<compile_context>
chip_gen: v6e
topology: v6e:2x2x1
jax: 0.10.0
libtpu: 0.0.40
codegen_flags: <defaults>
</compile_context>

<pallas_src>
import jax
import jax.numpy as jnp
import numpy as np
from jax.experimental import pallas as pl
from jax.experimental.pallas import tpu as pltpu

H = W = 16                      # spatial size handled by this kernel build
PH, PW = H + 2, W + 2           # zero-padded frame (18 x 18)
P = PH * PW                     # 324 flat padded pixels -> lane axis
C1 = 64                         # conv1 / conv2 output channels
C2 = 64
LEFT = 128                      # lane-aligned left halo inside scratch buffers
MAXOFF = PW + 1                 # 19 = max |3x3 tap offset| in flat coords
LBUF = 512                      # LEFT + P + right halo, padded to full vregs

# flat-frame offset of each 3x3 tap, row-major (dy, dx)
_TAPS = tuple((dy - 1) * PW + (dx - 1) for dy in range(3) for dx in range(3))
assert LEFT >= MAXOFF and LBUF >= LEFT + P + MAXOFF


def _fused_dip_kernel(r1_ref, w1t_ref, b1_ref, w2t_ref, b2_ref,
                      w3c_ref, b3_ref, mask_ref, out_ref, h1_ref, h2_ref):
    """One batch element: conv1+ReLU -> conv2+ReLU -> conv3, all in VMEM."""
    mask = mask_ref[...]                                     # (1, P) interior mask

    # ---- conv1: single im2col MXU matmul (Cout=64, K=9) ---------------------
    acc1 = jnp.dot(w1t_ref[...], r1_ref[0],
                   preferred_element_type=jnp.float32)       # (64, P)
    h1 = jnp.maximum(acc1 + b1_ref[...], 0.0) * mask         # zero frame border

    # Stash in halo buffer. Scratch persists across grid steps, so halo zeros
    # and the frame-border zeros are re-established every iteration.
    h1_ref[...] = jnp.zeros_like(h1_ref)
    h1_ref[:, LEFT:LEFT + P] = h1

    # ---- conv2: 9 shifted (64,64)x(64,P) MXU matmuls, fp32 accumulation -----
    acc2 = jnp.zeros((C2, P), dtype=jnp.float32)
    for j, off in enumerate(_TAPS):
        shifted = h1_ref[:, LEFT + off:LEFT + off + P]       # (64, P)
        acc2 = acc2 + jnp.dot(w2t_ref[j], shifted,
                              preferred_element_type=jnp.float32)
    h2 = jnp.maximum(acc2 + b2_ref[...], 0.0) * mask

    h2_ref[...] = jnp.zeros_like(h2_ref)
    h2_ref[:, LEFT:LEFT + P] = h2

    # ---- conv3 (Cout=1): VPU FMAs + one sublane reduction -> lane-dense row -
    part = jnp.zeros((C2, P), dtype=jnp.float32)
    for j, off in enumerate(_TAPS):
        shifted = h2_ref[:, LEFT + off:LEFT + off + P]       # (64, P)
        part = part + shifted * w3c_ref[:, j:j + 1]          # (64,P)*(64,1)
    y = jnp.sum(part, axis=0, keepdims=True) + b3_ref[...]   # (1, P)
    out_ref[0] = y


def _fused_call(r1, w1t, b1c, w2t, b2c, w3c, b3c, mask):
    n = r1.shape[0]
    return pl.pallas_call(
        _fused_dip_kernel,
        out_shape=jax.ShapeDtypeStruct((n, 1, P), jnp.float32),
        grid=(n,),
        in_specs=[
            pl.BlockSpec((1, 9, P), lambda i: (i, 0, 0)),     # per-batch im2col
            pl.BlockSpec((C1, 9), lambda i: (0, 0)),          # weights: VMEM-resident
            pl.BlockSpec((C1, 1), lambda i: (0, 0)),
            pl.BlockSpec((9, C2, C1), lambda i: (0, 0, 0)),
            pl.BlockSpec((C2, 1), lambda i: (0, 0)),
            pl.BlockSpec((C2, 9), lambda i: (0, 0)),
            pl.BlockSpec((1, 1), lambda i: (0, 0)),
            pl.BlockSpec((1, P), lambda i: (0, 0)),
        ],
        out_specs=pl.BlockSpec((1, 1, P), lambda i: (i, 0, 0)),
        scratch_shapes=[
            pltpu.VMEM((C1, LBUF), jnp.float32),              # padded h1
            pltpu.VMEM((C2, LBUF), jnp.float32),              # padded h2
        ],
        compiler_params=pltpu.CompilerParams(
            dimension_semantics=("parallel",)),
    )(r1, w1t, b1c, w2t, b2c, w3c, b3c, mask)


def init_params(key):
    """Deterministic synthetic init (PyTorch-like uniform(-1/sqrt(fan_in), .))."""
    def conv_init(k, cin, cout):
        k1, k2 = jax.random.split(k)
        bound = 1.0 / np.sqrt(cin * 9)
        w = jax.random.uniform(k1, (3, 3, cin, cout), jnp.float32, -bound, bound)
        b = jax.random.uniform(k2, (cout,), jnp.float32, -bound, bound)
        return w, b

    k1, k2, k3 = jax.random.split(key, 3)
    return {
        "conv1": conv_init(k1, 1, 64),
        "conv2": conv_init(k2, 64, 64),
        "conv3": conv_init(k3, 64, 1),
    }


@jax.jit
def simple_dip_forward(params, x_nchw):
    n = x_nchw.shape[0]
    w1, b1 = params["conv1"]        # (3,3,1,64), (64,)
    w2, b2 = params["conv2"]        # (3,3,64,64), (64,)
    w3, b3 = params["conv3"]        # (3,3,64,1), (1,)

    # im2col for conv1 (Cin=1): 9 shifted copies of the padded frame (tiny).
    x2 = x_nchw.reshape(n, H, W)
    xq = jnp.pad(x2, ((0, 0), (2, 2), (2, 2)))               # (n, 20, 20)
    r1 = jnp.stack([xq[:, dy:dy + PH, dx:dx + PW].reshape(n, P)
                    for dy in range(3) for dx in range(3)], axis=1)  # (n, 9, P)

    w1t = w1.reshape(9, C1).T                                 # (64, 9)
    w2t = jnp.transpose(w2.reshape(9, C1, C2), (0, 2, 1))     # (9, cout, cin)
    w3c = w3.reshape(9, C2).T                                 # (64, 9)
    mask = jnp.pad(jnp.ones((H, W), jnp.float32),
                   ((1, 1), (1, 1))).reshape(1, P)

    y = _fused_call(r1, w1t, b1.reshape(C1, 1), w2t, b2.reshape(C2, 1),
                    w3c, b3.reshape(1, 1), mask)              # (n, 1, P)
    y = y.reshape(n, PH, PW)[:, 1:1 + H, 1:1 + W]             # interior pixels
    return y.reshape(n, 1, H, W)                              # NCHW, like torch


def _ref_conv(x_nhwc, w_hwio, b, relu):
    y = jax.lax.conv_general_dilated(
        x_nhwc, w_hwio, window_strides=(1, 1), padding="SAME",
        dimension_numbers=("NHWC", "HWIO", "NHWC"))
    y = y + b
    return jnp.maximum(y, 0.0) if relu else y


def _reference_forward(params, x_nchw):
    x = jnp.transpose(x_nchw, (0, 2, 3, 1))
    w1, b1 = params["conv1"]
    w2, b2 = params["conv2"]
    w3, b3 = params["conv3"]
    x = _ref_conv(x, w1, b1, True)
    x = _ref_conv(x, w2, b2, True)
    x = _ref_conv(x, w3, b3, False)
    return jnp.transpose(x, (0, 3, 1, 2))


if __name__ == "__main__":
    key = jax.random.PRNGKey(0)
    pkey, xkey = jax.random.split(key)
    params = init_params(pkey)

    # PyTorch-style NCHW input: batch=2, channels=1 (required by conv1), 16x16
    x = jax.random.normal(xkey, (2, 1, 16, 16), dtype=jnp.float32)

    out = jax.block_until_ready(simple_dip_forward(params, x))

    ref = jax.block_until_ready(_reference_forward(params, x))
    np.testing.assert_allclose(np.asarray(out), np.asarray(ref),
                               rtol=1e-4, atol=1e-4)

    print("KERNEL_OK")
</pallas_src>

<mosaic_0001>
module attributes {stable_mosaic.version = 11 : i64} {
  func.func @_fused_dip_kernel(%arg0: i32, %arg1: memref<1x9x324xf32, #tpu.memory_space<vmem>>, %arg2: memref<64x9xf32, #tpu.memory_space<vmem>>, %arg3: memref<64x1xf32, #tpu.memory_space<vmem>>, %arg4: memref<9x64x64xf32, #tpu.memory_space<vmem>>, %arg5: memref<64x1xf32, #tpu.memory_space<vmem>>, %arg6: memref<64x9xf32, #tpu.memory_space<vmem>>, %arg7: memref<1x1xf32, #tpu.memory_space<vmem>>, %arg8: memref<1x324xf32, #tpu.memory_space<vmem>>, %arg9: memref<1x1x324xf32, #tpu.memory_space<vmem>>, %arg10: memref<64x512xf32, #tpu.memory_space<vmem>>, %arg11: memref<64x512xf32, #tpu.memory_space<vmem>>) attributes {dimension_semantics = [#tpu.dimension_semantics<parallel>], iteration_bounds = array<i64: 2>, scalar_prefetch = 0 : i64, scratch_operands = 2 : i64, tpu.core_type = #tpu.core_type<tc>, window_params = [{transform_indices = @transform_0, window_bounds = array<i64: 1, 9, 324>}, {pipeline_mode = #tpu.pipeline_mode<synchronous>, transform_indices = @transform_1, window_bounds = array<i64: 64, 9>}, {pipeline_mode = #tpu.pipeline_mode<synchronous>, transform_indices = @transform_2, window_bounds = array<i64: 64, 1>}, {pipeline_mode = #tpu.pipeline_mode<synchronous>, transform_indices = @transform_3, window_bounds = array<i64: 9, 64, 64>}, {pipeline_mode = #tpu.pipeline_mode<synchronous>, transform_indices = @transform_4, window_bounds = array<i64: 64, 1>}, {pipeline_mode = #tpu.pipeline_mode<synchronous>, transform_indices = @transform_5, window_bounds = array<i64: 64, 9>}, {pipeline_mode = #tpu.pipeline_mode<synchronous>, transform_indices = @transform_6, window_bounds = array<i64: 1, 1>}, {pipeline_mode = #tpu.pipeline_mode<synchronous>, transform_indices = @transform_7, window_bounds = array<i64: 1, 324>}, {transform_indices = @transform_8, window_bounds = array<i64: 1, 1, 324>}]} {
    %c0 = arith.constant 0 : index
    %c0_0 = arith.constant 0 : index
    %0 = vector.load %arg8[%c0, %c0_0] : memref<1x324xf32, #tpu.memory_space<vmem>>, vector<1x324xf32>
    %c0_1 = arith.constant 0 : index
    %c0_2 = arith.constant 0 : index
    %1 = vector.load %arg2[%c0_1, %c0_2] : memref<64x9xf32, #tpu.memory_space<vmem>>, vector<64x9xf32>
    %c0_3 = arith.constant 0 : index
    %c0_4 = arith.constant 0 : index
    %c0_5 = arith.constant 0 : index
    %2 = vector.load %arg1[%c0_3, %c0_4, %c0_5] : memref<1x9x324xf32, #tpu.memory_space<vmem>>, vector<1x9x324xf32>
    %3 = vector.shape_cast %2 : vector<1x9x324xf32> to vector<9x324xf32>
    %cst = arith.constant dense<0.000000e+00> : vector<64x324xf32>
    %4 = tpu.matmul %1, %3, %cst {dimension_numbers = #tpu.dot_dimension_numbers<[1], [0], [0], [1], [0, 0, 1, 1], [], []>} : vector<64x9xf32>, vector<9x324xf32>, vector<64x324xf32> -> vector<64x324xf32>
    %c0_6 = arith.constant 0 : index
    %c0_7 = arith.constant 0 : index
    %5 = vector.load %arg3[%c0_6, %c0_7] : memref<64x1xf32, #tpu.memory_space<vmem>>, vector<64x1xf32>
    %6 = vector.broadcast %5 : vector<64x1xf32> to vector<64x324xf32>
    %7 = arith.addf %4, %6 : vector<64x324xf32>
    %cst_8 = arith.constant 0.000000e+00 : f32
    %8 = vector.broadcast %cst_8 : f32 to vector<64x324xf32>
    %9 = arith.maximumf %7, %8 : vector<64x324xf32>
    %10 = vector.broadcast %0 : vector<1x324xf32> to vector<64x324xf32>
    %11 = arith.mulf %9, %10 : vector<64x324xf32>
    %cst_9 = arith.constant 0.000000e+00 : f32
    %12 = vector.broadcast %cst_9 : f32 to vector<64x512xf32>
    %c0_10 = arith.constant 0 : index
    %c0_11 = arith.constant 0 : index
    %13 = vector.load %arg10[%c0_10, %c0_11] : memref<64x512xf32, #tpu.memory_space<vmem>>, vector<64x512xf32>
    tpu.vector_store %arg10[%c0_10, %c0_11], %12 {strides = array<i32>} : memref<64x512xf32, #tpu.memory_space<vmem>>, vector<64x512xf32>,
    %c0_12 = arith.constant 0 : index
    %c128 = arith.constant 128 : index
    %14 = vector.load %arg10[%c0_12, %c128] : memref<64x512xf32, #tpu.memory_space<vmem>>, vector<64x324xf32>
    tpu.vector_store %arg10[%c0_12, %c128], %11 {strides = array<i32>} : memref<64x512xf32, #tpu.memory_space<vmem>>, vector<64x324xf32>,
    %cst_13 = arith.constant 0.000000e+00 : f32
    %15 = vector.broadcast %cst_13 : f32 to vector<64x324xf32>
    %c0_14 = arith.constant 0 : index
    %c109 = arith.constant 109 : index
    %16 = vector.load %arg10[%c0_14, %c109] : memref<64x512xf32, #tpu.memory_space<vmem>>, vector<64x324xf32>
    %c0_15 = arith.constant 0 : index
    %c0_16 = arith.constant 0 : index
    %c0_17 = arith.constant 0 : index
    %17 = vector.load %arg4[%c0_15, %c0_16, %c0_17] : memref<9x64x64xf32, #tpu.memory_space<vmem>>, vector<1x64x64xf32>
    %18 = vector.shape_cast %17 : vector<1x64x64xf32> to vector<64x64xf32>
    %cst_18 = arith.constant dense<0.000000e+00> : vector<64x324xf32>
    %19 = tpu.matmul %18, %16, %cst_18 {dimension_numbers = #tpu.dot_dimension_numbers<[1], [0], [0], [1], [0, 0, 1, 1], [], []>} : vector<64x64xf32>, vector<64x324xf32>, vector<64x324xf32> -> vector<64x324xf32>
    %20 = arith.addf %15, %19 : vector<64x324xf32>
    %c0_19 = arith.constant 0 : index
    %c110 = arith.constant 110 : index
    %21 = vector.load %arg10[%c0_19, %c110] : memref<64x512xf32, #tpu.memory_space<vmem>>, vector<64x324xf32>
    %c1 = arith.constant 1 : index
    %c0_20 = arith.constant 0 : index
    %c0_21 = arith.constant 0 : index
    %22 = vector.load %arg4[%c1, %c0_20, %c0_21] : memref<9x64x64xf32, #tpu.memory_space<vmem>>, vector<1x64x64xf32>
    %23 = vector.shape_cast %22 : vector<1x64x64xf32> to vector<64x64xf32>
    %cst_22 = arith.constant dense<0.000000e+00> : vector<64x324xf32>
    %24 = tpu.matmul %23, %21, %cst_22 {dimension_numbers = #tpu.dot_dimension_numbers<[1], [0], [0], [1], [0, 0, 1, 1], [], []>} : vector<64x64xf32>, vector<64x324xf32>, vector<64x324xf32> -> vector<64x324xf32>
    %25 = arith.addf %20, %24 : vector<64x324xf32>
    %c0_23 = arith.constant 0 : index
    %c111 = arith.constant 111 : index
    %26 = vector.load %arg10[%c0_23, %c111] : memref<64x512xf32, #tpu.memory_space<vmem>>, vector<64x324xf32>
    %c2 = arith.constant 2 : index
    %c0_24 = arith.constant 0 : index
    %c0_25 = arith.constant 0 : index
    %27 = vector.load %arg4[%c2, %c0_24, %c0_25] : memref<9x64x64xf32, #tpu.memory_space<vmem>>, vector<1x64x64xf32>
    %28 = vector.shape_cast %27 : vector<1x64x64xf32> to vector<64x64xf32>
    %cst_26 = arith.constant dense<0.000000e+00> : vector<64x324xf32>
    %29 = tpu.matmul %28, %26, %cst_26 {dimension_numbers = #tpu.dot_dimension_numbers<[1], [0], [0], [1], [0, 0, 1, 1], [], []>} : vector<64x64xf32>, vector<64x324xf32>, vector<64x324xf32> -> vector<64x324xf32>
    %30 = arith.addf %25, %29 : vector<64x324xf32>
    %c0_27 = arith.constant 0 : index
    %c127 = arith.constant 127 : index
    %31 = vector.load %arg10[%c0_27, %c127] : memref<64x512xf32, #tpu.memory_space<vmem>>, vector<64x324xf32>
    %c3 = arith.constant 3 : index
    %c0_28 = arith.constant 0 : index
    %c0_29 = arith.constant 0 : index
    %32 = vector.load %arg4[%c3, %c0_28, %c0_29] : memref<9x64x64xf32, #tpu.memory_space<vmem>>, vector<1x64x64xf32>
    %33 = vector.shape_cast %32 : vector<1x64x64xf32> to vector<64x64xf32>
    %cst_30 = arith.constant dense<0.000000e+00> : vector<64x324xf32>
    %34 = tpu.matmul %33, %31, %cst_30 {dimension_numbers = #tpu.dot_dimension_numbers<[1], [0], [0], [1], [0, 0, 1, 1], [], []>} : vector<64x64xf32>, vector<64x324xf32>, vector<64x324xf32> -> vector<64x324xf32>
    %35 = arith.addf %30, %34 : vector<64x324xf32>
    %c0_31 = arith.constant 0 : index
    %c128_32 = arith.constant 128 : index
    %36 = vector.load %arg10[%c0_31, %c128_32] : memref<64x512xf32, #tpu.memory_space<vmem>>, vector<64x324xf32>
    %c4 = arith.constant 4 : index
    %c0_33 = arith.constant 0 : index
    %c0_34 = arith.constant 0 : index
    %37 = vector.load %arg4[%c4, %c0_33, %c0_34] : memref<9x64x64xf32, #tpu.memory_space<vmem>>, vector<1x64x64xf32>
    %38 = vector.shape_cast %37 : vector<1x64x64xf32> to vector<64x64xf32>
    %cst_35 = arith.constant dense<0.000000e+00> : vector<64x324xf32>
    %39 = tpu.matmul %38, %36, %cst_35 {dimension_numbers = #tpu.dot_dimension_numbers<[1], [0], [0], [1], [0, 0, 1, 1], [], []>} : vector<64x64xf32>, vector<64x324xf32>, vector<64x324xf32> -> vector<64x324xf32>
    %40 = arith.addf %35, %39 : vector<64x324xf32>
    %c0_36 = arith.constant 0 : index
    %c129 = arith.constant 129 : index
    %41 = vector.load %arg10[%c0_36, %c129] : memref<64x512xf32, #tpu.memory_space<vmem>>, vector<64x324xf32>
    %c5 = arith.constant 5 : index
    %c0_37 = arith.constant 0 : index
    %c0_38 = arith.constant 0 : index
    %42 = vector.load %arg4[%c5, %c0_37, %c0_38] : memref<9x64x64xf32, #tpu.memory_space<vmem>>, vector<1x64x64xf32>
    %43 = vector.shape_cast %42 : vector<1x64x64xf32> to vector<64x64xf32>
    %cst_39 = arith.constant dense<0.000000e+00> : vector<64x324xf32>
    %44 = tpu.matmul %43, %41, %cst_39 {dimension_numbers = #tpu.dot_dimension_numbers<[1], [0], [0], [1], [0, 0, 1, 1], [], []>} : vector<64x64xf32>, vector<64x324xf32>, vector<64x324xf32> -> vector<64x324xf32>
    %45 = arith.addf %40, %44 : vector<64x324xf32>
    %c0_40 = arith.constant 0 : index
    %c145 = arith.constant 145 : index
    %46 = vector.load %arg10[%c0_40, %c145] : memref<64x512xf32, #tpu.memory_space<vmem>>, vector<64x324xf32>
    %c6 = arith.constant 6 : index
    %c0_41 = arith.constant 0 : index
    %c0_42 = arith.constant 0 : index
    %47 = vector.load %arg4[%c6, %c0_41, %c0_42] : memref<9x64x64xf32, #tpu.memory_space<vmem>>, vector<1x64x64xf32>
    %48 = vector.shape_cast %47 : vector<1x64x64xf32> to vector<64x64xf32>
    %cst_43 = arith.constant dense<0.000000e+00> : vector<64x324xf32>
    %49 = tpu.matmul %48, %46, %cst_43 {dimension_numbers = #tpu.dot_dimension_numbers<[1], [0], [0], [1], [0, 0, 1, 1], [], []>} : vector<64x64xf32>, vector<64x324xf32>, vector<64x324xf32> -> vector<64x324xf32>
    %50 = arith.addf %45, %49 : vector<64x324xf32>
    %c0_44 = arith.constant 0 : index
    %c146 = arith.constant 146 : index
    %51 = vector.load %arg10[%c0_44, %c146] : memref<64x512xf32, #tpu.memory_space<vmem>>, vector<64x324xf32>
    %c7 = arith.constant 7 : index
    %c0_45 = arith.constant 0 : index
    %c0_46 = arith.constant 0 : index
    %52 = vector.load %arg4[%c7, %c0_45, %c0_46] : memref<9x64x64xf32, #tpu.memory_space<vmem>>, vector<1x64x64xf32>
    %53 = vector.shape_cast %52 : vector<1x64x64xf32> to vector<64x64xf32>
    %cst_47 = arith.constant dense<0.000000e+00> : vector<64x324xf32>
    %54 = tpu.matmul %53, %51, %cst_47 {dimension_numbers = #tpu.dot_dimension_numbers<[1], [0], [0], [1], [0, 0, 1, 1], [], []>} : vector<64x64xf32>, vector<64x324xf32>, vector<64x324xf32> -> vector<64x324xf32>
    %55 = arith.addf %50, %54 : vector<64x324xf32>
    %c0_48 = arith.constant 0 : index
    %c147 = arith.constant 147 : index
    %56 = vector.load %arg10[%c0_48, %c147] : memref<64x512xf32, #tpu.memory_space<vmem>>, vector<64x324xf32>
    %c8 = arith.constant 8 : index
    %c0_49 = arith.constant 0 : index
    %c0_50 = arith.constant 0 : index
    %57 = vector.load %arg4[%c8, %c0_49, %c0_50] : memref<9x64x64xf32, #tpu.memory_space<vmem>>, vector<1x64x64xf32>
    %58 = vector.shape_cast %57 : vector<1x64x64xf32> to vector<64x64xf32>
    %cst_51 = arith.constant dense<0.000000e+00> : vector<64x324xf32>
    %59 = tpu.matmul %58, %56, %cst_51 {dimension_numbers = #tpu.dot_dimension_numbers<[1], [0], [0], [1], [0, 0, 1, 1], [], []>} : vector<64x64xf32>, vector<64x324xf32>, vector<64x324xf32> -> vector<64x324xf32>
    %60 = arith.addf %55, %59 : vector<64x324xf32>
    %c0_52 = arith.constant 0 : index
    %c0_53 = arith.constant 0 : index
    %61 = vector.load %arg5[%c0_52, %c0_53] : memref<64x1xf32, #tpu.memory_space<vmem>>, vector<64x1xf32>
    %62 = vector.broadcast %61 : vector<64x1xf32> to vector<64x324xf32>
    %63 = arith.addf %60, %62 : vector<64x324xf32>
    %cst_54 = arith.constant 0.000000e+00 : f32
    %64 = vector.broadcast %cst_54 : f32 to vector<64x324xf32>
    %65 = arith.maximumf %63, %64 : vector<64x324xf32>
    %66 = vector.broadcast %0 : vector<1x324xf32> to vector<64x324xf32>
    %67 = arith.mulf %65, %66 : vector<64x324xf32>
    %cst_55 = arith.constant 0.000000e+00 : f32
    %68 = vector.broadcast %cst_55 : f32 to vector<64x512xf32>
    %c0_56 = arith.constant 0 : index
    %c0_57 = arith.constant 0 : index
    %69 = vector.load %arg11[%c0_56, %c0_57] : memref<64x512xf32, #tpu.memory_space<vmem>>, vector<64x512xf32>
    tpu.vector_store %arg11[%c0_56, %c0_57], %68 {strides = array<i32>} : memref<64x512xf32, #tpu.memory_space<vmem>>, vector<64x512xf32>,
    %c0_58 = arith.constant 0 : index
    %c128_59 = arith.constant 128 : index
    %70 = vector.load %arg11[%c0_58, %c128_59] : memref<64x512xf32, #tpu.memory_space<vmem>>, vector<64x324xf32>
    tpu.vector_store %arg11[%c0_58, %c128_59], %67 {strides = array<i32>} : memref<64x512xf32, #tpu.memory_space<vmem>>, vector<64x324xf32>,
    %cst_60 = arith.constant 0.000000e+00 : f32
    %71 = vector.broadcast %cst_60 : f32 to vector<64x324xf32>
    %c0_61 = arith.constant 0 : index
    %c109_62 = arith.constant 109 : index
    %72 = vector.load %arg11[%c0_61, %c109_62] : memref<64x512xf32, #tpu.memory_space<vmem>>, vector<64x324xf32>
    %c0_63 = arith.constant 0 : index
    %c0_64 = arith.constant 0 : index
    %73 = vector.load %arg6[%c0_63, %c0_64] : memref<64x9xf32, #tpu.memory_space<vmem>>, vector<64x1xf32>
    %74 = vector.broadcast %73 : vector<64x1xf32> to vector<64x324xf32>
    %75 = arith.mulf %72, %74 : vector<64x324xf32>
    %76 = arith.addf %71, %75 : vector<64x324xf32>
    %c0_65 = arith.constant 0 : index
    %c110_66 = arith.constant 110 : index
    %77 = vector.load %arg11[%c0_65, %c110_66] : memref<64x512xf32, #tpu.memory_space<vmem>>, vector<64x324xf32>
    %c0_67 = arith.constant 0 : index
    %c1_68 = arith.constant 1 : index
    %78 = vector.load %arg6[%c0_67, %c1_68] : memref<64x9xf32, #tpu.memory_space<vmem>>, vector<64x1xf32>
    %79 = vector.broadcast %78 : vector<64x1xf32> to vector<64x324xf32>
    %80 = arith.mulf %77, %79 : vector<64x324xf32>
    %81 = arith.addf %76, %80 : vector<64x324xf32>
    %c0_69 = arith.constant 0 : index
    %c111_70 = arith.constant 111 : index
    %82 = vector.load %arg11[%c0_69, %c111_70] : memref<64x512xf32, #tpu.memory_space<vmem>>, vector<64x324xf32>
    %c0_71 = arith.constant 0 : index
    %c2_72 = arith.constant 2 : index
    %83 = vector.load %arg6[%c0_71, %c2_72] : memref<64x9xf32, #tpu.memory_space<vmem>>, vector<64x1xf32>
    %84 = vector.broadcast %83 : vector<64x1xf32> to vector<64x324xf32>
    %85 = arith.mulf %82, %84 : vector<64x324xf32>
    %86 = arith.addf %81, %85 : vector<64x324xf32>
    %c0_73 = arith.constant 0 : index
    %c127_74 = arith.constant 127 : index
    %87 = vector.load %arg11[%c0_73, %c127_74] : memref<64x512xf32, #tpu.memory_space<vmem>>, vector<64x324xf32>
    %c0_75 = arith.constant 0 : index
    %c3_76 = arith.constant 3 : index
    %88 = vector.load %arg6[%c0_75, %c3_76] : memref<64x9xf32, #tpu.memory_space<vmem>>, vector<64x1xf32>
    %89 = vector.broadcast %88 : vector<64x1xf32> to vector<64x324xf32>
    %90 = arith.mulf %87, %89 : vector<64x324xf32>
    %91 = arith.addf %86, %90 : vector<64x324xf32>
    %c0_77 = arith.constant 0 : index
    %c128_78 = arith.constant 128 : index
    %92 = vector.load %arg11[%c0_77, %c128_78] : memref<64x512xf32, #tpu.memory_space<vmem>>, vector<64x324xf32>
    %c0_79 = arith.constant 0 : index
    %c4_80 = arith.constant 4 : index
    %93 = vector.load %arg6[%c0_79, %c4_80] : memref<64x9xf32, #tpu.memory_space<vmem>>, vector<64x1xf32>
    %94 = vector.broadcast %93 : vector<64x1xf32> to vector<64x324xf32>
    %95 = arith.mulf %92, %94 : vector<64x324xf32>
    %96 = arith.addf %91, %95 : vector<64x324xf32>
    %c0_81 = arith.constant 0 : index
    %c129_82 = arith.constant 129 : index
    %97 = vector.load %arg11[%c0_81, %c129_82] : memref<64x512xf32, #tpu.memory_space<vmem>>, vector<64x324xf32>
    %c0_83 = arith.constant 0 : index
    %c5_84 = arith.constant 5 : index
    %98 = vector.load %arg6[%c0_83, %c5_84] : memref<64x9xf32, #tpu.memory_space<vmem>>, vector<64x1xf32>
    %99 = vector.broadcast %98 : vector<64x1xf32> to vector<64x324xf32>
    %100 = arith.mulf %97, %99 : vector<64x324xf32>
    %101 = arith.addf %96, %100 : vector<64x324xf32>
    %c0_85 = arith.constant 0 : index
    %c145_86 = arith.constant 145 : index
    %102 = vector.load %arg11[%c0_85, %c145_86] : memref<64x512xf32, #tpu.memory_space<vmem>>, vector<64x324xf32>
    %c0_87 = arith.constant 0 : index
    %c6_88 = arith.constant 6 : index
    %103 = vector.load %arg6[%c0_87, %c6_88] : memref<64x9xf32, #tpu.memory_space<vmem>>, vector<64x1xf32>
    %104 = vector.broadcast %103 : vector<64x1xf32> to vector<64x324xf32>
    %105 = arith.mulf %102, %104 : vector<64x324xf32>
    %106 = arith.addf %101, %105 : vector<64x324xf32>
    %c0_89 = arith.constant 0 : index
    %c146_90 = arith.constant 146 : index
    %107 = vector.load %arg11[%c0_89, %c146_90] : memref<64x512xf32, #tpu.memory_space<vmem>>, vector<64x324xf32>
    %c0_91 = arith.constant 0 : index
    %c7_92 = arith.constant 7 : index
    %108 = vector.load %arg6[%c0_91, %c7_92] : memref<64x9xf32, #tpu.memory_space<vmem>>, vector<64x1xf32>
    %109 = vector.broadcast %108 : vector<64x1xf32> to vector<64x324xf32>
    %110 = arith.mulf %107, %109 : vector<64x324xf32>
    %111 = arith.addf %106, %110 : vector<64x324xf32>
    %c0_93 = arith.constant 0 : index
    %c147_94 = arith.constant 147 : index
    %112 = vector.load %arg11[%c0_93, %c147_94] : memref<64x512xf32, #tpu.memory_space<vmem>>, vector<64x324xf32>
    %c0_95 = arith.constant 0 : index
    %c8_96 = arith.constant 8 : index
    %113 = vector.load %arg6[%c0_95, %c8_96] : memref<64x9xf32, #tpu.memory_space<vmem>>, vector<64x1xf32>
    %114 = vector.broadcast %113 : vector<64x1xf32> to vector<64x324xf32>
    %115 = arith.mulf %112, %114 : vector<64x324xf32>
    %116 = arith.addf %111, %115 : vector<64x324xf32>
    %cst_97 = arith.constant dense<0.000000e+00> : vector<324xf32>
    %117 = vector.multi_reduction <add>, %116, %cst_97 [0] : vector<64x324xf32> to vector<324xf32>
    %118 = vector.shape_cast %117 : vector<324xf32> to vector<1x324xf32>
    %c0_98 = arith.constant 0 : index
    %c0_99 = arith.constant 0 : index
    %119 = vector.load %arg7[%c0_98, %c0_99] : memref<1x1xf32, #tpu.memory_space<vmem>>, vector<1x1xf32>
    %120 = vector.broadcast %119 : vector<1x1xf32> to vector<1x324xf32>
    %121 = arith.addf %118, %120 : vector<1x324xf32>
    %c0_100 = arith.constant 0 : index
    %c0_101 = arith.constant 0 : index
    %c0_102 = arith.constant 0 : index
    %122 = vector.load %arg9[%c0_100, %c0_101, %c0_102] : memref<1x1x324xf32, #tpu.memory_space<vmem>>, vector<1x1x324xf32>
    %123 = vector.shape_cast %122 : vector<1x1x324xf32> to vector<1x324xf32>
    %124 = vector.shape_cast %121 : vector<1x324xf32> to vector<1x1x324xf32>
    tpu.vector_store %arg9[%c0_100, %c0_101, %c0_102], %124 {strides = array<i32>} : memref<1x1x324xf32, #tpu.memory_space<vmem>>, vector<1x1x324xf32>,
    return
  }
  func.func @transform_0(%arg0: i32) -> (i32, i32, i32) {
    %c0_i32 = arith.constant 0 : i32
    %c0_i32_0 = arith.constant 0 : i32
    %c0_i32_1 = arith.constant 0 : i32
    return %arg0, %c0_i32, %c0_i32_0 : i32, i32, i32
  }
  func.func @transform_1(%arg0: i32) -> (i32, i32) {
    %c0_i32 = arith.constant 0 : i32
    %c0_i32_0 = arith.constant 0 : i32
    %c0_i32_1 = arith.constant 0 : i32
    return %c0_i32, %c0_i32_0 : i32, i32
  }
  func.func @transform_2(%arg0: i32) -> (i32, i32) {
    %c0_i32 = arith.constant 0 : i32
    %c0_i32_0 = arith.constant 0 : i32
    %c0_i32_1 = arith.constant 0 : i32
    return %c0_i32, %c0_i32_0 : i32, i32
  }
  func.func @transform_3(%arg0: i32) -> (i32, i32, i32) {
    %c0_i32 = arith.constant 0 : i32
    %c0_i32_0 = arith.constant 0 : i32
    %c0_i32_1 = arith.constant 0 : i32
    %c0_i32_2 = arith.constant 0 : i32
    return %c0_i32, %c0_i32_0, %c0_i32_1 : i32, i32, i32
  }
  func.func @transform_4(%arg0: i32) -> (i32, i32) {
    %c0_i32 = arith.constant 0 : i32
    %c0_i32_0 = arith.constant 0 : i32
    %c0_i32_1 = arith.constant 0 : i32
    return %c0_i32, %c0_i32_0 : i32, i32
  }
  func.func @transform_5(%arg0: i32) -> (i32, i32) {
    %c0_i32 = arith.constant 0 : i32
    %c0_i32_0 = arith.constant 0 : i32
    %c0_i32_1 = arith.constant 0 : i32
    return %c0_i32, %c0_i32_0 : i32, i32
  }
  func.func @transform_6(%arg0: i32) -> (i32, i32) {
    %c0_i32 = arith.constant 0 : i32
    %c0_i32_0 = arith.constant 0 : i32
    %c0_i32_1 = arith.constant 0 : i32
    return %c0_i32, %c0_i32_0 : i32, i32
  }
  func.func @transform_7(%arg0: i32) -> (i32, i32) {
    %c0_i32 = arith.constant 0 : i32
    %c0_i32_0 = arith.constant 0 : i32
    %c0_i32_1 = arith.constant 0 : i32
    return %c0_i32, %c0_i32_0 : i32, i32
  }
  func.func @transform_8(%arg0: i32) -> (i32, i32, i32) {
    %c0_i32 = arith.constant 0 : i32
    %c0_i32_0 = arith.constant 0 : i32
    %c0_i32_1 = arith.constant 0 : i32
    return %arg0, %c0_i32, %c0_i32_0 : i32, i32, i32
  }
}

</mosaic_0001>

<bundles_post_ra>
// kernel: simple_dip_forward.1
= control target key start
LH: loop header
LB: loop body
LE: loop exit
PB: predicated region body
PF: predicated region fallthrough
CT: control target
= control target key end

     0   :  { %s7268_s29 = smov 0   ;;  %s12040_s0 = inlined_call_operand.vmem [shape: f32[2,9,324], index: 0, kind: input, shape index: {}]   ;;  %s12041_s1 = inlined_call_operand.vmem [shape: f32[64,9], index: 1, kind: input, shape index: {}]   ;;  %s12042_s2 = inlined_call_operand.vmem [shape: f32[64,1], index: 2, kind: input, shape index: {}]   ;;  %s12043_s3 = inlined_call_operand.vmem [shape: f32[9,64,64], index: 3, kind: input, shape index: {}]   ;;  %s12044_s4 = inlined_call_operand.vmem [shape: f32[64,1], index: 4, kind: input, shape index: {}]   ;;  %s12045_s5 = inlined_call_operand.vmem [shape: f32[64,9], index: 5, kind: input, shape index: {}]   ;;  %s12046_s6 = inlined_call_operand.<no memory space> [shape: f32[1,1], index: 6, kind: input, shape index: {}]   ;;  %s12047_s7 = inlined_call_operand.vmem [shape: f32[1,324], index: 7, kind: input, shape index: {}]   ;;  %s12048_s8 = inlined_call_operand.vmem [shape: f32[2,1,324], index: 8, kind: output, shape index: {}]  }
   0x1   :  { %v13_v0 = vstv %s12046_s6 }
   0x2   :  { %14 = vst [vmem:[#allocation4] sm:$0x1] %v13_v0 }
   0x3 LB: > { %s6326_s30 = sadd.s32 4294967295, %s7194_s29   ;;  %p6330_p0 = scmp.ge.s32.totalorder %s7194_s29, 1  ;;  %s7194_s29 = sphi %s7268_s29, %s20_s29  }
   0x4   : > { %p264_p1 = scmp.lt.s32.totalorder %s7194_s29, 3 }
   0x6   : > { %p265_p2 = pnand %p6330_p0, %p264_p1 }
   0x8   : > { %268 = sbr.rel (%p265_p2) target bundleno = 2073 (0x819), region = 52 }
   0xd   : > { %p7276_p3 = scmp.lt.s32.totalorder %s6326_s30, 1  ;;  %v307_v1 = vld [vmem:[%s12041_s1] sm:$0xff]  ;;  %vm369_vm0 = vcmask 72704   ;;  %v7196_v2 = vmov 0.0   ;;  %v12051_v3 = vmov 0   ;;  %v323_v5 = vld [vmem:[%s12042_s2 + $0x10] sm:$0xff]  ;;  %v12049_v25 = vlaneseq }
   0xe   : > { %468 = vmatprep.mubr.f32.mxu0 %v7196_v2  ;;  %686 = vst [vmem:[#allocation2] sm:$0xff] %v7196_v2  ;;  %689 = vst [vmem:[#allocation2 + $0x18] sm:$0xff] %v7196_v2  ;;  %6719 = vmatprep.mubr.msk.f32.mxu1 %vm369_vm0, %v307_v1  ;;  %v321_v4 = vld [vmem:[%s12042_s2] sm:$0xff]  ;;  %vm394_vm1 = vcmask 1040384   ;;  %v308_v12 = vld [vmem:[%s12041_s1 + $0x8] sm:$0xff]  ;;  %s7198_s24 = smov 18  }
   0xf   : > { %693 = vst [vmem:[#allocation2 + $0x38] sm:$0xff] %v7196_v2  ;;  %697 = vst [vmem:[#allocation2 + $0x58] sm:$0xff] %v7196_v2  ;;  %s12865_s30 = smov (!%p7276_p3, %s6326_s30), 1  ;;  %7017 = vset.pattern.permute.xlu0 %v12051_v3  ;;  %7018 = vset.pattern.permute.xlu1 %v12051_v3  ;;  %v309_v13 = vld [vmem:[%s12041_s1 + $0x10] sm:$0xff]  ;;  %v322_v14 = vld [vmem:[%s12042_s2 + $0x8] sm:$0xff]  ;;  %s7199_s25 = smov 19  }
  0x10   : > { %701 = vst [vmem:[#allocation2 + $0x78] sm:$0xff] %v7196_v2  ;;  %705 = vst [vmem:[#allocation2 + $0x98] sm:$0xff] %v7196_v2  ;;  %s6983_s13 = smul.u32 48, %s12865_s30  ;;  %331 = vperm.xlu0 %7017, %v321_v4   ;;  %341 = vperm.xlu1 %7018, %v323_v5   ;;  %v324_v15 = vld [vmem:[%s12042_s2 + $0x18] sm:$0xff]  ;;  %v311_v17 = vld [vmem:[%s12041_s1 + $0x20] sm:$0xff]  ;;  %s7200_s26 = smov 17  }
  0x11   : > { %709 = vst [vmem:[#allocation2 + $0xb8] sm:$0xff] %v7196_v2  ;;  %713 = vst [vmem:[#allocation2 + $0xd8] sm:$0xff] %v7196_v2  ;;  %v310_v16 = vld [vmem:[%s12041_s1 + $0x18] sm:$0xff]  ;;  %v325_v18 = vld [vmem:[%s12042_s2 + $0x20] sm:$0xff]  ;;  %s7201_s27 = smov 1   ;;  %v7413_v27 = vshrl.u32 %v12049_v25, 7 }
  0x12   : > { %717 = vst [vmem:[#allocation2 + $0xf8] sm:$0xff] %v7196_v2  ;;  %4165 = vst [vmem:[#allocation3 + $0x18] sm:$0xff] %v7196_v2  ;;  %s301_s18 = scalar_lea.vmem %s12040_s0, %s6983_s13  ;;  %v326_v19 = vld [vmem:[%s12042_s2 + $0x28] sm:$0xff]  ;;  %v313_v21 = vld [vmem:[%s12041_s1 + $0x30] sm:$0xff]  ;;  %vm720_vm2 = vcmask 556032   ;;  %s7202_s6 = smov 127  }
  0x13   : > { %4169 = vst [vmem:[#allocation3 + $0x38] sm:$0xff] %v7196_v2  ;;  %4173 = vst [vmem:[#allocation3 + $0x58] sm:$0xff] %v7196_v2  ;;  %v319_v6 = vld [vmem:[%s301_s18 + $0x20] sm:$0x1]  ;;  %v320_v7 = vld [vmem:[%s301_s18 + $0x28] sm:$0x1] }
  0x14   : > { %4177 = vst [vmem:[#allocation3 + $0x78] sm:$0xff] %v7196_v2  ;;  %4181 = vst [vmem:[#allocation3 + $0x98] sm:$0xff] %v7196_v2  ;;  %v318_v8 = vld [vmem:[%s301_s18 + $0x18] sm:$0x1]  ;;  %6332 = vmatprep.subr.msk.mxu0 %vm394_vm1, %v319_v6  ;;  %6715 = vmatprep.subr.msk.mxu1 %vm394_vm1, %v320_v7  ;;  %v316_v9 = vld [vmem:[%s301_s18 + $0x8] sm:$0xff]  ;;  %v12050_v29 = vsub.s32 0, %v7413_v27 }
  0x15   : > { %4185 = vst [vmem:[#allocation3 + $0xb8] sm:$0xff] %v7196_v2  ;;  %4189 = vst [vmem:[#allocation3 + $0xd8] sm:$0xff] %v7196_v2  ;;  %v317_v10 = vld [vmem:[%s301_s18 + $0x10] sm:$0xff]  ;;  %v315_v11 = vld [vmem:[%s301_s18] sm:$0xff]  ;;  %6333 = vmatpush1.msk.msra.mxu0 %vm394_vm1, %v318_v8  ;;  %6716 = vmatpush3.msk.msra.mxu1 %vm394_vm1, %v320_v7  ;;  %v657_v30 = vsub.s32 2, %v7413_v27  ;;  %v653_v32 = vsub.s32 1, %v7413_v27 }
  0x16   : > { %4193 = vst [vmem:[#allocation3 + $0xf8] sm:$0xff] %v7196_v2  ;;  %434 = vmatprep.subr.mxu0 %v316_v9  ;;  %6717 = vmatprep.subr.mxu1 %v317_v10  ;;  %v312_v20 = vld [vmem:[%s12041_s1 + $0x28] sm:$0xff]  ;;  %v327_v22 = vld [vmem:[%s12042_s2 + $0x30] sm:$0xff]  ;;  %v328_v23 = vld [vmem:[%s12042_s2 + $0x38] sm:$0xff]  ;;  %vm937_vm3 = vcmask 523264   ;;  %s7203_s12 = smov 111  }
  0x17   : > { %435 = vmatpush1.msra.mxu0 %v315_v11  ;;  %6718 = vmatpush3.msra.mxu1 %v317_v10  ;;  %v314_v24 = vld [vmem:[%s12041_s1 + $0x38] sm:$0xff]  ;;  %12293 = vst [vmem:[#allocation5_spill] sm:$0xff] %v7413_v27  ;;  %v306_v31 = vld [vmem:[%s12047_s7] sm:$0x7]  ;;  %s7204_s13 = smov 110   ;;  %vm888_vm4 = vcmask 146432  }
  0x18   : > { %6334 = vmatmul.mubr.msk.f32.vlgmr.msra.gmra.mxu0 %vm369_vm0, %v307_v1  ;;  %6720 = vmatmul.mubr.msk.f32.vlgmr.msra.gmra.mxu1 %vm369_vm0, %v308_v12  ;;  %v7425_v38 = vrot.slane %v306_v31, %v12050_v29  ;;  %v7427_v40 = vrot.slane %v306_v31, %v657_v30  ;;  %v7429_v42 = vrot.slane %v306_v31, %v653_v32  ;;  %vm1244_vm5 = vcmask 154624   ;;  %s7205_s11 = smov 109   ;;  %s7210_s17 = smov 126  }
  0x19   : > { %474 = vmatprep.mubr.f32.mxu0 %v7196_v2  ;;  %6722 = vmatprep.mubr.msk.f32.mxu1 %vm369_vm0, %v309_v13  ;;  %vm1608_vm6 = vcmask 138240   ;;  %vm1996_vm7 = vcmask 7168   ;;  %vm2643_vm8 = vcmask 1039360   ;;  %vm3007_vm9 = vcmask 908288   ;;  %s7212_s18 = smov 108   ;;  %s7217_s16 = smov 91  }
  0x1a   : > { %336 = vperm.xlu0 %7017, %v322_v14   ;;  %346 = vperm.xlu1 %7018, %v324_v15   ;;  %12294 = vst [vmem:[#allocation6_spill] sm:$0xff] %v7425_v38  ;;  %12295 = vst [vmem:[#allocation7_spill] sm:$0xff] %v7427_v40  ;;  %vm3371_vm10 = vcmask 900096   ;;  %vm3735_vm11 = vcmask 891904   ;;  %vm4770_vm12 = vcmask 1031168   ;;  %vm5443_vm13 = vcmask 883712  }
  0x1b   : > { %12296 = vst [vmem:[#allocation8_spill] sm:$0xff] %v7429_v42  ;;  %vm5652_vm14 = vcmask 752640   ;;  %vm5861_vm15 = vcmask 744448   ;;  %vm6151_vm1 = vcmask 1048424  }
  0x1c   : > { %6335 = vmatmul.mubr.msk.f32.gmra.mxu0 %vm369_vm0, %v308_v12  ;;  %6723 = vmatmul.mubr.msk.f32.gmra.mxu1 %vm369_vm0, %v310_v16 }
  0x1d   : > { %480 = vmatprep.mubr.f32.mxu0 %v7196_v2  ;;  %6725 = vmatprep.mubr.msk.f32.mxu1 %vm369_vm0, %v311_v17 }
  0x1e   : > { %351 = vperm.xlu0 %7017, %v325_v18   ;;  %356 = vperm.xlu1 %7018, %v326_v19  }
  0x20   : > { %6336 = vmatmul.mubr.msk.f32.gmra.mxu0 %vm369_vm0, %v309_v13  ;;  %6726 = vmatmul.mubr.msk.f32.gmra.mxu1 %vm369_vm0, %v312_v20 }
  0x21   : > { %486 = vmatprep.mubr.f32.mxu0 %v7196_v2  ;;  %6728 = vmatprep.mubr.msk.f32.mxu1 %vm369_vm0, %v313_v21 }
  0x22   : > { %361 = vperm.xlu0 %7017, %v327_v22   ;;  %366 = vperm.xlu1 %7018, %v328_v23  }
  0x24   : > { %6337 = vmatmul.mubr.msk.f32.gmra.mxu0 %vm369_vm0, %v310_v16  ;;  %6729 = vmatmul.mubr.msk.f32.gmra.mxu1 %vm369_vm0, %v314_v24 }
  0x25   : > { %492 = vmatprep.mubr.f32.mxu0 %v7196_v2  ;;  %1026 = vmatprep.mubr.f32.mxu1 %v7196_v2 }
  0x26   : > { %7025 = vrot.lane.b32.xlu1 %v7196_v2, %s7198_s24  ;;  %7020 = vrot.lane.b32.xlu0 %v7196_v2, %s7198_s24 }
  0x28   : > { %6338 = vmatmul.mubr.msk.f32.gmra.mxu0 %vm369_vm0, %v311_v17 }
  0x29   : > { %498 = vmatprep.mubr.f32.mxu0 %v7196_v2 }
  0x2a   : > { %7035 = vrot.lane.b32.xlu1 %v7196_v2, %s7198_s24  ;;  %7030 = vrot.lane.b32.xlu0 %v7196_v2, %s7198_s24 }
  0x2c   : > { %6339 = vmatmul.mubr.msk.f32.gmra.mxu0 %vm369_vm0, %v312_v20 }
  0x2d   : > { %504 = vmatprep.mubr.f32.mxu0 %v7196_v2 }
  0x2e   : > { %7045 = vrot.lane.b32.xlu1 %v7196_v2, %s7199_s25  ;;  %7040 = vrot.lane.b32.xlu0 %v7196_v2, %s7199_s25 }
  0x30   : > { %6340 = vmatmul.mubr.msk.f32.gmra.mxu0 %vm369_vm0, %v313_v21 }
  0x31   : > { %510 = vmatprep.mubr.f32.mxu0 %v7196_v2 }
  0x32   : > { %7055 = vrot.lane.b32.xlu1 %v7196_v2, %s7199_s25  ;;  %7050 = vrot.lane.b32.xlu0 %v7196_v2, %s7199_s25 }
  0x34   : > { %6341 = vmatmul.mubr.msk.f32.gmra.mxu0 %vm369_vm0, %v314_v24  ;;  %vm6070_vm0 = vcmask 736256  }
  0x36   : > { %7065 = vrot.lane.b32.xlu1 %v7196_v2, %s7200_s26  ;;  %7060 = vrot.lane.b32.xlu0 %v7196_v2, %s7200_s26 }
  0x3a   : > { %7075 = vrot.lane.b32.xlu1 %v7196_v2, %s7200_s26  ;;  %7070 = vrot.lane.b32.xlu0 %v7196_v2, %s7200_s26 }
  0x3e   : > { %7085 = vrot.lane.b32.xlu1 %v7196_v2, %s7201_s27  ;;  %7080 = vrot.lane.b32.xlu0 %v7196_v2, %s7201_s27 }
  0x42   : > { %7095 = vrot.lane.b32.xlu1 %v7196_v2, %s7201_s27  ;;  %7090 = vrot.lane.b32.xlu0 %v7196_v2, %s7201_s27 }
  0x8b   : > { %v332_v26 = vpop.permute.xlu0 %331  ;;  %v342_v28 = vpop.permute.xlu1 %341 }
  0x95   : > { %v337_v33 = vpop.permute.xlu0 %336  ;;  %v7421_v34 = vpop.permute.xlu1 %346 }
  0x99   : > { %v7435_v54 = vpop.permute.xlu1 %356  ;;  %v7438_v59 = vpop.permute.xlu0 %351 }
  0x9d   : > { %v7461_v17 = vpop.permute.xlu1 %366  ;;  %v362_v22 = vpop.permute.xlu0 %361 }
  0xd8   : > { %v470_v35 = vpop.f32.mrf.mxu0  ;;  %v6721_v36 = vpop.f32.mrf.mxu1 }
  0xd9   : > { %v471_v37 = vadd.f32 %v470_v35, %v332_v26  ;;  %v589_v39 = vadd.f32 %v6721_v36, %v337_v33 }
  0xda   : > { %v472_v41 = vpop.f32.mrf.mxu0  ;;  %v583_v43 = vpop.f32.mrf.mxu1 }
  0xdb   : > { %v622_v44 = vmax.f32 %v471_v37, 0.0  ;;  %v627_v45 = vmax.f32 %v589_v39, 0.0  ;;  %v473_v46 = vadd.f32 %v472_v41, %v332_v26  ;;  %v584_v47 = vadd.f32 %v583_v43, %v332_v26 }
  0xdc   : > { %v476_v48 = vpop.f32.mrf.mxu0  ;;  %v6724_v49 = vpop.f32.mrf.mxu1 }
  0xdd   : > { %v7432_v50 = vmul.f32 %v7425_v38, %v622_v44  ;;  %v667_v51 = vmul.f32 %v7427_v40, %v627_v45  ;;  %v623_v52 = vmax.f32 %v473_v46, 0.0  ;;  %v624_v53 = vmax.f32 %v584_v47, 0.0 }
  0xde   : > { %v477_v55 = vadd.f32 %v476_v48, %v337_v33  ;;  %v478_v56 = vpop.f32.mrf.mxu0  ;;  %v593_v57 = vpop.f32.mrf.mxu1  ;;  %v599_v58 = vadd.f32 %v6724_v49, %v7421_v34 }
  0xdf   : > { %718 = vst [vmem:[#allocation2 + $0x8] sm:$0xff] %v7432_v50  ;;  %724 = vst.msk [vmem:[#allocation2 + $0x38] sm:$0xff] %vm720_vm2, %v667_v51  ;;  %v7443_v60 = vmul.f32 %v7429_v42, %v623_v52  ;;  %v664_v61 = vmul.f32 %v7427_v40, %v624_v53  ;;  %v479_v62 = vadd.f32 %v478_v56, %v337_v33  ;;  %826 = vrot.lane.b32.xlu1 %v7432_v50, %s7198_s24 }
  0xe0   : > { %v594_v63 = vadd.f32 %v593_v57, %v342_v28  ;;  %v625_v0 = vmax.f32 %v477_v55, 0.0  ;;  %v482_v1 = vpop.f32.mrf.mxu0  ;;  %v6727_v2 = vpop.f32.mrf.mxu1  ;;  %v633_v4 = vmax.f32 %v599_v58, 0.0 }
  0xe1   : > { %719 = vst [vmem:[#allocation2 + $0x10] sm:$0xff] %v7443_v60  ;;  %721 = vst.msk [vmem:[#allocation2 + $0x18] sm:$0xff] %vm720_vm2, %v664_v61  ;;  %v626_v5 = vmax.f32 %v479_v62, 0.0  ;;  %v483_v6 = vadd.f32 %v482_v1, %v342_v28  ;;  %v609_v8 = vadd.f32 %v6727_v2, %v7435_v54 }
  0xe2   : > { %v630_v7 = vmax.f32 %v594_v63, 0.0  ;;  %v7452_v9 = vmul.f32 %v7425_v38, %v625_v0  ;;  %v484_v10 = vpop.f32.mrf.mxu0  ;;  %v603_v11 = vpop.f32.mrf.mxu1  ;;  %v673_v12 = vmul.f32 %v7427_v40, %v633_v4 }
  0xe3   : > { %v7456_v13 = vmul.f32 %v7429_v42, %v626_v5  ;;  %v604_v14 = vadd.f32 %v603_v11, %v7438_v59  ;;  %1182 = vrot.lane.b32.xlu1 %v7432_v50, %s7199_s25  ;;  %v485_v15 = vadd.f32 %v484_v10, %v342_v28  ;;  %v628_v16 = vmax.f32 %v483_v6, 0.0 }
  0xe4   : > { %722 = vst [vmem:[#allocation2 + $0x28] sm:$0xff] %v7452_v9  ;;  %v488_v18 = vpop.f32.mrf.mxu0  ;;  %v6730_v19 = vpop.f32.mrf.mxu1  ;;  %v670_v20 = vmul.f32 %v7427_v40, %v630_v7  ;;  %730 = vst.msk [vmem:[#allocation2 + $0x78] sm:$0xff] %vm720_vm2, %v673_v12  ;;  %v639_v21 = vmax.f32 %v609_v8, 0.0 }
  0xe5   : > { %723 = vst [vmem:[#allocation2 + $0x30] sm:$0xff] %v7456_v13  ;;  %v636_v23 = vmax.f32 %v604_v14, 0.0  ;;  %v629_v24 = vmax.f32 %v485_v15, 0.0  ;;  %v7468_v26 = vmul.f32 %v7425_v38, %v628_v16  ;;  %v489_v28 = vadd.f32 %v488_v18, %v7421_v34 }
  0xe6   : > { %v490_v30 = vpop.f32.mrf.mxu0  ;;  %v613_v31 = vpop.f32.mrf.mxu1  ;;  %v7471_v32 = vld [vmem:[#allocation2 + $0x38] sm:$0xff]  ;;  %727 = vst.msk [vmem:[#allocation2 + $0x58] sm:$0xff] %vm720_vm2, %v670_v20  ;;  %v679_v33 = vmul.f32 %v7427_v40, %v639_v21  ;;  %v619_v35 = vadd.f32 %v6730_v19, %v7461_v17 }
  0xe7   : > { %v676_v36 = vmul.f32 %v7427_v40, %v636_v23  ;;  %v614_v37 = vadd.f32 %v613_v31, %v362_v22  ;;  %838 = vrot.lane.b32.xlu0 %v7471_v32, %s7198_s24  ;;  %v7480_v39 = vmul.f32 %v7429_v42, %v629_v24  ;;  %725 = vst [vmem:[#allocation2 + $0x48] sm:$0xff] %v7468_v26  ;;  %v631_v41 = vmax.f32 %v489_v28, 0.0 }
  0xe8   : > { %1546 = vrot.lane.b32.xlu1 %v7432_v50, %s7200_s26  ;;  %v494_v43 = vpop.f32.mrf.mxu0  ;;  %v491_v44 = vadd.f32 %v490_v30, %v7421_v34  ;;  %736 = vst.msk [vmem:[#allocation2 + $0xb8] sm:$0xff] %vm720_vm2, %v679_v33  ;;  %v645_v45 = vmax.f32 %v619_v35, 0.0  ;;  %v7511_v63 = vld [vmem:[#allocation2 + $0x18] sm:$0xff]  ;;  %v7601_v30 = vpop.permute.xlu1 %7025 }
  0xe9   : > { %733 = vst.msk [vmem:[#allocation2 + $0x98] sm:$0xff] %vm720_vm2, %v676_v36  ;;  %v642_v46 = vmax.f32 %v614_v37, 0.0  ;;  %v495_v47 = vadd.f32 %v494_v43, %v7438_v59  ;;  %726 = vst [vmem:[#allocation2 + $0x50] sm:$0xff] %v7480_v39  ;;  %v7491_v48 = vmul.f32 %v7425_v38, %v631_v41  ;;  %v7613_v33 = vpop.permute.xlu0 %7020 }
  0xea   : > { %v496_v49 = vpop.f32.mrf.mxu0  ;;  %v632_v51 = vmax.f32 %v491_v44, 0.0  ;;  %v685_v52 = vmul.f32 %v7427_v40, %v645_v45 }
  0xeb   : > { %v682_v53 = vmul.f32 %v7427_v40, %v642_v46  ;;  %v634_v34 = vmax.f32 %v495_v47, 0.0  ;;  %v497_v55 = vadd.f32 %v496_v49, %v7438_v59  ;;  %1194 = vrot.lane.b32.xlu0 %v7471_v32, %s7199_s25  ;;  %728 = vst [vmem:[#allocation2 + $0x68] sm:$0xff] %v7491_v48 }
  0xec   : > { %1934 = vrot.lane.b32.xlu1 %v7432_v50, %s7201_s27  ;;  %v500_v56 = vpop.f32.mrf.mxu0  ;;  %v7502_v57 = vmul.f32 %v7429_v42, %v632_v51  ;;  %742 = vst.msk [vmem:[#allocation2 + $0xf8] sm:$0xff] %vm720_vm2, %v685_v52  ;;  %v7611_v31 = vpop.permute.xlu1 %7035 }
  0xed   : > { %739 = vst.msk [vmem:[#allocation2 + $0xd8] sm:$0xff] %vm720_vm2, %v682_v53  ;;  %v7507_v58 = vmul.f32 %v7425_v38, %v634_v34  ;;  %v635_v59 = vmax.f32 %v497_v55, 0.0  ;;  %v501_v61 = vadd.f32 %v500_v56, %v7435_v54  ;;  %v7595_v28 = vld [vmem:[#allocation2 + $0x58] sm:$0xff]  ;;  %v7627_v37 = vpop.permute.xlu0 %7030 }
  0xee   : > { %v502_v62 = vpop.f32.mrf.mxu0  ;;  %729 = vst [vmem:[#allocation2 + $0x70] sm:$0xff] %v7502_v57 }
  0xef   : > { %731 = vst [vmem:[#allocation2 + $0x88] sm:$0xff] %v7507_v58  ;;  %v7515_v0 = vmul.f32 %v7429_v42, %v635_v59  ;;  %1558 = vrot.lane.b32.xlu0 %v7471_v32, %s7200_s26  ;;  %v503_v1 = vadd.f32 %v502_v62, %v7435_v54  ;;  %v637_v2 = vmax.f32 %v501_v61, 0.0  ;;  %v7637_v44 = vld [vmem:[#allocation2 + $0xb8] sm:$0xff] }
  0xf0   : > { %830 = vrot.lane.b32.xlu1 %v7511_v63, %s7198_s24  ;;  %v506_v4 = vpop.f32.mrf.mxu0  ;;  %v7615_v35 = vld [vmem:[#allocation2 + $0x98] sm:$0xff]  ;;  %v7621_v36 = vpop.permute.xlu1 %7045 }
  0xf1   : > { %732 = vst [vmem:[#allocation2 + $0x90] sm:$0xff] %v7515_v0  ;;  %v507_v5 = vadd.f32 %v506_v4, %v362_v22  ;;  %v638_v6 = vmax.f32 %v503_v1, 0.0  ;;  %v7524_v7 = vmul.f32 %v7425_v38, %v637_v2  ;;  %v7635_v43 = vpop.permute.xlu0 %7040 }
  0xf2   : > { %v508_v8 = vpop.f32.mrf.mxu0  ;;  %12298 = vst [vmem:[#allocation10_spill] sm:$0xff] %v7635_v43 }
  0xf3   : > { %v640_v10 = vmax.f32 %v507_v5, 0.0  ;;  %v509_v11 = vadd.f32 %v508_v8, %v362_v22  ;;  %1946 = vrot.lane.b32.xlu0 %v7471_v32, %s7201_s27  ;;  %v7529_v54 = vmul.f32 %v7429_v42, %v638_v6  ;;  %734 = vst [vmem:[#allocation2 + $0xa8] sm:$0xff] %v7524_v7  ;;  %v7671_v53 = vld [vmem:[#allocation2 + $0xf8] sm:$0xff] }
  0xf4   : > { %1186 = vrot.lane.b32.xlu1 %v7511_v63, %s7199_s25  ;;  %v512_v12 = vpop.f32.mrf.mxu0  ;;  %v7633_v41 = vpop.permute.xlu1 %7055  ;;  %12304 = vst [vmem:[#allocation16_spill] sm:$0xff] %v7671_v53  ;;  %v7695_v62 = vld [vmem:[#allocation2 + $0xd8] sm:$0xff] }
  0xf5   : > { %v7535_v14 = vmul.f32 %v7425_v38, %v640_v10  ;;  %v641_v15 = vmax.f32 %v509_v11, 0.0  ;;  %735 = vst [vmem:[#allocation2 + $0xb0] sm:$0xff] %v7529_v54  ;;  %v513_v16 = vadd.f32 %v512_v12, %v7461_v17  ;;  %v7649_v46 = vpop.permute.xlu0 %7050 }
  0xf6   : > { %v514_v18 = vpop.f32.mrf.mxu0 }
  0xf7   : > { %737 = vst [vmem:[#allocation2 + $0xc8] sm:$0xff] %v7535_v14  ;;  %v7541_v19 = vmul.f32 %v7429_v42, %v641_v15  ;;  %2595 = vrot.lane.b32.xlu0 %v7432_v50, %s7202_s6  ;;  %v643_v20 = vmax.f32 %v513_v16, 0.0  ;;  %v515_v21 = vadd.f32 %v514_v18, %v7461_v17  ;;  %v7565_v17 = vld [vmem:[#allocation2 + $0x78] sm:$0xff] }
  0xf8   : > { %1550 = vrot.lane.b32.xlu1 %v7511_v63, %s7200_s26  ;;  %v7643_v45 = vpop.permute.xlu1 %7065 }
  0xf9   : > { %738 = vst [vmem:[#allocation2 + $0xd0] sm:$0xff] %v7541_v19  ;;  %v7550_v22 = vmul.f32 %v7425_v38, %v643_v20  ;;  %v644_v23 = vmax.f32 %v515_v21, 0.0  ;;  %12299 = vst [vmem:[#allocation11_spill] sm:$0xff] %v7643_v45  ;;  %v7657_v49 = vpop.permute.xlu0 %7060  ;;  %v7868_v45 = vld [vmem:[%s12043_s3 + $0x40] sm:$0xff] }
  0xfa   : > { %12301 = vst [vmem:[#allocation13_spill] sm:$0xff] %v7657_v49  ;;  %6747 = vmatprep.mubr.msk.f32.mxu0 %vm937_vm3, %v7868_v45 }
  0xfb   : > { %12297 = vst [vmem:[#allocation9_spill] sm:$0xff] %v7550_v22  ;;  %740 = vst [vmem:[#allocation2 + $0xe8] sm:$0xff] %v7550_v22  ;;  %v7554_v24 = vmul.f32 %v7429_v42, %v644_v23  ;;  %828 = vrot.lane.b32.xlu0 %v7443_v60, %s7198_s24 }
  0xfc   : > { %1938 = vrot.lane.b32.xlu1 %v7511_v63, %s7201_s27  ;;  %v7655_v47 = vpop.permute.xlu1 %7075 }
  0xfd   : > { %741 = vst [vmem:[#allocation2 + $0xf0] sm:$0xff] %v7554_v24  ;;  %12300 = vst [vmem:[#allocation12_spill] sm:$0xff] %v7655_v47  ;;  %v7667_v52 = vpop.permute.xlu0 %7070 }
  0xfe   : > { %12303 = vst [vmem:[#allocation15_spill] sm:$0xff] %v7667_v52 }
  0xff   : > { %1184 = vrot.lane.b32.xlu0 %v7443_v60, %s7199_s25 }
 0x100   : > { %2597 = vrot.lane.b32.xlu1 %v7443_v60, %s7202_s6  ;;  %v7663_v51 = vpop.permute.xlu1 %7085 }
 0x101   : > { %12302 = vst [vmem:[#allocation14_spill] sm:$0xff] %v7663_v51  ;;  %v7679_v55 = vpop.permute.xlu0 %7080 }
 0x102   : > { %12306 = vst [vmem:[#allocation18_spill] sm:$0xff] %v7679_v55 }
 0x103   : > { %1548 = vrot.lane.b32.xlu0 %v7443_v60, %s7200_s26 }
 0x104   : > { %854 = vrot.lane.b32.xlu1 %v7565_v17, %s7198_s24  ;;  %v7677_v34 = vpop.permute.xlu1 %7095 }
 0x105   : > { %12305 = vst [vmem:[#allocation17_spill] sm:$0xff] %v7677_v34  ;;  %v7689_v59 = vpop.permute.xlu0 %7090 }
 0x106   : > { %12307 = vst [vmem:[#allocation19_spill] sm:$0xff] %v7689_v59 }
 0x107   : > { %1936 = vrot.lane.b32.xlu0 %v7443_v60, %s7201_s27 }
 0x108   : > { %1210 = vrot.lane.b32.xlu1 %v7565_v17, %s7199_s25 }
 0x10b   : > { %2599 = vrot.lane.b32.xlu0 %v7511_v63, %s7202_s6 }
 0x10c   : > { %1574 = vrot.lane.b32.xlu1 %v7565_v17, %s7200_s26 }
 0x10f   : > { %834 = vrot.lane.b32.xlu0 %v7452_v9, %s7198_s24 }
 0x110   : > { %1962 = vrot.lane.b32.xlu1 %v7565_v17, %s7201_s27 }
 0x113   : > { %1190 = vrot.lane.b32.xlu0 %v7452_v9, %s7199_s25 }
 0x114   : > { %2601 = vrot.lane.b32.xlu1 %v7452_v9, %s7202_s6 }
 0x117   : > { %1554 = vrot.lane.b32.xlu0 %v7452_v9, %s7200_s26 }
 0x118   : > { %836 = vrot.lane.b32.xlu1 %v7456_v13, %s7198_s24 }
 0x11b   : > { %1942 = vrot.lane.b32.xlu0 %v7452_v9, %s7201_s27 }
 0x11c   : > { %1192 = vrot.lane.b32.xlu1 %v7456_v13, %s7199_s25 }
 0x11f   : > { %846 = vrot.lane.b32.xlu0 %v7595_v28, %s7198_s24 }
 0x120   : > { %1556 = vrot.lane.b32.xlu1 %v7456_v13, %s7200_s26 }
 0x123   : > { %1202 = vrot.lane.b32.xlu0 %v7595_v28, %s7199_s25 }
 0x124   : > { %1944 = vrot.lane.b32.xlu1 %v7456_v13, %s7201_s27 }
 0x127   : > { %1566 = vrot.lane.b32.xlu0 %v7595_v28, %s7200_s26 }
 0x128   : > { %844 = vrot.lane.b32.xlu1 %v7480_v39, %s7198_s24 }
 0x12b   : > { %1954 = vrot.lane.b32.xlu0 %v7595_v28, %s7201_s27 }
 0x12c   : > { %862 = vrot.lane.b32.xlu1 %v7615_v35, %s7198_s24 }
 0x12f   : > { %2603 = vrot.lane.b32.xlu0 %v7456_v13, %s7202_s6 }
 0x130   : > { %1200 = vrot.lane.b32.xlu1 %v7480_v39, %s7199_s25 }
 0x133   : > { %842 = vrot.lane.b32.xlu0 %v7468_v26, %s7198_s24 }
 0x134   : > { %1218 = vrot.lane.b32.xlu1 %v7615_v35, %s7199_s25 }
 0x137   : > { %870 = vrot.lane.b32.xlu0 %v7637_v44, %s7198_s24 }
 0x138   : > { %1564 = vrot.lane.b32.xlu1 %v7480_v39, %s7200_s26 }
 0x13b   : > { %1198 = vrot.lane.b32.xlu0 %v7468_v26, %s7199_s25 }
 0x13c   : > { %1582 = vrot.lane.b32.xlu1 %v7615_v35, %s7200_s26 }
 0x13f   : > { %1226 = vrot.lane.b32.xlu0 %v7637_v44, %s7199_s25 }
 0x140   : > { %1952 = vrot.lane.b32.xlu1 %v7480_v39, %s7201_s27 }
 0x143   : > { %1562 = vrot.lane.b32.xlu0 %v7468_v26, %s7200_s26 }
 0x144   : > { %1970 = vrot.lane.b32.xlu1 %v7615_v35, %s7201_s27 }
 0x147   : > { %1590 = vrot.lane.b32.xlu0 %v7637_v44, %s7200_s26 }
 0x148   : > { %850 = vrot.lane.b32.xlu1 %v7491_v48, %s7198_s24 }
 0x14b   : > { %1950 = vrot.lane.b32.xlu0 %v7468_v26, %s7201_s27 }
 0x14c   : > { %886 = vrot.lane.b32.xlu1 %v7671_v53, %s7198_s24 }
 0x14f   : > { %1978 = vrot.lane.b32.xlu0 %v7637_v44, %s7201_s27 }
 0x150   : > { %1206 = vrot.lane.b32.xlu1 %v7491_v48, %s7199_s25 }
 0x151   : > { %v7685_v56 = vpop.permute.xlu1 %826 }
 0x153   : > { %852 = vrot.lane.b32.xlu0 %v7502_v57, %s7198_s24 }
 0x154   : > { %1242 = vrot.lane.b32.xlu1 %v7671_v53, %s7199_s25 }
 0x155   : > { %v7693_v61 = vpop.permute.xlu1 %1182 }
 0x156   : > { %12308 = vst [vmem:[#allocation20_spill] sm:$0xff] %v7693_v61 }
 0x157   : > { %878 = vrot.lane.b32.xlu0 %v7695_v62, %s7198_s24 }
 0x158   : > { %1570 = vrot.lane.b32.xlu1 %v7491_v48, %s7200_s26 }
 0x159   : > { %v7701_v1 = vpop.permute.xlu0 %838 }
 0x15a   : > { %v7703_v2 = vpop.permute.xlu1 %1546 }
 0x15b   : > { %12309 = vst [vmem:[#allocation21_spill] sm:$0xff] %v7703_v2  ;;  %1208 = vrot.lane.b32.xlu0 %v7502_v57, %s7199_s25 }
 0x15c   : > { %1606 = vrot.lane.b32.xlu1 %v7671_v53, %s7200_s26 }
 0x15d   : > { %v7709_v4 = vpop.permute.xlu0 %1194 }
 0x15e   : > { %12310 = vst [vmem:[#allocation22_spill] sm:$0xff] %v7709_v4  ;;  %v7711_v5 = vpop.permute.xlu1 %1934 }
 0x15f   : > { %12311 = vst [vmem:[#allocation23_spill] sm:$0xff] %v7711_v5  ;;  %1234 = vrot.lane.b32.xlu0 %v7695_v62, %s7199_s25 }
 0x160   : > { %1958 = vrot.lane.b32.xlu1 %v7491_v48, %s7201_s27 }
 0x161   : > { %v7717_v6 = vpop.permute.xlu0 %1558 }
 0x162   : > { %12312 = vst [vmem:[#allocation24_spill] sm:$0xff] %v7717_v6  ;;  %v7719_v8 = vpop.permute.xlu1 %830 }
 0x163   : > { %1572 = vrot.lane.b32.xlu0 %v7502_v57, %s7200_s26 }
 0x164   : > { %1994 = vrot.lane.b32.xlu1 %v7671_v53, %s7201_s27 }
 0x165   : > { %v7725_v10 = vpop.permute.xlu0 %1946 }
 0x166   : > { %12313 = vst [vmem:[#allocation25_spill] sm:$0xff] %v7725_v10  ;;  %v7727_v11 = vpop.permute.xlu1 %1186 }
 0x167   : > { %12314 = vst [vmem:[#allocation26_spill] sm:$0xff] %v7727_v11  ;;  %1598 = vrot.lane.b32.xlu0 %v7695_v62, %s7200_s26 }
 0x168   : > { %858 = vrot.lane.b32.xlu1 %v7507_v58, %s7198_s24 }
 0x169   : > { %v7733_v12 = vpop.permute.xlu0 %2595 }
 0x16a   : > { %12315 = vst [vmem:[#allocation27_spill] sm:$0xff] %v7733_v12  ;;  %v7735_v15 = vpop.permute.xlu1 %1550 }
 0x16b   : > { %12316 = vst [vmem:[#allocation28_spill] sm:$0xff] %v7735_v15  ;;  %1960 = vrot.lane.b32.xlu0 %v7502_v57, %s7201_s27 }
 0x16c   : > { %1214 = vrot.lane.b32.xlu1 %v7507_v58, %s7199_s25 }
 0x16d   : > { %v7741_v16 = vpop.permute.xlu0 %828 }
 0x16e   : > { %v7743_v18 = vpop.permute.xlu1 %1938 }
 0x16f   : > { %12317 = vst [vmem:[#allocation29_spill] sm:$0xff] %v7743_v18  ;;  %1986 = vrot.lane.b32.xlu0 %v7695_v62, %s7201_s27 }
 0x170   : > { %1578 = vrot.lane.b32.xlu1 %v7507_v58, %s7200_s26 }
 0x171   : > { %v7749_v20 = vpop.permute.xlu0 %1184 }
 0x172   : > { %12318 = vst [vmem:[#allocation30_spill] sm:$0xff] %v7749_v20  ;;  %v7751_v21 = vpop.permute.xlu1 %2597 }
 0x173   : > { %12319 = vst [vmem:[#allocation31_spill] sm:$0xff] %v7751_v21  ;;  %860 = vrot.lane.b32.xlu0 %v7515_v0, %s7198_s24 }
 0x174   : > { %1966 = vrot.lane.b32.xlu1 %v7507_v58, %s7201_s27 }
 0x175   : > { %v7757_v23 = vpop.permute.xlu0 %1548 }
 0x176   : > { %12320 = vst [vmem:[#allocation32_spill] sm:$0xff] %v7757_v23  ;;  %v7759_v25 = vpop.permute.xlu1 %854 }
 0x177   : > { %1216 = vrot.lane.b32.xlu0 %v7515_v0, %s7199_s25 }
 0x178   : > { %868 = vrot.lane.b32.xlu1 %v7529_v54, %s7198_s24 }
 0x179   : > { %v7765_v29 = vpop.permute.xlu0 %1936 }
 0x17a   : > { %12321 = vst [vmem:[#allocation33_spill] sm:$0xff] %v7765_v29  ;;  %v7767_v3 = vpop.permute.xlu1 %1210 }
 0x17b   : > { %12322 = vst [vmem:[#allocation34_spill] sm:$0xff] %v7767_v3  ;;  %1580 = vrot.lane.b32.xlu0 %v7515_v0, %s7200_s26 }
 0x17c   : > { %1224 = vrot.lane.b32.xlu1 %v7529_v54, %s7199_s25 }
 0x17d   : > { %v7773_v27 = vpop.permute.xlu0 %2599 }
 0x17e   : > { %12323 = vst [vmem:[#allocation35_spill] sm:$0xff] %v7773_v27  ;;  %v7775_v42 = vpop.permute.xlu1 %1574 }
 0x17f   : > { %12324 = vst [vmem:[#allocation36_spill] sm:$0xff] %v7775_v42  ;;  %1968 = vrot.lane.b32.xlu0 %v7515_v0, %s7201_s27 }
 0x180   : > { %1588 = vrot.lane.b32.xlu1 %v7529_v54, %s7200_s26 }
 0x181   : > { %v7781_v40 = vpop.permute.xlu0 %834 }
 0x182   : > { %v7783_v38 = vpop.permute.xlu1 %1962 }
 0x183   : > { %12325 = vst [vmem:[#allocation37_spill] sm:$0xff] %v7783_v38  ;;  %866 = vrot.lane.b32.xlu0 %v7524_v7, %s7198_s24 }
 0x184   : > { %1976 = vrot.lane.b32.xlu1 %v7529_v54, %s7201_s27 }
 0x185   : > { %v7789_v12 = vpop.permute.xlu0 %1190 }
 0x186   : > { %12326 = vst [vmem:[#allocation38_spill] sm:$0xff] %v7789_v12  ;;  %v7791_v21 = vpop.permute.xlu1 %2601 }
 0x187   : > { %12327 = vst [vmem:[#allocation39_spill] sm:$0xff] %v7791_v21  ;;  %1222 = vrot.lane.b32.xlu0 %v7524_v7, %s7199_s25 }
 0x188   : > { %876 = vrot.lane.b32.xlu1 %v7541_v19, %s7198_s24 }
 0x189   : > { %v7797_v27 = vpop.permute.xlu0 %1554 }
 0x18a   : > { %12328 = vst [vmem:[#allocation40_spill] sm:$0xff] %v7797_v27  ;;  %v7799_v18 = vpop.permute.xlu1 %836 }
 0x18b   : > { %1586 = vrot.lane.b32.xlu0 %v7524_v7, %s7200_s26 }
 0x18c   : > { %1232 = vrot.lane.b32.xlu1 %v7541_v19, %s7199_s25 }
 0x18d   : > { %v7805_v5 = vpop.permute.xlu0 %1942 }
 0x18e   : > { %12329 = vst [vmem:[#allocation41_spill] sm:$0xff] %v7805_v5  ;;  %v7807_v29 = vpop.permute.xlu1 %1192 }
 0x18f   : > { %12330 = vst [vmem:[#allocation42_spill] sm:$0xff] %v7807_v29  ;;  %1974 = vrot.lane.b32.xlu0 %v7524_v7, %s7201_s27 }
 0x190   : > { %1596 = vrot.lane.b32.xlu1 %v7541_v19, %s7200_s26 }
 0x191   : > { %v7813_v21 = vpop.permute.xlu0 %846 }
 0x192   : > { %v7815_v55 = vpop.permute.xlu1 %1556 }
 0x193   : > { %12331 = vst [vmem:[#allocation43_spill] sm:$0xff] %v7815_v55  ;;  %874 = vrot.lane.b32.xlu0 %v7535_v14, %s7198_s24 }
 0x194   : > { %1984 = vrot.lane.b32.xlu1 %v7541_v19, %s7201_s27 }
 0x195   : > { %v7821_v10 = vpop.permute.xlu0 %1202 }
 0x196   : > { %12332 = vst [vmem:[#allocation44_spill] sm:$0xff] %v7821_v10  ;;  %v7823_v5 = vpop.permute.xlu1 %1944 }
 0x197   : > { %12333 = vst [vmem:[#allocation45_spill] sm:$0xff] %v7823_v5  ;;  %1230 = vrot.lane.b32.xlu0 %v7535_v14, %s7199_s25 }
 0x198   : > { %882 = vrot.lane.b32.xlu1 %v7550_v22, %s7198_s24 }
 0x199   : > { %v7829_v51 = vpop.permute.xlu0 %1566 }
 0x19a   : > { %12334 = vst [vmem:[#allocation46_spill] sm:$0xff] %v7829_v51  ;;  %v7831_v38 = vpop.permute.xlu1 %844 }
 0x19b   : > { %1594 = vrot.lane.b32.xlu0 %v7535_v14, %s7200_s26 }
 0x19c   : > { %1238 = vrot.lane.b32.xlu1 %v7550_v22, %s7199_s25 }
 0x19d   : > { %v7837_v59 = vpop.permute.xlu0 %1954 }
 0x19e   : > { %12335 = vst [vmem:[#allocation47_spill] sm:$0xff] %v7837_v59  ;;  %v7839_v34 = vpop.permute.xlu1 %862 }
 0x19f   : > { %1982 = vrot.lane.b32.xlu0 %v7535_v14, %s7201_s27 }
 0x1a0   : > { %1602 = vrot.lane.b32.xlu1 %v7550_v22, %s7200_s26 }
 0x1a1   : > { %v7845_v5 = vpop.permute.xlu0 %2603 }
 0x1a2   : > { %12336 = vst [vmem:[#allocation48_spill] sm:$0xff] %v7845_v5  ;;  %v7847_v2 = vpop.permute.xlu1 %1200 }
 0x1a3   : > { %12337 = vst [vmem:[#allocation49_spill] sm:$0xff] %v7847_v2  ;;  %884 = vrot.lane.b32.xlu0 %v7554_v24, %s7198_s24 }
 0x1a4   : > { %1990 = vrot.lane.b32.xlu1 %v7550_v22, %s7201_s27 }
 0x1a5   : > { %v7853_v27 = vpop.permute.xlu0 %842 }
 0x1a6   : > { %v7855_v59 = vpop.permute.xlu1 %1218 }
 0x1a7   : > { %1240 = vrot.lane.b32.xlu0 %v7554_v24, %s7199_s25 }
 0x1a8   : > { %2605 = vrot.lane.b32.xlu1 %v7471_v32, %s7202_s6 }
 0x1a9   : > { %v7861_v49 = vpop.permute.xlu0 %870 }
 0x1aa   : > { %v7863_v5 = vpop.permute.xlu1 %1564 }
 0x1ab   : > { %12338 = vst [vmem:[#allocation50_spill] sm:$0xff] %v7863_v5  ;;  %1604 = vrot.lane.b32.xlu0 %v7554_v24, %s7200_s26 }
 0x1ac   : > { %2609 = vrot.lane.b32.xlu1 %v7480_v39, %s7202_s6 }
 0x1ad   : > { %v7876_v52 = vpop.permute.xlu0 %1198 }
 0x1ae   : > { %12339 = vst [vmem:[#allocation51_spill] sm:$0xff] %v7876_v52  ;;  %v7878_v47 = vpop.permute.xlu1 %1582 }
 0x1af   : > { %12340 = vst [vmem:[#allocation52_spill] sm:$0xff] %v7878_v47  ;;  %1992 = vrot.lane.b32.xlu0 %v7554_v24, %s7201_s27 }
 0x1b0   : > { %2613 = vrot.lane.b32.xlu1 %v7491_v48, %s7202_s6 }
 0x1b1   : > { %v7884_v23 = vpop.permute.xlu0 %1226 }
 0x1b2   : > { %v7886_v15 = vpop.permute.xlu1 %1952 }
 0x1b3   : > { %12341 = vst [vmem:[#allocation53_spill] sm:$0xff] %v7886_v15  ;;  %2607 = vrot.lane.b32.xlu0 %v7468_v26, %s7202_s6 }
 0x1b4   : > { %2617 = vrot.lane.b32.xlu1 %v7565_v17, %s7202_s6 }
 0x1b5   : > { %v7892_v55 = vpop.permute.xlu0 %1562 }
 0x1b6   : > { %12342 = vst [vmem:[#allocation54_spill] sm:$0xff] %v7892_v55  ;;  %v7894_v6 = vpop.permute.xlu1 %1970 }
 0x1b7   : > { %12343 = vst [vmem:[#allocation55_spill] sm:$0xff] %v7894_v6  ;;  %2611 = vrot.lane.b32.xlu0 %v7595_v28, %s7202_s6 }
 0x1b8   : > { %2621 = vrot.lane.b32.xlu1 %v7515_v0, %s7202_s6 }
 0x1b9   : > { %v7900_v5 = vpop.permute.xlu0 %1590 }
 0x1ba   : > { %12344 = vst [vmem:[#allocation56_spill] sm:$0xff] %v7900_v5  ;;  %v7902_v51 = vpop.permute.xlu1 %850 }
 0x1bb   : > { %2615 = vrot.lane.b32.xlu0 %v7502_v57, %s7202_s6 }
 0x1bc   : > { %2625 = vrot.lane.b32.xlu1 %v7524_v7, %s7202_s6 }
 0x1bd   : > { %v7908_v15 = vpop.permute.xlu0 %1950 }
 0x1be   : > { %12345 = vst [vmem:[#allocation57_spill] sm:$0xff] %v7908_v15  ;;  %v7910_v55 = vpop.permute.xlu1 %886 }
 0x1bf   : > { %2619 = vrot.lane.b32.xlu0 %v7507_v58, %s7202_s6 }
 0x1c0   : > { %2629 = vrot.lane.b32.xlu1 %v7637_v44, %s7202_s6 }
 0x1c1   : > { %v7916_v6 = vpop.permute.xlu0 %1978 }
 0x1c2   : > { %12346 = vst [vmem:[#allocation58_spill] sm:$0xff] %v7916_v6  ;;  %v7918_v42 = vpop.permute.xlu1 %1206 }
 0x1c3   : > { %12347 = vst [vmem:[#allocation59_spill] sm:$0xff] %v7918_v42  ;;  %2623 = vrot.lane.b32.xlu0 %v7615_v35, %s7202_s6 }
 0x1c4   : > { %2633 = vrot.lane.b32.xlu1 %v7541_v19, %s7202_s6 }
 0x1c5   : > { %v7924_v47 = vpop.permute.xlu0 %852 }
 0x1c6   : > { %v7926_v15 = vpop.permute.xlu1 %1242 }
 0x1c7   : > { %2627 = vrot.lane.b32.xlu0 %v7529_v54, %s7202_s6 }
 0x1c8   : > { %2637 = vrot.lane.b32.xlu1 %v7550_v22, %s7202_s6 }
 0x1c9   : > { %v7932_v5 = vpop.permute.xlu0 %878 }
 0x1ca   : > { %v7934_v6 = vpop.permute.xlu1 %1570 }
 0x1cb   : > { %12348 = vst [vmem:[#allocation60_spill] sm:$0xff] %v7934_v6  ;;  %2631 = vrot.lane.b32.xlu0 %v7535_v14, %s7202_s6 }
 0x1cc   : > { %2641 = vrot.lane.b32.xlu1 %v7671_v53, %s7202_s6 }
 0x1cd   : > { %v7940_v11 = vpop.permute.xlu0 %1208 }
 0x1ce   : > { %12349 = vst [vmem:[#allocation61_spill] sm:$0xff] %v7940_v11  ;;  %v7942_v61 = vpop.permute.xlu1 %1606 }
 0x1cf   : > { %12350 = vst [vmem:[#allocation62_spill] sm:$0xff] %v7942_v61  ;;  %2635 = vrot.lane.b32.xlu0 %v7695_v62, %s7202_s6 }
 0x1d0   : > { %2961 = vrot.lane.b32.xlu1 %v7443_v60, %s7203_s12 }
 0x1d1   : > { %v7948_v20 = vpop.permute.xlu0 %1234 }
 0x1d2   : > { %v7950_v6 = vpop.permute.xlu1 %1958 }
 0x1d3   : > { %12351 = vst [vmem:[#allocation63_spill] sm:$0xff] %v7950_v6  ;;  %2639 = vrot.lane.b32.xlu0 %v7554_v24, %s7202_s6 }
 0x1d4   : > { %2965 = vrot.lane.b32.xlu1 %v7452_v9, %s7203_s12 }
 0x1d5   : > { %v7956_v4 = vpop.permute.xlu0 %1572 }
 0x1d6   : > { %12352 = vst [vmem:[#allocation64_spill] sm:$0xff] %v7956_v4  ;;  %v7958_v61 = vpop.permute.xlu1 %1994 }
 0x1d7   : > { %12353 = vst [vmem:[#allocation65_spill] sm:$0xff] %v7958_v61  ;;  %2959 = vrot.lane.b32.xlu0 %v7432_v50, %s7203_s12 }
 0x1d8   : > { %2969 = vrot.lane.b32.xlu1 %v7471_v32, %s7203_s12 }
 0x1d9   : > { %v7964_v12 = vpop.permute.xlu0 %1598 }
 0x1da   : > { %12354 = vst [vmem:[#allocation66_spill] sm:$0xff] %v7964_v12  ;;  %v7966_v29 = vpop.permute.xlu1 %858 }
 0x1db   : > { %2963 = vrot.lane.b32.xlu0 %v7511_v63, %s7203_s12 }
 0x1dc   : > { %2973 = vrot.lane.b32.xlu1 %v7480_v39, %s7203_s12 }
 0x1dd   : > { %v7972_v6 = vpop.permute.xlu0 %1960 }
 0x1de   : > { %12355 = vst [vmem:[#allocation67_spill] sm:$0xff] %v7972_v6  ;;  %v7974_v4 = vpop.permute.xlu1 %1214 }
 0x1df   : > { %2967 = vrot.lane.b32.xlu0 %v7456_v13, %s7203_s12 }
 0x1e0   : > { %2977 = vrot.lane.b32.xlu1 %v7491_v48, %s7203_s12 }
 0x1e1   : > { %v7980_v61 = vpop.permute.xlu0 %1986 }
 0x1e2   : > { %12356 = vst [vmem:[#allocation68_spill] sm:$0xff] %v7980_v61  ;;  %v7982_v12 = vpop.permute.xlu1 %1578 }
 0x1e3   : > { %12357 = vst [vmem:[#allocation69_spill] sm:$0xff] %v7982_v12  ;;  %2971 = vrot.lane.b32.xlu0 %v7468_v26, %s7203_s12 }
 0x1e4   : > { %2981 = vrot.lane.b32.xlu1 %v7565_v17, %s7203_s12 }
 0x1e5   : > { %v7988_v43 = vpop.permute.xlu0 %860 }
 0x1e6   : > { %v7990_v6 = vpop.permute.xlu1 %1966 }
 0x1e7   : > { %12358 = vst [vmem:[#allocation70_spill] sm:$0xff] %v7990_v6  ;;  %2975 = vrot.lane.b32.xlu0 %v7595_v28, %s7203_s12 }
 0x1e8   : > { %2985 = vrot.lane.b32.xlu1 %v7515_v0, %s7203_s12 }
 0x1e9   : > { %v7996_v10 = vpop.permute.xlu0 %1216 }
 0x1ea   : > { %v7998_v61 = vpop.permute.xlu1 %868 }
 0x1eb   : > { %2979 = vrot.lane.b32.xlu0 %v7502_v57, %s7203_s12 }
 0x1ec   : > { %2989 = vrot.lane.b32.xlu1 %v7524_v7, %s7203_s12 }
 0x1ed   : > { %v8004_v12 = vpop.permute.xlu0 %1580 }
 0x1ee   : > { %12359 = vst [vmem:[#allocation71_spill] sm:$0xff] %v8004_v12  ;;  %v8006_v52 = vpop.permute.xlu1 %1224 }
 0x1ef   : > { %2983 = vrot.lane.b32.xlu0 %v7507_v58, %s7203_s12 }
 0x1f0   : > { %2993 = vrot.lane.b32.xlu1 %v7637_v44, %s7203_s12 }
 0x1f1   : > { %v8012_v6 = vpop.permute.xlu0 %1968 }
 0x1f2   : > { %12360 = vst [vmem:[#allocation72_spill] sm:$0xff] %v8012_v6  ;;  %v8014_v2 = vpop.permute.xlu1 %1588 }
 0x1f3   : > { %12361 = vst [vmem:[#allocation73_spill] sm:$0xff] %v8014_v2  ;;  %2987 = vrot.lane.b32.xlu0 %v7615_v35, %s7203_s12 }
 0x1f4   : > { %2997 = vrot.lane.b32.xlu1 %v7541_v19, %s7203_s12 }
 0x1f5   : > { %v8020_v3 = vpop.permute.xlu0 %866 }
 0x1f6   : > { %v8022_v12 = vpop.permute.xlu1 %1976 }
 0x1f7   : > { %12362 = vst [vmem:[#allocation74_spill] sm:$0xff] %v8022_v12  ;;  %2991 = vrot.lane.b32.xlu0 %v7529_v54, %s7203_s12 }
 0x1f8   : > { %3001 = vrot.lane.b32.xlu1 %v7550_v22, %s7203_s12 }
 0x1f9   : > { %v8028_v42 = vpop.permute.xlu0 %1222 }
 0x1fa   : > { %v877_v6 = vpop.permute.xlu1 %876 }
 0x1fb   : > { %2995 = vrot.lane.b32.xlu0 %v7535_v14, %s7203_s12 }
 0x1fc   : > { %3005 = vrot.lane.b32.xlu1 %v7671_v53, %s7203_s12 }
 0x1fd   : > { %v8034_v2 = vpop.permute.xlu0 %1586 }
 0x1fe   : > { %12363 = vst [vmem:[#allocation75_spill] sm:$0xff] %v8034_v2  ;;  %v8036_v11 = vpop.permute.xlu1 %1232 }
 0x1ff   : > { %2999 = vrot.lane.b32.xlu0 %v7695_v62, %s7203_s12 }
 0x200   : > { %3325 = vrot.lane.b32.xlu1 %v7443_v60, %s7204_s13 }
 0x201   : > { %v8042_v12 = vpop.permute.xlu0 %1974 }
 0x202   : > { %12364 = vst [vmem:[#allocation76_spill] sm:$0xff] %v8042_v12  ;;  %v8044_v22 = vpop.permute.xlu1 %1596 }
 0x203   : > { %12365 = vst [vmem:[#allocation77_spill] sm:$0xff] %v8044_v22  ;;  %3003 = vrot.lane.b32.xlu0 %v7554_v24, %s7203_s12 }
 0x204   : > { %3329 = vrot.lane.b32.xlu1 %v7452_v9, %s7204_s13 }
 0x205   : > { %v875_v2 = vpop.permute.xlu0 %874 }
 0x206   : > { %v8050_v53 = vpop.permute.xlu1 %1984 }
 0x207   : > { %12366 = vst [vmem:[#allocation78_spill] sm:$0xff] %v8050_v53  ;;  %3323 = vrot.lane.b32.xlu0 %v7432_v50, %s7204_s13  ;;  %v7038_v53 = vunpack.i.h.bf16 %v7611_v31 }
 0x208   : > { %3333 = vrot.lane.b32.xlu1 %v7471_v32, %s7204_s13 }
 0x209   : > { %v8056_v60 = vpop.permute.xlu0 %1230 }
 0x20a   : > { %v883_v12 = vpop.permute.xlu1 %882 }
 0x20b   : > { %3327 = vrot.lane.b32.xlu0 %v7511_v63, %s7204_s13 }
 0x20c   : > { %3337 = vrot.lane.b32.xlu1 %v7480_v39, %s7204_s13 }
 0x20d   : > { %v8062_v22 = vpop.permute.xlu0 %1594 }
 0x20e   : > { %12367 = vst [vmem:[#allocation79_spill] sm:$0xff] %v8062_v22  ;;  %v8064_v9 = vpop.permute.xlu1 %1238 }
 0x20f   : > { %3331 = vrot.lane.b32.xlu0 %v7456_v13, %s7204_s13 }
 0x210   : > { %3341 = vrot.lane.b32.xlu1 %v7491_v48, %s7204_s13 }
 0x211   : > { %v8070_v50 = vpop.permute.xlu0 %1982 }
 0x212   : > { %12368 = vst [vmem:[#allocation80_spill] sm:$0xff] %v8070_v50  ;;  %v8072_v32 = vpop.permute.xlu1 %1602  ;;  %v909_v50 = vsel %vm888_vm4, %v877_v6, %v7932_v5  ;;  %v906_v5 = vsel %vm888_vm4, %v7998_v61, %v7861_v49 }
 0x213   : > { %3335 = vrot.lane.b32.xlu0 %v7468_v26, %s7204_s13  ;;  %v7037_v26 = vunpack.i.l.bf16 %v7611_v31 }
 0x214   : > { %3345 = vrot.lane.b32.xlu1 %v7565_v17, %s7204_s13  ;;  %v910_v17 = vsel %vm888_vm4, %v7038_v53, %v883_v12  ;;  %v905_v53 = vsel %vm888_vm4, %v8020_v3, %v7998_v61 }
 0x215   : > { %v885_v39 = vpop.permute.xlu0 %884  ;;  %v907_v31 = vsel %vm888_vm4, %v7037_v26, %v875_v2  ;;  %v7058_v26 = vunpack.i.h.bf16 %v7633_v41 }
 0x216   : > { %v8078_v63 = vpop.permute.xlu1 %1990  ;;  %v912_v13 = vsel %vm888_vm4, %v885_v39, %v7910_v55  ;;  %v911_v48 = vsel %vm888_vm4, %v883_v12, %v885_v39  ;;  %v908_v55 = vsel %vm888_vm4, %v875_v2, %v877_v6  ;;  %v7032_v6 = vunpack.i.l.bf16 %v7627_v37 }
 0x217   : > { %12369 = vst [vmem:[#allocation81_spill] sm:$0xff] %v8078_v63  ;;  %3339 = vrot.lane.b32.xlu0 %v7595_v28, %s7204_s13  ;;  %6731 = vmatprep.subr.mxu0 %v912_v13  ;;  %v7033_v63 = vunpack.i.h.bf16 %v7627_v37 }
 0x218   : > { %978 = vmatprep.subr.mxu1 %v911_v48  ;;  %6732 = vmatpush3.msra.mxu0 %v912_v13  ;;  %v901_v37 = vsel %vm888_vm4, %v7032_v6, %v7966_v29  ;;  %v7022_v13 = vunpack.i.l.bf16 %v7613_v33  ;;  %v1258_v6 = vsel %vm1244_vm5, %v7974_v4, %v7996_v10 }
 0x219   : > { %979 = vmatpush1.msra.mxu1 %v910_v17  ;;  %v8090_v22 = vpop.permute.xlu0 %1240  ;;  %6733 = vmatprep.subr.mxu0 %v909_v50  ;;  %v904_v2 = vsel %vm888_vm4, %v7033_v63, %v8020_v3  ;;  %v7028_v3 = vunpack.i.h.bf16 %v7601_v30 }
 0x21a   : > { %v8093_v39 = vpop.permute.xlu1 %2605  ;;  %980 = vmatprep.subr.mxu1 %v908_v55  ;;  %6734 = vmatpush3.msra.mxu0 %v909_v50  ;;  %v903_v50 = vsel %vm888_vm4, %v7988_v43, %v7839_v34  ;;  %v900_v34 = vsel %vm888_vm4, %v7924_v47, %v7759_v25  ;;  %v897_v25 = vsel %vm888_vm4, %v7831_v38, %v7813_v21  ;;  %v6354_v55 = vld [vmem:[%s12043_s3 + $0x58] sm:$0xff] }
 0x21b   : > { %981 = vmatpush1.msra.mxu1 %v907_v31  ;;  %3343 = vrot.lane.b32.xlu0 %v7502_v57, %s7204_s13  ;;  %v902_v57 = vsel %vm888_vm4, %v7966_v29, %v7988_v43  ;;  %v899_v43 = vsel %vm888_vm4, %v7902_v51, %v7924_v47  ;;  %v7027_v29 = vunpack.i.l.bf16 %v7601_v30  ;;  %v898_v61 = vsel %vm888_vm4, %v7028_v3, %v7902_v51 }
 0x21c   : > { %982 = vmatprep.subr.mxu1 %v905_v53  ;;  %6735 = vmatprep.subr.mxu0 %v906_v5  ;;  %v7023_v47 = vunpack.i.h.bf16 %v7613_v33  ;;  %v893_v51 = vsel %vm888_vm4, %v7781_v40, %v7799_v18  ;;  %v889_v33 = vsel %vm888_vm4, %v7022_v13, %v7685_v56  ;;  %v1262_v53 = vsel %vm1244_vm5, %v8006_v52, %v7884_v23 }
 0x21d   : > { %983 = vmatpush1.msra.mxu1 %v904_v2  ;;  %6736 = vmatpush3.msra.mxu0 %v906_v5  ;;  %v8108_v12 = vpop.permute.xlu0 %1604  ;;  %v895_v30 = vsel %vm888_vm4, %v7027_v29, %v7853_v27  ;;  %v7052_v5 = vunpack.i.l.bf16 %v7649_v46  ;;  %v8261_v2 = vld [vmem:[%s12043_s3 + $0x68] sm:$0xff]  ;;  %v8286_v29 = vld [vmem:[%s12043_s3 + $0x70] sm:$0xff] }
 0x21e   : > { %v8116_v49 = vpop.permute.xlu1 %2609  ;;  %984 = vmatprep.subr.mxu1 %v902_v57  ;;  %6737 = vmatprep.subr.mxu0 %v903_v50  ;;  %v12372_v57 = vld [vmem:[#allocation59_spill] sm:$0xff] }
 0x21f   : > { %985 = vmatpush1.msra.mxu1 %v901_v37  ;;  %6738 = vmatpush3.msra.mxu0 %v903_v50  ;;  %v12373_v37 = vld [vmem:[#allocation34_spill] sm:$0xff] }
 0x220   : > { %3347 = vrot.lane.b32.xlu0 %v7507_v58, %s7204_s13  ;;  %3349 = vrot.lane.b32.xlu1 %v7515_v0, %s7204_s13  ;;  %v896_v0 = vsel %vm888_vm4, %v7853_v27, %v7831_v38  ;;  %v894_v38 = vsel %vm888_vm4, %v7799_v18, %v7701_v1  ;;  %v891_v1 = vsel %vm888_vm4, %v7741_v16, %v7719_v8  ;;  %v6352_v18 = vld [vmem:[%s12043_s3 + $0x48] sm:$0xff] }
 0x221   : > { %986 = vmatprep.subr.mxu1 %v899_v43  ;;  %6739 = vmatprep.subr.mxu0 %v900_v34  ;;  %v8134_v63 = vpop.permute.xlu0 %1992  ;;  %v1268_v8 = vsel %vm1244_vm5, %v8090_v22, %v7926_v15 }
 0x222   : > { %v8136_v58 = vpop.permute.xlu1 %2613  ;;  %987 = vmatpush1.msra.mxu1 %v898_v61  ;;  %6740 = vmatpush3.msra.mxu0 %v900_v34  ;;  %v7047_v61 = vunpack.i.l.bf16 %v7621_v36 }
 0x223   : > { %988 = vmatprep.subr.mxu1 %v896_v0  ;;  %6741 = vmatprep.subr.mxu0 %v897_v25  ;;  %v12374_v0 = vld [vmem:[#allocation49_spill] sm:$0xff] }
 0x224   : > { %989 = vmatpush1.msra.mxu1 %v895_v30  ;;  %6742 = vmatpush3.msra.mxu0 %v897_v25  ;;  %v12375_v25 = vld [vmem:[#allocation51_spill] sm:$0xff] }
 0x225   : > { %3351 = vrot.lane.b32.xlu0 %v7615_v35, %s7204_s13  ;;  %3353 = vrot.lane.b32.xlu1 %v7524_v7, %s7204_s13  ;;  %v8157_v21 = vpop.permute.xlu0 %2607  ;;  %v892_v35 = vsel %vm888_vm4, %v7023_v47, %v7781_v40  ;;  %v890_v7 = vsel %vm888_vm4, %v7685_v56, %v7741_v16  ;;  %v1267_v56 = vsel %vm1244_vm5, %v8064_v9, %v8090_v22  ;;  %v12376_v47 = vld [vmem:[#allocation44_spill] sm:$0xff] }
 0x226   : > { %v8159_v27 = vpop.permute.xlu1 %2617  ;;  %990 = vmatprep.subr.mxu1 %v893_v51  ;;  %6743 = vmatprep.subr.mxu0 %v894_v38  ;;  %v1264_v16 = vsel %vm1244_vm5, %v8056_v60, %v8036_v11  ;;  %v1265_v22 = vsel %vm1244_vm5, %v8036_v11, %v7948_v20  ;;  %v7053_v11 = vunpack.i.h.bf16 %v7649_v46  ;;  %v1257_v46 = vsel %vm1244_vm5, %v7052_v5, %v7974_v4  ;;  %v12371_v4 = vld [vmem:[#allocation61_spill] sm:$0xff] }
 0x227   : > { %991 = vmatpush1.msra.mxu1 %v892_v35  ;;  %6744 = vmatpush3.msra.mxu0 %v894_v38  ;;  %v1255_v50 = vsel %vm1244_vm5, %v12372_v57, %v12371_v4  ;;  %v1256_v3 = vsel %vm1244_vm5, %v12371_v4, %v12373_v37  ;;  %v1252_v30 = vsel %vm1244_vm5, %v12375_v25, %v12374_v0  ;;  %v8303_v38 = vld [vmem:[%s12043_s3 + $0x78] sm:$0xff] }
 0x228   : > { %992 = vmatprep.subr.mxu1 %v890_v7  ;;  %6745 = vmatprep.subr.mxu0 %v891_v1  ;;  %v1253_v51 = vsel %vm1244_vm5, %v12374_v0, %v12376_v47  ;;  %v12377_v7 = vld [vmem:[#allocation10_spill] sm:$0xff]  ;;  %v12392_v0 = vld [vmem:[#allocation56_spill] sm:$0xff] }
 0x229   : > { %993 = vmatpush1.msra.mxu1 %v889_v33  ;;  %6746 = vmatpush3.msra.mxu0 %v891_v1  ;;  %v8175_v40 = vpop.permute.xlu0 %2611  ;;  %v7043_v1 = vunpack.i.h.bf16 %v12377_v7  ;;  %v12378_v33 = vld [vmem:[#allocation16_spill] sm:$0xff] }
 0x22a   : > { %v8177_v48 = vpop.permute.xlu1 %2621  ;;  %3355 = vrot.lane.b32.xlu0 %v7529_v54, %s7204_s13  ;;  %3357 = vrot.lane.b32.xlu1 %v7637_v44, %s7204_s13  ;;  %v1266_v54 = vsel %vm1244_vm5, %v7058_v26, %v8064_v9  ;;  %v6353_v44 = vld [vmem:[%s12043_s3 + $0x50] sm:$0xff]  ;;  %v8209_v9 = vld [vmem:[#allocation2] sm:$0xff] }
 0x22b   : > { %6359 = vmatmul.mubr.msk.f32.vlgmr.msra.gmra.mxu1 %vm937_vm3, %v7868_v45  ;;  %6748 = vmatmul.mubr.msk.f32.vlgmr.msra.gmra.mxu0 %vm937_vm3, %v6352_v18  ;;  %v7057_v45 = vunpack.i.l.bf16 %v7633_v41  ;;  %v12380_v26 = vld [vmem:[#allocation38_spill] sm:$0xff] }
 0x22c   : > { %1333 = vmatprep.subr.mxu0 %v1267_v56  ;;  %6759 = vmatprep.subr.mxu1 %v1268_v8 }
 0x22d   : > { %1334 = vmatpush1.msra.mxu0 %v1266_v54  ;;  %6760 = vmatpush3.msra.mxu1 %v1268_v8  ;;  %v8205_v15 = vpop.permute.xlu0 %2615  ;;  %v1263_v41 = vsel %vm1244_vm5, %v7057_v45, %v8056_v60  ;;  %v1261_v60 = vsel %vm1244_vm5, %v8028_v42, %v8006_v52  ;;  %v1259_v52 = vsel %vm1244_vm5, %v7996_v10, %v7855_v59  ;;  %v7048_v59 = vunpack.i.h.bf16 %v7621_v36  ;;  %v12370_v10 = vld [vmem:[#allocation9_spill] sm:$0xff]  ;;  %v12381_v8 = vld [vmem:[#allocation22_spill] sm:$0xff] }
 0x22e   : > { %v8207_v17 = vpop.permute.xlu1 %2625  ;;  %1335 = vmatprep.subr.mxu0 %v1264_v16  ;;  %6761 = vmatprep.subr.mxu1 %v1265_v22  ;;  %v1251_v36 = vsel %vm1244_vm5, %v7047_v61, %v12375_v25  ;;  %v8385_v61 = vld [vmem:[#allocation2 + $0x28] sm:$0xff] }
 0x22f   : > { %1032 = vmatprep.mubr.f32.mxu1 %v8209_v9  ;;  %6750 = vmatprep.mubr.msk.f32.mxu0 %vm937_vm3, %v6353_v44  ;;  %v12393_v25 = vld [vmem:[#allocation73_spill] sm:$0xff] }
 0x230   : > { %1336 = vmatpush1.msra.mxu0 %v1263_v41  ;;  %6762 = vmatpush3.msra.mxu1 %v1265_v22  ;;  %v12383_v22 = vld [vmem:[#allocation30_spill] sm:$0xff]  ;;  %v12384_v41 = vld [vmem:[#allocation20_spill] sm:$0xff] }
 0x231   : > { %3359 = vrot.lane.b32.xlu0 %v7535_v14, %s7204_s13  ;;  %3361 = vrot.lane.b32.xlu1 %v7541_v19, %s7204_s13  ;;  %v8223_v20 = vpop.permute.xlu0 %2619  ;;  %v1260_v14 = vsel %vm1244_vm5, %v7053_v11, %v8028_v42  ;;  %v8240_v19 = vld [vmem:[%s12043_s3 + $0x60] sm:$0xff]  ;;  %v12385_v11 = vld [vmem:[#allocation26_spill] sm:$0xff] }
 0x232   : > { %v8225_v31 = vpop.permute.xlu1 %2629  ;;  %6360 = vmatmul.mubr.msk.f32.gmra.mxu1 %vm937_vm3, %v6352_v18  ;;  %6751 = vmatmul.mubr.msk.f32.gmra.mxu0 %vm937_vm3, %v6354_v55  ;;  %v12379_v18 = vld [vmem:[#allocation42_spill] sm:$0xff] }
 0x233   : > { %1337 = vmatprep.subr.mxu0 %v1261_v60  ;;  %6763 = vmatprep.subr.mxu1 %v1262_v53  ;;  %v1249_v56 = vsel %vm1244_vm5, %v12380_v26, %v12379_v18  ;;  %v1250_v54 = vsel %vm1244_vm5, %v12379_v18, %v12381_v8  ;;  %v1247_v60 = vsel %vm1244_vm5, %v12383_v22, %v12385_v11  ;;  %v8412_v18 = vld [vmem:[#allocation2 + $0x38] sm:$0xff] }
 0x234   : > { %1338 = vmatpush1.msra.mxu0 %v1260_v14  ;;  %6764 = vmatpush3.msra.mxu1 %v1262_v53  ;;  %v8342_v14 = vld [vmem:[%s12043_s3] sm:$0xff] }
 0x235   : > { %1339 = vmatprep.subr.mxu0 %v1258_v6  ;;  %6765 = vmatprep.subr.mxu1 %v1259_v52  ;;  %v8249_v42 = vpop.permute.xlu0 %2623 }
 0x236   : > { %v8251_v23 = vpop.permute.xlu1 %2633  ;;  %1038 = vmatprep.mubr.f32.mxu1 %v8209_v9  ;;  %6753 = vmatprep.mubr.msk.f32.mxu0 %vm937_vm3, %v8240_v19 }
 0x237   : > { %1340 = vmatpush1.msra.mxu0 %v1257_v46  ;;  %6766 = vmatpush3.msra.mxu1 %v1259_v52  ;;  %v8349_v52 = vld [vmem:[#allocation2 + $0x8] sm:$0xff]  ;;  %v8353_v46 = vld [vmem:[#allocation2 + $0x10] sm:$0xff] }
 0x238   : > { %3363 = vrot.lane.b32.xlu0 %v7695_v62, %s7204_s13  ;;  %3365 = vrot.lane.b32.xlu1 %v12370_v10, %s7204_s13  ;;  %v1254_v62 = vsel %vm1244_vm5, %v7048_v59, %v12372_v57  ;;  %v1631_v59 = vsel %vm1608_vm6, %v8072_v32, %v8108_v12  ;;  %v12387_v10 = vld [vmem:[#allocation62_spill] sm:$0xff] }
 0x239   : > { %6361 = vmatmul.mubr.msk.f32.gmra.mxu1 %vm937_vm3, %v6353_v44  ;;  %6754 = vmatmul.mubr.msk.f32.gmra.mxu0 %vm937_vm3, %v8261_v2  ;;  %v8277_v43 = vpop.permute.xlu0 %2627  ;;  %v7042_v44 = vunpack.i.l.bf16 %v12377_v7  ;;  %v1632_v4 = vsel %vm1608_vm6, %v8108_v12, %v12387_v10  ;;  %v12388_v57 = vld [vmem:[#allocation66_spill] sm:$0xff]  ;;  %v12397_v7 = vld [vmem:[#allocation71_spill] sm:$0xff] }
 0x23a   : > { %v8279_v34 = vpop.permute.xlu1 %2637  ;;  %1341 = vmatprep.subr.mxu0 %v1255_v50  ;;  %6767 = vmatprep.subr.mxu1 %v1256_v3  ;;  %v12389_v50 = vld [vmem:[#allocation77_spill] sm:$0xff]  ;;  %v12407_v10 = vld [vmem:[#allocation43_spill] sm:$0xff] }
 0x23b   : > { %1342 = vmatpush1.msra.mxu0 %v1254_v62  ;;  %6768 = vmatpush3.msra.mxu1 %v1256_v3  ;;  %v1245_v53 = vsel %vm1244_vm5, %v7042_v44, %v12384_v41  ;;  %v1629_v37 = vsel %vm1608_vm6, %v12389_v50, %v12388_v57  ;;  %v8379_v12 = vld [vmem:[%s12043_s3 + $0x8] sm:$0xff]  ;;  %v8381_v62 = vld [vmem:[#allocation2 + $0x18] sm:$0xff] }
 0x23c   : > { %1343 = vmatprep.subr.mxu0 %v1252_v30  ;;  %6769 = vmatprep.subr.mxu1 %v1253_v51  ;;  %v1626_v30 = vsel %vm1608_vm6, %v12393_v25, %v12392_v0  ;;  %v12408_v57 = vld [vmem:[#allocation28_spill] sm:$0xff] }
 0x23d   : > { %1044 = vmatprep.mubr.f32.mxu1 %v8209_v9  ;;  %6756 = vmatprep.mubr.msk.f32.mxu0 %vm937_vm3, %v8286_v29  ;;  %v8305_v13 = vpop.permute.xlu0 %2631 }
 0x23e   : > { %v8307_v35 = vpop.permute.xlu1 %2641  ;;  %1344 = vmatpush1.msra.mxu0 %v1251_v36  ;;  %6770 = vmatpush3.msra.mxu1 %v1253_v51  ;;  %v12396_v36 = vld [vmem:[#allocation52_spill] sm:$0xff] }
 0x23f   : > { %3367 = vrot.lane.b32.xlu0 %v7554_v24, %s7204_s13  ;;  %3369 = vrot.lane.b32.xlu1 %v12378_v33, %s7204_s13  ;;  %v1248_v24 = vsel %vm1244_vm5, %v7043_v1, %v12380_v26  ;;  %v1623_v1 = vsel %vm1608_vm6, %v12397_v7, %v12396_v36  ;;  %v8408_v33 = vld [vmem:[#allocation2 + $0x30] sm:$0xff]  ;;  %v12398_v26 = vld [vmem:[#allocation36_spill] sm:$0xff] }
 0x240   : > { %6362 = vmatmul.mubr.msk.f32.gmra.mxu1 %vm937_vm3, %v6354_v55  ;;  %6757 = vmatmul.mubr.msk.f32.gmra.mxu0 %vm937_vm3, %v8303_v38  ;;  %v1246_v55 = vsel %vm1244_vm5, %v12384_v41, %v12383_v22  ;;  %v12403_v22 = vld [vmem:[#allocation50_spill] sm:$0xff] }
 0x241   : > { %1345 = vmatprep.subr.mxu0 %v1249_v56  ;;  %6771 = vmatprep.subr.mxu1 %v1250_v54  ;;  %v8326_v45 = vpop.permute.xlu0 %2635  ;;  %v12399_v56 = vld [vmem:[#allocation64_spill] sm:$0xff] }
 0x242   : > { %v8328_v16 = vpop.permute.xlu1 %2961  ;;  %1346 = vmatpush1.msra.mxu0 %v1248_v24  ;;  %6772 = vmatpush3.msra.mxu1 %v1250_v54  ;;  %v1620_v8 = vsel %vm1608_vm6, %v12399_v56, %v12398_v26  ;;  %v12402_v24 = vld [vmem:[#allocation46_spill] sm:$0xff] }
 0x243   : > { %12382 = vst [vmem:[#allocation9_spill] sm:$0xff] %v8328_v16  ;;  %1347 = vmatprep.subr.mxu0 %v1246_v55  ;;  %6773 = vmatprep.subr.mxu1 %v1247_v60  ;;  %v1617_v41 = vsel %vm1608_vm6, %v12403_v22, %v12402_v24  ;;  %v8434_v55 = vld [vmem:[#allocation2 + $0x48] sm:$0xff] }
 0x244   : > { %1050 = vmatprep.mubr.f32.mxu1 %v8209_v9  ;;  %1348 = vmatpush1.msra.mxu0 %v1245_v53  ;;  %v8442_v53 = vld [vmem:[#allocation2 + $0x50] sm:$0xff] }
 0x245   : > { %1381 = vmatprep.mubr.f32.mxu0 %v8209_v9  ;;  %6774 = vmatpush3.msra.mxu1 %v1247_v60  ;;  %v8345_v5 = vpop.permute.xlu0 %2639 }
 0x246   : > { %v8347_v6 = vpop.permute.xlu1 %2965  ;;  %3687 = vrot.lane.b32.xlu0 %v8349_v52, %s7205_s11  ;;  %3689 = vrot.lane.b32.xlu1 %v8353_v46, %s7205_s11 }
 0x247   : > { %12386 = vst [vmem:[#allocation61_spill] sm:$0xff] %v8347_v6  ;;  %6363 = vmatmul.mubr.msk.f32.gmra.mxu1 %vm937_vm3, %v8240_v19  ;;  %6375 = vmatmul.mubr.msk.f32.vlgmr.msra.gmra.mxu0 %vm937_vm3, %v8342_v14 }
 0x248   : > { %1697 = vmatprep.subr.mxu1 %v1631_v59  ;;  %6787 = vmatprep.subr.mxu0 %v1632_v4  ;;  %v12406_v59 = vld [vmem:[#allocation24_spill] sm:$0xff] }
 0x249   : > { %6788 = vmatpush3.msra.mxu0 %v1632_v4  ;;  %1056 = vmatprep.mubr.f32.mxu1 %v8209_v9  ;;  %v8371_v19 = vpop.permute.xlu0 %2959  ;;  %v1614_v4 = vsel %vm1608_vm6, %v12407_v10, %v12406_v59  ;;  %v12414_v59 = vld [vmem:[#allocation79_spill] sm:$0xff] }
 0x24a   : > { %12390 = vst [vmem:[#allocation59_spill] sm:$0xff] %v8371_v19  ;;  %v8373_v3 = vpop.permute.xlu1 %2969  ;;  %6789 = vmatprep.subr.mxu0 %v1629_v37  ;;  %1387 = vmatprep.mubr.f32.mxu0 %v8209_v9 }
 0x24b   : > { %12391 = vst [vmem:[#allocation34_spill] sm:$0xff] %v8373_v3  ;;  %6790 = vmatpush3.msra.mxu0 %v1629_v37  ;;  %3691 = vrot.lane.b32.xlu0 %v8381_v62, %s7205_s11  ;;  %v12409_v37 = vld [vmem:[#allocation32_spill] sm:$0xff] }
 0x24c   : > { %3693 = vrot.lane.b32.xlu1 %v8385_v61, %s7205_s11  ;;  %6364 = vmatmul.mubr.msk.f32.gmra.mxu1 %vm937_vm3, %v8261_v2  ;;  %v777_v2 = vld [vmem:[%s12043_s3 + $0x10] sm:$0xff]  ;;  %v1611_v0 = vsel %vm1608_vm6, %v12409_v37, %v12408_v57 }
 0x24d   : > { %6376 = vmatmul.mubr.msk.f32.gmra.mxu0 %vm937_vm3, %v8379_v12  ;;  %6791 = vmatprep.subr.mxu0 %v1626_v30  ;;  %v8396_v47 = vpop.permute.xlu0 %2963 }
 0x24e   : > { %12394 = vst [vmem:[#allocation49_spill] sm:$0xff] %v8396_v47  ;;  %v8398_v51 = vpop.permute.xlu1 %2973  ;;  %6792 = vmatpush3.msra.mxu0 %v1626_v30  ;;  %1062 = vmatprep.mubr.f32.mxu1 %v8209_v9  ;;  %v779_v30 = vld [vmem:[%s12043_s3 + $0x20] sm:$0xff]  ;;  %v12454_v47 = vld [vmem:[#allocation47_spill] sm:$0xff] }
 0x24f   : > { %12395 = vst [vmem:[#allocation51_spill] sm:$0xff] %v8398_v51  ;;  %6793 = vmatprep.subr.mxu0 %v1623_v1  ;;  %1393 = vmatprep.mubr.f32.mxu0 %v8209_v9 }
 0x250   : > { %6794 = vmatpush3.msra.mxu0 %v1623_v1  ;;  %3695 = vrot.lane.b32.xlu0 %v8408_v33, %s7205_s11  ;;  %v12412_v1 = vld [vmem:[#allocation12_spill] sm:$0xff] }
 0x251   : > { %3697 = vrot.lane.b32.xlu1 %v8412_v18, %s7205_s11  ;;  %6365 = vmatmul.mubr.msk.f32.gmra.mxu1 %vm937_vm3, %v8286_v29  ;;  %v8421_v54 = vpop.permute.xlu0 %2967  ;;  %v778_v29 = vld [vmem:[%s12043_s3 + $0x18] sm:$0xff]  ;;  %v7078_v26 = vunpack.i.h.bf16 %v12412_v1 }
 0x252   : > { %12400 = vst [vmem:[#allocation44_spill] sm:$0xff] %v8421_v54  ;;  %v8423_v44 = vpop.permute.xlu1 %2977  ;;  %6377 = vmatmul.mubr.msk.f32.gmra.mxu0 %vm937_vm3, %v777_v2  ;;  %6795 = vmatprep.subr.mxu0 %v1620_v8 }
 0x253   : > { %12401 = vst [vmem:[#allocation10_spill] sm:$0xff] %v8423_v44  ;;  %6796 = vmatpush3.msra.mxu0 %v1620_v8  ;;  %1068 = vmatprep.mubr.f32.mxu1 %v8209_v9  ;;  %v8468_v8 = vld [vmem:[#allocation2 + $0x68] sm:$0xff]  ;;  %v12436_v44 = vld [vmem:[#allocation68_spill] sm:$0xff] }
 0x254   : > { %6797 = vmatprep.subr.mxu0 %v1617_v41  ;;  %1399 = vmatprep.mubr.f32.mxu0 %v8209_v9 }
 0x255   : > { %6798 = vmatpush3.msra.mxu0 %v1617_v41  ;;  %3699 = vrot.lane.b32.xlu0 %v8434_v55, %s7205_s11  ;;  %v8438_v11 = vpop.permute.xlu0 %2971  ;;  %v7077_v41 = vunpack.i.l.bf16 %v12412_v1 }
 0x256   : > { %12404 = vst [vmem:[#allocation16_spill] sm:$0xff] %v8438_v11  ;;  %v8440_v60 = vpop.permute.xlu1 %2981  ;;  %3701 = vrot.lane.b32.xlu1 %v8442_v53, %s7205_s11  ;;  %6366 = vmatmul.mubr.msk.f32.gmra.mxu1 %vm937_vm3, %v8303_v38  ;;  %v8597_v11 = vld [vmem:[#allocation2 + $0xb0] sm:$0xff] }
 0x257   : > { %12405 = vst [vmem:[#allocation42_spill] sm:$0xff] %v8440_v60  ;;  %6378 = vmatmul.mubr.msk.f32.gmra.mxu0 %vm937_vm3, %v778_v29  ;;  %6799 = vmatprep.subr.mxu0 %v1614_v4  ;;  %v1627_v1 = vsel %vm1608_vm6, %v7077_v41, %v12414_v59  ;;  %v8503_v41 = vld [vmem:[#allocation2 + $0x78] sm:$0xff] }
 0x258   : > { %6800 = vmatpush3.msra.mxu0 %v1614_v4  ;;  %1405 = vmatprep.mubr.f32.mxu0 %v8209_v9  ;;  %v1628_v4 = vsel %vm1608_vm6, %v12414_v59, %v12389_v50  ;;  %v12418_v50 = vld [vmem:[#allocation75_spill] sm:$0xff] }
 0x259   : > { %6801 = vmatprep.subr.mxu0 %v1611_v0  ;;  %6775 = vmatprep.mubr.msk.f32.mxu1 %vm937_vm3, %v8342_v14  ;;  %v8461_v38 = vpop.permute.xlu0 %2975  ;;  %v12413_v14 = vld [vmem:[#allocation81_spill] sm:$0xff] }
 0x25a   : > { %12410 = vst [vmem:[#allocation38_spill] sm:$0xff] %v8461_v38  ;;  %v8463_v36 = vpop.permute.xlu1 %2985  ;;  %6802 = vmatpush3.msra.mxu0 %v1611_v0  ;;  %3703 = vrot.lane.b32.xlu0 %v7595_v28, %s7205_s11  ;;  %v2019_v24 = vsel %vm1996_vm7, %v12413_v14, %v8134_v63  ;;  %v1630_v28 = vsel %vm1608_vm6, %v7078_v26, %v8072_v32  ;;  %v780_v32 = vld [vmem:[%s12043_s3 + $0x28] sm:$0xff] }
 0x25b   : > { %12411 = vst [vmem:[#allocation22_spill] sm:$0xff] %v8463_v36  ;;  %3705 = vrot.lane.b32.xlu1 %v8468_v8, %s7205_s11  ;;  %6379 = vmatmul.mubr.msk.f32.gmra.mxu0 %vm937_vm3, %v779_v30  ;;  %v8647_v36 = vld [vmem:[#allocation2 + $0xd0] sm:$0xff]  ;;  %v12463_v38 = vld [vmem:[#allocation29_spill] sm:$0xff] }
 0x25c   : > { %6776 = vmatmul.mubr.msk.f32.vlgmr.msra.gmra.mxu1 %vm937_vm3, %v8379_v12  ;;  %2085 = vmatprep.subr.mxu0 %v2019_v24  ;;  %v12417_v12 = vld [vmem:[#allocation15_spill] sm:$0xff]  ;;  %v1625_v24 = vsel %vm1608_vm6, %v12418_v50, %v12393_v25 }
 0x25d   : > { %1698 = vmatpush1.msra.mxu1 %v1630_v28  ;;  %1411 = vmatprep.mubr.f32.mxu0 %v8209_v9  ;;  %v8485_v57 = vpop.permute.xlu0 %2979  ;;  %v7073_v26 = vunpack.i.h.bf16 %v12417_v12  ;;  %v8499_v28 = vld [vmem:[#allocation2 + $0x70] sm:$0xff] }
 0x25e   : > { %12415 = vst [vmem:[#allocation30_spill] sm:$0xff] %v8485_v57  ;;  %v8487_v0 = vpop.permute.xlu1 %2989  ;;  %1699 = vmatprep.subr.mxu1 %v1628_v4  ;;  %6778 = vmatprep.mubr.msk.f32.mxu1 %vm937_vm3, %v777_v2  ;;  %v7072_v2 = vunpack.i.l.bf16 %v12417_v12 }
 0x25f   : > { %12416 = vst [vmem:[#allocation20_spill] sm:$0xff] %v8487_v0  ;;  %1700 = vmatpush1.msra.mxu1 %v1627_v1  ;;  %3707 = vrot.lane.b32.xlu0 %v8499_v28, %s7205_s11  ;;  %v1624_v25 = vsel %vm1608_vm6, %v7073_v26, %v12418_v50  ;;  %v12420_v1 = vld [vmem:[#allocation69_spill] sm:$0xff]  ;;  %v12421_v26 = vld [vmem:[#allocation11_spill] sm:$0xff] }
 0x260   : > { %1701 = vmatprep.subr.mxu1 %v1625_v24  ;;  %3709 = vrot.lane.b32.xlu1 %v8503_v41, %s7205_s11  ;;  %v1622_v24 = vsel %vm1608_vm6, %v12420_v1, %v12397_v7  ;;  %v1621_v12 = vsel %vm1608_vm6, %v7072_v2, %v12420_v1  ;;  %v7068_v50 = vunpack.i.h.bf16 %v12421_v26  ;;  %v8530_v7 = vld [vmem:[#allocation2 + $0x88] sm:$0xff]  ;;  %v8534_v2 = vld [vmem:[#allocation2 + $0x90] sm:$0xff] }
 0x261   : > { %6380 = vmatmul.mubr.msk.f32.gmra.mxu0 %vm937_vm3, %v780_v32  ;;  %6779 = vmatmul.mubr.msk.f32.gmra.mxu1 %vm937_vm3, %v778_v29  ;;  %v8512_v59 = vpop.permute.xlu0 %2983  ;;  %v781_v29 = vld [vmem:[%s12043_s3 + $0x30] sm:$0xff] }
 0x262   : > { %12419 = vst [vmem:[#allocation26_spill] sm:$0xff] %v8512_v59  ;;  %v8514_v4 = vpop.permute.xlu1 %2993  ;;  %1702 = vmatpush1.msra.mxu1 %v1624_v25  ;;  %1417 = vmatprep.mubr.f32.mxu0 %v8209_v9  ;;  %v12422_v25 = vld [vmem:[#allocation60_spill] sm:$0xff]  ;;  %v8643_v59 = vld [vmem:[#allocation2 + $0xc8] sm:$0xff] }
 0x263   : > { %1703 = vmatprep.subr.mxu1 %v1622_v24  ;;  %6781 = vmatprep.mubr.msk.f32.mxu1 %vm937_vm3, %v779_v30  ;;  %v1619_v19 = vsel %vm1608_vm6, %v12422_v25, %v12399_v56  ;;  %v7067_v24 = vunpack.i.l.bf16 %v12421_v26  ;;  %v1618_v56 = vsel %vm1608_vm6, %v7068_v50, %v12422_v25  ;;  %v12426_v26 = vld [vmem:[#allocation13_spill] sm:$0xff]  ;;  %v12427_v50 = vld [vmem:[#allocation40_spill] sm:$0xff] }
 0x264   : > { %1704 = vmatpush1.msra.mxu1 %v1621_v12  ;;  %3711 = vrot.lane.b32.xlu0 %v8530_v7, %s7205_s11  ;;  %v7063_v6 = vunpack.i.h.bf16 %v12426_v26  ;;  %v1613_v25 = vsel %vm1608_vm6, %v12427_v50, %v12407_v10  ;;  %v7062_v10 = vunpack.i.l.bf16 %v12426_v26 }
 0x265   : > { %1705 = vmatprep.subr.mxu1 %v1619_v19  ;;  %3713 = vrot.lane.b32.xlu1 %v8534_v2, %s7205_s11  ;;  %v8538_v30 = vpop.permute.xlu0 %2987  ;;  %v12425_v19 = vld [vmem:[#allocation54_spill] sm:$0xff] }
 0x266   : > { %12423 = vst [vmem:[#allocation62_spill] sm:$0xff] %v8538_v30  ;;  %v8540_v1 = vpop.permute.xlu1 %2997  ;;  %6381 = vmatmul.mubr.msk.f32.gmra.mxu0 %vm937_vm3, %v781_v29  ;;  %6782 = vmatmul.mubr.msk.f32.gmra.mxu1 %vm937_vm3, %v780_v32  ;;  %v1616_v12 = vsel %vm1608_vm6, %v12425_v19, %v12403_v22  ;;  %v1615_v16 = vsel %vm1608_vm6, %v7067_v24, %v12425_v19  ;;  %v782_v32 = vld [vmem:[%s12043_s3 + $0x38] sm:$0xff] }
 0x267   : > { %12424 = vst [vmem:[#allocation66_spill] sm:$0xff] %v8540_v1  ;;  %1706 = vmatpush1.msra.mxu1 %v1618_v56  ;;  %1423 = vmatprep.mubr.f32.mxu0 %v8209_v9  ;;  %v8561_v22 = vld [vmem:[#allocation2 + $0x98] sm:$0xff]  ;;  %v1612_v19 = vsel %vm1608_vm6, %v7063_v6, %v12427_v50  ;;  %v12432_v6 = vld [vmem:[#allocation17_spill] sm:$0xff] }
 0x268   : > { %1707 = vmatprep.subr.mxu1 %v1616_v12  ;;  %6784 = vmatprep.mubr.msk.f32.mxu1 %vm937_vm3, %v781_v29  ;;  %v8569_v29 = vld [vmem:[#allocation2 + $0xa8] sm:$0xff]  ;;  %v7098_v50 = vunpack.i.h.bf16 %v12432_v6 }
 0x269   : > { %1708 = vmatpush1.msra.mxu1 %v1615_v16  ;;  %3715 = vrot.lane.b32.xlu0 %v8561_v22, %s7205_s11  ;;  %v8565_v56 = vpop.permute.xlu0 %2991  ;;  %v6391_v16 = vld [vmem:[%s12043_s3 + $0x80] sm:$0xff] }
 0x26a   : > { %12428 = vst [vmem:[#allocation77_spill] sm:$0xff] %v8565_v56  ;;  %v8567_v24 = vpop.permute.xlu1 %3001  ;;  %1709 = vmatprep.subr.mxu1 %v1613_v25  ;;  %3717 = vrot.lane.b32.xlu1 %v8569_v29, %s7205_s11  ;;  %v12430_v12 = vld [vmem:[#allocation21_spill] sm:$0xff]  ;;  %v12444_v56 = vld [vmem:[#allocation55_spill] sm:$0xff] }
 0x26b   : > { %12429 = vst [vmem:[#allocation56_spill] sm:$0xff] %v8567_v24  ;;  %6382 = vmatmul.mubr.msk.f32.gmra.mxu0 %vm937_vm3, %v782_v32  ;;  %6785 = vmatmul.mubr.msk.f32.gmra.mxu1 %vm937_vm3, %v782_v32  ;;  %v1610_v25 = vsel %vm1608_vm6, %v12430_v12, %v12409_v37  ;;  %v1609_v54 = vsel %vm1608_vm6, %v7062_v10, %v12430_v12  ;;  %v6392_v32 = vld [vmem:[%s12043_s3 + $0x88] sm:$0xff]  ;;  %v8601_v10 = vld [vmem:[#allocation2 + $0xb8] sm:$0xff] }
 0x26c   : > { %1710 = vmatpush1.msra.mxu1 %v1612_v19  ;;  %1745 = vmatprep.mubr.f32.mxu1 %v8209_v9  ;;  %v12433_v19 = vld [vmem:[#allocation65_spill] sm:$0xff] }
 0x26d   : > { %1711 = vmatprep.subr.mxu1 %v1610_v25  ;;  %6803 = vmatprep.mubr.msk.f32.mxu0 %vm937_vm3, %v6391_v16  ;;  %v8591_v26 = vpop.permute.xlu0 %2995  ;;  %v2020_v37 = vsel %vm1996_vm7, %v8134_v63, %v12433_v19  ;;  %v7097_v25 = vunpack.i.l.bf16 %v12432_v6  ;;  %v2018_v63 = vsel %vm1996_vm7, %v7098_v50, %v12413_v14  ;;  %v12435_v19 = vld [vmem:[#allocation80_spill] sm:$0xff]  ;;  %v6393_v6 = vld [vmem:[%s12043_s3 + $0x90] sm:$0xff]  ;;  %v12453_v1 = vld [vmem:[#allocation57_spill] sm:$0xff] }
 0x26e   : > { %12431 = vst [vmem:[#allocation73_spill] sm:$0xff] %v8591_v26  ;;  %1712 = vmatpush1.msra.mxu1 %v1609_v54  ;;  %3719 = vrot.lane.b32.xlu0 %v8597_v11, %s7205_s11  ;;  %v8605_v12 = vpop.permute.xlu1 %3005  ;;  %v12434_v54 = vld [vmem:[#allocation78_spill] sm:$0xff] }
 0x26f   : > { %6815 = vmatprep.subr.mxu1 %v2020_v37  ;;  %3721 = vrot.lane.b32.xlu1 %v8601_v10, %s7205_s11  ;;  %v2016_v51 = vsel %vm1996_vm7, %v12435_v19, %v12434_v54  ;;  %v2017_v57 = vsel %vm1996_vm7, %v12434_v54, %v12436_v44  ;;  %v2015_v14 = vsel %vm1996_vm7, %v7097_v25, %v12435_v19  ;;  %v12437_v50 = vld [vmem:[#allocation74_spill] sm:$0xff]  ;;  %v12440_v25 = vld [vmem:[#allocation19_spill] sm:$0xff] }
 0x270   : > { %6399 = vmatmul.mubr.msk.f32.vlgmr.msra.gmra.mxu1 %vm937_vm3, %v6391_v16  ;;  %6804 = vmatmul.mubr.msk.f32.vlgmr.msra.gmra.mxu0 %vm937_vm3, %v6392_v32  ;;  %v7093_v19 = vunpack.i.h.bf16 %v12440_v25 }
 0x271   : > { %2086 = vmatpush1.msra.mxu0 %v2018_v63  ;;  %6816 = vmatpush3.msra.mxu1 %v2020_v37  ;;  %v8621_v16 = vpop.permute.xlu0 %2999  ;;  %v12438_v37 = vld [vmem:[#allocation76_spill] sm:$0xff]  ;;  %v12439_v63 = vld [vmem:[#allocation58_spill] sm:$0xff] }
 0x272   : > { %2087 = vmatprep.subr.mxu0 %v2016_v51  ;;  %6817 = vmatprep.subr.mxu1 %v2017_v57  ;;  %v2013_v44 = vsel %vm1996_vm7, %v12438_v37, %v12437_v50  ;;  %v2014_v54 = vsel %vm1996_vm7, %v12437_v50, %v12439_v63  ;;  %v8636_v51 = vld [vmem:[%s12043_s3 + $0x98] sm:$0xff]  ;;  %v7092_v50 = vunpack.i.l.bf16 %v12440_v25 }
 0x273   : > { %2088 = vmatpush1.msra.mxu0 %v2015_v14  ;;  %6818 = vmatpush3.msra.mxu1 %v2017_v57  ;;  %v8641_v14 = vpop.permute.xlu1 %3325  ;;  %v12442_v63 = vld [vmem:[#allocation72_spill] sm:$0xff] }
 0x274   : > { %1751 = vmatprep.mubr.f32.mxu1 %v8209_v9  ;;  %6806 = vmatprep.mubr.msk.f32.mxu0 %vm937_vm3, %v6393_v6  ;;  %12441 = vst [vmem:[#allocation52_spill] sm:$0xff] %v8641_v14  ;;  %v12443_v14 = vld [vmem:[#allocation70_spill] sm:$0xff]  ;;  %v2011_v26 = vsel %vm1996_vm7, %v12442_v63, %v12444_v56  ;;  %v12446_v56 = vld [vmem:[#allocation67_spill] sm:$0xff] }
 0x275   : > { %2089 = vmatprep.subr.mxu0 %v2013_v44  ;;  %6819 = vmatprep.subr.mxu1 %v2014_v54  ;;  %v8639_v57 = vpop.permute.xlu0 %3003  ;;  %v2012_v44 = vsel %vm1996_vm7, %v7093_v19, %v12438_v37  ;;  %v2010_v0 = vsel %vm1996_vm7, %v12443_v14, %v12442_v63  ;;  %v2009_v37 = vsel %vm1996_vm7, %v7092_v50, %v12443_v14  ;;  %v8684_v14 = vld [vmem:[%s12043_s3 + $0xa8] sm:$0xff] }
 0x276   : > { %3723 = vrot.lane.b32.xlu0 %v8643_v59, %s7205_s11  ;;  %3725 = vrot.lane.b32.xlu1 %v8647_v36, %s7205_s11 }
 0x277   : > { %6400 = vmatmul.mubr.msk.f32.gmra.mxu1 %vm937_vm3, %v6392_v32  ;;  %6807 = vmatmul.mubr.msk.f32.gmra.mxu0 %vm937_vm3, %v8636_v51  ;;  %v8666_v32 = vld [vmem:[%s12043_s3 + $0xa0] sm:$0xff]  ;;  %v8686_v50 = vpop.permute.xlu1 %3329 }
 0x278   : > { %2090 = vmatpush1.msra.mxu0 %v2012_v44  ;;  %6820 = vmatpush3.msra.mxu1 %v2014_v54  ;;  %v12447_v54 = vld [vmem:[#allocation63_spill] sm:$0xff]  ;;  %v12448_v44 = vld [vmem:[#allocation37_spill] sm:$0xff]  ;;  %12449 = vst [vmem:[#allocation36_spill] sm:$0xff] %v8686_v50 }
 0x279   : > { %2091 = vmatprep.subr.mxu0 %v2010_v0  ;;  %6821 = vmatprep.subr.mxu1 %v2011_v26  ;;  %v8670_v25 = vpop.permute.xlu0 %3323  ;;  %v2007_v19 = vsel %vm1996_vm7, %v12447_v54, %v12446_v56  ;;  %v2008_v0 = vsel %vm1996_vm7, %v12446_v56, %v12448_v44  ;;  %v12452_v50 = vld [vmem:[#allocation53_spill] sm:$0xff] }
 0x27a   : > { %12445 = vst [vmem:[#allocation71_spill] sm:$0xff] %v8670_v25  ;;  %2092 = vmatpush1.msra.mxu0 %v2009_v37  ;;  %6822 = vmatpush3.msra.mxu1 %v2011_v26  ;;  %v12450_v26 = vld [vmem:[#allocation14_spill] sm:$0xff]  ;;  %v8689_v37 = vld [vmem:[#allocation2 + $0xd8] sm:$0xff]  ;;  %v2004_v24 = vsel %vm1996_vm7, %v12453_v1, %v12452_v50 }
 0x27b   : > { %1757 = vmatprep.mubr.f32.mxu1 %v8209_v9  ;;  %6809 = vmatprep.mubr.msk.f32.mxu0 %vm937_vm3, %v8666_v32  ;;  %v7088_v63 = vunpack.i.h.bf16 %v12450_v26  ;;  %v8693_v25 = vld [vmem:[#allocation2 + $0xe8] sm:$0xff]  ;;  %v7087_v44 = vunpack.i.l.bf16 %v12450_v26  ;;  %v8720_v26 = vpop.permute.xlu1 %3333 }
 0x27c   : > { %2093 = vmatprep.subr.mxu0 %v2007_v19  ;;  %6823 = vmatprep.subr.mxu1 %v2008_v0  ;;  %12456 = vst [vmem:[#allocation50_spill] sm:$0xff] %v8720_v26 }
 0x27d   : > { %3727 = vrot.lane.b32.xlu0 %v8689_v37, %s7205_s11  ;;  %3729 = vrot.lane.b32.xlu1 %v8693_v25, %s7205_s11  ;;  %v8697_v56 = vpop.permute.xlu0 %3327  ;;  %v2006_v19 = vsel %vm1996_vm7, %v7088_v63, %v12447_v54  ;;  %v2003_v54 = vsel %vm1996_vm7, %v7087_v44, %v12453_v1  ;;  %v8734_v1 = vld [vmem:[%s12043_s3 + $0xb8] sm:$0xff] }
 0x27e   : > { %12451 = vst [vmem:[#allocation64_spill] sm:$0xff] %v8697_v56  ;;  %6401 = vmatmul.mubr.msk.f32.gmra.mxu1 %vm937_vm3, %v6393_v6  ;;  %6810 = vmatmul.mubr.msk.f32.gmra.mxu0 %vm937_vm3, %v8684_v14  ;;  %v2005_v56 = vsel %vm1996_vm7, %v12452_v50, %v12454_v47  ;;  %v8714_v6 = vld [vmem:[%s12043_s3 + $0xb0] sm:$0xff]  ;;  %v12457_v47 = vld [vmem:[#allocation45_spill] sm:$0xff] }
 0x27f   : > { %2094 = vmatpush1.msra.mxu0 %v2006_v19  ;;  %6824 = vmatpush3.msra.mxu1 %v2008_v0  ;;  %v12458_v50 = vld [vmem:[#allocation41_spill] sm:$0xff]  ;;  %v8756_v30 = vpop.permute.xlu1 %3337 }
 0x280   : > { %2095 = vmatprep.subr.mxu0 %v2004_v24  ;;  %6825 = vmatprep.subr.mxu1 %v2005_v56  ;;  %v2001_v63 = vsel %vm1996_vm7, %v12458_v50, %v12457_v47  ;;  %v12459_v24 = vld [vmem:[#allocation25_spill] sm:$0xff] }
 0x281   : > { %2096 = vmatpush1.msra.mxu0 %v2003_v54  ;;  %6826 = vmatpush3.msra.mxu1 %v2005_v56  ;;  %v8718_v0 = vpop.permute.xlu0 %3331  ;;  %v2002_v19 = vsel %vm1996_vm7, %v12457_v47, %v12459_v24  ;;  %v12460_v56 = vld [vmem:[#allocation18_spill] sm:$0xff]  ;;  %v12462_v24 = vld [vmem:[#allocation23_spill] sm:$0xff] }
 0x282   : > { %12455 = vst [vmem:[#allocation46_spill] sm:$0xff] %v8718_v0  ;;  %1763 = vmatprep.mubr.f32.mxu1 %v8209_v9  ;;  %6812 = vmatprep.mubr.msk.f32.mxu0 %vm937_vm3, %v8714_v6  ;;  %v7083_v44 = vunpack.i.h.bf16 %v12460_v56  ;;  %v7143_v54 = vld [vmem:[#allocation2 + $0xf0] sm:$0xff]  ;;  %v7144_v0 = vld [vmem:[#allocation2 + $0xf8] sm:$0xff]  ;;  %v7082_v26 = vunpack.i.l.bf16 %v12460_v56 }
 0x283   : > { %2097 = vmatprep.subr.mxu0 %v2001_v63  ;;  %6827 = vmatprep.subr.mxu1 %v2002_v19  ;;  %v12461_v63 = vld [vmem:[#allocation33_spill] sm:$0xff] }
 0x284   : > { %3731 = vrot.lane.b32.xlu0 %v7143_v54, %s7205_s11  ;;  %3733 = vrot.lane.b32.xlu1 %v7144_v0, %s7205_s11  ;;  %v2000_v47 = vsel %vm1996_vm7, %v7083_v44, %v12458_v50  ;;  %v1998_v3 = vsel %vm1996_vm7, %v12462_v24, %v12461_v63  ;;  %v1999_v60 = vsel %vm1996_vm7, %v12461_v63, %v12463_v38  ;;  %v4042_v50 = vld [vmem:[%s12044_s4] sm:$0xff]  ;;  %v6416_v44 = vld [vmem:[%s12043_s3 + $0xc8] sm:$0xff]  ;;  %v7145_v63 = vld [vmem:[#allocation2 + $0x58] sm:$0xff] }
 0x285   : > { %6402 = vmatmul.mubr.msk.f32.gmra.mxu1 %vm937_vm3, %v8636_v51  ;;  %6813 = vmatmul.mubr.msk.f32.gmra.mxu0 %vm937_vm3, %v8734_v1  ;;  %v1997_v51 = vsel %vm1996_vm7, %v7082_v26, %v12462_v24  ;;  %v8754_v56 = vpop.permute.xlu0 %3335  ;;  %v8778_v26 = vpop.permute.xlu1 %3341 }
 0x286   : > { %2098 = vmatpush1.msra.mxu0 %v2000_v47  ;;  %6828 = vmatpush3.msra.mxu1 %v2002_v19  ;;  %v4043_v19 = vld [vmem:[%s12044_s4 + $0x8] sm:$0xff] }
 0x287   : > { %2099 = vmatprep.subr.mxu0 %v1998_v3  ;;  %6829 = vmatprep.subr.mxu1 %v1999_v60  ;;  %v6415_v3 = vld [vmem:[%s12043_s3 + $0xc0] sm:$0xff] }
 0x288   : > { %2100 = vmatpush1.msra.mxu0 %v1997_v51  ;;  %6830 = vmatpush3.msra.mxu1 %v1999_v60  ;;  %v4044_v60 = vld [vmem:[%s12044_s4 + $0x10] sm:$0xff] }
 0x289   : > { %1769 = vmatprep.mubr.f32.mxu1 %v8209_v9  ;;  %2133 = vmatprep.mubr.f32.mxu0 %v8209_v9  ;;  %v8776_v38 = vpop.permute.xlu0 %3339  ;;  %v8808_v47 = vpop.permute.xlu1 %3345 }
 0x28a   : > { %2360 = vmatprep.subr.mxu1 %v7143_v54  ;;  %6843 = vmatprep.subr.mxu0 %v7144_v0 }
 0x28b   : > { %4052 = vperm.xlu0 %7017, %v4042_v50   ;;  %4057 = vperm.xlu1 %7018, %v4043_v19   ;;  %v7206_v50 = vmov 1   ;;  %v4250_v19 = vld [vmem:[%s12045_s5] sm:$0xff] }
 0x28c   : > { %6403 = vmatmul.mubr.msk.f32.gmra.mxu1 %vm937_vm3, %v8666_v32  ;;  %6423 = vmatmul.mubr.msk.f32.vlgmr.msra.gmra.mxu0 %vm937_vm3, %v6415_v3  ;;  %v4045_v32 = vld [vmem:[%s12044_s4 + $0x18] sm:$0xff] }
 0x28d   : > { %6844 = vmatpush3.msra.mxu0 %v7144_v0  ;;  %1775 = vmatprep.mubr.f32.mxu1 %v8209_v9  ;;  %v4046_v0 = vld [vmem:[%s12044_s4 + $0x20] sm:$0xff]  ;;  %v8806_v54 = vpop.permute.xlu0 %3343 }
 0x28e   : > { %6845 = vmatprep.subr.mxu0 %v8689_v37  ;;  %2139 = vmatprep.mubr.f32.mxu0 %v8209_v9 }
 0x28f   : > { %6846 = vmatpush3.msra.mxu0 %v8689_v37  ;;  %4062 = vperm.xlu0 %7017, %v4044_v60   ;;  %v6417_v37 = vld [vmem:[%s12043_s3 + $0xd0] sm:$0xff] }
 0x290   : > { %6847 = vmatprep.subr.mxu0 %v8601_v10  ;;  %6404 = vmatmul.mubr.msk.f32.gmra.mxu1 %vm937_vm3, %v8684_v14  ;;  %v4047_v14 = vld [vmem:[%s12044_s4 + $0x28] sm:$0xff] }
 0x291   : > { %4067 = vperm.xlu1 %7018, %v4045_v32   ;;  %6424 = vmatmul.mubr.msk.f32.gmra.mxu0 %vm937_vm3, %v6416_v44  ;;  %v4253_v32 = vld [vmem:[%s12045_s5 + $0x18] sm:$0xff] }
 0x292   : > { %6848 = vmatpush3.msra.mxu0 %v8601_v10  ;;  %1781 = vmatprep.mubr.f32.mxu1 %v8209_v9  ;;  %v4048_v10 = vld [vmem:[%s12044_s4 + $0x30] sm:$0xff]  ;;  %v8827_v24 = vpop.permute.xlu0 %3347  ;;  %v8829_v51 = vpop.permute.xlu1 %3349 }
 0x293   : > { %6849 = vmatprep.subr.mxu0 %v8561_v22  ;;  %2145 = vmatprep.mubr.f32.mxu0 %v8209_v9 }
 0x294   : > { %6850 = vmatpush3.msra.mxu0 %v8561_v22  ;;  %4072 = vperm.xlu0 %7017, %v4046_v0   ;;  %v6418_v22 = vld [vmem:[%s12043_s3 + $0xd8] sm:$0xff]  ;;  %v2653_v0 = vsel %vm2643_vm8, %v8177_v48, %v8249_v42 }
 0x295   : > { %6851 = vmatprep.subr.mxu0 %v8503_v41  ;;  %6405 = vmatmul.mubr.msk.f32.gmra.mxu1 %vm937_vm3, %v8714_v6  ;;  %v4049_v6 = vld [vmem:[%s12044_s4 + $0x38] sm:$0xff] }
 0x296   : > { %6425 = vmatmul.mubr.msk.f32.gmra.mxu0 %vm937_vm3, %v6417_v37  ;;  %4077 = vperm.xlu1 %7018, %v4047_v14   ;;  %v2652_v14 = vsel %vm2643_vm8, %v8223_v20, %v8177_v48  ;;  %v2651_v48 = vsel %vm2643_vm8, %v8205_v15, %v8159_v27  ;;  %v8996_v20 = vld [vmem:[%s12045_s5 + $0x20] sm:$0xff] }
 0x297   : > { %6852 = vmatpush3.msra.mxu0 %v8503_v41  ;;  %1787 = vmatprep.mubr.f32.mxu1 %v8209_v9  ;;  %v6419_v41 = vld [vmem:[%s12043_s3 + $0xe0] sm:$0xff]  ;;  %v8857_v60 = vpop.permute.xlu1 %3353 }
 0x298   : > { %6853 = vmatprep.subr.mxu0 %v7145_v63  ;;  %2151 = vmatprep.mubr.f32.mxu0 %v8209_v9 }
 0x299   : > { %6854 = vmatpush3.msra.mxu0 %v7145_v63  ;;  %4082 = vperm.xlu0 %7017, %v4048_v10   ;;  %v2648_v10 = vsel %vm2643_vm8, %v8157_v21, %v8116_v49  ;;  %v6445_v63 = vld [vmem:[%s12043_s3 + $0x130] sm:$0xff]  ;;  %v6446_v21 = vld [vmem:[%s12043_s3 + $0x138] sm:$0xff] }
 0x29a   : > { %6855 = vmatprep.subr.mxu0 %v8412_v18  ;;  %6406 = vmatmul.mubr.msk.f32.gmra.mxu1 %vm937_vm3, %v8734_v1  ;;  %v8845_v1 = vld [vmem:[%s12045_s5 + $0x8] sm:$0xff] }
 0x29b   : > { %6426 = vmatmul.mubr.msk.f32.gmra.mxu0 %vm937_vm3, %v6418_v22  ;;  %4087 = vperm.xlu1 %7018, %v4049_v6   ;;  %v9034_v6 = vld [vmem:[%s12045_s5 + $0x30] sm:$0xff] }
 0x29c   : > { %6856 = vmatpush3.msra.mxu0 %v8412_v18  ;;  %2157 = vmatprep.mubr.f32.mxu0 %v8209_v9  ;;  %v2659_v18 = vsel %vm2643_vm8, %v8345_v5, %v8307_v35 }
 0x29d   : > { %6857 = vmatprep.subr.mxu0 %v8381_v62  ;;  %6831 = vmatprep.mubr.msk.f32.mxu1 %vm937_vm3, %v6415_v3  ;;  %v8855_v3 = vpop.permute.xlu0 %3351 }
 0x29e   : > { %6858 = vmatpush3.msra.mxu0 %v8381_v62  ;;  %7099 = vset.pattern.permute.xlu0 %v7206_v50  ;;  %v6420_v62 = vld [vmem:[%s12043_s3 + $0xe8] sm:$0xff] }
 0x29f   : > { %2724 = vmatprep.subr.mxu0 %v2659_v18  ;;  %6427 = vmatmul.mubr.msk.f32.gmra.mxu0 %vm937_vm3, %v6419_v41  ;;  %v12466_v18 = vld [vmem:[#allocation35_spill] sm:$0xff] }
 0x2a0   : > { %6832 = vmatmul.mubr.msk.f32.vlgmr.msra.gmra.mxu1 %vm937_vm3, %v6416_v44  ;;  %4265 = vperm.xlu1 %7018, %v8845_v1  }
 0x2a1   : > { %2361 = vmatpush1.msra.mxu1 %v8693_v25  ;;  %4363 = vperm.xlu0 %7099, %v4250_v19   ;;  %v8875_v25 = vpop.permute.xlu0 %3355 }
 0x2a2   : > { %2362 = vmatprep.subr.mxu1 %v8647_v36  ;;  %2163 = vmatprep.mubr.f32.mxu0 %v8209_v9  ;;  %v8877_v36 = vpop.permute.xlu1 %3357 }
 0x2a3   : > { %2363 = vmatpush1.msra.mxu1 %v8643_v59  ;;  %6834 = vmatprep.mubr.msk.f32.mxu1 %vm937_vm3, %v6417_v37  ;;  %v6421_v59 = vld [vmem:[%s12043_s3 + $0xf0] sm:$0xff]  ;;  %v6443_v37 = vld [vmem:[%s12043_s3 + $0x120] sm:$0xff] }
 0x2a4   : > { %2364 = vmatprep.subr.mxu1 %v8597_v11  ;;  %6428 = vmatmul.mubr.msk.f32.gmra.mxu0 %vm937_vm3, %v6420_v62  ;;  %v4255_v11 = vld [vmem:[%s12045_s5 + $0x28] sm:$0xff] }
 0x2a5   : > { %6835 = vmatmul.mubr.msk.f32.gmra.mxu1 %vm937_vm3, %v6418_v22  ;;  %4275 = vperm.xlu1 %7018, %v4253_v32  }
 0x2a6   : > { %2365 = vmatpush1.msra.mxu1 %v8569_v29  ;;  %4375 = vperm.xlu0 %7099, %v4253_v32   ;;  %v8897_v29 = vpop.permute.xlu0 %3359  ;;  %v8899_v44 = vpop.permute.xlu1 %3361 }
 0x2a7   : > { %2366 = vmatprep.subr.mxu1 %v8534_v2  ;;  %2169 = vmatprep.mubr.f32.mxu0 %v8209_v9  ;;  %v6422_v2 = vld [vmem:[%s12043_s3 + $0xf8] sm:$0xff] }
 0x2a8   : > { %2367 = vmatpush1.msra.mxu1 %v8530_v7  ;;  %6837 = vmatprep.mubr.msk.f32.mxu1 %vm937_vm3, %v6419_v41  ;;  %v6441_v7 = vld [vmem:[%s12043_s3 + $0x110] sm:$0xff] }
 0x2a9   : > { %2368 = vmatprep.subr.mxu1 %v8499_v28  ;;  %6429 = vmatmul.mubr.msk.f32.gmra.mxu0 %vm937_vm3, %v6421_v59  ;;  %v4257_v28 = vld [vmem:[%s12045_s5 + $0x38] sm:$0xff] }
 0x2aa   : > { %6838 = vmatmul.mubr.msk.f32.gmra.mxu1 %vm937_vm3, %v6420_v62  ;;  %4285 = vperm.xlu1 %7018, %v4255_v11  }
 0x2ab   : > { %2369 = vmatpush1.msra.mxu1 %v8468_v8  ;;  %4383 = vperm.xlu0 %7099, %v4255_v11   ;;  %v8922_v8 = vpop.permute.xlu1 %3365 }
 0x2ac   : > { %2370 = vmatprep.subr.mxu1 %v8442_v53  ;;  %2175 = vmatprep.mubr.f32.mxu0 %v8209_v9  ;;  %v6439_v53 = vld [vmem:[%s12043_s3 + $0x100] sm:$0xff] }
 0x2ad   : > { %2371 = vmatpush1.msra.mxu1 %v8434_v55  ;;  %6840 = vmatprep.mubr.msk.f32.mxu1 %vm937_vm3, %v6421_v59  ;;  %v8920_v55 = vpop.permute.xlu0 %3363  ;;  %v12468_v59 = vld [vmem:[#allocation27_spill] sm:$0xff] }
 0x2ae   : > { %2372 = vmatprep.subr.mxu1 %v8408_v33  ;;  %6430 = vmatmul.mubr.msk.f32.gmra.mxu0 %vm937_vm3, %v6422_v2  ;;  %v6440_v33 = vld [vmem:[%s12043_s3 + $0x108] sm:$0xff] }
 0x2af   : > { %6841 = vmatmul.mubr.msk.f32.gmra.mxu1 %vm937_vm3, %v6422_v2  ;;  %4295 = vperm.xlu1 %7018, %v4257_v28   ;;  %v3023_v2 = vsel %vm3007_vm9, %v8639_v57, %v8605_v12 }
 0x2b0   : > { %2373 = vmatpush1.msra.mxu1 %v8385_v61  ;;  %4391 = vperm.xlu0 %7099, %v4257_v28   ;;  %v2656_v61 = vsel %vm2643_vm8, %v8305_v13, %v8251_v23  ;;  %v4252_v13 = vld [vmem:[%s12045_s5 + $0x10] sm:$0xff] }
 0x2b1   : > { %2374 = vmatprep.subr.mxu1 %v8353_v46  ;;  %2408 = vmatprep.mubr.f32.mxu1 %v8209_v9  ;;  %v2658_v46 = vsel %vm2643_vm8, %v8279_v34, %v8345_v5  ;;  %v8944_v34 = vpop.permute.xlu0 %3367  ;;  %v2655_v5 = vsel %vm2643_vm8, %v8277_v43, %v8225_v31 }
 0x2b2   : > { %2375 = vmatpush1.msra.mxu1 %v8349_v52  ;;  %6859 = vmatprep.mubr.msk.f32.mxu0 %vm937_vm3, %v6439_v53  ;;  %v2657_v52 = vsel %vm2643_vm8, %v8251_v23, %v8326_v45  ;;  %v6442_v23 = vld [vmem:[%s12043_s3 + $0x118] sm:$0xff] }
 0x2b3   : > { %6871 = vmatprep.subr.mxu1 %v8307_v35  ;;  %6447 = vmatmul.mubr.msk.f32.vlgmr.msra.gmra.mxu1 %vm937_vm3, %v6439_v53 }
 0x2b4   : > { %6860 = vmatmul.mubr.msk.f32.vlgmr.msra.gmra.mxu0 %vm937_vm3, %v6440_v33  ;;  %7100 = vset.pattern.permute.xlu1 %v7206_v50  ;;  %v12467_v50 = vld [vmem:[#allocation31_spill] sm:$0xff] }
 0x2b5   : > { %2725 = vmatpush1.msra.mxu0 %v2658_v46  ;;  %6872 = vmatpush3.msra.mxu1 %v8307_v35  ;;  %v8946_v35 = vpop.permute.xlu1 %3369  ;;  %v2645_v19 = vsel %vm2643_vm8, %v12467_v50, %v12466_v18  ;;  %v2644_v11 = vsel %vm2643_vm8, %v12468_v59, %v12467_v50  ;;  %v7207_v46 = vmov 2   ;;  %v12479_v50 = vld [vmem:[#allocation22_spill] sm:$0xff] }
 0x2b6   : > { %4367 = vperm.xlu1 %7100, %v8845_v1   ;;  %2726 = vmatprep.subr.mxu0 %v2657_v52  ;;  %v12469_v52 = vld [vmem:[#allocation62_spill] sm:$0xff] }
 0x2b7   : > { %6873 = vmatprep.subr.mxu1 %v8326_v45  ;;  %2727 = vmatpush1.msra.mxu0 %v2656_v61  ;;  %v12480_v59 = vld [vmem:[#allocation26_spill] sm:$0xff] }
 0x2b8   : > { %6874 = vmatpush3.msra.mxu1 %v8326_v45  ;;  %2414 = vmatprep.mubr.f32.mxu1 %v8209_v9  ;;  %v2654_v45 = vsel %vm2643_vm8, %v8207_v17, %v8277_v43  ;;  %v8977_v17 = vpop.permute.xlu0 %3687  ;;  %v8985_v43 = vld [vmem:[%s12043_s3 + $0x128] sm:$0xff] }
 0x2b9   : > { %6862 = vmatprep.mubr.msk.f32.mxu0 %vm937_vm3, %v6441_v7  ;;  %2728 = vmatprep.subr.mxu0 %v2655_v5  ;;  %v12470_v5 = vld [vmem:[#allocation42_spill] sm:$0xff] }
 0x2ba   : > { %6875 = vmatprep.subr.mxu1 %v8225_v31  ;;  %6448 = vmatmul.mubr.msk.f32.gmra.mxu1 %vm937_vm3, %v6440_v33  ;;  %v6464_v33 = vld [vmem:[%s12043_s3 + $0x148] sm:$0xff] }
 0x2bb   : > { %6863 = vmatmul.mubr.msk.f32.gmra.mxu0 %vm937_vm3, %v6442_v23  ;;  %6876 = vmatpush3.msra.mxu1 %v8225_v31  ;;  %v8979_v31 = vpop.permute.xlu1 %3689 }
 0x2bc   : > { %2729 = vmatpush1.msra.mxu0 %v2654_v45  ;;  %4371 = vperm.xlu1 %7100, %v4252_v13   ;;  %v12471_v13 = vld [vmem:[#allocation38_spill] sm:$0xff] }
 0x2bd   : > { %2730 = vmatprep.subr.mxu0 %v2653_v0  ;;  %6877 = vmatprep.subr.mxu1 %v8249_v42  ;;  %v9015_v22 = vpop.permute.xlu0 %3691 }
 0x2be   : > { %2731 = vmatpush1.msra.mxu0 %v2652_v14  ;;  %6878 = vmatpush3.msra.mxu1 %v8249_v42  ;;  %v2649_v42 = vsel %vm2643_vm8, %v8116_v49, %v8175_v40  ;;  %v12473_v14 = vld [vmem:[#allocation49_spill] sm:$0xff] }
 0x2bf   : > { %2420 = vmatprep.mubr.f32.mxu1 %v8209_v9  ;;  %6865 = vmatprep.mubr.msk.f32.mxu0 %vm937_vm3, %v6443_v37  ;;  %v2650_v9 = vsel %vm2643_vm8, %v8136_v58, %v8205_v15  ;;  %v9017_v58 = vpop.permute.xlu1 %3693  ;;  %v12464_v15 = vld [vmem:[#allocation48_spill] sm:$0xff] }
 0x2c0   : > { %2732 = vmatprep.subr.mxu0 %v2651_v48  ;;  %6879 = vmatprep.subr.mxu1 %v8159_v27  ;;  %v2647_v49 = vsel %vm2643_vm8, %v12464_v15, %v8093_v39  ;;  %v12474_v48 = vld [vmem:[#allocation56_spill] sm:$0xff] }
 0x2c1   : > { %6449 = vmatmul.mubr.msk.f32.gmra.mxu1 %vm937_vm3, %v6441_v7  ;;  %6866 = vmatmul.mubr.msk.f32.gmra.mxu0 %vm937_vm3, %v8985_v43 }
 0x2c2   : > { %2733 = vmatpush1.msra.mxu0 %v2650_v9  ;;  %6880 = vmatpush3.msra.mxu1 %v8159_v27  ;;  %v9021_v27 = vld [vmem:[#allocation2] sm:$0xff]  ;;  %v9047_v62 = vpop.permute.xlu0 %3695  ;;  %v3022_v9 = vsel %vm3007_vm9, %v12474_v48, %v8639_v57 }
 0x2c3   : > { %4379 = vperm.xlu1 %7100, %v8996_v20   ;;  %2734 = vmatprep.subr.mxu0 %v2649_v42  ;;  %v9049_v32 = vpop.permute.xlu1 %3697  ;;  %v12475_v42 = vld [vmem:[#allocation66_spill] sm:$0xff]  ;;  %v12477_v57 = vld [vmem:[#allocation77_spill] sm:$0xff] }
 0x2c4   : > { %6881 = vmatprep.subr.mxu1 %v8175_v40  ;;  %2735 = vmatpush1.msra.mxu0 %v2648_v10  ;;  %v3021_v10 = vsel %vm3007_vm9, %v12475_v42, %v8621_v16 }
 0x2c5   : > { %6882 = vmatpush3.msra.mxu1 %v8175_v40  ;;  %2426 = vmatprep.mubr.f32.mxu1 %v9021_v27  ;;  %v12465_v40 = vld [vmem:[#allocation39_spill] sm:$0xff] }
 0x2c6   : > { %6868 = vmatprep.mubr.msk.f32.mxu0 %vm937_vm3, %v6445_v63  ;;  %2736 = vmatprep.subr.mxu0 %v2647_v49  ;;  %v2646_v41 = vsel %vm2643_vm8, %v12465_v40, %v12464_v15  ;;  %v6468_v49 = vld [vmem:[%s12043_s3 + $0x168] sm:$0xff] }
 0x2c7   : > { %6883 = vmatprep.subr.mxu1 %v8093_v39  ;;  %6450 = vmatmul.mubr.msk.f32.gmra.mxu1 %vm937_vm3, %v6442_v23  ;;  %v9069_v28 = vpop.permute.xlu0 %3699  ;;  %v6466_v23 = vld [vmem:[%s12043_s3 + $0x158] sm:$0xff] }
 0x2c8   : > { %6869 = vmatmul.mubr.msk.f32.gmra.mxu0 %vm937_vm3, %v6446_v21  ;;  %6884 = vmatpush3.msra.mxu1 %v8093_v39  ;;  %v6463_v39 = vld [vmem:[%s12043_s3 + $0x140] sm:$0xff]  ;;  %v9071_v53 = vpop.permute.xlu1 %3701 }
 0x2c9   : > { %2737 = vmatpush1.msra.mxu0 %v2646_v41  ;;  %4387 = vperm.xlu1 %7100, %v9034_v6   ;;  %v12478_v41 = vld [vmem:[#allocation20_spill] sm:$0xff] }
 0x2ca   : > { %2738 = vmatprep.subr.mxu0 %v2645_v19  ;;  %6885 = vmatprep.subr.mxu1 %v12466_v18  ;;  %v6469_v19 = vld [vmem:[%s12043_s3 + $0x170] sm:$0xff] }
 0x2cb   : > { %2739 = vmatpush1.msra.mxu0 %v2644_v11  ;;  %6886 = vmatpush3.msra.mxu1 %v12466_v18  ;;  %v3018_v18 = vsel %vm3007_vm9, %v12478_v41, %v12477_v57  ;;  %v3016_v11 = vsel %vm3007_vm9, %v12480_v59, %v12479_v50  ;;  %v3385_v59 = vsel %vm3371_vm10, %v8899_v44, %v8920_v55 }
 0x2cc   : > { %2432 = vmatprep.mubr.f32.mxu1 %v9021_v27  ;;  %2772 = vmatprep.mubr.f32.mxu0 %v9021_v27  ;;  %v9091_v61 = vpop.permute.xlu0 %3703 }
 0x2cd   : > { %3088 = vmatprep.subr.mxu1 %v3023_v2  ;;  %6899 = vmatprep.subr.mxu0 %v8605_v12  ;;  %v9093_v7 = vpop.permute.xlu1 %3705 }
 0x2ce   : > { %6451 = vmatmul.mubr.msk.f32.gmra.mxu1 %vm937_vm3, %v6443_v37  ;;  %6471 = vmatmul.mubr.msk.f32.vlgmr.msra.gmra.mxu0 %vm937_vm3, %v6463_v39  ;;  %v6467_v37 = vld [vmem:[%s12043_s3 + $0x160] sm:$0xff] }
 0x2cf   : > { %6900 = vmatpush3.msra.mxu0 %v8605_v12  ;;  %2438 = vmatprep.mubr.f32.mxu1 %v9021_v27  ;;  %v6465_v12 = vld [vmem:[%s12043_s3 + $0x150] sm:$0xff] }
 0x2d0   : > { %6901 = vmatprep.subr.mxu0 %v8621_v16  ;;  %2778 = vmatprep.mubr.f32.mxu0 %v9021_v27 }
 0x2d1   : > { %6902 = vmatpush3.msra.mxu0 %v8621_v16  ;;  %7102 = vset.pattern.permute.xlu0 %v7207_v46  ;;  %v9111_v45 = vpop.permute.xlu0 %3707 }
 0x2d2   : > { %6903 = vmatprep.subr.mxu0 %v8514_v4  ;;  %6452 = vmatmul.mubr.msk.f32.gmra.mxu1 %vm937_vm3, %v8985_v43  ;;  %v9113_v0 = vpop.permute.xlu1 %3709  ;;  %v3387_v43 = vsel %vm3371_vm10, %v8944_v34, %v8946_v35 }
 0x2d3   : > { %6472 = vmatmul.mubr.msk.f32.gmra.mxu0 %vm937_vm3, %v6464_v33  ;;  %2444 = vmatprep.mubr.f32.mxu1 %v9021_v27 }
 0x2d4   : > { %6904 = vmatpush3.msra.mxu0 %v8514_v4  ;;  %2784 = vmatprep.mubr.f32.mxu0 %v9021_v27 }
 0x2d5   : > { %6905 = vmatprep.subr.mxu0 %v12469_v52  ;;  %4615 = vperm.xlu0 %7102, %v8845_v1   ;;  %v12472_v1 = vld [vmem:[#allocation34_spill] sm:$0xff] }
 0x2d6   : > { %6906 = vmatpush3.msra.mxu0 %v12469_v52  ;;  %6453 = vmatmul.mubr.msk.f32.gmra.mxu1 %vm937_vm3, %v6445_v63  ;;  %v12476_v63 = vld [vmem:[#allocation73_spill] sm:$0xff]  ;;  %v9144_v40 = vpop.permute.xlu0 %3711 }
 0x2d7   : > { %6907 = vmatprep.subr.mxu0 %v12470_v5  ;;  %6473 = vmatmul.mubr.msk.f32.gmra.mxu0 %vm937_vm3, %v6465_v12  ;;  %v3020_v15 = vsel %vm3007_vm9, %v12476_v63, %v12475_v42  ;;  %v9146_v16 = vpop.permute.xlu1 %3713 }
 0x2d8   : > { %6908 = vmatpush3.msra.mxu0 %v12470_v5  ;;  %2450 = vmatprep.mubr.f32.mxu1 %v9021_v27 }
 0x2d9   : > { %6909 = vmatprep.subr.mxu0 %v12471_v13  ;;  %2790 = vmatprep.mubr.f32.mxu0 %v9021_v27 }
 0x2da   : > { %6910 = vmatpush3.msra.mxu0 %v12471_v13  ;;  %6454 = vmatmul.mubr.msk.f32.gmra.mxu1 %vm937_vm3, %v6446_v21  ;;  %v3019_v21 = vsel %vm3007_vm9, %v12477_v57, %v8514_v4  ;;  %v3017_v4 = vsel %vm3007_vm9, %v12479_v50, %v12469_v52  ;;  %v12482_v52 = vld [vmem:[#allocation10_spill] sm:$0xff] }
 0x2db   : > { %6911 = vmatprep.subr.mxu0 %v12472_v1  ;;  %6474 = vmatmul.mubr.msk.f32.gmra.mxu0 %vm937_vm3, %v6466_v23 }
 0x2dc   : > { %6912 = vmatpush3.msra.mxu0 %v12472_v1  ;;  %2796 = vmatprep.mubr.f32.mxu0 %v9021_v27 }
 0x2dd   : > { %6913 = vmatprep.subr.mxu0 %v12473_v14  ;;  %6887 = vmatprep.mubr.msk.f32.mxu1 %vm937_vm3, %v6463_v39  ;;  %v12481_v39 = vld [vmem:[#allocation30_spill] sm:$0xff] }
 0x2de   : > { %6914 = vmatpush3.msra.mxu0 %v12473_v14  ;;  %6888 = vmatmul.mubr.msk.f32.vlgmr.msra.gmra.mxu1 %vm937_vm3, %v6464_v33  ;;  %v3015_v2 = vsel %vm3007_vm9, %v12481_v39, %v12470_v5  ;;  %v9170_v33 = vpop.permute.xlu0 %3715  ;;  %v6470_v5 = vld [vmem:[%s12043_s3 + $0x178] sm:$0xff] }
 0x2df   : > { %6475 = vmatmul.mubr.msk.f32.gmra.mxu0 %vm937_vm3, %v6467_v37  ;;  %3089 = vmatpush1.msra.mxu1 %v3022_v9  ;;  %v12485_v9 = vld [vmem:[#allocation44_spill] sm:$0xff] }
 0x2e0   : > { %3452 = vmatprep.subr.mxu0 %v3387_v43  ;;  %3090 = vmatprep.subr.mxu1 %v3021_v10  ;;  %v12484_v43 = vld [vmem:[#allocation16_spill] sm:$0xff]  ;;  %v3011_v42 = vsel %vm3007_vm9, %v12485_v9, %v12472_v1  ;;  %v6488_v1 = vld [vmem:[%s12043_s3 + $0x188] sm:$0xff] }
 0x2e1   : > { %3091 = vmatpush1.msra.mxu1 %v3020_v15  ;;  %2802 = vmatprep.mubr.f32.mxu0 %v9021_v27 }
 0x2e2   : > { %6890 = vmatprep.mubr.msk.f32.mxu1 %vm937_vm3, %v6465_v12  ;;  %3092 = vmatprep.subr.mxu1 %v3019_v21  ;;  %v9172_v12 = vpop.permute.xlu1 %3717  ;;  %v9212_v21 = vpop.permute.xlu0 %3719 }
 0x2e3   : > { %6476 = vmatmul.mubr.msk.f32.gmra.mxu0 %vm937_vm3, %v6468_v49  ;;  %6891 = vmatmul.mubr.msk.f32.gmra.mxu1 %vm937_vm3, %v6466_v23  ;;  %v3014_v23 = vsel %vm3007_vm9, %v12482_v52, %v12481_v39  ;;  %v3384_v39 = vsel %vm3371_vm10, %v8897_v29, %v8899_v44 }
 0x2e4   : > { %3093 = vmatpush1.msra.mxu1 %v3018_v18  ;;  %2808 = vmatprep.mubr.f32.mxu0 %v9021_v27  ;;  %v12488_v18 = vld [vmem:[#allocation59_spill] sm:$0xff] }
 0x2e5   : > { %3094 = vmatprep.subr.mxu1 %v3017_v4  ;;  %6893 = vmatprep.mubr.msk.f32.mxu1 %vm937_vm3, %v6467_v37 }
 0x2e6   : > { %3095 = vmatpush1.msra.mxu1 %v3016_v11  ;;  %7101 = vset.pattern.permute.xlu1 %v7207_v46  ;;  %v12483_v46 = vld [vmem:[#allocation51_spill] sm:$0xff]  ;;  %v9214_v41 = vpop.permute.xlu1 %3721 }
 0x2e7   : > { %3096 = vmatprep.subr.mxu1 %v3015_v2  ;;  %6477 = vmatmul.mubr.msk.f32.gmra.mxu0 %vm937_vm3, %v6469_v19  ;;  %v3013_v37 = vsel %vm3007_vm9, %v12483_v46, %v12471_v13  ;;  %v3012_v48 = vsel %vm3007_vm9, %v12484_v43, %v12483_v46  ;;  %v6487_v13 = vld [vmem:[%s12043_s3 + $0x180] sm:$0xff]  ;;  %v6489_v11 = vld [vmem:[%s12043_s3 + $0x190] sm:$0xff]  ;;  %v3378_v43 = vsel %vm3371_vm10, %v8778_v26, %v8806_v54 }
 0x2e8   : > { %6894 = vmatmul.mubr.msk.f32.gmra.mxu1 %vm937_vm3, %v6468_v49  ;;  %2814 = vmatprep.mubr.f32.mxu0 %v9021_v27  ;;  %v12487_v49 = vld [vmem:[#allocation9_spill] sm:$0xff]  ;;  %v9254_v29 = vpop.permute.xlu0 %3723  ;;  %v3376_v26 = vsel %vm3371_vm10, %v8754_v56, %v8756_v30  ;;  %v12491_v56 = vld [vmem:[#allocation36_spill] sm:$0xff] }
 0x2e9   : > { %3097 = vmatpush1.msra.mxu1 %v3014_v23  ;;  %6896 = vmatprep.mubr.msk.f32.mxu1 %vm937_vm3, %v6469_v19  ;;  %v3009_v57 = vsel %vm3007_vm9, %v12487_v49, %v12473_v14  ;;  %v3008_v50 = vsel %vm3007_vm9, %v12488_v18, %v12487_v49  ;;  %v3386_v14 = vsel %vm3371_vm10, %v8922_v8, %v8944_v34  ;;  %v6490_v34 = vld [vmem:[%s12043_s3 + $0x198] sm:$0xff]  ;;  %v6491_v46 = vld [vmem:[%s12043_s3 + $0x1a0] sm:$0xff] }
 0x2ea   : > { %3098 = vmatprep.subr.mxu1 %v3013_v37  ;;  %4627 = vperm.xlu0 %7102, %v8996_v20   ;;  %v12486_v20 = vld [vmem:[#allocation61_spill] sm:$0xff]  ;;  %v9256_v44 = vpop.permute.xlu1 %3725  ;;  %v3382_v23 = vsel %vm3371_vm10, %v8857_v60, %v8875_v25  ;;  %v3380_v37 = vsel %vm3371_vm10, %v8827_v24, %v8829_v51  ;;  %v3379_v24 = vsel %vm3371_vm10, %v8806_v54, %v8808_v47  ;;  %v9326_v54 = vld [vmem:[%s12043_s3 + $0x1b8] sm:$0xff] }
 0x2eb   : > { %3099 = vmatpush1.msra.mxu1 %v3012_v48  ;;  %6478 = vmatmul.mubr.msk.f32.gmra.mxu0 %vm937_vm3, %v6470_v5  ;;  %v9197_v10 = vpop.f32.mrf.mxu1  ;;  %v9199_v63 = vpop.f32.mrf.mxu0  ;;  %v3010_v15 = vsel %vm3007_vm9, %v12486_v20, %v12485_v9  ;;  %v9283_v60 = vld [vmem:[%s12043_s3 + $0x1a8] sm:$0xff]  ;;  %v12492_v18 = vld [vmem:[#allocation64_spill] sm:$0xff] }
 0x2ec   : > { %3100 = vmatprep.subr.mxu1 %v3011_v42  ;;  %6897 = vmatmul.mubr.msk.f32.gmra.mxu1 %vm937_vm3, %v6470_v5  ;;  %v3381_v5 = vsel %vm3371_vm10, %v8829_v51, %v8855_v3  ;;  %v3377_v42 = vsel %vm3371_vm10, %v8756_v30, %v8776_v38  ;;  %v12490_v20 = vld [vmem:[#allocation46_spill] sm:$0xff] }
 0x2ed   : > { %3101 = vmatpush1.msra.mxu1 %v3010_v15  ;;  %3136 = vmatprep.mubr.f32.mxu1 %v9021_v27  ;;  %v9220_v4 = vpop.f32.mrf.mxu1  ;;  %v9222_v19 = vpop.f32.mrf.mxu0 }
 0x2ee   : > { %3102 = vmatprep.subr.mxu1 %v3009_v57  ;;  %6915 = vmatprep.mubr.msk.f32.mxu0 %vm937_vm3, %v6487_v13 }
 0x2ef   : > { %3103 = vmatpush1.msra.mxu1 %v3008_v50  ;;  %6916 = vmatmul.mubr.msk.f32.vlgmr.msra.gmra.mxu0 %vm937_vm3, %v6488_v1  ;;  %v9295_v51 = vpop.permute.xlu0 %3727  ;;  %v12493_v50 = vld [vmem:[#allocation52_spill] sm:$0xff] }
 0x2f0   : > { %6927 = vmatprep.subr.mxu1 %v8946_v35  ;;  %6495 = vmatmul.mubr.msk.f32.vlgmr.msra.gmra.mxu1 %vm937_vm3, %v6487_v13  ;;  %v9316_v13 = vld [vmem:[%s12043_s3 + $0x1b0] sm:$0xff] }
 0x2f1   : > { %3453 = vmatpush1.msra.mxu0 %v3386_v14  ;;  %6928 = vmatpush3.msra.mxu1 %v8946_v35  ;;  %v3383_v35 = vsel %vm3371_vm10, %v8875_v25, %v8877_v36  ;;  %v3373_v14 = vsel %vm3371_vm10, %v12493_v50, %v12492_v18 }
 0x2f2   : > { %3454 = vmatprep.subr.mxu0 %v3385_v59  ;;  %6929 = vmatprep.subr.mxu1 %v8920_v55  ;;  %v9241_v2 = vpop.f32.mrf.mxu1  ;;  %v9243_v8 = vpop.f32.mrf.mxu0 }
 0x2f3   : > { %3455 = vmatpush1.msra.mxu0 %v3384_v39  ;;  %6930 = vmatpush3.msra.mxu1 %v8920_v55  ;;  %v12494_v39 = vld [vmem:[#allocation71_spill] sm:$0xff] }
 0x2f4   : > { %3142 = vmatprep.mubr.f32.mxu1 %v9021_v27  ;;  %6918 = vmatprep.mubr.msk.f32.mxu0 %vm937_vm3, %v6489_v11  ;;  %v9259_v55 = vpop.f32.mrf.mxu1  ;;  %v9261_v52 = vpop.f32.mrf.mxu0 }
 0x2f5   : > { %3456 = vmatprep.subr.mxu0 %v3383_v35  ;;  %6931 = vmatprep.subr.mxu1 %v8877_v36  ;;  %v6511_v35 = vld [vmem:[%s12043_s3 + $0x1c0] sm:$0xff] }
 0x2f6   : > { %6496 = vmatmul.mubr.msk.f32.gmra.mxu1 %vm937_vm3, %v6488_v1  ;;  %6919 = vmatmul.mubr.msk.f32.gmra.mxu0 %vm937_vm3, %v6490_v34  ;;  %v9345_v49 = vpop.permute.xlu0 %3731 }
 0x2f7   : > { %3457 = vmatpush1.msra.mxu0 %v3382_v23  ;;  %6932 = vmatpush3.msra.mxu1 %v8877_v36 }
 0x2f8   : > { %3458 = vmatprep.subr.mxu0 %v3381_v5  ;;  %6933 = vmatprep.subr.mxu1 %v8855_v3 }
 0x2f9   : > { %3459 = vmatpush1.msra.mxu0 %v3380_v37  ;;  %6934 = vmatpush3.msra.mxu1 %v8855_v3  ;;  %v9285_v25 = vpop.f32.mrf.mxu1  ;;  %v9287_v36 = vpop.f32.mrf.mxu0 }
 0x2fa   : > { %3148 = vmatprep.mubr.f32.mxu1 %v9021_v27  ;;  %6921 = vmatprep.mubr.msk.f32.mxu0 %vm937_vm3, %v6491_v46  ;;  %v9297_v3 = vpop.permute.xlu1 %3729 }
 0x2fb   : > { %3460 = vmatprep.subr.mxu0 %v3379_v24  ;;  %6935 = vmatprep.subr.mxu1 %v8808_v47  ;;  %v9305_v48 = vpop.f32.mrf.mxu1  ;;  %v9307_v9 = vpop.f32.mrf.mxu0 }
 0x2fc   : > { %6497 = vmatmul.mubr.msk.f32.gmra.mxu1 %vm937_vm3, %v6489_v11  ;;  %6922 = vmatmul.mubr.msk.f32.gmra.mxu0 %vm937_vm3, %v9283_v60 }
 0x2fd   : > { %3461 = vmatpush1.msra.mxu0 %v3378_v43  ;;  %6936 = vmatpush3.msra.mxu1 %v8808_v47  ;;  %v12489_v47 = vld [vmem:[#allocation50_spill] sm:$0xff] }
 0x2fe   : > { %3462 = vmatprep.subr.mxu0 %v3377_v42  ;;  %6937 = vmatprep.subr.mxu1 %v8776_v38  ;;  %v3375_v15 = vsel %vm3371_vm10, %v12490_v20, %v12489_v47  ;;  %v3734_v57 = vpop.permute.xlu1 %3733  ;;  %v6512_v43 = vld [vmem:[%s12043_s3 + $0x1c8] sm:$0xff] }
 0x2ff   : > { %3463 = vmatpush1.msra.mxu0 %v3376_v26  ;;  %6938 = vmatpush3.msra.mxu1 %v8776_v38  ;;  %v3374_v38 = vsel %vm3371_vm10, %v12491_v56, %v12490_v20  ;;  %v3751_v23 = vsel %vm3735_vm11, %v9345_v49, %v3734_v57 }
 0x300   : > { %3154 = vmatprep.mubr.f32.mxu1 %v9021_v27  ;;  %6924 = vmatprep.mubr.msk.f32.mxu0 %vm937_vm3, %v9316_v13  ;;  %v9334_v1 = vpop.f32.mrf.mxu1  ;;  %v9336_v30 = vpop.f32.mrf.mxu0 }
 0x301   : > { %3464 = vmatprep.subr.mxu0 %v3375_v15  ;;  %6939 = vmatprep.subr.mxu1 %v12489_v47 }
 0x302   : > { %6498 = vmatmul.mubr.msk.f32.gmra.mxu1 %vm937_vm3, %v6490_v34  ;;  %6925 = vmatmul.mubr.msk.f32.gmra.mxu0 %vm937_vm3, %v9326_v54  ;;  %v9351_v59 = vpop.f32.mrf.mxu1  ;;  %v9353_v11 = vpop.f32.mrf.mxu0  ;;  %v3372_v34 = vsel %vm3371_vm10, %v12494_v39, %v12493_v50 }
 0x303   : > { %3465 = vmatpush1.msra.mxu0 %v3374_v38  ;;  %6940 = vmatpush3.msra.mxu1 %v12489_v47  ;;  %v7208_v38 = vmov 3  }
 0x304   : > { %3466 = vmatprep.subr.mxu0 %v3373_v14  ;;  %6941 = vmatprep.subr.mxu1 %v12492_v18 }
 0x305   : > { %3467 = vmatpush1.msra.mxu0 %v3372_v34  ;;  %6942 = vmatpush3.msra.mxu1 %v12492_v18 }
 0x306   : > { %3160 = vmatprep.mubr.f32.mxu1 %v9021_v27  ;;  %3500 = vmatprep.mubr.f32.mxu0 %v9021_v27  ;;  %v9367_v5 = vpop.permute.xlu1 %4057 }
 0x307   : > { %12495 = vst [vmem:[#allocation24_spill] sm:$0xff] %v9367_v5  ;;  %6499 = vmatmul.mubr.msk.f32.gmra.mxu1 %vm937_vm3, %v6491_v46  ;;  %6519 = vmatmul.mubr.msk.f32.vlgmr.msra.gmra.mxu0 %vm937_vm3, %v6511_v35  ;;  %v9371_v37 = vpop.f32.mrf.mxu1  ;;  %v1383_v24 = vpop.f32.mrf.mxu0 }
 0x308   : > { %3166 = vmatprep.mubr.f32.mxu1 %v9021_v27  ;;  %3506 = vmatprep.mubr.f32.mxu0 %v9021_v27  ;;  %v9379_v42 = vadd.f32 %v1383_v24, %v9197_v10  ;;  %v6513_v10 = vld [vmem:[%s12043_s3 + $0x1d0] sm:$0xff] }
 0x309   : > { %6955 = vmatprep.subr.mxu0 %v3734_v57  ;;  %3816 = vmatprep.subr.mxu1 %v3751_v23  ;;  %v9381_v26 = vpop.f32.mrf.mxu1  ;;  %v1385_v46 = vpop.f32.mrf.mxu0 }
 0x30a   : > { %6956 = vmatpush3.msra.mxu0 %v3734_v57  ;;  %v9384_v47 = vadd.f32 %v1385_v46, %v9220_v4  ;;  %4635 = vperm.xlu0 %7102, %v9034_v6   ;;  %v9401_v4 = vpop.permute.xlu0 %4052 }
 0x30b   : > { %6500 = vmatmul.mubr.msk.f32.gmra.mxu1 %vm937_vm3, %v9283_v60  ;;  %6520 = vmatmul.mubr.msk.f32.gmra.mxu0 %vm937_vm3, %v6512_v43  ;;  %12497 = vst [vmem:[#allocation28_spill] sm:$0xff] %v9401_v4 }
 0x30c   : > { %3172 = vmatprep.mubr.f32.mxu1 %v9021_v27  ;;  %3512 = vmatprep.mubr.f32.mxu0 %v9021_v27  ;;  %v9395_v20 = vpop.permute.xlu1 %4067  ;;  %v9397_v15 = vpop.f32.mrf.mxu1 }
 0x30d   : > { %12496 = vst [vmem:[#allocation43_spill] sm:$0xff] %v9395_v20  ;;  %6957 = vmatprep.subr.mxu0 %v9295_v51  ;;  %v1389_v6 = vpop.f32.mrf.mxu0 }
 0x30e   : > { %6958 = vmatpush3.msra.mxu0 %v9295_v51  ;;  %v9404_v60 = vadd.f32 %v1389_v6, %v9241_v2  ;;  %v9406_v56 = vpop.f32.mrf.mxu1  ;;  %7103 = vset.pattern.permute.xlu0 %v7208_v38  ;;  %v6514_v2 = vld [vmem:[%s12043_s3 + $0x1d8] sm:$0xff]  ;;  %v9439_v23 = vpop.permute.xlu0 %4062 }
 0x30f   : > { %6501 = vmatmul.mubr.msk.f32.gmra.mxu1 %vm937_vm3, %v9316_v13  ;;  %6521 = vmatmul.mubr.msk.f32.gmra.mxu0 %vm937_vm3, %v6513_v10  ;;  %v1391_v57 = vpop.f32.mrf.mxu0  ;;  %12499 = vst [vmem:[#allocation12_spill] sm:$0xff] %v9439_v23 }
 0x310   : > { %3178 = vmatprep.mubr.f32.mxu1 %v9021_v27  ;;  %3518 = vmatprep.mubr.f32.mxu0 %v9021_v27  ;;  %v9418_v18 = vadd.f32 %v1391_v57, %v9259_v55  ;;  %v6515_v55 = vld [vmem:[%s12043_s3 + $0x1e0] sm:$0xff] }
 0x311   : > { %6959 = vmatprep.subr.mxu0 %v9214_v41  ;;  %v9421_v50 = vpop.permute.xlu1 %4077  ;;  %v9423_v14 = vpop.f32.mrf.mxu1 }
 0x312   : > { %12498 = vst [vmem:[#allocation32_spill] sm:$0xff] %v9421_v50  ;;  %6960 = vmatpush3.msra.mxu0 %v9214_v41  ;;  %v1395_v13 = vpop.f32.mrf.mxu0 }
 0x313   : > { %6502 = vmatmul.mubr.msk.f32.gmra.mxu1 %vm937_vm3, %v9326_v54  ;;  %6522 = vmatmul.mubr.msk.f32.gmra.mxu0 %vm937_vm3, %v6514_v2  ;;  %v9430_v39 = vadd.f32 %v1395_v13, %v9285_v25  ;;  %v9432_v34 = vpop.f32.mrf.mxu1  ;;  %v3750_v54 = vsel %vm3735_vm11, %v9297_v3, %v9345_v49  ;;  %v3749_v3 = vsel %vm3735_vm11, %v9256_v44, %v9295_v51  ;;  %v9472_v51 = vpop.permute.xlu0 %4072 }
 0x314   : > { %3524 = vmatprep.mubr.f32.mxu0 %v9021_v27  ;;  %6943 = vmatprep.mubr.msk.f32.mxu1 %vm937_vm3, %v6511_v35  ;;  %v1397_v24 = vpop.f32.mrf.mxu0  ;;  %12501 = vst [vmem:[#allocation79_spill] sm:$0xff] %v9472_v51 }
 0x315   : > { %6961 = vmatprep.subr.mxu0 %v9170_v33  ;;  %v9446_v25 = vadd.f32 %v1397_v24, %v9305_v48  ;;  %v6516_v48 = vld [vmem:[%s12043_s3 + $0x1e8] sm:$0xff] }
 0x316   : > { %6962 = vmatpush3.msra.mxu0 %v9170_v33  ;;  %v9449_v46 = vpop.permute.xlu1 %4087  ;;  %v9451_v35 = vpop.f32.mrf.mxu1 }
 0x317   : > { %12500 = vst [vmem:[#allocation81_spill] sm:$0xff] %v9449_v46  ;;  %6523 = vmatmul.mubr.msk.f32.gmra.mxu0 %vm937_vm3, %v6515_v55  ;;  %6944 = vmatmul.mubr.msk.f32.vlgmr.msra.gmra.mxu1 %vm937_vm3, %v6512_v43  ;;  %v1401_v6 = vpop.f32.mrf.mxu0  ;;  %v3748_v43 = vsel %vm3735_vm11, %v9254_v29, %v9256_v44  ;;  %v3746_v44 = vsel %vm3735_vm11, %v9172_v12, %v9212_v21 }
 0x318   : > { %3817 = vmatpush1.msra.mxu1 %v3750_v54  ;;  %3530 = vmatprep.mubr.f32.mxu0 %v9021_v27  ;;  %v9463_v49 = vadd.f32 %v1401_v6, %v9334_v1  ;;  %v9465_v57 = vpop.f32.mrf.mxu1  ;;  %v3747_v1 = vsel %vm3735_vm11, %v9212_v21, %v9214_v41  ;;  %v3745_v41 = vsel %vm3735_vm11, %v9146_v16, %v9170_v33 }
 0x319   : > { %3818 = vmatprep.subr.mxu1 %v3749_v3  ;;  %6946 = vmatprep.mubr.msk.f32.mxu1 %vm937_vm3, %v6513_v10  ;;  %v1403_v13 = vpop.f32.mrf.mxu0  ;;  %v3744_v21 = vsel %vm3735_vm11, %v9144_v40, %v9146_v16  ;;  %v3743_v33 = vsel %vm3735_vm11, %v9111_v45, %v9113_v0  ;;  %v3742_v40 = vsel %vm3735_vm11, %v9093_v7, %v9111_v45 }
 0x31a   : > { %3819 = vmatpush1.msra.mxu1 %v3748_v43  ;;  %6963 = vmatprep.subr.mxu0 %v9113_v0  ;;  %v9475_v24 = vadd.f32 %v1403_v13, %v9351_v59  ;;  %v6517_v59 = vld [vmem:[%s12043_s3 + $0x1f0] sm:$0xff] }
 0x31b   : > { %6524 = vmatmul.mubr.msk.f32.gmra.mxu0 %vm937_vm3, %v6516_v48  ;;  %6947 = vmatmul.mubr.msk.f32.gmra.mxu1 %vm937_vm3, %v6514_v2  ;;  %v9482_v10 = vpop.permute.xlu1 %4265  ;;  %v1407_v29 = vpop.f32.mrf.mxu0 }
 0x31c   : > { %12502 = vst [vmem:[#allocation15_spill] sm:$0xff] %v9482_v10  ;;  %3820 = vmatprep.subr.mxu1 %v3747_v1  ;;  %3536 = vmatprep.mubr.f32.mxu0 %v9021_v27  ;;  %v9492_v2 = vadd.f32 %v1407_v29, %v9371_v37  ;;  %v6777_v54 = vpop.f32.mrf.mxu1  ;;  %v3739_v1 = vsel %vm3735_vm11, %v9047_v62, %v9049_v32 }
 0x31d   : > { %3821 = vmatpush1.msra.mxu1 %v3746_v44  ;;  %6949 = vmatprep.mubr.msk.f32.mxu1 %vm937_vm3, %v6515_v55  ;;  %v9499_v6 = vadd.f32 %v6777_v54, %v9199_v63  ;;  %v1409_v12 = vpop.f32.mrf.mxu0  ;;  %v6518_v55 = vld [vmem:[%s12043_s3 + $0x1f8] sm:$0xff]  ;;  %v3737_v29 = vsel %vm3735_vm11, %v8979_v31, %v9015_v22 }
 0x31e   : > { %3822 = vmatprep.subr.mxu1 %v3745_v41  ;;  %6964 = vmatpush3.msra.mxu0 %v9113_v0  ;;  %v9506_v37 = vadd.f32 %v1409_v12, %v9381_v26  ;;  %v1496_v3 = vpop.f32.mrf.mxu1  ;;  %v3741_v26 = vsel %vm3735_vm11, %v9071_v53, %v9091_v61  ;;  %v9525_v0 = vpop.permute.xlu0 %4082 }
 0x31f   : > { %3823 = vmatpush1.msra.mxu1 %v3744_v21  ;;  %6525 = vmatmul.mubr.msk.f32.gmra.mxu0 %vm937_vm3, %v6517_v59  ;;  %v9513_v63 = vadd.f32 %v1496_v3, %v9222_v19  ;;  %12504 = vst [vmem:[#allocation69_spill] sm:$0xff] %v9525_v0 }
 0x320   : > { %6950 = vmatmul.mubr.msk.f32.gmra.mxu1 %vm937_vm3, %v6516_v48  ;;  %3824 = vmatprep.subr.mxu1 %v3743_v33  ;;  %v9519_v16 = vpop.permute.xlu1 %4275  ;;  %v3740_v48 = vsel %vm3735_vm11, %v9069_v28, %v9071_v53  ;;  %v6539_v33 = vld [vmem:[%s12043_s3 + $0x220] sm:$0xff] }
 0x321   : > { %12503 = vst [vmem:[#allocation75_spill] sm:$0xff] %v9519_v16  ;;  %3825 = vmatpush1.msra.mxu1 %v3742_v40  ;;  %6965 = vmatprep.subr.mxu0 %v9091_v61  ;;  %v1413_v19 = vpop.f32.mrf.mxu0  ;;  %v6780_v45 = vpop.f32.mrf.mxu1 }
 0x322   : > { %3826 = vmatprep.subr.mxu1 %v3741_v26  ;;  %6966 = vmatpush3.msra.mxu0 %v9091_v61  ;;  %v9532_v7 = vadd.f32 %v1413_v19, %v9397_v15  ;;  %v9540_v43 = vadd.f32 %v6780_v45, %v9243_v8  ;;  %v3738_v8 = vsel %vm3735_vm11, %v9017_v58, %v9047_v62  ;;  %v9567_v44 = vpop.permute.xlu0 %4363  ;;  %v6536_v62 = vld [vmem:[%s12043_s3 + $0x208] sm:$0xff] }
 0x323   : > { %3542 = vmatprep.mubr.f32.mxu0 %v9021_v27  ;;  %6952 = vmatprep.mubr.msk.f32.mxu1 %vm937_vm3, %v6517_v59  ;;  %v1415_v61 = vpop.f32.mrf.mxu0  ;;  %v1506_v15 = vpop.f32.mrf.mxu1  ;;  %12506 = vst [vmem:[#allocation60_spill] sm:$0xff] %v9567_v44  ;;  %v3736_v58 = vsel %vm3735_vm11, %v8977_v17, %v8979_v31  ;;  %v4394_v54 = vmul.f32 %v9021_v27, %v9567_v44 }
 0x324   : > { %3827 = vmatpush1.msra.mxu1 %v3740_v48  ;;  %6967 = vmatprep.subr.mxu0 %v9049_v32  ;;  %v9544_v13 = vadd.f32 %v1415_v61, %v9406_v56  ;;  %v9554_v53 = vadd.f32 %v1506_v15, %v9261_v52  ;;  %v6535_v52 = vld [vmem:[%s12043_s3 + $0x200] sm:$0xff] }
 0x325   : > { %6526 = vmatmul.mubr.msk.f32.gmra.mxu0 %vm937_vm3, %v6518_v55  ;;  %6953 = vmatmul.mubr.msk.f32.gmra.mxu1 %vm937_vm3, %v6518_v55  ;;  %v9551_v28 = vpop.permute.xlu1 %4285 }
 0x326   : > { %12505 = vst [vmem:[#allocation11_spill] sm:$0xff] %v9551_v28  ;;  %3828 = vmatprep.subr.mxu1 %v3739_v1  ;;  %6968 = vmatpush3.msra.mxu0 %v9049_v32  ;;  %v1419_v56 = vpop.f32.mrf.mxu0  ;;  %v6783_v59 = vpop.f32.mrf.mxu1 }
 0x327   : > { %3829 = vmatpush1.msra.mxu1 %v3738_v8  ;;  %6969 = vmatprep.subr.mxu0 %v9015_v22  ;;  %v9570_v32 = vadd.f32 %v1419_v56, %v9423_v14  ;;  %v9582_v41 = vadd.f32 %v6783_v59, %v9287_v36 }
 0x328   : > { %3830 = vmatprep.subr.mxu1 %v3737_v29  ;;  %6970 = vmatpush3.msra.mxu0 %v9015_v22  ;;  %v1421_v14 = vpop.f32.mrf.mxu0  ;;  %v6537_v22 = vld [vmem:[%s12043_s3 + $0x210] sm:$0xff]  ;;  %v1516_v31 = vpop.f32.mrf.mxu1 }
 0x329   : > { %3831 = vmatpush1.msra.mxu1 %v3736_v58  ;;  %3864 = vmatprep.mubr.f32.mxu1 %v9021_v27  ;;  %v9589_v17 = vadd.f32 %v1421_v14, %v9432_v34  ;;  %v9594_v12 = vadd.f32 %v1516_v31, %v9307_v9  ;;  %v6538_v34 = vld [vmem:[%s12043_s3 + $0x218] sm:$0xff] }
 0x32a   : > { %6971 = vmatprep.mubr.msk.f32.mxu0 %vm937_vm3, %v6535_v52  ;;  %6543 = vmatmul.mubr.msk.f32.vlgmr.msra.gmra.mxu1 %vm937_vm3, %v6535_v52  ;;  %v9598_v36 = vpop.permute.xlu1 %4295 }
 0x32b   : > { %6972 = vmatmul.mubr.msk.f32.vlgmr.msra.gmra.mxu0 %vm937_vm3, %v6536_v62  ;;  %3870 = vmatprep.mubr.f32.mxu1 %v9021_v27  ;;  %12507 = vst [vmem:[#allocation54_spill] sm:$0xff] %v9598_v36  ;;  %v1425_v21 = vpop.f32.mrf.mxu0  ;;  %v6786_v9 = vpop.f32.mrf.mxu1 }
 0x32c   : > { %6974 = vmatprep.mubr.msk.f32.mxu0 %vm937_vm3, %v6537_v22  ;;  %4458 = vrot.lane.b32.xlu1 %v4394_v54, %s7202_s6  ;;  %v9606_v3 = vadd.f32 %v1425_v21, %v9451_v35  ;;  %v9612_v40 = vadd.f32 %v6786_v9, %v9336_v30  ;;  %v6540_v30 = vld [vmem:[%s12043_s3 + $0x228] sm:$0xff] }
 0x32d   : > { %v1427_v26 = vpop.f32.mrf.mxu0  ;;  %v1526_v55 = vpop.f32.mrf.mxu1 }
 0x32e   : > { %6544 = vmatmul.mubr.msk.f32.gmra.mxu1 %vm937_vm3, %v6536_v62  ;;  %v9616_v19 = vadd.f32 %v1427_v26, %v9465_v57  ;;  %v9621_v35 = vadd.f32 %v1526_v55, %v9353_v11  ;;  %v6541_v57 = vld [vmem:[%s12043_s3 + $0x230] sm:$0xff]  ;;  %v9662_v62 = vpop.permute.xlu0 %4375 }
 0x32f   : > { %6975 = vmatmul.mubr.msk.f32.gmra.mxu0 %vm937_vm3, %v6538_v34  ;;  %3876 = vmatprep.mubr.f32.mxu1 %v9021_v27  ;;  %12510 = vst [vmem:[#allocation21_spill] sm:$0xff] %v9662_v62 }
 0x330   : > { %6977 = vmatprep.mubr.msk.f32.mxu0 %vm937_vm3, %v6539_v33  ;;  %v1747_v45 = vpop.f32.mrf.mxu1  ;;  %v6805_v48 = vpop.f32.mrf.mxu0 }
 0x331   : > { %v9630_v61 = vpop.permute.xlu1 %4367  ;;  %v9633_v15 = vadd.f32 %v1747_v45, %v9379_v42  ;;  %v9636_v11 = vadd.f32 %v6805_v48, %v9499_v6  ;;  %v6542_v6 = vld [vmem:[%s12043_s3 + $0x238] sm:$0xff] }
 0x332   : > { %12508 = vst [vmem:[#allocation13_spill] sm:$0xff] %v9630_v61  ;;  %6545 = vmatmul.mubr.msk.f32.gmra.mxu1 %vm937_vm3, %v6537_v22  ;;  %v4398_v1 = vmul.f32 %v9021_v27, %v9630_v61  ;;  %v1749_v8 = vpop.f32.mrf.mxu1  ;;  %v1860_v56 = vpop.f32.mrf.mxu0 }
 0x333   : > { %6978 = vmatmul.mubr.msk.f32.gmra.mxu0 %vm937_vm3, %v6540_v30  ;;  %3882 = vmatprep.mubr.f32.mxu1 %v9021_v27  ;;  %v9644_v29 = vadd.f32 %v1749_v8, %v9384_v47  ;;  %v9647_v42 = vadd.f32 %v1860_v56, %v9513_v63  ;;  %v9687_v55 = vpop.permute.xlu0 %4383 }
 0x334   : > { %6980 = vmatprep.mubr.msk.f32.mxu0 %vm937_vm3, %v6541_v57  ;;  %4466 = vrot.lane.b32.xlu1 %v4398_v1, %s7202_s6  ;;  %12512 = vst [vmem:[#allocation65_spill] sm:$0xff] %v9687_v55 }
 0x336   : > { %6546 = vmatmul.mubr.msk.f32.gmra.mxu1 %vm937_vm3, %v6538_v34 }
 0x337   : > { %6981 = vmatmul.mubr.msk.f32.gmra.mxu0 %vm937_vm3, %v6542_v6  ;;  %3888 = vmatprep.mubr.f32.mxu1 %v9021_v27  ;;  %v9657_v52 = vpop.permute.xlu1 %4371  ;;  %v1753_v47 = vpop.f32.mrf.mxu1 }
 0x338   : > { %12509 = vst [vmem:[#allocation40_spill] sm:$0xff] %v9657_v52  ;;  %v4402_v63 = vmul.f32 %v9021_v27, %v9657_v52  ;;  %v1902_v59 = vadd.f32 %v1753_v47, %v9404_v60  ;;  %v6808_v58 = vpop.f32.mrf.mxu0  ;;  %v4406_v60 = vmul.f32 %v9021_v27, %v9662_v62 }
 0x339   : > { %v9665_v54 = vadd.f32 %v6808_v58, %v9540_v43  ;;  %v1755_v14 = vpop.f32.mrf.mxu1 }
 0x33a   : > { %6547 = vmatmul.mubr.msk.f32.gmra.mxu1 %vm937_vm3, %v6539_v33  ;;  %4474 = vrot.lane.b32.xlu1 %v4402_v63, %s7202_s6  ;;  %v1903_v22 = vadd.f32 %v1755_v14, %v9418_v18  ;;  %v1870_v31 = vpop.f32.mrf.mxu0  ;;  %v9712_v14 = vpop.permute.xlu0 %4391 }
 0x33b   : > { %3894 = vmatprep.mubr.f32.mxu1 %v9021_v27  ;;  %v9672_v21 = vadd.f32 %v1870_v31, %v9554_v53  ;;  %12514 = vst [vmem:[#allocation80_spill] sm:$0xff] %v9712_v14 }
 0x33e   : > { %6548 = vmatmul.mubr.msk.f32.gmra.mxu1 %vm937_vm3, %v6540_v30  ;;  %v9677_v43 = vpop.permute.xlu1 %4379  ;;  %4482 = vrot.lane.b32.xlu1 %v4406_v60, %s7202_s6  ;;  %v1759_v34 = vpop.f32.mrf.mxu1 }
 0x33f   : > { %12511 = vst [vmem:[#allocation17_spill] sm:$0xff] %v9677_v43  ;;  %3900 = vmatprep.mubr.f32.mxu1 %v9021_v27  ;;  %v1905_v18 = vadd.f32 %v1759_v34, %v9430_v39  ;;  %v6811_v9 = vpop.f32.mrf.mxu0  ;;  %v4410_v33 = vmul.f32 %v9021_v27, %v9677_v43 }
 0x340   : > { %v9685_v53 = vadd.f32 %v6811_v9, %v9582_v41  ;;  %v1761_v26 = vpop.f32.mrf.mxu1  ;;  %v4414_v41 = vmul.f32 %v9021_v27, %v9687_v55 }
 0x341   : > { %v1906_v30 = vadd.f32 %v1761_v26, %v9446_v25  ;;  %v1880_v45 = vpop.f32.mrf.mxu0 }
 0x342   : > { %6549 = vmatmul.mubr.msk.f32.gmra.mxu1 %vm937_vm3, %v6541_v57  ;;  %4490 = vrot.lane.b32.xlu1 %v4410_v33, %s7202_s6  ;;  %v9693_v48 = vadd.f32 %v1880_v45, %v9594_v12 }
 0x343   : > { %3906 = vmatprep.mubr.f32.mxu1 %v9021_v27 }
 0x344   : > { %v9696_v39 = vpop.permute.xlu1 %4387 }
 0x345   : > { %12513 = vst [vmem:[#allocation78_spill] sm:$0xff] %v9696_v39  ;;  %v1765_v1 = vpop.f32.mrf.mxu1  ;;  %v6814_v8 = vpop.f32.mrf.mxu0  ;;  %v4418_v47 = vmul.f32 %v9021_v27, %v9696_v39 }
 0x346   : > { %6550 = vmatmul.mubr.msk.f32.gmra.mxu1 %vm937_vm3, %v6542_v6  ;;  %4498 = vrot.lane.b32.xlu1 %v4414_v41, %s7202_s6  ;;  %v1908_v25 = vadd.f32 %v1765_v1, %v9463_v49  ;;  %v9704_v57 = vadd.f32 %v6814_v8, %v9612_v40  ;;  %v4422_v49 = vmul.f32 %v9021_v27, %v9712_v14 }
 0x347   : > { %v1767_v12 = vpop.f32.mrf.mxu1  ;;  %v1890_v56 = vpop.f32.mrf.mxu0 }
 0x348   : > { %v1909_v63 = vadd.f32 %v1767_v12, %v9475_v24  ;;  %v9710_v58 = vadd.f32 %v1890_v56, %v9621_v35 }
 0x34a   : > { %4506 = vrot.lane.b32.xlu1 %v4418_v47, %s7202_s6 }
 0x34c   : > { %v1771_v6 = vpop.f32.mrf.mxu1  ;;  %v2135_v40 = vpop.f32.mrf.mxu0 }
 0x34d   : > { %v1911_v31 = vadd.f32 %v1771_v6, %v9492_v2  ;;  %v9719_v60 = vadd.f32 %v2135_v40, %v9633_v15  ;;  %v9730_v2 = vld [vmem:[%s12045_s5] sm:$0xff] }
 0x34e   : > { %4514 = vrot.lane.b32.xlu1 %v4422_v49, %s7202_s6  ;;  %v1773_v24 = vpop.f32.mrf.mxu1  ;;  %v2137_v34 = vpop.f32.mrf.mxu0  ;;  %12515 = vst [vmem:[#allocation68_spill] sm:$0xff] %v9730_v2 }
 0x34f   : > { %v1912_v35 = vadd.f32 %v1773_v24, %v9506_v37  ;;  %v9724_v9 = vadd.f32 %v2137_v34, %v9644_v29 }
 0x350   : > { %v1777_v33 = vpop.f32.mrf.mxu1 }
 0x351   : > { %v1914_v26 = vadd.f32 %v1777_v33, %v9532_v7  ;;  %v2141_v27 = vpop.f32.mrf.mxu0  ;;  %v9741_v7 = vld [vmem:[%s12045_s5 + $0x10] sm:$0xff] }
 0x352   : > { %4611 = vperm.xlu1 %7101, %v9730_v2   ;;  %v9733_v15 = vadd.f32 %v2141_v27, %v1902_v59  ;;  %v1779_v45 = vpop.f32.mrf.mxu1  ;;  %12516 = vst [vmem:[#allocation74_spill] sm:$0xff] %v9741_v7 }
 0x353   : > { %v1915_v41 = vadd.f32 %v1779_v45, %v9544_v13  ;;  %v2143_v37 = vpop.f32.mrf.mxu0 }
 0x354   : > { %v9736_v1 = vadd.f32 %v2143_v37, %v1903_v22  ;;  %v9753_v22 = vld [vmem:[%s12045_s5 + $0x18] sm:$0xff] }
 0x355   : > { %v1783_v29 = vpop.f32.mrf.mxu1  ;;  %12517 = vst [vmem:[#allocation76_spill] sm:$0xff] %v9753_v22 }
 0x356   : > { %4619 = vperm.xlu1 %7101, %v9741_v7   ;;  %v1917_v8 = vadd.f32 %v1783_v29, %v9570_v32  ;;  %v2147_v12 = vpop.f32.mrf.mxu0 }
 0x357   : > { %v9745_v56 = vadd.f32 %v2147_v12, %v1905_v18  ;;  %v1785_v59 = vpop.f32.mrf.mxu1 }
 0x358   : > { %v1918_v47 = vadd.f32 %v1785_v59, %v9589_v17  ;;  %v2149_v13 = vpop.f32.mrf.mxu0 }
 0x359   : > { %v9748_v49 = vadd.f32 %v2149_v13, %v1906_v30  ;;  %v9763_v30 = vld [vmem:[%s12045_s5 + $0x28] sm:$0xff] }
 0x35a   : > { %4623 = vperm.xlu1 %7101, %v9753_v22   ;;  %v1789_v6 = vpop.f32.mrf.mxu1  ;;  %12518 = vst [vmem:[#allocation58_spill] sm:$0xff] %v9763_v30  ;;  %v9969_v22 = vld [vmem:[#allocation2] sm:$0xff] }
 0x35b   : > { %v1920_v40 = vadd.f32 %v1789_v6, %v9606_v3  ;;  %v2153_v32 = vpop.f32.mrf.mxu0 }
 0x35c   : > { %v9757_v24 = vadd.f32 %v2153_v32, %v1908_v25  ;;  %v1791_v18 = vpop.f32.mrf.mxu1  ;;  %v9787_v32 = vld [vmem:[%s12045_s5 + $0x8] sm:$0xff] }
 0x35d   : > { %v1921_v34 = vadd.f32 %v1791_v18, %v9616_v19  ;;  %v2155_v17 = vpop.f32.mrf.mxu0  ;;  %v9774_v19 = vld [vmem:[%s12045_s5 + $0x38] sm:$0xff]  ;;  %12520 = vst [vmem:[#allocation72_spill] sm:$0xff] %v9787_v32 }
 0x35e   : > { %4631 = vperm.xlu1 %7101, %v9763_v30   ;;  %v9766_v33 = vadd.f32 %v2155_v17, %v1909_v63  ;;  %12519 = vst [vmem:[#allocation19_spill] sm:$0xff] %v9774_v19 }
 0x35f   : > { %v2159_v27 = vpop.f32.mrf.mxu0 }
 0x360   : > { %v9768_v45 = vadd.f32 %v2159_v27, %v1911_v31  ;;  %v6833_v3 = vpop.f32.mrf.mxu1 }
 0x361   : > { %v2292_v25 = vadd.f32 %v6833_v3, %v9636_v11  ;;  %v2161_v37 = vpop.f32.mrf.mxu0 }
 0x362   : > { %4639 = vperm.xlu1 %7101, %v9774_v19   ;;  %v9777_v29 = vadd.f32 %v2161_v37, %v1912_v35  ;;  %v2248_v12 = vpop.f32.mrf.mxu1 }
 0x363   : > { %v2289_v63 = vadd.f32 %v2248_v12, %v9647_v42 }
 0x364   : > { %v2165_v59 = vpop.f32.mrf.mxu0 }
 0x365   : > { %v9780_v13 = vadd.f32 %v2165_v59, %v1914_v26  ;;  %v6836_v31 = vpop.f32.mrf.mxu1 }
 0x366   : > { %v2298_v6 = vadd.f32 %v6836_v31, %v9665_v54  ;;  %7104 = vset.pattern.permute.xlu1 %v7208_v38  ;;  %v2167_v11 = vpop.f32.mrf.mxu0 }
 0x367   : > { %4864 = vperm.xlu1 %7104, %v9787_v32   ;;  %v9790_v35 = vadd.f32 %v2167_v11, %v1915_v41  ;;  %v2258_v18 = vpop.f32.mrf.mxu1 }
 0x368   : > { %v2295_v42 = vadd.f32 %v2258_v18, %v9672_v21  ;;  %v9805_v21 = vld [vmem:[%s12045_s5 + $0x20] sm:$0xff] }
 0x369   : > { %v2171_v26 = vpop.f32.mrf.mxu0  ;;  %12521 = vst [vmem:[#allocation70_spill] sm:$0xff] %v9805_v21 }
 0x36a   : > { %v9793_v17 = vadd.f32 %v2171_v26, %v1917_v8  ;;  %v6839_v27 = vpop.f32.mrf.mxu1 }
 0x36b   : > { %v2304_v54 = vadd.f32 %v6839_v27, %v9685_v53  ;;  %v2173_v38 = vpop.f32.mrf.mxu0  ;;  %4868 = vperm.xlu1 %7104, %v9741_v7  }
 0x36c   : > { %v9797_v3 = vadd.f32 %v2173_v38, %v1918_v47  ;;  %v2268_v37 = vpop.f32.mrf.mxu1 }
 0x36d   : > { %v2301_v12 = vadd.f32 %v2268_v37, %v9693_v48 }
 0x36e   : > { %v2177_v59 = vpop.f32.mrf.mxu0 }
 0x36f   : > { %v9800_v41 = vadd.f32 %v2177_v59, %v1920_v40  ;;  %v6842_v31 = vpop.f32.mrf.mxu1  ;;  %4876 = vperm.xlu1 %7104, %v9805_v21   ;;  %v9815_v40 = vld [vmem:[%s12045_s5 + $0x30] sm:$0xff] }
 0x370   : > { %v2310_v53 = vadd.f32 %v6842_v31, %v9704_v57  ;;  %v2179_v8 = vpop.f32.mrf.mxu0  ;;  %12522 = vst [vmem:[#allocation55_spill] sm:$0xff] %v9815_v40 }
 0x371   : > { %v9809_v11 = vadd.f32 %v2179_v8, %v1921_v34  ;;  %v2278_v47 = vpop.f32.mrf.mxu1 }
 0x372   : > { %v2307_v18 = vadd.f32 %v2278_v47, %v9710_v58 }
 0x373   : > { %v2410_v48 = vpop.f32.mrf.mxu1  ;;  %4884 = vperm.xlu1 %7104, %v9815_v40  }
 0x374   : > { %v2562_v26 = vadd.f32 %v2410_v48, %v9719_v60  ;;  %v6861_v27 = vpop.f32.mrf.mxu0 }
 0x375   : > { %v9819_v38 = vadd.f32 %v6861_v27, %v2292_v25  ;;  %v2412_v57 = vpop.f32.mrf.mxu1 }
 0x376   : > { %v2563_v34 = vadd.f32 %v2412_v57, %v9724_v9  ;;  %v2523_v37 = vpop.f32.mrf.mxu0 }
 0x377   : > { %v9822_v59 = vadd.f32 %v2523_v37, %v2289_v63 }
 0x37a   : > { %v2416_v58 = vpop.f32.mrf.mxu1 }
 0x37b   : > { %v2565_v31 = vadd.f32 %v2416_v58, %v9733_v15  ;;  %v6864_v8 = vpop.f32.mrf.mxu0 }
 0x37c   : > { %v9825_v47 = vadd.f32 %v6864_v8, %v2298_v6  ;;  %v2418_v36 = vpop.f32.mrf.mxu1 }
 0x37d   : > { %v2566_v28 = vadd.f32 %v2418_v36, %v9736_v1  ;;  %v2533_v16 = vpop.f32.mrf.mxu0 }
 0x37e   : > { %v9828_v60 = vadd.f32 %v2533_v16, %v2295_v42 }
 0x381   : > { %v2422_v25 = vpop.f32.mrf.mxu1  ;;  %v6867_v48 = vpop.f32.mrf.mxu0 }
 0x382   : > { %v2568_v27 = vadd.f32 %v2422_v25, %v9745_v56  ;;  %v9831_v9 = vadd.f32 %v6867_v48, %v2304_v54 }
 0x383   : > { %v2424_v63 = vpop.f32.mrf.mxu1  ;;  %v2543_v57 = vpop.f32.mrf.mxu0 }
 0x384   : > { %v2569_v37 = vadd.f32 %v2424_v63, %v9748_v49  ;;  %v9834_v15 = vadd.f32 %v2543_v57, %v2301_v12 }
 0x387   : > { %v2428_v6 = vpop.f32.mrf.mxu1 }
 0x388   : > { %v2571_v58 = vadd.f32 %v2428_v6, %v9757_v24  ;;  %v6870_v8 = vpop.f32.mrf.mxu0 }
 0x389   : > { %v9837_v36 = vadd.f32 %v6870_v8, %v2310_v53  ;;  %v2430_v16 = vpop.f32.mrf.mxu1  ;;  %v12131_v53 = vmov 4  }
 0x38a   : > { %v2572_v1 = vadd.f32 %v2430_v16, %v9766_v33  ;;  %v2553_v42 = vpop.f32.mrf.mxu0  ;;  %7105 = vset.pattern.permute.xlu1 %v12131_v53 }
 0x38b   : > { %v9840_v10 = vadd.f32 %v2553_v42, %v2307_v18 }
 0x38e   : > { %v2434_v56 = vpop.f32.mrf.mxu1  ;;  %v2774_v54 = vpop.f32.mrf.mxu0 }
 0x38f   : > { %v2574_v25 = vadd.f32 %v2434_v56, %v9768_v45  ;;  %v9843_v48 = vadd.f32 %v2774_v54, %v2562_v26 }
 0x390   : > { %v2436_v49 = vpop.f32.mrf.mxu1  ;;  %v2776_v12 = vpop.f32.mrf.mxu0 }
 0x391   : > { %v2575_v63 = vadd.f32 %v2436_v49, %v9777_v29  ;;  %v9846_v24 = vadd.f32 %v2776_v12, %v2563_v34 }
 0x392   : > { %v2440_v57 = vpop.f32.mrf.mxu1 }
 0x393   : > { %v2577_v33 = vadd.f32 %v2440_v57, %v9780_v13  ;;  %v2780_v18 = vpop.f32.mrf.mxu0 }
 0x394   : > { %v9850_v6 = vadd.f32 %v2780_v18, %v2565_v31  ;;  %v2442_v8 = vpop.f32.mrf.mxu1 }
 0x395   : > { %v2578_v45 = vadd.f32 %v2442_v8, %v9790_v35  ;;  %v2782_v26 = vpop.f32.mrf.mxu0 }
 0x396   : > { %v9853_v16 = vadd.f32 %v2782_v26, %v2566_v28  ;;  %v2446_v42 = vpop.f32.mrf.mxu1 }
 0x397   : > { %v2580_v29 = vadd.f32 %v2446_v42, %v9793_v17  ;;  %v2786_v34 = vpop.f32.mrf.mxu0 }
 0x398   : > { %v9856_v56 = vadd.f32 %v2786_v34, %v2568_v27  ;;  %v2448_v54 = vpop.f32.mrf.mxu1 }
 0x399   : > { %v2581_v49 = vadd.f32 %v2448_v54, %v9797_v3  ;;  %v2788_v12 = vpop.f32.mrf.mxu0 }
 0x39a   : > { %v9859_v13 = vadd.f32 %v2788_v12, %v2569_v37  ;;  %v2452_v31 = vpop.f32.mrf.mxu1 }
 0x39b   : > { %v2583_v57 = vadd.f32 %v2452_v31, %v9800_v41  ;;  %v2792_v18 = vpop.f32.mrf.mxu0 }
 0x39c   : > { %v9862_v35 = vadd.f32 %v2792_v18, %v2571_v58  ;;  %v2454_v28 = vpop.f32.mrf.mxu1 }
 0x39d   : > { %v2584_v8 = vadd.f32 %v2454_v28, %v9809_v11  ;;  %v2794_v26 = vpop.f32.mrf.mxu0 }
 0x39e   : > { %v9865_v17 = vadd.f32 %v2794_v26, %v2572_v1  ;;  %v9867_v27 = vpop.f32.mrf.mxu1  ;;  %v9873_v37 = vpop.permute.xlu1 %4458 }
 0x39f   : > { %v2798_v42 = vpop.f32.mrf.mxu0  ;;  %12523 = vst [vmem:[#allocation67_spill] sm:$0xff] %v9873_v37 }
 0x3a0   : > { %v9869_v34 = vadd.f32 %v2798_v42, %v2574_v25  ;;  %v9871_v3 = vpop.f32.mrf.mxu1 }
 0x3a1   : > { %v2800_v54 = vpop.f32.mrf.mxu0 }
 0x3a2   : > { %v9875_v41 = vadd.f32 %v2800_v54, %v2575_v63 }
 0x3a3   : > { %v2804_v58 = vpop.f32.mrf.mxu0  ;;  %v9877_v12 = vpop.f32.mrf.mxu1 }
 0x3a4   : > { %v9879_v31 = vadd.f32 %v2804_v58, %v2577_v33 }
 0x3a5   : > { %v2806_v11 = vpop.f32.mrf.mxu0  ;;  %v9881_v1 = vpop.f32.mrf.mxu1 }
 0x3a6   : > { %v9883_v18 = vadd.f32 %v2806_v11, %v2578_v45  ;;  %v9885_v28 = vpop.permute.xlu1 %4466 }
 0x3a7   : > { %12524 = vst [vmem:[#allocation63_spill] sm:$0xff] %v9885_v28  ;;  %v2810_v25 = vpop.f32.mrf.mxu0 }
 0x3a8   : > { %v9887_v26 = vadd.f32 %v2810_v25, %v2580_v29  ;;  %v9889_v42 = vpop.f32.mrf.mxu1 }
 0x3a9   : > { %v2812_v53 = vpop.f32.mrf.mxu0 }
 0x3aa   : > { %12525 = vst [vmem:[#allocation37_spill] sm:$0xff] %v9887_v26  ;;  %v9891_v63 = vadd.f32 %v2812_v53, %v2581_v49  ;;  %v9893_v54 = vpop.f32.mrf.mxu1 }
 0x3ab   : > { %v2816_v37 = vpop.f32.mrf.mxu0 }
 0x3ac   : > { %12526 = vst [vmem:[#allocation14_spill] sm:$0xff] %v9891_v63  ;;  %v9895_v33 = vadd.f32 %v2816_v37, %v2583_v57  ;;  %v9897_v58 = vpop.f32.mrf.mxu1  ;;  %v9899_v39 = vpop.permute.xlu1 %4474 }
 0x3ad   : > { %12528 = vst [vmem:[#allocation57_spill] sm:$0xff] %v9899_v39  ;;  %v2818_v45 = vpop.f32.mrf.mxu0 }
 0x3ae   : > { %12527 = vst [vmem:[#allocation53_spill] sm:$0xff] %v9895_v33  ;;  %v9901_v11 = vadd.f32 %v2818_v45, %v2584_v8  ;;  %v9903_v28 = vpop.f32.mrf.mxu1 }
 0x3af   : > { %v9905_v29 = vpop.f32.mrf.mxu0 }
 0x3b0   : > { %12529 = vst [vmem:[#allocation47_spill] sm:$0xff] %v9901_v11  ;;  %v9907_v25 = vpop.f32.mrf.mxu1  ;;  %v9909_v53 = vpop.permute.xlu1 %4482 }
 0x3b1   : > { %12530 = vst [vmem:[#allocation45_spill] sm:$0xff] %v9909_v53  ;;  %v9913_v14 = vpop.f32.mrf.mxu0 }
 0x3b2   : > { %v9911_v49 = vpop.f32.mrf.mxu1 }
 0x3b4   : > { %v9919_v39 = vpop.permute.xlu1 %4490 }
 0x3b5   : > { %12531 = vst [vmem:[#allocation41_spill] sm:$0xff] %v9919_v39 }
 0x3b6   : > { %v9915_v57 = vpop.f32.mrf.mxu1  ;;  %v9917_v37 = vpop.f32.mrf.mxu0 }
 0x3b8   : > { %v9921_v8 = vpop.f32.mrf.mxu1  ;;  %v9923_v45 = vpop.f32.mrf.mxu0 }
 0x3b9   : > { %v9929_v52 = vpop.permute.xlu1 %4498 }
 0x3ba   : > { %12532 = vst [vmem:[#allocation25_spill] sm:$0xff] %v9929_v52 }
 0x3bc   : > { %v9925_v43 = vpop.f32.mrf.mxu1  ;;  %v9927_v55 = vpop.f32.mrf.mxu0 }
 0x3bd   : > { %v9939_v44 = vpop.permute.xlu1 %4506 }
 0x3be   : > { %v9931_v53 = vpop.f32.mrf.mxu1  ;;  %v9933_v62 = vpop.f32.mrf.mxu0  ;;  %12533 = vst [vmem:[#allocation18_spill] sm:$0xff] %v9939_v44 }
 0x3c1   : > { %v9953_v33 = vpop.permute.xlu1 %4514 }
 0x3c2   : > { %v9935_v7 = vpop.f32.mrf.mxu1  ;;  %v9937_v61 = vpop.f32.mrf.mxu0  ;;  %12534 = vst [vmem:[#allocation33_spill] sm:$0xff] %v9953_v33 }
 0x3c3   : > { %v9973_v33 = vpop.permute.xlu0 %4615 }
 0x3c4   : > { %v9941_v39 = vpop.f32.mrf.mxu1  ;;  %v9943_v40 = vpop.f32.mrf.mxu0  ;;  %12540 = vst [vmem:[#allocation31_spill] sm:$0xff] %v9973_v33  ;;  %v4646_v5 = vmul.f32 %v9969_v22, %v9973_v33 }
 0x3c7   : > { %v9945_v21 = vpop.f32.mrf.mxu1  ;;  %v9947_v32 = vpop.f32.mrf.mxu0 }
 0x3c8   : > { %v9997_v26 = vpop.permute.xlu0 %4627 }
 0x3c9   : > { %v9949_v11 = vpop.f32.mrf.mxu1  ;;  %v9951_v52 = vpop.f32.mrf.mxu0 }
 0x3cb   : > { %v9955_v19 = vpop.f32.mrf.mxu1  ;;  %v9957_v0 = vpop.f32.mrf.mxu0 }
 0x3cd   : > { %v9959_v46 = vpop.f32.mrf.mxu1  ;;  %v9961_v44 = vpop.f32.mrf.mxu0 }
 0x3ce   : > { %12535 = vst [vmem:[#allocation23_spill] sm:$0xff] %v9959_v46  ;;  %12536 = vst [vmem:[#allocation29_spill] sm:$0xff] %v9961_v44  ;;  %v9963_v30 = vpop.permute.xlu1 %4611  ;;  %v10019_v46 = vpop.permute.xlu0 %4635 }
 0x3cf   : > { %12537 = vst [vmem:[#allocation48_spill] sm:$0xff] %v9963_v30  ;;  %v9965_v51 = vpop.f32.mrf.mxu1  ;;  %v9967_v50 = vpop.f32.mrf.mxu0  ;;  %v4642_v23 = vmul.f32 %v9969_v22, %v9963_v30 }
 0x3d0   : > { %12538 = vst [vmem:[#allocation39_spill] sm:$0xff] %v9965_v51  ;;  %12539 = vst [vmem:[#allocation35_spill] sm:$0xff] %v9967_v50 }
 0x3d1   : > { %v9975_v20 = vpop.f32.mrf.mxu1  ;;  %v9977_v2 = vpop.f32.mrf.mxu0  ;;  %4706 = vrot.lane.b32.xlu0 %v4642_v23, %s7210_s17 }
 0x3d2   : > { %12541 = vst [vmem:[#allocation27_spill] sm:$0xff] %v9975_v20  ;;  %12542 = vst [vmem:[#allocation62_spill] sm:$0xff] %v9977_v2  ;;  %v9982_v4 = vpop.permute.xlu1 %4619 }
 0x3d3   : > { %12543 = vst [vmem:[#allocation42_spill] sm:$0xff] %v9982_v4  ;;  %v9984_v63 = vpop.f32.mrf.mxu1  ;;  %v9986_v50 = vpop.f32.mrf.mxu0  ;;  %v4650_v23 = vmul.f32 %v9969_v22, %v9982_v4  ;;  %v2931_v4 = vadd.f32 %v9867_v27, %v9819_v38  ;;  %v2934_v38 = vadd.f32 %v9881_v1, %v9828_v60  ;;  %v2943_v27 = vadd.f32 %v9889_v42, %v9831_v9 }
 0x3d4   : > { %12544 = vst [vmem:[#allocation38_spill] sm:$0xff] %v9984_v63  ;;  %12545 = vst [vmem:[#allocation34_spill] sm:$0xff] %v9986_v50  ;;  %v2946_v60 = vadd.f32 %v9903_v28, %v9840_v10  ;;  %v3290_v9 = vadd.f32 %v9907_v25, %v9843_v48  ;;  %v3294_v10 = vadd.f32 %v9921_v8, %v9853_v16 }
 0x3d5   : > { %v9988_v51 = vpop.f32.mrf.mxu1  ;;  %v9990_v30 = vpop.f32.mrf.mxu0  ;;  %4714 = vrot.lane.b32.xlu0 %v4646_v5, %s7210_s17  ;;  %v3295_v1 = vadd.f32 %v9905_v29, %v2931_v4  ;;  %v3298_v48 = vadd.f32 %v9923_v45, %v2934_v38  ;;  %v3296_v4 = vadd.f32 %v9925_v43, %v9856_v56  ;;  %v3307_v28 = vadd.f32 %v9927_v55, %v2943_v27 }
 0x3d6   : > { %12546 = vst [vmem:[#allocation49_spill] sm:$0xff] %v9988_v51  ;;  %12547 = vst [vmem:[#allocation56_spill] sm:$0xff] %v9990_v30  ;;  %v9999_v33 = vpop.permute.xlu1 %4623  ;;  %v3300_v43 = vadd.f32 %v9941_v39, %v9865_v17  ;;  %v3310_v55 = vadd.f32 %v9943_v40, %v2946_v60  ;;  %v3302_v56 = vadd.f32 %v9945_v21, %v9869_v34  ;;  %v12554_v21 = vld [vmem:[#allocation23_spill] sm:$0xff] }
 0x3d7   : > { %v9993_v20 = vpop.f32.mrf.mxu0  ;;  %v6945_v2 = vpop.f32.mrf.mxu1  ;;  %12549 = vst [vmem:[#allocation73_spill] sm:$0xff] %v9999_v33  ;;  %v4654_v5 = vmul.f32 %v9969_v22, %v9999_v33  ;;  %v2937_v33 = vadd.f32 %v9877_v12, %v9825_v47  ;;  %v2949_v47 = vadd.f32 %v9897_v58, %v9837_v36  ;;  %v4666_v12 = vmul.f32 %v9969_v22, %v10019_v46 }
 0x3d8   : > { %12548 = vst [vmem:[#allocation66_spill] sm:$0xff] %v9993_v20  ;;  %v10090_v17 = vadd.f32 %v12554_v21, %v9883_v18 }
 0x3d9   : > { %v10001_v44 = vpop.f32.mrf.mxu0  ;;  %v3615_v63 = vpop.f32.mrf.mxu1  ;;  %4722 = vrot.lane.b32.xlu0 %v4650_v23, %s7210_s17  ;;  %v4658_v23 = vmul.f32 %v9969_v22, %v9997_v26  ;;  %v3301_v58 = vadd.f32 %v9917_v37, %v2937_v33  ;;  %v3313_v16 = vadd.f32 %v9937_v61, %v2949_v47  ;;  %v3654_v33 = vadd.f32 %v9947_v32, %v3290_v9  ;;  %v12555_v32 = vld [vmem:[#allocation29_spill] sm:$0xff] }
 0x3da   : > { %12550 = vst [vmem:[#allocation77_spill] sm:$0xff] %v10001_v44  ;;  %v3305_v61 = vadd.f32 %v9955_v19, %v9879_v31  ;;  %v3658_v34 = vadd.f32 %v12555_v32, %v3294_v10  ;;  %v12559_v19 = vld [vmem:[#allocation14_spill] sm:$0xff] }
 0x3db   : > { %v10004_v51 = vpop.f32.mrf.mxu0  ;;  %v10006_v30 = vpop.f32.mrf.mxu1  ;;  %v12562_v18 = vld [vmem:[#allocation34_spill] sm:$0xff] }
 0x3dc   : > { %12551 = vst [vmem:[#allocation20_spill] sm:$0xff] %v10004_v51  ;;  %v2928_v51 = vadd.f32 %v9871_v3, %v9822_v59  ;;  %v2940_v59 = vadd.f32 %v9893_v54, %v9834_v15  ;;  %v3291_v15 = vadd.f32 %v9911_v49, %v9846_v24  ;;  %v3293_v54 = vadd.f32 %v9915_v57, %v9850_v6  ;;  %v12557_v49 = vld [vmem:[#allocation39_spill] sm:$0xff] }
 0x3dd   : > { %v10010_v20 = vpop.f32.mrf.mxu0  ;;  %v10012_v50 = vpop.f32.mrf.mxu1  ;;  %4730 = vrot.lane.b32.xlu0 %v4654_v5, %s7210_s17  ;;  %v3299_v6 = vadd.f32 %v9935_v7, %v9862_v35  ;;  %v3659_v35 = vadd.f32 %v6945_v2, %v3295_v1  ;;  %v12560_v2 = vld [vmem:[#allocation27_spill] sm:$0xff] }
 0x3de   : > { %12552 = vst [vmem:[#allocation22_spill] sm:$0xff] %v10010_v20  ;;  %12553 = vst [vmem:[#allocation26_spill] sm:$0xff] %v10012_v50  ;;  %v10029_v50 = vpop.permute.xlu1 %4631  ;;  %v3292_v36 = vadd.f32 %v9913_v14, %v2928_v51  ;;  %v3297_v51 = vadd.f32 %v9931_v53, %v9859_v13  ;;  %v3304_v14 = vadd.f32 %v9933_v62, %v2940_v59  ;;  %v12556_v53 = vld [vmem:[#allocation37_spill] sm:$0xff] }
 0x3df   : > { %v10017_v44 = vpop.f32.mrf.mxu0  ;;  %v4662_v42 = vmul.f32 %v9969_v22, %v10029_v50  ;;  %v3303_v62 = vadd.f32 %v9949_v11, %v9875_v41  ;;  %v3655_v7 = vadd.f32 %v9951_v52, %v3291_v15  ;;  %v3657_v40 = vadd.f32 %v9957_v0, %v3293_v54  ;;  %v12558_v52 = vld [vmem:[#allocation35_spill] sm:$0xff]  ;;  %v12561_v11 = vld [vmem:[#allocation62_spill] sm:$0xff] }
 0x3e0   : > { %v10027_v20 = vpop.f32.mrf.mxu1  ;;  %v10095_v57 = vadd.f32 %v12557_v49, %v12556_v53  ;;  %v3660_v41 = vadd.f32 %v12558_v52, %v3296_v4  ;;  %v10101_v31 = vadd.f32 %v12560_v2, %v12559_v19  ;;  %v3661_v0 = vadd.f32 %v12561_v11, %v3297_v51  ;;  %v12568_v51 = vld [vmem:[#allocation28_spill] sm:$0xff] }
 0x3e1   : > { %v10035_v5 = vpop.f32.mrf.mxu0  ;;  %4738 = vrot.lane.b32.xlu0 %v4658_v23, %s7210_s17  ;;  %v3656_v37 = vadd.f32 %v3615_v63, %v3292_v36  ;;  %v10105_v45 = vadd.f32 %v12562_v18, %v3299_v6  ;;  %v12563_v23 = vld [vmem:[#allocation56_spill] sm:$0xff]  ;;  %v12565_v9 = vld [vmem:[#allocation77_spill] sm:$0xff]  ;;  %v3665_v63 = vadd.f32 %v10006_v30, %v3301_v58 }
 0x3e2   : > { %v3635_v3 = vpop.f32.mrf.mxu1  ;;  %v10085_v39 = vpop.permute.xlu1 %4639  ;;  %v10108_v38 = vadd.f32 %v12563_v23, %v3300_v43  ;;  %v10116_v1 = vadd.f32 %v12565_v9, %v3303_v62  ;;  %v12569_v62 = vld [vmem:[#allocation24_spill] sm:$0xff] }
 0x3e3   : > { %v4670_v47 = vmul.f32 %v9969_v22, %v10085_v39  ;;  %v12566_v36 = vld [vmem:[#allocation20_spill] sm:$0xff]  ;;  %v3668_v21 = vadd.f32 %v3635_v3, %v3304_v14 }
 0x3e4   : > { %v10120_v54 = vadd.f32 %v12566_v36, %v3305_v61  ;;  %v12575_v36 = vld [vmem:[#allocation12_spill] sm:$0xff] }
 0x3e5   : > { %v10063_v29 = vpop.f32.mrf.mxu0  ;;  %v6954_v24 = vpop.f32.mrf.mxu1  ;;  %4746 = vrot.lane.b32.xlu0 %v4662_v42, %s7210_s17  ;;  %v12567_v10 = vld [vmem:[#allocation26_spill] sm:$0xff] }
 0x3e6   : > { %v3662_v4 = vadd.f32 %v12567_v10, %v3298_v48  ;;  %v3677_v58 = vadd.f32 %v6954_v24, %v3313_v16  ;;  %v12571_v16 = vld [vmem:[#allocation68_spill] sm:$0xff] }
 0x3e7   : > { %v10078_v25 = vpop.f32.mrf.mxu0  ;;  %v3645_v13 = vpop.f32.mrf.mxu1 }
 0x3e8   : > { %v10128_v48 = vadd.f32 %v3645_v13, %v3310_v55  ;;  %v12573_v55 = vld [vmem:[#allocation43_spill] sm:$0xff] }
 0x3e9   : > { %4754 = vrot.lane.b32.xlu0 %v4666_v12, %s7210_s17  ;;  %v12564_v12 = vld [vmem:[#allocation66_spill] sm:$0xff] }
 0x3ea   : > { %v3866_v8 = vpop.f32.mrf.mxu1  ;;  %v10113_v60 = vadd.f32 %v12564_v12, %v3302_v56  ;;  %v3671_v56 = vadd.f32 %v10027_v20, %v3307_v28 }
 0x3eb   : > { %v4018_v27 = vadd.f32 %v3866_v8, %v3654_v33  ;;  %v6973_v59 = vpop.f32.mrf.mxu0  ;;  %v12570_v8 = vld [vmem:[#allocation6_spill] sm:$0xff] }
 0x3ec   : > { %v4023_v42 = vadd.f32 %v6973_v59, %v3659_v35  ;;  %v3868_v15 = vpop.f32.mrf.mxu1  ;;  %v12574_v59 = vld [vmem:[#allocation8_spill] sm:$0xff] }
 0x3ed   : > { %v4090_v6 = vadd.f32 %v12568_v51, %v4018_v27  ;;  %v4019_v43 = vadd.f32 %v3868_v15, %v3655_v7  ;;  %v3979_v33 = vpop.f32.mrf.mxu0  ;;  %4762 = vrot.lane.b32.xlu0 %v4670_v47, %s7210_s17 }
 0x3ee   : > { %v4095_v32 = vadd.f32 %v12569_v62, %v4023_v42  ;;  %v4020_v53 = vadd.f32 %v3979_v33, %v3656_v37  ;;  %v3872_v30 = vpop.f32.mrf.mxu1  ;;  %v12572_v37 = vld [vmem:[#allocation7_spill] sm:$0xff] }
 0x3ef   : > { %v4114_v35 = vmax.f32 %v4090_v6, 0.0  ;;  %v4091_v61 = vadd.f32 %v12568_v51, %v4019_v43  ;;  %v4021_v49 = vadd.f32 %v3872_v30, %v3657_v40  ;;  %v6976_v52 = vpop.f32.mrf.mxu0 }
 0x3f0   : > { %v4119_v19 = vmax.f32 %v4095_v32, 0.0  ;;  %v4092_v7 = vadd.f32 %v12568_v51, %v4020_v53  ;;  %v4029_v2 = vadd.f32 %v6976_v52, %v3665_v63  ;;  %v3874_v11 = vpop.f32.mrf.mxu1  ;;  %v12576_v32 = vld [vmem:[#allocation76_spill] sm:$0xff] }
 0x3f1   : > { %v10132_v20 = vmul.f32 %v4114_v35, %v12570_v8  ;;  %v4115_v3 = vmax.f32 %v4091_v61, 0.0  ;;  %v4093_v28 = vadd.f32 %v12569_v62, %v4021_v49  ;;  %v4022_v14 = vadd.f32 %v3874_v11, %v3658_v34  ;;  %v3989_v24 = vpop.f32.mrf.mxu0  ;;  %4860 = vperm.xlu0 %7103, %v12571_v16   ;;  %v12577_v35 = vld [vmem:[#allocation32_spill] sm:$0xff] }
 0x3f2   : > { %v4143_v40 = vmul.f32 %v4119_v19, %v12572_v37  ;;  %v4116_v18 = vmax.f32 %v4092_v7, 0.0  ;;  %v4101_v13 = vadd.f32 %v12573_v55, %v4029_v2  ;;  %v4026_v23 = vadd.f32 %v3989_v24, %v3662_v4  ;;  %v3878_v27 = vpop.f32.mrf.mxu1 }
 0x3f3   : > { %4194 = vst [vmem:[#allocation3 + $0x8] sm:$0xff] %v10132_v20  ;;  %v10140_v47 = vmul.f32 %v4115_v3, %v12574_v59  ;;  %v4117_v12 = vmax.f32 %v4093_v28, 0.0  ;;  %v4094_v9 = vadd.f32 %v12569_v62, %v4022_v14  ;;  %v4024_v63 = vadd.f32 %v3878_v27, %v3660_v41  ;;  %v6979_v34 = vpop.f32.mrf.mxu0  ;;  %v12578_v28 = vld [vmem:[#allocation79_spill] sm:$0xff]  ;;  %v12579_v27 = vld [vmem:[#allocation58_spill] sm:$0xff] }
 0x3f4   : > { %4199 = vst.msk [vmem:[#allocation3 + $0x38] sm:$0xff] %vm720_vm2, %v4143_v40  ;;  %v4140_v42 = vmul.f32 %v4116_v18, %v12572_v37  ;;  %v4125_v15 = vmax.f32 %v4101_v13, 0.0  ;;  %v4098_v10 = vadd.f32 %v12575_v36, %v4026_v23  ;;  %v4035_v51 = vadd.f32 %v6979_v34, %v3671_v56  ;;  %v3880_v4 = vpop.f32.mrf.mxu1 }
 0x3f5   : > { %4195 = vst [vmem:[#allocation3 + $0x10] sm:$0xff] %v10140_v47  ;;  %v10148_v6 = vmul.f32 %v4117_v12, %v12570_v8  ;;  %v4118_v43 = vmax.f32 %v4094_v9, 0.0  ;;  %v4096_v33 = vadd.f32 %v12575_v36, %v4024_v63  ;;  %v4025_v62 = vadd.f32 %v3880_v4, %v3661_v0  ;;  %v3999_v41 = vpop.f32.mrf.mxu0  ;;  %4872 = vperm.xlu0 %7103, %v12576_v32  }
 0x3f6   : > { %4196 = vst.msk [vmem:[#allocation3 + $0x18] sm:$0xff] %vm720_vm2, %v4140_v42  ;;  %v4149_v53 = vmul.f32 %v4125_v15, %v12572_v37  ;;  %v4122_v30 = vmax.f32 %v4098_v10, 0.0  ;;  %v4107_v56 = vadd.f32 %v12577_v35, %v4035_v51  ;;  %v4032_v61 = vadd.f32 %v3999_v41, %v3668_v21  ;;  %v3884_v49 = vpop.f32.mrf.mxu1  ;;  %v12581_v51 = vld [vmem:[#allocation22_spill] sm:$0xff] }
 0x3f7   : > { %4197 = vst [vmem:[#allocation3 + $0x28] sm:$0xff] %v10148_v6  ;;  %v10157_v52 = vmul.f32 %v4118_v43, %v12574_v59  ;;  %v4120_v19 = vmax.f32 %v4096_v33, 0.0  ;;  %v4097_v0 = vadd.f32 %v12575_v36, %v4025_v62  ;;  %v4027_v7 = vadd.f32 %v3884_v49, %v10105_v45  ;;  %v6982_v2 = vpop.f32.mrf.mxu0 }
 0x3f8   : > { %4205 = vst.msk [vmem:[#allocation3 + $0x78] sm:$0xff] %vm720_vm2, %v4149_v53  ;;  %v4146_v11 = vmul.f32 %v4122_v30, %v12572_v37  ;;  %v4131_v3 = vmax.f32 %v4107_v56, 0.0  ;;  %v4104_v14 = vadd.f32 %v12578_v28, %v4032_v61  ;;  %v4041_v21 = vadd.f32 %v6982_v2, %v3677_v58  ;;  %v3886_v24 = vpop.f32.mrf.mxu1  ;;  %v12580_v58 = vld [vmem:[#allocation81_spill] sm:$0xff]  ;;  %v12583_v56 = vld [vmem:[#allocation19_spill] sm:$0xff]  ;;  %v12585_v61 = vld [vmem:[#allocation38_spill] sm:$0xff] }
 0x3f9   : > { %4198 = vst [vmem:[#allocation3 + $0x30] sm:$0xff] %v10157_v52  ;;  %v10166_v40 = vmul.f32 %v4120_v19, %v12570_v8  ;;  %v4121_v18 = vmax.f32 %v4097_v0, 0.0  ;;  %v4099_v13 = vadd.f32 %v12573_v55, %v4027_v7  ;;  %v4028_v45 = vadd.f32 %v3886_v24, %v10108_v38  ;;  %v4009_v23 = vpop.f32.mrf.mxu0  ;;  %4880 = vperm.xlu0 %7103, %v12579_v27   ;;  %v12587_v24 = vld [vmem:[#allocation49_spill] sm:$0xff] }
 0x3fa   : > { %4202 = vst.msk [vmem:[#allocation3 + $0x58] sm:$0xff] %vm720_vm2, %v4146_v11  ;;  %v4155_v12 = vmul.f32 %v4131_v3, %v12572_v37  ;;  %v4128_v9 = vmax.f32 %v4104_v14, 0.0  ;;  %v4113_v63 = vadd.f32 %v12580_v58, %v4041_v21  ;;  %v4038_v34 = vadd.f32 %v4009_v23, %v10128_v48  ;;  %v3890_v42 = vpop.f32.mrf.mxu1  ;;  %v12582_v48 = vld [vmem:[#allocation69_spill] sm:$0xff]  ;;  %v12586_v21 = vld [vmem:[#allocation47_spill] sm:$0xff] }
 0x3fb   : > { %4200 = vst [vmem:[#allocation3 + $0x48] sm:$0xff] %v10166_v40  ;;  %v10177_v15 = vmul.f32 %v4121_v18, %v12574_v59  ;;  %v4123_v36 = vmax.f32 %v4099_v13, 0.0  ;;  %v4100_v38 = vadd.f32 %v12573_v55, %v4028_v45  ;;  %v4030_v10 = vadd.f32 %v3890_v42, %v10113_v60 }
 0x3fc   : > { %v3670_v4 = vadd.f32 %v12581_v51, %v10090_v17  ;;  %4211 = vst.msk [vmem:[#allocation3 + $0xb8] sm:$0xff] %vm720_vm2, %v4155_v12  ;;  %v4152_v43 = vmul.f32 %v4128_v9, %v12572_v37  ;;  %v4137_v33 = vmax.f32 %v4113_v63, 0.0  ;;  %v4110_v62 = vadd.f32 %v12582_v48, %v4038_v34  ;;  %v3892_v41 = vpop.f32.mrf.mxu1  ;;  %v12584_v17 = vld [vmem:[#allocation53_spill] sm:$0xff] }
 0x3fd   : > { %4201 = vst [vmem:[#allocation3 + $0x50] sm:$0xff] %v10177_v15  ;;  %v10188_v53 = vmul.f32 %v4123_v36, %v12570_v8  ;;  %v4124_v30 = vmax.f32 %v4100_v38, 0.0  ;;  %v4102_v55 = vadd.f32 %v12578_v28, %v4030_v10  ;;  %v4031_v60 = vadd.f32 %v3892_v41, %v10116_v1  ;;  %4888 = vperm.xlu0 %7103, %v12583_v56  }
 0x3fe   : > { %v3311_v49 = vadd.f32 %v12585_v61, %v12584_v17  ;;  %v3672_v19 = vadd.f32 %v10017_v44, %v10095_v57  ;;  %4208 = vst.msk [vmem:[#allocation3 + $0x98] sm:$0xff] %vm720_vm2, %v4152_v43  ;;  %v4161_v0 = vmul.f32 %v4137_v33, %v12572_v37  ;;  %v4134_v7 = vmax.f32 %v4110_v62, 0.0  ;;  %v3896_v2 = vpop.f32.mrf.mxu1  ;;  %v12590_v33 = vld [vmem:[#allocation70_spill] sm:$0xff] }
 0x3ff   : > { %4203 = vst [vmem:[#allocation3 + $0x68] sm:$0xff] %v10188_v53  ;;  %v10201_v11 = vmul.f32 %v4124_v30, %v12574_v59  ;;  %v4126_v1 = vmax.f32 %v4102_v55, 0.0  ;;  %v4103_v3 = vadd.f32 %v12578_v28, %v4031_v60  ;;  %v4033_v14 = vadd.f32 %v3896_v2, %v10120_v54 }
 0x400   : > { %v3312_v18 = vadd.f32 %v12587_v24, %v12586_v21  ;;  %v3673_v44 = vadd.f32 %v10035_v5, %v10101_v31  ;;  %4217 = vst.msk [vmem:[#allocation3 + $0xf8] sm:$0xff] %vm720_vm2, %v4161_v0  ;;  %v4158_v57 = vmul.f32 %v4134_v7, %v12572_v37  ;;  %v3898_v13 = vpop.f32.mrf.mxu1  ;;  %v12588_v12 = vmov 4   ;;  %v12589_v31 = vld [vmem:[#allocation72_spill] sm:$0xff] }
 0x401   : > { %4204 = vst [vmem:[#allocation3 + $0x70] sm:$0xff] %v10201_v11  ;;  %v10213_v45 = vmul.f32 %v4126_v1, %v12570_v8  ;;  %v4127_v23 = vmax.f32 %v4103_v3, 0.0  ;;  %v4105_v28 = vadd.f32 %v12577_v35, %v4033_v14  ;;  %v4034_v54 = vadd.f32 %v3898_v13, %v3670_v4  ;;  %7106 = vset.pattern.permute.xlu0 %v12588_v12  ;;  %v10263_v14 = vld [vmem:[#allocation3 + $0x38] sm:$0xff] }
 0x402   : > { %v3675_v9 = vadd.f32 %v10063_v29, %v3311_v49  ;;  %4214 = vst.msk [vmem:[#allocation3 + $0xd8] sm:$0xff] %vm720_vm2, %v4158_v57  ;;  %v3902_v5 = vpop.f32.mrf.mxu1  ;;  %5112 = vperm.xlu0 %7106, %v12589_v31   ;;  %v3676_v36 = vadd.f32 %v10078_v25, %v3312_v18  ;;  %v12591_v49 = vld [vmem:[#allocation55_spill] sm:$0xff]  ;;  %v7211_v1 = vmov 5   ;;  %vm6199_vm2 = vcmask 400384  }
 0x403   : > { %4206 = vst [vmem:[#allocation3 + $0x88] sm:$0xff] %v10213_v45  ;;  %v10222_v37 = vmul.f32 %v4127_v23, %v12574_v59  ;;  %v4129_v63 = vmax.f32 %v4105_v28, 0.0  ;;  %v4106_v34 = vadd.f32 %v12577_v35, %v4034_v54  ;;  %v4036_v42 = vadd.f32 %v3902_v5, %v3672_v19 }
 0x404   : > { %v3904_v38 = vpop.f32.mrf.mxu1 }
 0x405   : > { %4207 = vst [vmem:[#allocation3 + $0x90] sm:$0xff] %v10222_v37  ;;  %v10228_v29 = vmul.f32 %v4129_v63, %v12570_v8  ;;  %v4130_v10 = vmax.f32 %v4106_v34, 0.0  ;;  %v4108_v51 = vadd.f32 %v12582_v48, %v4036_v42  ;;  %v4037_v4 = vadd.f32 %v3904_v38, %v3673_v44  ;;  %v10291_v63 = vpop.permute.xlu1 %4864 }
 0x406   : > { %v3908_v43 = vpop.f32.mrf.mxu1  ;;  %5124 = vperm.xlu0 %7106, %v12590_v33   ;;  %v4895_v34 = vmul.f32 %v9969_v22, %v10291_v63  ;;  %v4898_v42 = vmul.f32 %v10291_v63, %v10263_v14 }
 0x407   : > { %4209 = vst [vmem:[#allocation3 + $0xa8] sm:$0xff] %v10228_v29  ;;  %v10234_v35 = vmul.f32 %v4130_v10, %v12574_v59  ;;  %v4132_v62 = vmax.f32 %v4108_v51, 0.0  ;;  %v4109_v25 = vadd.f32 %v12582_v48, %v4037_v4  ;;  %v4039_v41 = vadd.f32 %v3908_v43, %v3675_v9 }
 0x408   : > { %v3910_v30 = vpop.f32.mrf.mxu1 }
 0x409   : > { %4210 = vst [vmem:[#allocation3 + $0xb0] sm:$0xff] %v10234_v35  ;;  %v10239_v55 = vmul.f32 %v4132_v62, %v12570_v8  ;;  %v4133_v60 = vmax.f32 %v4109_v25, 0.0  ;;  %v4111_v17 = vadd.f32 %v12580_v58, %v4039_v41  ;;  %v4040_v61 = vadd.f32 %v3910_v30, %v3676_v36  ;;  %v10301_v36 = vpop.permute.xlu1 %4868 }
 0x40a   : > { %5132 = vperm.xlu0 %7106, %v12591_v49   ;;  %v4899_v38 = vmul.f32 %v9969_v22, %v10301_v36 }
 0x40b   : > { %4212 = vst [vmem:[#allocation3 + $0xc8] sm:$0xff] %v10239_v55  ;;  %v10245_v19 = vmul.f32 %v4133_v60, %v12574_v59  ;;  %v4135_v0 = vmax.f32 %v4111_v17, 0.0  ;;  %v4112_v48 = vadd.f32 %v12580_v58, %v4040_v61  ;;  %v12600_v61 = vld [vmem:[#allocation74_spill] sm:$0xff] }
 0x40d   : > { %4213 = vst [vmem:[#allocation3 + $0xd0] sm:$0xff] %v10245_v19  ;;  %v10250_v7 = vmul.f32 %v4135_v0, %v12570_v8  ;;  %v4136_v2 = vmax.f32 %v4112_v48, 0.0  ;;  %v12592_v8 = vld [vmem:[#allocation60_spill] sm:$0xff]  ;;  %v10311_v4 = vpop.permute.xlu1 %4876 }
 0x40e   : > { %7107 = vset.pattern.permute.xlu0 %v7211_v1  ;;  %v4395_v58 = vmul.f32 %v12592_v8, %v10132_v20  ;;  %v4907_v43 = vmul.f32 %v9969_v22, %v10311_v4 }
 0x40f   : > { %4215 = vst [vmem:[#allocation3 + $0xe8] sm:$0xff] %v10250_v7  ;;  %v10254_v3 = vmul.f32 %v4136_v2, %v12574_v59  ;;  %5316 = vperm.xlu0 %7107, %v12571_v16   ;;  %v12593_v59 = vld [vmem:[#allocation13_spill] sm:$0xff]  ;;  %v4396_v2 = vmul.f32 %v12592_v8, %v10140_v47 }
 0x410   : > { %v4401_v21 = vmul.f32 %v12593_v59, %v10263_v14 }
 0x411   : > { %4216 = vst [vmem:[#allocation3 + $0xf0] sm:$0xff] %v10254_v3  ;;  %v10321_v41 = vpop.permute.xlu1 %4884 }
 0x412   : > { %v4915_v30 = vmul.f32 %v9969_v22, %v10321_v41 }
 0x413   : > { %5328 = vperm.xlu0 %7107, %v12576_v32  }
 0x417   : > { %5336 = vperm.xlu0 %7107, %v12579_v27  }
 0x41b   : > { %5344 = vperm.xlu0 %7107, %v12583_v56  }
 0x41f   : > { %4460 = vrot.lane.b32.xlu0 %v4395_v58, %s7202_s6 }
 0x423   : > { %4472 = vrot.lane.b32.xlu0 %v4401_v21, %s7202_s6 }
 0x443   : > { %v10269_v24 = vpop.permute.xlu0 %4706 }
 0x447   : > { %v10271_v18 = vpop.permute.xlu0 %4714 }
 0x448   : > { %12594 = vst [vmem:[#allocation30_spill] sm:$0xff] %v10271_v18 }
 0x44b   : > { %v10273_v44 = vpop.permute.xlu0 %4722 }
 0x44f   : > { %v10275_v57 = vpop.permute.xlu0 %4730 }
 0x450   : > { %12595 = vst [vmem:[#allocation10_spill] sm:$0xff] %v10275_v57 }
 0x453   : > { %v10277_v13 = vpop.permute.xlu0 %4738 }
 0x454   : > { %12596 = vst [vmem:[#allocation51_spill] sm:$0xff] %v10277_v13 }
 0x457   : > { %v10279_v23 = vpop.permute.xlu0 %4746 }
 0x458   : > { %12597 = vst [vmem:[#allocation16_spill] sm:$0xff] %v10279_v23 }
 0x45b   : > { %v10281_v28 = vpop.permute.xlu0 %4754 }
 0x45c   : > { %12598 = vst [vmem:[#allocation44_spill] sm:$0xff] %v10281_v28 }
 0x45f   : > { %v10283_v54 = vpop.permute.xlu0 %4762 }
 0x460   : > { %12599 = vst [vmem:[#allocation61_spill] sm:$0xff] %v10283_v54 }
 0x46c   : > { %v10285_v12 = vpop.permute.xlu0 %4860 }
 0x46d   : > { %v4892_v9 = vmul.f32 %v10285_v12, %v10132_v20  ;;  %v4891_v5 = vmul.f32 %v9969_v22, %v10285_v12  ;;  %v4893_v21 = vmul.f32 %v10285_v12, %v10140_v47 }
 0x46f   : > { %4957 = vrot.lane.b32.xlu0 %v4892_v9, %s7204_s13  ;;  %4955 = vrot.lane.b32.xlu1 %v4891_v5, %s7204_s13 }
 0x470   : > { %v10305_v10 = vpop.permute.xlu0 %4872 }
 0x471   : > { %v4903_v51 = vmul.f32 %v9969_v22, %v10305_v10  ;;  %v4905_v23 = vmul.f32 %v10305_v10, %v10201_v11 }
 0x473   : > { %4969 = vrot.lane.b32.xlu0 %v4898_v42, %s7204_s13  ;;  %4963 = vrot.lane.b32.xlu1 %v4895_v34, %s7204_s13 }
 0x474   : > { %v10315_v62 = vpop.permute.xlu0 %4880 }
 0x475   : > { %v4911_v25 = vmul.f32 %v9969_v22, %v10315_v62 }
 0x477   : > { %4971 = vrot.lane.b32.xlu1 %v4899_v38, %s7204_s13 }
 0x478   : > { %v10325_v60 = vpop.permute.xlu0 %4888 }
 0x479   : > { %v4919_v17 = vmul.f32 %v9969_v22, %v10325_v60 }
 0x47b   : > { %4979 = vrot.lane.b32.xlu1 %v4903_v51, %s7204_s13 }
 0x47d   : > { %v10338_v0 = vpop.permute.xlu0 %5112 }
 0x47e   : > { %v5144_v48 = vmul.f32 %v10338_v0, %v10263_v14 }
 0x47f   : > { %4987 = vrot.lane.b32.xlu1 %v4907_v43, %s7204_s13 }
 0x481   : > { %v10341_v22 = vpop.permute.xlu0 %5124 }
 0x483   : > { %4995 = vrot.lane.b32.xlu1 %v4911_v25, %s7204_s13 }
 0x487   : > { %5003 = vrot.lane.b32.xlu1 %v4915_v30, %s7204_s13 }
 0x48b   : > { %5011 = vrot.lane.b32.xlu1 %v4919_v17, %s7204_s13 }
 0x48f   : > { %5108 = vperm.xlu1 %7105, %v12571_v16   ;;  %v12601_v16 = vld [vmem:[#allocation48_spill] sm:$0xff] }
 0x493   : > { %5116 = vperm.xlu1 %7105, %v12600_v61  }
 0x497   : > { %5120 = vperm.xlu1 %7105, %v12576_v32   ;;  %v4643_v32 = vmul.f32 %v12601_v16, %v10132_v20 }
 0x49b   : > { %5128 = vperm.xlu1 %7105, %v12579_v27   ;;  %v10347_v27 = vpop.permute.xlu0 %5132 }
 0x49f   : > { %5136 = vperm.xlu1 %7105, %v12583_v56   ;;  %v12602_v56 = vld [vmem:[#allocation31_spill] sm:$0xff] }
 0x4a3   : > { %7108 = vset.pattern.permute.xlu1 %v7211_v1  ;;  %v10359_v1 = vld [vmem:[#allocation3 + $0x18] sm:$0xff] }
 0x4a4   : > { %5320 = vperm.xlu1 %7108, %v12589_v31   ;;  %v4649_v31 = vmul.f32 %v12602_v56, %v10263_v14  ;;  %v4645_v58 = vmul.f32 %v12601_v16, %v10359_v1  ;;  %v4397_v54 = vmul.f32 %v12592_v8, %v10359_v1  ;;  %v4894_v8 = vmul.f32 %v10285_v12, %v10359_v1 }
 0x4a8   : > { %5324 = vperm.xlu1 %7108, %v12600_v61  }
 0x4ac   : > { %5332 = vperm.xlu1 %7108, %v12590_v33   ;;  %v5317_v33 = vpop.permute.xlu0 %5316 }
 0x4b0   : > { %5340 = vperm.xlu1 %7108, %v12591_v49   ;;  %v5347_v49 = vmul.f32 %v5317_v33, %v10132_v20 }
 0x4b4   : > { %4708 = vrot.lane.b32.xlu1 %v4643_v32, %s7210_s17 }
 0x4b8   : > { %4720 = vrot.lane.b32.xlu1 %v4649_v31, %s7210_s17  ;;  %v5349_v31 = vmul.f32 %v5317_v33, %v10359_v1 }
 0x4bc   : > { %5197 = vrot.lane.b32.xlu1 %v5144_v48, %s7205_s11 }
 0x4c0   : > { %5395 = vrot.lane.b32.xlu1 %v5347_v49, %s7212_s18  ;;  %v4647_v49 = vmul.f32 %v12602_v56, %v10148_v6 }
 0x4c4   : > { %4462 = vrot.lane.b32.xlu1 %v4396_v2, %s7202_s6  ;;  %v10396_v2 = vld [vmem:[#allocation3 + $0x78] sm:$0xff] }
 0x4c8   : > { %4712 = vrot.lane.b32.xlu1 %v4645_v58, %s7210_s17  ;;  %v12610_v58 = vld [vmem:[#allocation73_spill] sm:$0xff] }
 0x4cc   : > { %4959 = vrot.lane.b32.xlu1 %v4893_v21, %s7204_s13  ;;  %v4657_v21 = vmul.f32 %v12610_v58, %v10396_v2 }
 0x4e1   : > { %v10368_v9 = vpop.permute.xlu1 %4955 }
 0x4e5   : > { %v10370_v5 = vpop.permute.xlu1 %4963 }
 0x4e6   : > { %12603 = vst [vmem:[#allocation9_spill] sm:$0xff] %v10370_v5 }
 0x4e9   : > { %v10372_v34 = vpop.permute.xlu1 %4971 }
 0x4ea   : > { %12604 = vst [vmem:[#allocation59_spill] sm:$0xff] %v10372_v34 }
 0x4ed   : > { %v10374_v42 = vpop.permute.xlu1 %4979 }
 0x4ee   : > { %12605 = vst [vmem:[#allocation50_spill] sm:$0xff] %v10374_v42  ;;  %v4659_v42 = vmul.f32 %v9997_v26, %v10213_v45 }
 0x4f1   : > { %v10376_v38 = vpop.permute.xlu1 %4987 }
 0x4f2   : > { %12606 = vst [vmem:[#allocation46_spill] sm:$0xff] %v10376_v38 }
 0x4f5   : > { %v10378_v51 = vpop.permute.xlu1 %4995 }
 0x4f6   : > { %12607 = vst [vmem:[#allocation36_spill] sm:$0xff] %v10378_v51 }
 0x4f9   : > { %v10380_v43 = vpop.permute.xlu1 %5003 }
 0x4fa   : > { %12608 = vst [vmem:[#allocation64_spill] sm:$0xff] %v10380_v43 }
 0x4fd   : > { %v10382_v25 = vpop.permute.xlu1 %5011 }
 0x4fe   : > { %12609 = vst [vmem:[#allocation52_spill] sm:$0xff] %v10382_v25  ;;  %v10416_v25 = vld [vmem:[#allocation3 + $0x58] sm:$0xff] }
 0x50a   : > { %v5109_v30 = vpop.permute.xlu1 %5108 }
 0x50b   : > { %v5139_v17 = vmul.f32 %v5109_v30, %v10132_v20  ;;  %v5140_v61 = vmul.f32 %v5109_v30, %v10140_v47 }
 0x50d   : > { %5189 = vrot.lane.b32.xlu1 %v5140_v61, %s7205_s11  ;;  %5187 = vrot.lane.b32.xlu0 %v5139_v17, %s7205_s11  ;;  %v5142_v61 = vmul.f32 %v10338_v0, %v10148_v6 }
 0x50e   : > { %v10388_v32 = vpop.permute.xlu1 %5116 }
 0x511   : > { %5399 = vrot.lane.b32.xlu1 %v5349_v31, %s7212_s18 }
 0x512   : > { %v10392_v48 = vpop.permute.xlu1 %5120 }
 0x513   : > { %v5150_v31 = vmul.f32 %v10392_v48, %v10396_v2 }
 0x515   : > { %4716 = vrot.lane.b32.xlu1 %v4647_v49, %s7210_s17 }
 0x516   : > { %v10399_v20 = vpop.permute.xlu1 %5128 }
 0x517   : > { %v5154_v5 = vmul.f32 %v10399_v20, %v10228_v29 }
 0x519   : > { %4736 = vrot.lane.b32.xlu1 %v4657_v21, %s7210_s17  ;;  %v4400_v21 = vmul.f32 %v12593_v59, %v10157_v52 }
 0x51a   : > { %v10404_v17 = vpop.permute.xlu1 %5136 }
 0x51d   : > { %5193 = vrot.lane.b32.xlu1 %v5142_v61, %s7205_s11  ;;  %v12611_v61 = vld [vmem:[#allocation42_spill] sm:$0xff] }
 0x51e   : > { %v4653_v51 = vmul.f32 %v12611_v61, %v10416_v25  ;;  %v4651_v12 = vmul.f32 %v12611_v61, %v10166_v40 }
 0x51f   : > { %v5321_v43 = vpop.permute.xlu1 %5320 }
 0x520   : > { %v5352_v49 = vmul.f32 %v5321_v43, %v10263_v14 }
 0x521   : > { %5209 = vrot.lane.b32.xlu1 %v5150_v31, %s7205_s11  ;;  %v4644_v31 = vmul.f32 %v12601_v16, %v10140_v47 }
 0x522   : > { %5405 = vrot.lane.b32.xlu0 %v5352_v49, %s7212_s18  ;;  %v4897_v49 = vmul.f32 %v10291_v63, %v10157_v52 }
 0x523   : > { %v10436_v28 = vpop.permute.xlu1 %5324 }
 0x524   : > { %v5355_v16 = vmul.f32 %v10436_v28, %v10416_v25 }
 0x525   : > { %4470 = vrot.lane.b32.xlu1 %v4400_v21, %s7202_s6  ;;  %v5141_v21 = vmul.f32 %v5109_v30, %v10359_v1  ;;  %v4399_v30 = vmul.f32 %v12593_v59, %v10148_v6  ;;  %v4896_v59 = vmul.f32 %v10291_v63, %v10148_v6  ;;  %v5350_v63 = vmul.f32 %v5321_v43, %v10148_v6 }
 0x526   : > { %4464 = vrot.lane.b32.xlu0 %v4397_v54, %s7202_s6  ;;  %v5351_v54 = vmul.f32 %v5321_v43, %v10157_v52  ;;  %v4901_v6 = vmul.f32 %v10301_v36, %v10177_v15 }
 0x529   : > { %4728 = vrot.lane.b32.xlu1 %v4653_v51, %s7210_s17  ;;  %v5348_v51 = vmul.f32 %v5317_v33, %v10140_v47  ;;  %v12612_v47 = vld [vmem:[#allocation21_spill] sm:$0xff] }
 0x52a   : > { %4710 = vrot.lane.b32.xlu0 %v4644_v31, %s7210_s17  ;;  %v10447_v31 = vld [vmem:[#allocation3 + $0xb8] sm:$0xff]  ;;  %v4409_v33 = vmul.f32 %v12612_v47, %v10396_v2 }
 0x52d   : > { %4967 = vrot.lane.b32.xlu1 %v4897_v49, %s7204_s13  ;;  %v4665_v49 = vmul.f32 %v10029_v50, %v10447_v31 }
 0x52e   : > { %4961 = vrot.lane.b32.xlu0 %v4894_v8, %s7204_s13  ;;  %v5156_v8 = vmul.f32 %v10399_v20, %v10447_v31 }
 0x531   : > { %5403 = vrot.lane.b32.xlu1 %v5351_v54, %s7212_s18  ;;  %v5353_v54 = vmul.f32 %v10436_v28, %v10166_v40 }
 0x532   : > { %5191 = vrot.lane.b32.xlu0 %v5141_v21, %s7205_s11  ;;  %v4906_v21 = vmul.f32 %v10305_v10, %v10396_v2 }
 0x535   : > { %5411 = vrot.lane.b32.xlu1 %v5355_v16, %s7212_s18  ;;  %v12613_v16 = vld [vmem:[#allocation40_spill] sm:$0xff] }
 0x536   : > { %5397 = vrot.lane.b32.xlu0 %v5348_v51, %s7212_s18  ;;  %v4404_v51 = vmul.f32 %v12613_v16, %v10177_v15  ;;  %v4405_v43 = vmul.f32 %v12613_v16, %v10416_v25 }
 0x539   : > { %4724 = vrot.lane.b32.xlu1 %v4651_v12, %s7210_s17  ;;  %v10473_v12 = vld [vmem:[#allocation3 + $0x98] sm:$0xff] }
 0x53a   : > { %4468 = vrot.lane.b32.xlu0 %v4399_v30, %s7202_s6  ;;  %v10476_v30 = vpop.permute.xlu0 %5328 }
 0x53d   : > { %4752 = vrot.lane.b32.xlu1 %v4665_v49, %s7210_s17  ;;  %v10480_v49 = vpop.permute.xlu1 %5332 }
 0x53e   : > { %4488 = vrot.lane.b32.xlu0 %v4409_v33, %s7202_s6  ;;  %v4661_v33 = vmul.f32 %v9997_v26, %v10473_v12  ;;  %v10556_v38 = vpop.permute.xlu0 %5336 }
 0x541   : > { %5221 = vrot.lane.b32.xlu1 %v5156_v8, %s7205_s11  ;;  %v5358_v8 = vmul.f32 %v10476_v30, %v10396_v2 }
 0x542   : > { %4965 = vrot.lane.b32.xlu0 %v4896_v59, %s7204_s13  ;;  %v12180_v59 = vmov 6  }
 0x543   : > { %7109 = vset.pattern.permute.xlu1 %v12180_v59  ;;  %7110 = vset.pattern.permute.xlu0 %v12180_v59 }
 0x545   : > { %5407 = vrot.lane.b32.xlu1 %v5353_v54, %s7212_s18  ;;  %v10494_v54 = vpop.permute.xlu1 %5340 }
 0x546   : > { %4985 = vrot.lane.b32.xlu0 %v4906_v21, %s7204_s13  ;;  %v5146_v21 = vmul.f32 %v10388_v32, %v10177_v15 }
 0x549   : > { %4478 = vrot.lane.b32.xlu1 %v4404_v51, %s7202_s6  ;;  %v4648_v51 = vmul.f32 %v12602_v56, %v10157_v52 }
 0x54a   : > { %5401 = vrot.lane.b32.xlu0 %v5350_v63, %s7212_s18  ;;  %v10504_v63 = vpop.permute.xlu1 %4708 }
 0x54d   : > { %4744 = vrot.lane.b32.xlu1 %v4661_v33, %s7210_s17  ;;  %v4655_v33 = vmul.f32 %v12610_v58, %v10188_v53 }
 0x54e   : > { %5417 = vrot.lane.b32.xlu0 %v5358_v8, %s7212_s18  ;;  %v10508_v8 = vld [vmem:[#allocation3 + $0xf8] sm:$0xff] }
 0x54f   : > { %v4673_v56 = vmul.f32 %v10085_v39, %v10508_v8 }
 0x551   : > { %4975 = vrot.lane.b32.xlu1 %v4901_v6, %s7204_s13  ;;  %v4902_v6 = vmul.f32 %v10301_v36, %v10416_v25 }
 0x552   : > { %4480 = vrot.lane.b32.xlu0 %v4405_v43, %s7202_s6  ;;  %v5143_v43 = vmul.f32 %v10338_v0, %v10157_v52  ;;  %v4403_v0 = vmul.f32 %v12613_v16, %v10166_v40 }
 0x555   : > { %5201 = vrot.lane.b32.xlu1 %v5146_v21, %s7205_s11  ;;  %v10518_v21 = vpop.permute.xlu1 %4720 }
 0x556   : > { %4718 = vrot.lane.b32.xlu0 %v4648_v51, %s7210_s17  ;;  %12614 = vst [vmem:[#allocation71_spill] sm:$0xff] %v10518_v21  ;;  %v5148_v51 = vmul.f32 %v10392_v48, %v10188_v53 }
 0x559   : > { %4732 = vrot.lane.b32.xlu1 %v4655_v33, %s7210_s17  ;;  %v5147_v33 = vmul.f32 %v10388_v32, %v10416_v25  ;;  %v10530_v52 = vpop.permute.xlu1 %5197 }
 0x55a   : > { %4977 = vrot.lane.b32.xlu0 %v4902_v6, %s7204_s13  ;;  %v5162_v6 = vmul.f32 %v10404_v17, %v10508_v8  ;;  %12615 = vst [vmem:[#allocation23_spill] sm:$0xff] %v10530_v52 }
 0x55d   : > { %4768 = vrot.lane.b32.xlu1 %v4673_v56, %s7210_s17  ;;  %v4408_v56 = vmul.f32 %v12612_v47, %v10201_v11  ;;  %v10542_v59 = vpop.permute.xlu1 %5395 }
 0x55e   : > { %5195 = vrot.lane.b32.xlu0 %v5143_v43, %s7205_s11  ;;  %v10538_v43 = vld [vmem:[#allocation3 + $0xd8] sm:$0xff] }
 0x55f   : > { %v4669_v16 = vmul.f32 %v10019_v46, %v10538_v43 }
 0x561   : > { %5205 = vrot.lane.b32.xlu1 %v5148_v51, %s7205_s11  ;;  %v12616_v51 = vld [vmem:[#allocation65_spill] sm:$0xff] }
 0x562   : > { %5203 = vrot.lane.b32.xlu0 %v5147_v33, %s7205_s11  ;;  %v4417_v33 = vmul.f32 %v12616_v51, %v10447_v31 }
 0x565   : > { %5233 = vrot.lane.b32.xlu1 %v5162_v6, %s7205_s11  ;;  %v4900_v6 = vmul.f32 %v10301_v36, %v10166_v40  ;;  %v5357_v36 = vmul.f32 %v10476_v30, %v10201_v11 }
 0x566   : > { %4476 = vrot.lane.b32.xlu0 %v4403_v0, %s7202_s6  ;;  %v10552_v0 = vpop.permute.xlu1 %4462 }
 0x569   : > { %4486 = vrot.lane.b32.xlu1 %v4408_v56, %s7202_s6  ;;  %v4914_v56 = vmul.f32 %v10315_v62, %v10447_v31 }
 0x56a   : > { %4504 = vrot.lane.b32.xlu0 %v4417_v33, %s7202_s6  ;;  %v5145_v33 = vmul.f32 %v10388_v32, %v10166_v40 }
 0x56d   : > { %4760 = vrot.lane.b32.xlu1 %v4669_v16, %s7210_s17  ;;  %v10566_v16 = vpop.permute.xlu1 %4712 }
 0x56e   : > { %4973 = vrot.lane.b32.xlu0 %v4900_v6, %s7204_s13  ;;  %v10569_v6 = vpop.permute.xlu0 %5344 }
 0x571   : > { %4983 = vrot.lane.b32.xlu1 %v4905_v23, %s7204_s13  ;;  %v12617_v23 = vld [vmem:[#allocation17_spill] sm:$0xff]  ;;  %v10578_v13 = vpop.permute.xlu1 %4959 }
 0x572   : > { %5001 = vrot.lane.b32.xlu0 %v4914_v56, %s7204_s13  ;;  %v4413_v56 = vmul.f32 %v12617_v23, %v10473_v12  ;;  %v4412_v40 = vmul.f32 %v12617_v23, %v10222_v37  ;;  %v10582_v32 = vpop.permute.xlu0 %4460 }
 0x575   : > { %5415 = vrot.lane.b32.xlu1 %v5357_v36, %s7212_s18  ;;  %v4652_v36 = vmul.f32 %v12611_v61, %v10177_v15  ;;  %v5152_v61 = vmul.f32 %v10341_v22, %v10222_v37 }
 0x576   : > { %5199 = vrot.lane.b32.xlu0 %v5145_v33, %s7205_s11  ;;  %v10595_v57 = vpop.permute.xlu0 %4472 }
 0x577   : > { %12618 = vst [vmem:[#allocation29_spill] sm:$0xff] %v10595_v57 }
 0x579   : > { %4740 = vrot.lane.b32.xlu1 %v4659_v42, %s7210_s17  ;;  %v4909_v42 = vmul.f32 %v10311_v4, %v10222_v37 }
 0x57a   : > { %4496 = vrot.lane.b32.xlu0 %v4413_v56, %s7202_s6  ;;  %v4910_v56 = vmul.f32 %v10311_v4, %v10473_v12  ;;  %v10605_v52 = vpop.permute.xlu0 %4957 }
 0x57d   : > { %4494 = vrot.lane.b32.xlu1 %v4412_v40, %s7202_s6 }
 0x57e   : > { %4726 = vrot.lane.b32.xlu0 %v4652_v36, %s7210_s17  ;;  %v5153_v36 = vmul.f32 %v10341_v22, %v10473_v12  ;;  %v10620_v18 = vpop.permute.xlu0 %4969 }
 0x57f   : > { %v10588_v33 = vpop.permute.xlu1 %5189  ;;  %12621 = vst [vmem:[#allocation35_spill] sm:$0xff] %v10620_v18 }
 0x581   : > { %4991 = vrot.lane.b32.xlu1 %v4909_v42, %s7204_s13  ;;  %v4663_v42 = vmul.f32 %v10029_v50, %v10228_v29 }
 0x582   : > { %4993 = vrot.lane.b32.xlu0 %v4910_v56, %s7204_s13  ;;  %v5354_v56 = vmul.f32 %v10436_v28, %v10177_v15  ;;  %v4416_v15 = vmul.f32 %v12616_v51, %v10234_v35  ;;  %v10630_v28 = vpop.permute.xlu0 %5187 }
 0x583   : > { %v10600_v40 = vpop.permute.xlu1 %5399 }
 0x585   : > { %5213 = vrot.lane.b32.xlu1 %v5152_v61, %s7205_s11 }
 0x586   : > { %5215 = vrot.lane.b32.xlu0 %v5153_v36, %s7205_s11  ;;  %v4407_v36 = vmul.f32 %v12612_v47, %v10188_v53 }
 0x587   : > { %v10608_v21 = vpop.permute.xlu1 %4716 }
 0x588   : > { %12619 = vst [vmem:[#allocation37_spill] sm:$0xff] %v10608_v21 }
 0x589   : > { %4748 = vrot.lane.b32.xlu1 %v4663_v42, %s7210_s17  ;;  %v12623_v42 = vld [vmem:[#allocation80_spill] sm:$0xff] }
 0x58a   : > { %5409 = vrot.lane.b32.xlu0 %v5354_v56, %s7212_s18  ;;  %v4425_v56 = vmul.f32 %v12623_v42, %v10508_v8 }
 0x58b   : > { %v10618_v61 = vpop.permute.xlu1 %4736 }
 0x58c   : > { %12620 = vst [vmem:[#allocation39_spill] sm:$0xff] %v10618_v61 }
 0x58d   : > { %5217 = vrot.lane.b32.xlu1 %v5154_v5, %s7205_s11  ;;  %v4913_v5 = vmul.f32 %v10315_v62, %v10234_v35 }
 0x58e   : > { %4484 = vrot.lane.b32.xlu0 %v4407_v36, %s7202_s6  ;;  %v4904_v36 = vmul.f32 %v10305_v10, %v10188_v53  ;;  %v12628_v10 = vld [vmem:[#allocation78_spill] sm:$0xff] }
 0x58f   : > { %v10626_v21 = vpop.permute.xlu1 %5193  ;;  %v4421_v57 = vmul.f32 %v12628_v10, %v10538_v43 }
 0x590   : > { %12622 = vst [vmem:[#allocation14_spill] sm:$0xff] %v10626_v21 }
 0x591   : > { %4502 = vrot.lane.b32.xlu1 %v4416_v15, %s7202_s6  ;;  %v4667_v15 = vmul.f32 %v10019_v46, %v10239_v55 }
 0x592   : > { %4520 = vrot.lane.b32.xlu0 %v4425_v56, %s7202_s6 }
 0x593   : > { %v10636_v61 = vpop.permute.xlu1 %5209 }
 0x594   : > { %12624 = vst [vmem:[#allocation27_spill] sm:$0xff] %v10636_v61  ;;  %v10640_v47 = vpop.permute.xlu0 %5405  ;;  %v4922_v61 = vmul.f32 %v10325_v60, %v10508_v8 }
 0x595   : > { %12625 = vst [vmem:[#allocation62_spill] sm:$0xff] %v10640_v47  ;;  %4999 = vrot.lane.b32.xlu1 %v4913_v5, %s7204_s13  ;;  %v4420_v5 = vmul.f32 %v12628_v10, %v10245_v19 }
 0x596   : > { %4981 = vrot.lane.b32.xlu0 %v4904_v36, %s7204_s13  ;;  %v5356_v36 = vmul.f32 %v10476_v30, %v10188_v53  ;;  %v5158_v53 = vmul.f32 %v10347_v27, %v10245_v19 }
 0x597   : > { %v10646_v21 = vpop.permute.xlu1 %4470 }
 0x598   : > { %12626 = vst [vmem:[#allocation34_spill] sm:$0xff] %v10646_v21  ;;  %v10650_v56 = vpop.permute.xlu0 %4464 }
 0x599   : > { %4756 = vrot.lane.b32.xlu1 %v4667_v15, %s7210_s17  ;;  %v4917_v15 = vmul.f32 %v10321_v41, %v10245_v19 }
 0x59a   : > { %5017 = vrot.lane.b32.xlu0 %v4922_v61, %s7204_s13 }
 0x59b   : > { %v10656_v47 = vpop.permute.xlu1 %4728 }
 0x59c   : > { %12627 = vst [vmem:[#allocation56_spill] sm:$0xff] %v10656_v47  ;;  %v10662_v18 = vpop.permute.xlu0 %4710  ;;  %v4918_v47 = vmul.f32 %v10321_v41, %v10538_v43 }
 0x59d   : > { %4510 = vrot.lane.b32.xlu1 %v4420_v5, %s7202_s6 }
 0x59e   : > { %5413 = vrot.lane.b32.xlu0 %v5356_v36, %s7212_s18  ;;  %v4656_v36 = vmul.f32 %v12610_v58, %v10201_v11  ;;  %v5160_v58 = vmul.f32 %v10404_v17, %v10250_v7 }
 0x59f   : > { %v10666_v21 = vpop.permute.xlu1 %4967 }
 0x5a0   : > { %12629 = vst [vmem:[#allocation66_spill] sm:$0xff] %v10666_v21  ;;  %v10670_v61 = vpop.permute.xlu0 %4961 }
 0x5a1   : > { %5007 = vrot.lane.b32.xlu1 %v4917_v15, %s7204_s13  ;;  %v4671_v15 = vmul.f32 %v10085_v39, %v10250_v7 }
 0x5a2   : > { %4512 = vrot.lane.b32.xlu0 %v4421_v57, %s7202_s6 }
 0x5a3   : > { %v10678_v30 = vpop.permute.xlu1 %5403 }
 0x5a4   : > { %12630 = vst [vmem:[#allocation77_spill] sm:$0xff] %v10678_v30  ;;  %v10680_v5 = vpop.permute.xlu0 %5191 }
 0x5a5   : > { %5225 = vrot.lane.b32.xlu1 %v5158_v53, %s7205_s11 }
 0x5a6   : > { %4734 = vrot.lane.b32.xlu0 %v4656_v36, %s7210_s17  ;;  %v5149_v36 = vmul.f32 %v10392_v48, %v10201_v11  ;;  %v4921_v48 = vmul.f32 %v10325_v60, %v10254_v3 }
 0x5a7   : > { %v10686_v21 = vpop.permute.xlu1 %5411 }
 0x5a8   : > { %12631 = vst [vmem:[#allocation20_spill] sm:$0xff] %v10686_v21  ;;  %v10690_v57 = vpop.permute.xlu0 %5397 }
 0x5a9   : > { %4764 = vrot.lane.b32.xlu1 %v4671_v15, %s7210_s17  ;;  %v4424_v15 = vmul.f32 %v12623_v42, %v10254_v3 }
 0x5aa   : > { %5009 = vrot.lane.b32.xlu0 %v4918_v47, %s7204_s13  ;;  %v5159_v47 = vmul.f32 %v10347_v27, %v10538_v43 }
 0x5ab   : > { %v10698_v53 = vpop.permute.xlu1 %4724 }
 0x5ac   : > { %v10702_v30 = vpop.permute.xlu0 %4468 }
 0x5ad   : > { %5229 = vrot.lane.b32.xlu1 %v5160_v58, %s7205_s11 }
 0x5ae   : > { %5207 = vrot.lane.b32.xlu0 %v5149_v36, %s7205_s11  ;;  %v4411_v36 = vmul.f32 %v12617_v23, %v10213_v45  ;;  %v5361_v23 = vmul.f32 %v10480_v49, %v10473_v12 }
 0x5af   : > { %v10706_v21 = vpop.permute.xlu1 %4752 }
 0x5b0   : > { %12632 = vst [vmem:[#allocation26_spill] sm:$0xff] %v10706_v21  ;;  %v10712_v34 = vpop.permute.xlu0 %4488  ;;  %v5359_v21 = vmul.f32 %v10480_v49, %v10213_v45 }
 0x5b1   : > { %12633 = vst [vmem:[#allocation28_spill] sm:$0xff] %v10712_v34  ;;  %4518 = vrot.lane.b32.xlu1 %v4424_v15, %s7202_s6 }
 0x5b2   : > { %5227 = vrot.lane.b32.xlu0 %v5159_v47, %s7205_s11 }
 0x5b3   : > { %v10716_v11 = vpop.permute.xlu1 %5221 }
 0x5b4   : > { %12634 = vst [vmem:[#allocation24_spill] sm:$0xff] %v10716_v11  ;;  %v10720_v58 = vpop.permute.xlu0 %4965  ;;  %v4908_v11 = vmul.f32 %v10311_v4, %v10213_v45  ;;  %v5363_v4 = vmul.f32 %v10556_v38, %v10234_v35 }
 0x5b5   : > { %12635 = vst [vmem:[#allocation6_spill] sm:$0xff] %v10720_v58  ;;  %5015 = vrot.lane.b32.xlu1 %v4921_v48, %s7204_s13 }
 0x5b6   : > { %4492 = vrot.lane.b32.xlu0 %v4411_v36, %s7202_s6  ;;  %v5151_v36 = vmul.f32 %v10341_v22, %v10213_v45  ;;  %v5365_v45 = vmul.f32 %v10494_v54, %v10239_v55 }
 0x5b7   : > { %v10728_v15 = vpop.permute.xlu1 %5407 }
 0x5b8   : > { %12636 = vst [vmem:[#allocation68_spill] sm:$0xff] %v10728_v15  ;;  %v10730_v47 = vpop.permute.xlu0 %4985 }
 0x5b9   : > { %12637 = vst [vmem:[#allocation7_spill] sm:$0xff] %v10730_v47  ;;  %5419 = vrot.lane.b32.xlu1 %v5359_v21, %s7212_s18  ;;  %v4660_v47 = vmul.f32 %v9997_v26, %v10222_v37  ;;  %v5367_v26 = vmul.f32 %v10494_v54, %v10538_v43 }
 0x5ba   : > { %4989 = vrot.lane.b32.xlu0 %v4908_v11, %s7204_s13 }
 0x5bb   : > { %v10738_v48 = vpop.permute.xlu1 %4478 }
 0x5bc   : > { %v10742_v34 = vpop.permute.xlu0 %5401 }
 0x5bd   : > { %12638 = vst [vmem:[#allocation43_spill] sm:$0xff] %v10742_v34  ;;  %5423 = vrot.lane.b32.xlu1 %v5361_v23, %s7212_s18 }
 0x5be   : > { %5211 = vrot.lane.b32.xlu0 %v5151_v36, %s7205_s11  ;;  %v4415_v36 = vmul.f32 %v12616_v51, %v10228_v29  ;;  %v5369_v51 = vmul.f32 %v10569_v6, %v10254_v3 }
 0x5bf   : > { %v10748_v21 = vpop.permute.xlu1 %4744 }
 0x5c0   : > { %12639 = vst [vmem:[#allocation8_spill] sm:$0xff] %v10748_v21  ;;  %v10750_v11 = vpop.permute.xlu0 %5417  ;;  %v4664_v21 = vmul.f32 %v10029_v50, %v10234_v35 }
 0x5c1   : > { %12640 = vst [vmem:[#allocation12_spill] sm:$0xff] %v10750_v11  ;;  %5427 = vrot.lane.b32.xlu1 %v5363_v4, %s7212_s18  ;;  %v4912_v11 = vmul.f32 %v10315_v62, %v10228_v29  ;;  %v5155_v62 = vmul.f32 %v10399_v20, %v10234_v35  ;;  %v10808_v35 = vld [vmem:[%s12045_s5 + $0x10] sm:$0xff] }
 0x5c2   : > { %4742 = vrot.lane.b32.xlu0 %v4660_v47, %s7210_s17 }
 0x5c3   : > { %v10758_v22 = vpop.permute.xlu1 %4975 }
 0x5c4   : > { %12641 = vst [vmem:[#allocation76_spill] sm:$0xff] %v10758_v22  ;;  %v10760_v23 = vpop.permute.xlu0 %4480 }
 0x5c5   : > { %5431 = vrot.lane.b32.xlu1 %v5365_v45, %s7212_s18 }
 0x5c6   : > { %4500 = vrot.lane.b32.xlu0 %v4415_v36, %s7202_s6 }
 0x5c7   : > { %v10768_v4 = vpop.permute.xlu1 %5201 }
 0x5c8   : > { %12642 = vst [vmem:[#allocation32_spill] sm:$0xff] %v10768_v4  ;;  %v10770_v47 = vpop.permute.xlu0 %4718 }
 0x5c9   : > { %12643 = vst [vmem:[#allocation79_spill] sm:$0xff] %v10770_v47  ;;  %5435 = vrot.lane.b32.xlu1 %v5367_v26, %s7212_s18  ;;  %v10795_v26 = vld [vmem:[%s12045_s5] sm:$0xff] }
 0x5ca   : > { %4997 = vrot.lane.b32.xlu0 %v4912_v11, %s7204_s13 }
 0x5cb   : > { %v10778_v45 = vpop.permute.xlu1 %4732 }
 0x5cc   : > { %12644 = vst [vmem:[#allocation58_spill] sm:$0xff] %v10778_v45  ;;  %v10780_v36 = vpop.permute.xlu0 %4977 }
 0x5cd   : > { %12645 = vst [vmem:[#allocation81_spill] sm:$0xff] %v10780_v36  ;;  %5439 = vrot.lane.b32.xlu1 %v5369_v51, %s7212_s18 }
 0x5ce   : > { %4750 = vrot.lane.b32.xlu0 %v4664_v21, %s7210_s17  ;;  %v4419_v21 = vmul.f32 %v12628_v10, %v10239_v55  ;;  %v10821_v10 = vld [vmem:[%s12045_s5 + $0x18] sm:$0xff] }
 0x5cf   : > { %v10786_v34 = vpop.permute.xlu1 %4768 }
 0x5d0   : > { %12646 = vst [vmem:[#allocation22_spill] sm:$0xff] %v10786_v34  ;;  %v10790_v11 = vpop.permute.xlu0 %5195 }
 0x5d1   : > { %12647 = vst [vmem:[#allocation69_spill] sm:$0xff] %v10790_v11  ;;  %5525 = vperm.xlu1 %7109, %v10795_v26  }
 0x5d2   : > { %5219 = vrot.lane.b32.xlu0 %v5155_v62, %s7205_s11  ;;  %v4916_v62 = vmul.f32 %v10321_v41, %v10239_v55  ;;  %v10834_v41 = vld [vmem:[%s12045_s5 + $0x28] sm:$0xff] }
 0x5d3   : > { %v10799_v50 = vpop.permute.xlu1 %5205 }
 0x5d4   : > { %12648 = vst [vmem:[#allocation19_spill] sm:$0xff] %v10799_v50  ;;  %v10801_v51 = vpop.permute.xlu0 %5203 }
 0x5d5   : > { %12649 = vst [vmem:[#allocation53_spill] sm:$0xff] %v10801_v51  ;;  %5533 = vperm.xlu1 %7109, %v10808_v35  }
 0x5d6   : > { %4508 = vrot.lane.b32.xlu0 %v4419_v21, %s7202_s6  ;;  %v5157_v21 = vmul.f32 %v10347_v27, %v10239_v55  ;;  %v7160_v55 = vld [vmem:[%s12045_s5 + $0x8] sm:$0xff] }
 0x5d7   : > { %v10812_v20 = vpop.permute.xlu1 %5233 }
 0x5d8   : > { %12650 = vst [vmem:[#allocation38_spill] sm:$0xff] %v10812_v20  ;;  %v10814_v34 = vpop.permute.xlu0 %4476 }
 0x5d9   : > { %5537 = vperm.xlu1 %7109, %v10821_v10  }
 0x5da   : > { %5005 = vrot.lane.b32.xlu0 %v4916_v62, %s7204_s13  ;;  %v4668_v62 = vmul.f32 %v10019_v46, %v10245_v19 }
 0x5db   : > { %v10825_v50 = vpop.permute.xlu1 %4486 }
 0x5dc   : > { %12651 = vst [vmem:[#allocation47_spill] sm:$0xff] %v10825_v50  ;;  %v10829_v20 = vpop.permute.xlu0 %4504  ;;  %v12210_v50 = vmov 7  }
 0x5dd   : > { %12652 = vst [vmem:[#allocation49_spill] sm:$0xff] %v10829_v20  ;;  %5545 = vperm.xlu1 %7109, %v10834_v41   ;;  %v12216_v20 = vmov 8  }
 0x5de   : > { %5223 = vrot.lane.b32.xlu0 %v5157_v21, %s7205_s11 }
 0x5df   : > { %v10838_v45 = vpop.permute.xlu1 %4760 }
 0x5e0   : > { %12653 = vst [vmem:[#allocation72_spill] sm:$0xff] %v10838_v45  ;;  %v10840_v11 = vpop.permute.xlu0 %4973  ;;  %v4423_v45 = vmul.f32 %v12623_v42, %v10250_v7 }
 0x5e1   : > { %7112 = vset.pattern.permute.xlu1 %v12210_v50 }
 0x5e2   : > { %4758 = vrot.lane.b32.xlu0 %v4668_v62, %s7210_s17  ;;  %5738 = vperm.xlu1 %7112, %v7160_v55   ;;  %v4920_v62 = vmul.f32 %v10325_v60, %v10250_v7  ;;  %v5360_v60 = vmul.f32 %v10480_v49, %v10222_v37  ;;  %v5364_v49 = vmul.f32 %v10556_v38, %v10447_v31 }
 0x5e3   : > { %v10849_v27 = vpop.permute.xlu1 %4983 }
 0x5e4   : > { %12654 = vst [vmem:[#allocation70_spill] sm:$0xff] %v10849_v27  ;;  %v10851_v21 = vpop.permute.xlu0 %5001 }
 0x5e5   : > { %12655 = vst [vmem:[#allocation55_spill] sm:$0xff] %v10851_v21 }
 0x5e6   : > { %4516 = vrot.lane.b32.xlu0 %v4423_v45, %s7202_s6  ;;  %5742 = vperm.xlu1 %7112, %v10808_v35   ;;  %v4672_v45 = vmul.f32 %v10085_v39, %v10254_v3  ;;  %v5362_v39 = vmul.f32 %v10556_v38, %v10228_v29  ;;  %v10904_v29 = vld [vmem:[%s12045_s5 + $0x30] sm:$0xff]  ;;  %v12669_v38 = vmov 8  }
 0x5e7   : > { %v10857_v46 = vpop.permute.xlu1 %5415 }
 0x5e8   : > { %12656 = vst [vmem:[#allocation60_spill] sm:$0xff] %v10857_v46  ;;  %v10859_v50 = vpop.permute.xlu0 %5199  ;;  %v12660_v46 = vmov 7  }
 0x5e9   : > { %12657 = vst [vmem:[#allocation13_spill] sm:$0xff] %v10859_v50 }
 0x5ea   : > { %5013 = vrot.lane.b32.xlu0 %v4920_v62, %s7204_s13  ;;  %7113 = vset.pattern.permute.xlu1 %v12216_v20 }
 0x5eb   : > { %5947 = vperm.xlu1 %7113, %v7160_v55   ;;  %v10865_v21 = vpop.permute.xlu1 %4740 }
 0x5ec   : > { %12658 = vst [vmem:[#allocation74_spill] sm:$0xff] %v10865_v21  ;;  %v10867_v42 = vpop.permute.xlu0 %4496 }
 0x5ed   : > { %12659 = vst [vmem:[#allocation48_spill] sm:$0xff] %v10867_v42 }
 0x5ee   : > { %4766 = vrot.lane.b32.xlu0 %v4672_v45, %s7210_s17  ;;  %v10890_v45 = vld [vmem:[%s12045_s5 + $0x20] sm:$0xff]  ;;  %s7218_s17 = smov 90  }
 0x5ef   : > { %7114 = vset.pattern.permute.xlu1 %v12660_v46  ;;  %v10873_v27 = vpop.permute.xlu1 %4494 }
 0x5f0   : > { %12661 = vst [vmem:[#allocation31_spill] sm:$0xff] %v10873_v27  ;;  %v10877_v62 = vpop.permute.xlu0 %4726  ;;  %5746 = vperm.xlu1 %7114, %v10821_v10   ;;  %v5366_v27 = vmul.f32 %v10494_v54, %v10245_v19  ;;  %v5370_v54 = vmul.f32 %v10569_v6, %v10508_v8 }
 0x5f2   : > { %5421 = vrot.lane.b32.xlu0 %v5360_v60, %s7212_s18 }
 0x5f3   : > { %v10881_v20 = vpop.permute.xlu1 %4991 }
 0x5f4   : > { %12662 = vst [vmem:[#allocation73_spill] sm:$0xff] %v10881_v20  ;;  %v10885_v42 = vpop.permute.xlu0 %4993  ;;  %5750 = vperm.xlu1 %7114, %v10890_v45   ;;  %v12666_v20 = vmov 6  }
 0x5f5   : > { %12663 = vst [vmem:[#allocation42_spill] sm:$0xff] %v10885_v42 }
 0x5f6   : > { %5425 = vrot.lane.b32.xlu0 %v5362_v39, %s7212_s18  ;;  %v5161_v39 = vmul.f32 %v10404_v17, %v10254_v3  ;;  %v7163_v3 = vld [vmem:[%s12045_s5 + $0x38] sm:$0xff] }
 0x5f7   : > { %v10894_v37 = vpop.permute.xlu1 %5213 }
 0x5f8   : > { %12664 = vst [vmem:[#allocation21_spill] sm:$0xff] %v10894_v37  ;;  %v10898_v60 = vpop.permute.xlu0 %5215  ;;  %7115 = vset.pattern.permute.xlu1 %v12666_v20 }
 0x5f9   : > { %12665 = vst [vmem:[#allocation40_spill] sm:$0xff] %v10898_v60  ;;  %5549 = vperm.xlu1 %7115, %v10904_v29  }
 0x5fa   : > { %5429 = vrot.lane.b32.xlu0 %v5364_v49, %s7212_s18  ;;  %v5368_v49 = vmul.f32 %v10569_v6, %v10250_v7 }
 0x5fb   : > { %v10908_v42 = vpop.permute.xlu1 %4748 }
 0x5fc   : > { %12667 = vst [vmem:[#allocation65_spill] sm:$0xff] %v10908_v42  ;;  %v10912_v37 = vpop.permute.xlu0 %5409 }
 0x5fd   : > { %12668 = vst [vmem:[#allocation17_spill] sm:$0xff] %v10912_v37  ;;  %7116 = vset.pattern.permute.xlu1 %v12669_v38  ;;  %v11108_v37 = vld [vmem:[#allocation3 + $0x70] sm:$0xff] }
 0x5fe   : > { %5231 = vrot.lane.b32.xlu0 %v5161_v39, %s7205_s11  ;;  %5959 = vperm.xlu1 %7116, %v10890_v45   ;;  %s7216_s11 = smov 92  }
 0x5ff   : > { %v10917_v60 = vpop.permute.xlu1 %5217 }
 0x600   : > { %12670 = vst [vmem:[#allocation80_spill] sm:$0xff] %v10917_v60  ;;  %v10921_v21 = vpop.permute.xlu0 %4484 }
 0x601   : > { %12671 = vst [vmem:[#allocation78_spill] sm:$0xff] %v10921_v21 }
 0x602   : > { %5433 = vrot.lane.b32.xlu0 %v5366_v27, %s7212_s18  ;;  %7117 = vset.pattern.permute.xlu1 %v12666_v20 }
 0x603   : > { %5553 = vperm.xlu1 %7117, %v7163_v3   ;;  %v10928_v17 = vpop.permute.xlu1 %4502 }
 0x604   : > { %12672 = vst [vmem:[#allocation82_spill] sm:$0xff] %v10928_v17  ;;  %v10932_v39 = vpop.permute.xlu0 %4520 }
 0x605   : > { %12673 = vst [vmem:[#allocation83_spill] sm:$0xff] %v10932_v39 }
 0x606   : > { %5437 = vrot.lane.b32.xlu0 %v5368_v49, %s7212_s18 }
 0x607   : > { %7118 = vset.pattern.permute.xlu1 %v12669_v38  ;;  %v10936_v19 = vpop.permute.xlu1 %4999 }
 0x608   : > { %12674 = vst [vmem:[#allocation84_spill] sm:$0xff] %v10936_v19  ;;  %v10940_v20 = vpop.permute.xlu0 %4981  ;;  %5963 = vperm.xlu1 %7118, %v10834_v41  }
 0x609   : > { %12675 = vst [vmem:[#allocation85_spill] sm:$0xff] %v10940_v20 }
 0x60a   : > { %5441 = vrot.lane.b32.xlu0 %v5370_v54, %s7212_s18  ;;  %s6984_s18 = smul.u32 3, %s12865_s30 }
 0x60b   : > { %v10944_v27 = vpop.permute.xlu1 %4756 }
 0x60c   : > { %12676 = vst [vmem:[#allocation86_spill] sm:$0xff] %v10944_v27  ;;  %v10946_v7 = vpop.permute.xlu0 %5017  ;;  %5967 = vperm.xlu1 %7118, %v10904_v29   ;;  %s305_s21 = scalar_lea.vmem %s12048_s8, %s6984_s18 }
 0x60d   : > { %12677 = vst [vmem:[#allocation87_spill] sm:$0xff] %v10946_v7 }
 0x60e   : > { %5529 = vperm.xlu0 %7110, %v7160_v55  }
 0x60f   : > { %v10949_v49 = vpop.permute.xlu1 %4510 }
 0x610   : > { %12678 = vst [vmem:[#allocation88_spill] sm:$0xff] %v10949_v49  ;;  %v10951_v60 = vpop.permute.xlu0 %5413 }
 0x611   : > { %12679 = vst [vmem:[#allocation89_spill] sm:$0xff] %v10951_v60 }
 0x612   : > { %5541 = vperm.xlu0 %7110, %v10890_v45  }
 0x613   : > { %v10954_v6 = vpop.permute.xlu1 %5007 }
 0x614   : > { %12680 = vst [vmem:[#allocation90_spill] sm:$0xff] %v10954_v6  ;;  %v10956_v19 = vpop.permute.xlu0 %4512 }
 0x615   : > { %12681 = vst [vmem:[#allocation91_spill] sm:$0xff] %v10956_v19 }
 0x616   : > { %7111 = vset.pattern.permute.xlu0 %v12660_v46 }
 0x617   : > { %5734 = vperm.xlu0 %7111, %v10795_v26   ;;  %v10960_v54 = vpop.permute.xlu1 %5225 }
 0x618   : > { %12682 = vst [vmem:[#allocation92_spill] sm:$0xff] %v10960_v54  ;;  %v10962_v27 = vpop.permute.xlu0 %4734 }
 0x619   : > { %12683 = vst [vmem:[#allocation93_spill] sm:$0xff] %v10962_v27 }
 0x61b   : > { %5754 = vperm.xlu0 %7111, %v10834_v41   ;;  %v10965_v55 = vpop.permute.xlu1 %4764 }
 0x61c   : > { %12684 = vst [vmem:[#allocation94_spill] sm:$0xff] %v10965_v55  ;;  %v10967_v49 = vpop.permute.xlu0 %5009 }
 0x61d   : > { %12685 = vst [vmem:[#allocation95_spill] sm:$0xff] %v10967_v49 }
 0x61f   : > { %5758 = vperm.xlu0 %7111, %v10904_v29   ;;  %v10970_v42 = vpop.permute.xlu1 %5229 }
 0x620   : > { %12686 = vst [vmem:[#allocation96_spill] sm:$0xff] %v10970_v42  ;;  %v10972_v6 = vpop.permute.xlu0 %5207 }
 0x621   : > { %12687 = vst [vmem:[#allocation97_spill] sm:$0xff] %v10972_v6  ;;  %v11057_v6 = vld [vmem:[#allocation3 + $0x28] sm:$0xff] }
 0x623   : > { %5762 = vperm.xlu0 %7111, %v7163_v3   ;;  %v10974_v46 = vpop.permute.xlu1 %4518 }
 0x624   : > { %12688 = vst [vmem:[#allocation98_spill] sm:$0xff] %v10974_v46  ;;  %v10976_v19 = vpop.permute.xlu0 %5227  ;;  %v12699_v46 = vmov 0  }
 0x625   : > { %12689 = vst [vmem:[#allocation99_spill] sm:$0xff] %v10976_v19 }
 0x627   : > { %7119 = vset.pattern.permute.xlu0 %v12669_v38  ;;  %v10979_v54 = vpop.permute.xlu1 %5015 }
 0x628   : > { %12690 = vst [vmem:[#allocation100_spill] sm:$0xff] %v10979_v54  ;;  %v10981_v41 = vpop.permute.xlu0 %4492  ;;  %5943 = vperm.xlu0 %7119, %v10795_v26  }
 0x629   : > { %12691 = vst [vmem:[#allocation101_spill] sm:$0xff] %v10981_v41  ;;  %v11096_v41 = vld [vmem:[#allocation3 + $0x38] sm:$0xff] }
 0x62b   : > { %v10984_v49 = vpop.permute.xlu1 %5419 }
 0x62c   : > { %12692 = vst [vmem:[#allocation102_spill] sm:$0xff] %v10984_v49  ;;  %v10986_v55 = vpop.permute.xlu0 %4989  ;;  %5951 = vperm.xlu0 %7119, %v10808_v35  }
 0x62d   : > { %12693 = vst [vmem:[#allocation103_spill] sm:$0xff] %v10986_v55  ;;  %v11073_v55 = vld [vmem:[#allocation3 + $0x50] sm:$0xff] }
 0x62f   : > { %v10989_v42 = vpop.permute.xlu1 %5423 }
 0x630   : > { %12694 = vst [vmem:[#allocation104_spill] sm:$0xff] %v10989_v42  ;;  %v10991_v7 = vpop.permute.xlu0 %5211  ;;  %5955 = vperm.xlu0 %7119, %v10821_v10  }
 0x631   : > { %12695 = vst [vmem:[#allocation105_spill] sm:$0xff] %v10991_v7 }
 0x633   : > { %v10996_v38 = vpop.permute.xlu1 %5427 }
 0x634   : > { %v10994_v19 = vpop.permute.xlu0 %4742  ;;  %5971 = vperm.xlu0 %7119, %v7163_v3   ;;  %12697 = vst [vmem:[#allocation107_spill] sm:$0xff] %v10996_v38 }
 0x635   : > { %12696 = vst [vmem:[#allocation106_spill] sm:$0xff] %v10994_v19 }
 0x637   : > { %v11002_v17 = vpop.permute.xlu1 %5431 }
 0x638   : > { %v10998_v54 = vpop.permute.xlu0 %4500  ;;  %7120 = vset.pattern.permute.xlu0 %v12699_v46  ;;  %12700 = vst [vmem:[#allocation109_spill] sm:$0xff] %v11002_v17 }
 0x639   : > { %12698 = vst [vmem:[#allocation108_spill] sm:$0xff] %v10998_v54  ;;  %4260 = vperm.xlu0 %7120, %v10795_v26  }
 0x63b   : > { %v11010_v10 = vpop.permute.xlu1 %5435 }
 0x63c   : > { %v11004_v39 = vpop.permute.xlu0 %4997  ;;  %12703 = vst [vmem:[#allocation112_spill] sm:$0xff] %v11010_v10 }
 0x63d   : > { %12701 = vst [vmem:[#allocation110_spill] sm:$0xff] %v11004_v39  ;;  %4270 = vperm.xlu0 %7120, %v10808_v35   ;;  %v11021_v39 = vld [vmem:[#allocation3 + $0x8] sm:$0xff] }
 0x63f   : > { %v11015_v38 = vpop.permute.xlu1 %5439 }
 0x640   : > { %v11007_v42 = vpop.permute.xlu0 %4750  ;;  %12705 = vst [vmem:[#allocation114_spill] sm:$0xff] %v11015_v38 }
 0x641   : > { %12702 = vst [vmem:[#allocation111_spill] sm:$0xff] %v11007_v42  ;;  %4280 = vperm.xlu0 %7120, %v10890_v45  }
 0x644   : > { %v11012_v3 = vpop.permute.xlu0 %5219 }
 0x645   : > { %12704 = vst [vmem:[#allocation113_spill] sm:$0xff] %v11012_v3  ;;  %4290 = vperm.xlu0 %7120, %v10904_v29   ;;  %v11029_v29 = vld [vmem:[#allocation3 + $0x10] sm:$0xff] }
 0x648   : > { %v11017_v46 = vpop.permute.xlu0 %4508 }
 0x649   : > { %12706 = vst [vmem:[#allocation115_spill] sm:$0xff] %v11017_v46 }
 0x64c   : > { %v11019_v26 = vpop.permute.xlu0 %5005  ;;  %v5526_v17 = vpop.permute.xlu1 %5525 }
 0x64d   : > { %12707 = vst [vmem:[#allocation116_spill] sm:$0xff] %v11019_v26  ;;  %v5556_v35 = vmul.f32 %v11021_v39, %v5526_v17  ;;  %v5558_v42 = vmul.f32 %v5526_v17, %v10359_v1  ;;  %v5557_v10 = vmul.f32 %v11029_v29, %v5526_v17 }
 0x64f   : > { %5604 = vrot.lane.b32.xlu1 %v5556_v35, %s7216_s11  ;;  %5608 = vrot.lane.b32.xlu0 %v5558_v42, %s7216_s11 }
 0x650   : > { %v11027_v45 = vpop.permute.xlu0 %5223  ;;  %v5534_v60 = vpop.permute.xlu1 %5533 }
 0x651   : > { %12708 = vst [vmem:[#allocation117_spill] sm:$0xff] %v11027_v45  ;;  %v5563_v19 = vmul.f32 %v11073_v55, %v5534_v60 }
 0x653   : > { %5606 = vrot.lane.b32.xlu1 %v5557_v10, %s7216_s11 }
 0x654   : > { %v11033_v38 = vpop.permute.xlu0 %4758  ;;  %v5538_v10 = vpop.permute.xlu1 %5537 }
 0x655   : > { %12709 = vst [vmem:[#allocation118_spill] sm:$0xff] %v11033_v38 }
 0x658   : > { %v11035_v26 = vpop.permute.xlu0 %4516  ;;  %v11053_v38 = vpop.permute.xlu1 %5545 }
 0x659   : > { %12710 = vst [vmem:[#allocation119_spill] sm:$0xff] %v11035_v26 }
 0x65c   : > { %v11037_v3 = vpop.permute.xlu0 %5013 }
 0x65d   : > { %12711 = vst [vmem:[#allocation120_spill] sm:$0xff] %v11037_v3  ;;  %v5739_v3 = vpop.permute.xlu1 %5738 }
 0x660   : > { %v11039_v46 = vpop.permute.xlu0 %4766 }
 0x661   : > { %12712 = vst [vmem:[#allocation121_spill] sm:$0xff] %v11039_v46 }
 0x664   : > { %v11041_v54 = vpop.permute.xlu0 %5421 }
 0x665   : > { %12713 = vst [vmem:[#allocation122_spill] sm:$0xff] %v11041_v54  ;;  %v11060_v54 = vld [vmem:[#allocation3 + $0x30] sm:$0xff] }
 0x668   : > { %v11043_v35 = vpop.permute.xlu0 %5425 }
 0x669   : > { %12714 = vst [vmem:[#allocation123_spill] sm:$0xff] %v11043_v35 }
 0x66c   : > { %v11045_v42 = vpop.permute.xlu0 %5429 }
 0x66d   : > { %12715 = vst [vmem:[#allocation124_spill] sm:$0xff] %v11045_v42  ;;  %v11067_v42 = vld [vmem:[#allocation3 + $0x48] sm:$0xff] }
 0x670   : > { %v11047_v45 = vpop.permute.xlu0 %5231 }
 0x671   : > { %12716 = vst [vmem:[#allocation125_spill] sm:$0xff] %v11047_v45 }
 0x674   : > { %v11049_v17 = vpop.permute.xlu0 %5433 }
 0x675   : > { %12717 = vst [vmem:[#allocation126_spill] sm:$0xff] %v11049_v17  ;;  %v5743_v17 = vpop.permute.xlu1 %5742 }
 0x676   : > { %v5772_v4 = vmul.f32 %v11073_v55, %v5743_v17  ;;  %v5773_v51 = vmul.f32 %v5743_v17, %v10416_v25 }
 0x678   : > { %v11051_v49 = vpop.permute.xlu0 %5437 }
 0x679   : > { %12718 = vst [vmem:[#allocation127_spill] sm:$0xff] %v11051_v49  ;;  %v11077_v27 = vpop.permute.xlu1 %5947 }
 0x67a   : > { %v5979_v50 = vmul.f32 %v11096_v41, %v11077_v27 }
 0x67c   : > { %v11055_v26 = vpop.permute.xlu0 %5441 }
 0x67d   : > { %12719 = vst [vmem:[#allocation128_spill] sm:$0xff] %v11055_v26  ;;  %v5562_v26 = vmul.f32 %v11067_v42, %v5534_v60 }
 0x689   : > { %v5530_v46 = vpop.permute.xlu0 %5529 }
 0x68a   : > { %v5559_v35 = vmul.f32 %v11057_v6, %v5530_v46  ;;  %v5560_v45 = vmul.f32 %v11060_v54, %v5530_v46  ;;  %v5561_v7 = vmul.f32 %v5530_v46, %v10263_v14  ;;  %v11087_v46 = vpop.permute.xlu1 %5746 }
 0x68c   : > { %5612 = vrot.lane.b32.xlu0 %v5560_v45, %s7216_s11  ;;  %5610 = vrot.lane.b32.xlu1 %v5559_v35, %s7216_s11  ;;  %v5564_v45 = vmul.f32 %v5534_v60, %v10416_v25  ;;  %v5768_v60 = vmul.f32 %v11057_v6, %v5739_v3 }
 0x68d   : > { %v11065_v49 = vpop.permute.xlu0 %5541 }
 0x690   : > { %5614 = vrot.lane.b32.xlu1 %v5561_v7, %s7216_s11  ;;  %5616 = vrot.lane.b32.xlu0 %v5562_v26, %s7216_s11 }
 0x692   : > { %v5735_v35 = vpop.permute.xlu0 %5734 }
 0x693   : > { %v5765_v20 = vmul.f32 %v11021_v39, %v5735_v35  ;;  %v5766_v14 = vmul.f32 %v11029_v29, %v5735_v35  ;;  %v5767_v26 = vmul.f32 %v5735_v35, %v10359_v1  ;;  %v11105_v35 = vld [vmem:[#allocation3 + $0x68] sm:$0xff] }
 0x694   : > { %5618 = vrot.lane.b32.xlu1 %v5563_v19, %s7216_s11  ;;  %5620 = vrot.lane.b32.xlu0 %v5564_v45, %s7216_s11  ;;  %v5769_v45 = vmul.f32 %v11060_v54, %v5739_v3 }
 0x696   : > { %v11083_v7 = vpop.permute.xlu0 %5754 }
 0x698   : > { %5813 = vrot.lane.b32.xlu1 %v5765_v20, %s7217_s16  ;;  %5815 = vrot.lane.b32.xlu0 %v5766_v14, %s7217_s16  ;;  %v5770_v20 = vmul.f32 %v11096_v41, %v5739_v3  ;;  %v11101_v14 = vpop.permute.xlu1 %5750 }
 0x69a   : > { %v11091_v19 = vpop.permute.xlu0 %5758 }
 0x69c   : > { %5817 = vrot.lane.b32.xlu1 %v5767_v26, %s7217_s16  ;;  %5819 = vrot.lane.b32.xlu0 %v5768_v60, %s7217_s16  ;;  %v5565_v26 = vmul.f32 %v11105_v35, %v5538_v10  ;;  %v5566_v60 = vmul.f32 %v11108_v37, %v5538_v10  ;;  %v11113_v3 = vpop.permute.xlu1 %5549 }
 0x69e   : > { %v11099_v21 = vpop.permute.xlu0 %5762 }
 0x69f   : > { %12720 = vst [vmem:[#allocation129_spill] sm:$0xff] %v11099_v21  ;;  %v5567_v21 = vmul.f32 %v5538_v10, %v10396_v2 }
 0x6a0   : > { %5821 = vrot.lane.b32.xlu1 %v5769_v45, %s7217_s16  ;;  %5823 = vrot.lane.b32.xlu0 %v5770_v20, %s7217_s16  ;;  %v5771_v45 = vmul.f32 %v11067_v42, %v5743_v17  ;;  %v11123_v47 = vpop.permute.xlu1 %5959 }
 0x6a3   : > { %v5944_v15 = vpop.permute.xlu0 %5943 }
 0x6a4   : > { %5622 = vrot.lane.b32.xlu1 %v5565_v26, %s7216_s11  ;;  %5624 = vrot.lane.b32.xlu0 %v5566_v60, %s7216_s11  ;;  %v5974_v2 = vmul.f32 %v11021_v39, %v5944_v15  ;;  %v5975_v10 = vmul.f32 %v11029_v29, %v5944_v15  ;;  %v11135_v25 = vpop.permute.xlu1 %5553 }
 0x6a7   : > { %v11117_v20 = vpop.permute.xlu0 %5951 }
 0x6a8   : > { %5626 = vrot.lane.b32.xlu1 %v5567_v21, %s7216_s11  ;;  %5825 = vrot.lane.b32.xlu0 %v5771_v45, %s7217_s16  ;;  %v5977_v21 = vmul.f32 %v11057_v6, %v11077_v27  ;;  %v11161_v22 = vpop.permute.xlu1 %5963 }
 0x6ab   : > { %v11125_v26 = vpop.permute.xlu0 %5955 }
 0x6ac   : > { %5827 = vrot.lane.b32.xlu1 %v5772_v4, %s7217_s16  ;;  %5829 = vrot.lane.b32.xlu0 %v5773_v51, %s7217_s16  ;;  %v5976_v4 = vmul.f32 %v5944_v15, %v10359_v1  ;;  %v12722_v51 = vld [vmem:[#allocation67_spill] sm:$0xff] }
 0x6ad   : > { %v4522_v17 = vsel %vm2643_vm8, %v12722_v51, %v10582_v32  ;;  %v4523_v51 = vsel %vm2643_vm8, %v10582_v32, %v10552_v0  ;;  %v4772_v32 = vsel %vm4770_vm12, %v10504_v63, %v10662_v18 }
 0x6af   : > { %v11131_v60 = vpop.permute.xlu0 %5971 }
 0x6b0   : > { %12721 = vst [vmem:[#allocation130_spill] sm:$0xff] %v11131_v60  ;;  %6022 = vrot.lane.b32.xlu1 %v5974_v2, %s7218_s17  ;;  %6024 = vrot.lane.b32.xlu0 %v5975_v10, %s7218_s17  ;;  %v11145_v2 = vld [vmem:[#allocation2] sm:$0xff] }
 0x6b4   : > { %v4261_v45 = vpop.permute.xlu0 %4260  ;;  %6026 = vrot.lane.b32.xlu1 %v5976_v4, %s7218_s17  ;;  %6028 = vrot.lane.b32.xlu0 %v5977_v21, %s7218_s17  ;;  %v4524_v4 = vsel %vm2643_vm8, %v10552_v0, %v10650_v56  ;;  %v5978_v21 = vmul.f32 %v11060_v54, %v11077_v27  ;;  %v4771_v0 = vsel %vm4770_vm12, %v10269_v24, %v10504_v63 }
 0x6b5   : > { %v4298_v10 = vmul.f32 %v11145_v2, %v4261_v45  ;;  %v4299_v60 = vmul.f32 %v11021_v39, %v4261_v45  ;;  %v4300_v58 = vmul.f32 %v11029_v29, %v4261_v45  ;;  %v4301_v15 = vmul.f32 %v4261_v45, %v10359_v1 }
 0x6b6   : > { %v5019_v24 = vsel %vm3371_vm10, %v10368_v9, %v10605_v52  ;;  %v5774_v9 = vmul.f32 %v11105_v35, %v11087_v46 }
 0x6b7   : > { %v4578_v39 = vadd.f32 %v4522_v17, %v4298_v10  ;;  %v4579_v29 = vadd.f32 %v4523_v51, %v4299_v60  ;;  %v4580_v36 = vadd.f32 %v4524_v4, %v4300_v58  ;;  %v4581_v1 = vadd.f32 %v10650_v56, %v4301_v15  ;;  %v11177_v56 = vld [vmem:[#allocation3 + $0x88] sm:$0xff]  ;;  %v11181_v17 = vld [vmem:[#allocation3 + $0x90] sm:$0xff] }
 0x6b8   : > { %v11167_v45 = vpop.permute.xlu0 %4270  ;;  %6030 = vrot.lane.b32.xlu1 %v5978_v21, %s7218_s17  ;;  %6032 = vrot.lane.b32.xlu0 %v5979_v50, %s7218_s17  ;;  %v4773_v58 = vsel %vm4770_vm12, %v10662_v18, %v10566_v16  ;;  %v5568_v60 = vmul.f32 %v11177_v56, %v11065_v49  ;;  %v5569_v10 = vmul.f32 %v11181_v17, %v11065_v49  ;;  %v11199_v21 = vpop.permute.xlu1 %5967 }
 0x6b9   : > { %v4828_v27 = vadd.f32 %v4772_v32, %v4579_v29  ;;  %v4827_v50 = vadd.f32 %v4771_v0, %v4578_v39  ;;  %v4830_v15 = vadd.f32 %v10566_v16, %v4581_v1  ;;  %v4829_v63 = vadd.f32 %v4773_v58, %v4580_v36 }
 0x6ba   : > { %v5020_v18 = vsel %vm3371_vm10, %v10605_v52, %v10578_v13  ;;  %v5021_v16 = vsel %vm3371_vm10, %v10578_v13, %v10670_v61  ;;  %v5570_v52 = vmul.f32 %v11065_v49, %v10473_v12  ;;  %v5235_v32 = vsel %vm3735_vm11, %v10630_v28, %v10588_v33 }
 0x6bb   : > { %v5075_v4 = vadd.f32 %v5019_v24, %v4827_v50  ;;  %v5076_v39 = vadd.f32 %v5020_v18, %v4828_v27  ;;  %v5078_v29 = vadd.f32 %v10670_v61, %v4830_v15  ;;  %v5077_v1 = vadd.f32 %v5021_v16, %v4829_v63 }
 0x6bc   : > { %v11192_v51 = vpop.permute.xlu0 %4280  ;;  %5628 = vrot.lane.b32.xlu1 %v5568_v60, %s7216_s11  ;;  %5630 = vrot.lane.b32.xlu0 %v5569_v10, %s7216_s11  ;;  %v5236_v61 = vsel %vm3735_vm11, %v10588_v33, %v10680_v5  ;;  %v5775_v60 = vmul.f32 %v11108_v37, %v11087_v46  ;;  %v5444_v63 = vsel %vm5443_vm13, %v10542_v59, %v10690_v57 }
 0x6bd   : > { %v5283_v36 = vadd.f32 %v10630_v28, %v5075_v4  ;;  %v5286_v58 = vadd.f32 %v10680_v5, %v5078_v29  ;;  %v5284_v27 = vadd.f32 %v5235_v32, %v5076_v39  ;;  %v11221_v28 = vld [vmem:[#allocation3 + $0x78] sm:$0xff]  ;;  %v5285_v24 = vadd.f32 %v5236_v61, %v5077_v1 }
 0x6be   : > { %v5776_v10 = vmul.f32 %v11221_v28, %v11087_v46  ;;  %v5445_v33 = vsel %vm5443_vm13, %v10690_v57, %v10600_v40  ;;  %v5980_v39 = vmul.f32 %v11067_v42, %v11117_v20  ;;  %v7178_v1 = vld [vmem:[#allocation3 + $0x58] sm:$0xff]  ;;  %v5779_v61 = vmul.f32 %v11101_v14, %v10473_v12 }
 0x6bf   : > { %v5492_v13 = vadd.f32 %v10542_v59, %v5283_v36  ;;  %v5495_v15 = vadd.f32 %v10600_v40, %v5286_v58  ;;  %v5493_v18 = vadd.f32 %v5444_v63, %v5284_v27  ;;  %v5494_v4 = vadd.f32 %v5445_v33, %v5285_v24  ;;  %v11250_v36 = vld [vmem:[#allocation3 + $0xa8] sm:$0xff]  ;;  %v11301_v33 = vld [vmem:[#allocation3 + $0xb8] sm:$0xff] }
 0x6c0   : > { %v11210_v0 = vpop.permute.xlu0 %4290  ;;  %5632 = vrot.lane.b32.xlu1 %v5570_v52, %s7216_s11  ;;  %5831 = vrot.lane.b32.xlu0 %v5774_v9, %s7217_s16  ;;  %v5981_v59 = vmul.f32 %v11073_v55, %v11117_v20  ;;  %v5571_v29 = vmul.f32 %v11250_v36, %v11053_v38  ;;  %v5982_v32 = vmul.f32 %v7178_v1, %v11117_v20 }
 0x6c1   : > { %v5605_v49 = vpop.permute.xlu1 %5604  ;;  %v5777_v27 = vmul.f32 %v11177_v56, %v11101_v14  ;;  %v5778_v20 = vmul.f32 %v11181_v17, %v11101_v14  ;;  %v11287_v14 = vld [vmem:[#allocation3 + $0xd0] sm:$0xff]  ;;  %v5780_v24 = vmul.f32 %v11250_v36, %v11083_v7 }
 0x6c2   : > { %v11225_v50 = vadd.f32 %v5605_v49, %v5492_v13  ;;  %v11257_v13 = vld [vmem:[#allocation3 + $0xb0] sm:$0xff] }
 0x6c3   : > { %v5572_v58 = vmul.f32 %v11257_v13, %v11053_v38  ;;  %v5781_v63 = vmul.f32 %v11257_v13, %v11083_v7 }
 0x6c4   : > { %v5609_v5 = vpop.permute.xlu0 %5608  ;;  %5833 = vrot.lane.b32.xlu1 %v5775_v60, %s7217_s16  ;;  %5835 = vrot.lane.b32.xlu0 %v5776_v10, %s7217_s16  ;;  %v5985_v60 = vmul.f32 %v11221_v28, %v11125_v26  ;;  %v11283_v10 = vld [vmem:[#allocation3 + $0xc8] sm:$0xff] }
 0x6c5   : > { %v11236_v46 = vadd.f32 %v5609_v5, %v5495_v15  ;;  %v5607_v16 = vpop.permute.xlu1 %5606  ;;  %v5574_v12 = vmul.f32 %v11283_v10, %v11113_v3  ;;  %v5575_v15 = vmul.f32 %v11287_v14, %v11113_v3 }
 0x6c6   : > { %v5653_v9 = vsel %vm5652_vm14, %v5605_v49, %v5607_v16  ;;  %v5654_v40 = vsel %vm5652_vm14, %v5607_v16, %v5609_v5  ;;  %v5573_v49 = vmul.f32 %v11053_v38, %v10447_v31  ;;  %v5983_v31 = vmul.f32 %v11105_v35, %v11125_v26  ;;  %v11319_v16 = vld [vmem:[#allocation3 + $0xe8] sm:$0xff] }
 0x6c7   : > { %v11244_v57 = vadd.f32 %v5653_v9, %v5493_v18  ;;  %v11246_v52 = vadd.f32 %v5654_v40, %v5494_v4  ;;  %v5984_v38 = vmul.f32 %v11108_v37, %v11125_v26  ;;  %v5576_v26 = vmul.f32 %v11113_v3, %v10538_v43  ;;  %v11315_v4 = vld [vmem:[#allocation3 + $0x98] sm:$0xff] }
 0x6c8   : > { %6034 = vrot.lane.b32.xlu1 %v5980_v39, %s7218_s17  ;;  %6036 = vrot.lane.b32.xlu0 %v5981_v59, %s7218_s17  ;;  %v5782_v5 = vmul.f32 %v11301_v33, %v11083_v7  ;;  %v5986_v43 = vmul.f32 %v11177_v56, %v11123_v47  ;;  %v5987_v3 = vmul.f32 %v11181_v17, %v11123_v47  ;;  %v12723_v59 = vld [vmem:[#allocation57_spill] sm:$0xff] }
 0x6c9   : > { %v4306_v18 = vmul.f32 %v11145_v2, %v11167_v45  ;;  %v5988_v7 = vmul.f32 %v11315_v4, %v11123_v47  ;;  %v5577_v39 = vmul.f32 %v11319_v16, %v11135_v25  ;;  %v4528_v9 = vsel %vm2643_vm8, %v12723_v59, %v10814_v34  ;;  %v12728_v59 = vld [vmem:[#allocation29_spill] sm:$0xff] }
 0x6ca   : > { %v4309_v40 = vmul.f32 %v7178_v1, %v11167_v45  ;;  %v4530_v1 = vsel %vm2643_vm8, %v10738_v48, %v10760_v23 }
 0x6cc   : > { %6038 = vrot.lane.b32.xlu1 %v5982_v32, %s7218_s17  ;;  %5634 = vrot.lane.b32.xlu0 %v5571_v29, %s7216_s11  ;;  %v4586_v29 = vadd.f32 %v4528_v9, %v4306_v18  ;;  %v11329_v32 = vld [vmem:[#allocation3 + $0xf0] sm:$0xff] }
 0x6cd   : > { %v5578_v47 = vmul.f32 %v11329_v32, %v11135_v25 }
 0x6d0   : > { %5636 = vrot.lane.b32.xlu1 %v5572_v58, %s7216_s11  ;;  %5638 = vrot.lane.b32.xlu0 %v5573_v49, %s7216_s11  ;;  %v5579_v58 = vmul.f32 %v11135_v25, %v10508_v8  ;;  %v4307_v49 = vmul.f32 %v11067_v42, %v11167_v45  ;;  %v4529_v8 = vsel %vm2643_vm8, %v10814_v34, %v10738_v48  ;;  %v12726_v48 = vld [vmem:[#allocation59_spill] sm:$0xff] }
 0x6d1   : > { %v4589_v42 = vadd.f32 %v10760_v23, %v4309_v40  ;;  %v5025_v23 = vsel %vm3371_vm10, %v12726_v48, %v10840_v11  ;;  %v12729_v40 = vld [vmem:[#allocation37_spill] sm:$0xff] }
 0x6d4   : > { %5839 = vrot.lane.b32.xlu0 %v5778_v20, %s7217_s16  ;;  %5837 = vrot.lane.b32.xlu1 %v5777_v27, %s7217_s16  ;;  %v4308_v27 = vmul.f32 %v11073_v55, %v11167_v45  ;;  %v4777_v20 = vsel %vm4770_vm12, %v10273_v44, %v10698_v53  ;;  %v5783_v55 = vmul.f32 %v11283_v10, %v11091_v19 }
 0x6d5   : > { %v4835_v25 = vadd.f32 %v4777_v20, %v4586_v29  ;;  %v5784_v44 = vmul.f32 %v11287_v14, %v11091_v19  ;;  %v4587_v45 = vadd.f32 %v4529_v8, %v4307_v49  ;;  %v12730_v29 = vld [vmem:[#allocation30_spill] sm:$0xff]  ;;  %v12734_v20 = vld [vmem:[#allocation13_spill] sm:$0xff] }
 0x6d8   : > { %6040 = vrot.lane.b32.xlu0 %v5983_v31, %s7218_s17  ;;  %5841 = vrot.lane.b32.xlu1 %v5779_v61, %s7217_s16  ;;  %v4588_v61 = vadd.f32 %v4530_v1, %v4308_v27  ;;  %v12724_v31 = vld [vmem:[#allocation15_spill] sm:$0xff] }
 0x6dc   : > { %6044 = vrot.lane.b32.xlu0 %v5985_v60, %s7218_s17  ;;  %6042 = vrot.lane.b32.xlu1 %v5984_v38, %s7218_s17  ;;  %v4302_v38 = vmul.f32 %v11145_v2, %v12724_v31  ;;  %v4305_v60 = vmul.f32 %v11096_v41, %v12724_v31 }
 0x6de   : > { %v4585_v9 = vadd.f32 %v12728_v59, %v4305_v60  ;;  %v12735_v60 = vld [vmem:[#allocation6_spill] sm:$0xff] }
 0x6e0   : > { %5642 = vrot.lane.b32.xlu0 %v5575_v15, %s7216_s11  ;;  %5640 = vrot.lane.b32.xlu1 %v5574_v12, %s7216_s11  ;;  %v12725_v12 = vld [vmem:[#allocation63_spill] sm:$0xff]  ;;  %v4778_v15 = vsel %vm4770_vm12, %v10698_v53, %v10877_v62  ;;  %v4304_v53 = vmul.f32 %v11060_v54, %v12724_v31  ;;  %v12733_v54 = vld [vmem:[#allocation76_spill] sm:$0xff] }
 0x6e1   : > { %v4525_v34 = vsel %vm2643_vm8, %v12725_v12, %v10702_v30  ;;  %v4836_v18 = vadd.f32 %v4778_v15, %v4587_v45  ;;  %v12736_v12 = vld [vmem:[#allocation9_spill] sm:$0xff] }
 0x6e4   : > { %5843 = vrot.lane.b32.xlu0 %v5780_v24, %s7217_s16  ;;  %5644 = vrot.lane.b32.xlu1 %v5576_v26, %s7216_s11  ;;  %v12727_v26 = vld [vmem:[#allocation56_spill] sm:$0xff]  ;;  %v5083_v24 = vadd.f32 %v5025_v23, %v4835_v25  ;;  %v12738_v23 = vld [vmem:[#allocation71_spill] sm:$0xff] }
 0x6e5   : > { %v4779_v41 = vsel %vm4770_vm12, %v10877_v62, %v12727_v26  ;;  %v4582_v62 = vadd.f32 %v4525_v34, %v4302_v38  ;;  %v5022_v34 = vsel %vm3371_vm10, %v12736_v12, %v12735_v60  ;;  %v12745_v12 = vld [vmem:[#allocation35_spill] sm:$0xff] }
 0x6e6   : > { %v5291_v1 = vadd.f32 %v12734_v20, %v5083_v24 }
 0x6e8   : > { %5847 = vrot.lane.b32.xlu0 %v5782_v5, %s7217_s16  ;;  %5845 = vrot.lane.b32.xlu1 %v5781_v63, %s7217_s16  ;;  %v4838_v63 = vadd.f32 %v12727_v26, %v4589_v42  ;;  %v5989_v5 = vmul.f32 %v11250_v36, %v11161_v22  ;;  %v5990_v42 = vmul.f32 %v11257_v13, %v11161_v22  ;;  %v12739_v26 = vld [vmem:[#allocation53_spill] sm:$0xff] }
 0x6ec   : > { %6048 = vrot.lane.b32.xlu0 %v5987_v3, %s7218_s17  ;;  %6046 = vrot.lane.b32.xlu1 %v5986_v43, %s7218_s17  ;;  %v11376_v43 = vld [vmem:[#allocation3 + $0xd8] sm:$0xff] }
 0x6ed   : > { %v5785_v3 = vmul.f32 %v11376_v43, %v11091_v19  ;;  %v12732_v19 = vld [vmem:[#allocation81_spill] sm:$0xff] }
 0x6ee   : > { %v5027_v27 = vsel %vm3371_vm10, %v12733_v54, %v12732_v19  ;;  %v5086_v8 = vadd.f32 %v12732_v19, %v4838_v63 }
 0x6f0   : > { %6050 = vrot.lane.b32.xlu1 %v5988_v7, %s7218_s17  ;;  %5646 = vrot.lane.b32.xlu0 %v5577_v39, %s7216_s11  ;;  %v4837_v7 = vadd.f32 %v4779_v41, %v4588_v61  ;;  %v4303_v39 = vmul.f32 %v11057_v6, %v12724_v31  ;;  %v5026_v6 = vsel %vm3371_vm10, %v10840_v11, %v12733_v54  ;;  %v12740_v41 = vld [vmem:[#allocation32_spill] sm:$0xff] }
 0x6f1   : > { %v5240_v24 = vsel %vm3735_vm11, %v12740_v41, %v12739_v26  ;;  %v5239_v63 = vsel %vm3735_vm11, %v12734_v20, %v12740_v41 }
 0x6f2   : > { %v5085_v45 = vadd.f32 %v5027_v27, %v4837_v7  ;;  %v12742_v7 = vld [vmem:[#allocation129_spill] sm:$0xff] }
 0x6f4   : > { %5648 = vrot.lane.b32.xlu1 %v5578_v47, %s7216_s11  ;;  %5650 = vrot.lane.b32.xlu0 %v5579_v58, %s7216_s11  ;;  %v4774_v47 = vsel %vm4770_vm12, %v12730_v29, %v12729_v40  ;;  %v12731_v58 = vld [vmem:[#allocation34_spill] sm:$0xff] }
 0x6f5   : > { %v4526_v49 = vsel %vm2643_vm8, %v10702_v30, %v12731_v58  ;;  %v5991_v30 = vmul.f32 %v11301_v33, %v11161_v22  ;;  %v4527_v61 = vsel %vm2643_vm8, %v12731_v58, %v12728_v59  ;;  %v4831_v31 = vadd.f32 %v4774_v47, %v4582_v62  ;;  %v12737_v22 = vld [vmem:[#allocation79_spill] sm:$0xff] }
 0x6f6   : > { %v4583_v11 = vadd.f32 %v4526_v49, %v4303_v39  ;;  %v4775_v48 = vsel %vm4770_vm12, %v12729_v40, %v12737_v22  ;;  %v4776_v15 = vsel %vm4770_vm12, %v12737_v22, %v12738_v23  ;;  %v5786_v39 = vmul.f32 %v11319_v16, %v12742_v7 }
 0x6f7   : > { %v5787_v62 = vmul.f32 %v11329_v32, %v12742_v7  ;;  %v5293_v47 = vadd.f32 %v5240_v24, %v5085_v45  ;;  %v4834_v58 = vadd.f32 %v12738_v23, %v4585_v9  ;;  %v4584_v49 = vadd.f32 %v4527_v61, %v4304_v53 }
 0x6f8   : > { %5849 = vrot.lane.b32.xlu1 %v5783_v55, %s7217_s16  ;;  %5851 = vrot.lane.b32.xlu0 %v5784_v44, %s7217_s16  ;;  %v5084_v44 = vadd.f32 %v5026_v6, %v4836_v18  ;;  %v5294_v18 = vadd.f32 %v12739_v26, %v5086_v8  ;;  %v5079_v27 = vadd.f32 %v5022_v34, %v4831_v31 }
 0x6f9   : > { %v4832_v6 = vadd.f32 %v4775_v48, %v4583_v11  ;;  %v4833_v20 = vadd.f32 %v4776_v15, %v4584_v49  ;;  %v5082_v34 = vadd.f32 %v12745_v12, %v4834_v58  ;;  %v12746_v15 = vld [vmem:[#allocation66_spill] sm:$0xff]  ;;  %v5994_v58 = vmul.f32 %v11376_v43, %v11199_v21 }
 0x6fa   : > { %v5292_v29 = vadd.f32 %v5239_v63, %v5084_v44  ;;  %v5024_v26 = vsel %vm3371_vm10, %v12746_v15, %v12745_v12  ;;  %v5023_v63 = vsel %vm3371_vm10, %v12735_v60, %v12746_v15 }
 0x6fc   : > { %5853 = vrot.lane.b32.xlu1 %v5785_v3, %s7217_s16  ;;  %6052 = vrot.lane.b32.xlu0 %v5989_v5, %s7218_s17  ;;  %v12741_v5 = vld [vmem:[#allocation68_spill] sm:$0xff] }
 0x6fd   : > { %v5500_v3 = vadd.f32 %v12741_v5, %v5291_v1  ;;  %v12743_v1 = vld [vmem:[#allocation17_spill] sm:$0xff] }
 0x6fe   : > { %v5613_v25 = vpop.permute.xlu0 %5612  ;;  %v11405_v55 = vpop.permute.xlu1 %5610  ;;  %v5448_v8 = vsel %vm5443_vm13, %v12741_v5, %v12743_v1  ;;  %v12747_v5 = vld [vmem:[#allocation14_spill] sm:$0xff] }
 0x6ff   : > { %v11412_v38 = vsel %vm5652_vm14, %v11405_v55, %v5613_v25  ;;  %v5501_v61 = vadd.f32 %v5448_v8, %v5292_v29  ;;  %v5081_v29 = vadd.f32 %v5024_v26, %v4833_v20 }
 0x700   : > { %6054 = vrot.lane.b32.xlu1 %v5990_v42, %s7218_s17  ;;  %6056 = vrot.lane.b32.xlu0 %v5991_v30, %s7218_s17  ;;  %v12744_v42 = vld [vmem:[#allocation20_spill] sm:$0xff]  ;;  %v5992_v30 = vmul.f32 %v11283_v10, %v11199_v21 }
 0x701   : > { %v5449_v53 = vsel %vm5443_vm13, %v12743_v1, %v12744_v42  ;;  %v5503_v9 = vadd.f32 %v12744_v42, %v5294_v18  ;;  %v12748_v18 = vld [vmem:[#allocation69_spill] sm:$0xff]  ;;  %v12750_v1 = vld [vmem:[#allocation43_spill] sm:$0xff] }
 0x702   : > { %v5617_v59 = vpop.permute.xlu0 %5616  ;;  %v11437_v40 = vpop.permute.xlu1 %5614  ;;  %v5502_v11 = vadd.f32 %v5449_v53, %v5293_v47  ;;  %v5993_v47 = vmul.f32 %v11287_v14, %v11199_v21 }
 0x703   : > { %v11440_v19 = vadd.f32 %v5617_v59, %v5500_v3  ;;  %v11444_v54 = vsel %vm5652_vm14, %v5613_v25, %v11437_v40  ;;  %v11457_v25 = vld [vmem:[#allocation3 + $0xf8] sm:$0xff]  ;;  %v5287_v3 = vadd.f32 %v12747_v5, %v5079_v27 }
 0x704   : > { %5855 = vrot.lane.b32.xlu1 %v5786_v39, %s7217_s16  ;;  %5857 = vrot.lane.b32.xlu0 %v5787_v62, %s7217_s16  ;;  %v5788_v44 = vmul.f32 %v11457_v25, %v12742_v7  ;;  %v5237_v7 = vsel %vm3735_vm11, %v12747_v5, %v12748_v18  ;;  %v12749_v39 = vld [vmem:[#allocation23_spill] sm:$0xff] }
 0x705   : > { %v5238_v62 = vsel %vm3735_vm11, %v12748_v18, %v12749_v39  ;;  %v5290_v27 = vadd.f32 %v12749_v39, %v5082_v34  ;;  %v5496_v8 = vadd.f32 %v12750_v1, %v5287_v3  ;;  %v6221_v3 = vld [vmem:[#allocation4] sm:$0x1]  ;;  %v12754_v18 = vld [vmem:[#allocation75_spill] sm:$0xff] }
 0x706   : > { %v5621_v45 = vpop.permute.xlu0 %5620  ;;  %v5619_v31 = vpop.permute.xlu1 %5618 }
 0x707   : > { %v11462_v22 = vadd.f32 %v5621_v45, %v5503_v9  ;;  %v5657_v48 = vsel %vm5652_vm14, %v5617_v59, %v5619_v31  ;;  %v5658_v23 = vsel %vm5652_vm14, %v5619_v31, %v5621_v45  ;;  %v5080_v59 = vadd.f32 %v5023_v63, %v4832_v6  ;;  %v12752_v45 = vld [vmem:[#allocation77_spill] sm:$0xff] }
 0x708   : > { %v11469_v41 = vadd.f32 %v5657_v48, %v5501_v61  ;;  %v11471_v24 = vadd.f32 %v5658_v23, %v5502_v11  ;;  %5859 = vrot.lane.b32.xlu1 %v5788_v44, %s7217_s16  ;;  %6058 = vrot.lane.b32.xlu0 %v5992_v30, %s7218_s17  ;;  %v5289_v6 = vadd.f32 %v5238_v62, %v5081_v29  ;;  %v12751_v30 = vld [vmem:[#allocation62_spill] sm:$0xff] }
 0x709   : > { %v5288_v9 = vadd.f32 %v5237_v7, %v5080_v59  ;;  %v5705_v21 = vadd.f32 %v11405_v55, %v5496_v8  ;;  %v5499_v44 = vadd.f32 %v12751_v30, %v5290_v27  ;;  %v5447_v61 = vsel %vm5443_vm13, %v12752_v45, %v12751_v30  ;;  %v12753_v11 = vld [vmem:[#allocation130_spill] sm:$0xff] }
 0x70a   : > { %v5816_v49 = vpop.permute.xlu0 %5815  ;;  %v5814_v60 = vpop.permute.xlu1 %5813  ;;  %v5996_v31 = vmul.f32 %v11329_v32, %v12753_v11  ;;  %v5446_v34 = vsel %vm5443_vm13, %v12750_v1, %v12752_v45  ;;  %v5498_v26 = vadd.f32 %v5447_v61, %v5289_v6  ;;  %v4313_v7 = vmul.f32 %v11221_v28, %v12754_v18  ;;  %v12757_v1 = vld [vmem:[#allocation45_spill] sm:$0xff] }
 0x70b   : > { %v5862_v42 = vsel %vm5861_vm15, %v5814_v60, %v5816_v49  ;;  %v11493_v53 = vadd.f32 %v5814_v60, %v11225_v50  ;;  %v5995_v50 = vmul.f32 %v11319_v16, %v12753_v11  ;;  %v5497_v15 = vadd.f32 %v5446_v34, %v5288_v9  ;;  %v12758_v9 = vld [vmem:[#allocation39_spill] sm:$0xff] }
 0x70c   : > { %v11496_v20 = vadd.f32 %v5862_v42, %v11244_v57  ;;  %6060 = vrot.lane.b32.xlu1 %v5993_v47, %s7218_s17  ;;  %6062 = vrot.lane.b32.xlu0 %v5994_v58, %s7218_s17  ;;  %v5708_v5 = vadd.f32 %v11437_v40, %v5499_v44  ;;  %v5997_v39 = vmul.f32 %v11457_v25, %v12753_v11  ;;  %v12755_v40 = vld [vmem:[#allocation28_spill] sm:$0xff]  ;;  %v12759_v44 = vld [vmem:[#allocation47_spill] sm:$0xff] }
 0x70d   : > { %v5707_v62 = vadd.f32 %v11444_v54, %v5498_v26  ;;  %v12756_v54 = vld [vmem:[#allocation78_spill] sm:$0xff]  ;;  %v4312_v30 = vmul.f32 %v11108_v37, %v12754_v18  ;;  %v4533_v45 = vsel %vm2643_vm8, %v12759_v44, %v12755_v40  ;;  %v4314_v61 = vmul.f32 %v11145_v2, %v11192_v51  ;;  %v12760_v11 = vld [vmem:[#allocation7_spill] sm:$0xff] }
 0x70e   : > { %v5820_v57 = vpop.permute.xlu0 %5819  ;;  %v5818_v12 = vpop.permute.xlu1 %5817  ;;  %v4531_v8 = vsel %vm2643_vm8, %v12757_v1, %v12756_v54  ;;  %v12761_v37 = vld [vmem:[#allocation58_spill] sm:$0xff] }
 0x70f   : > { %v11512_v48 = vadd.f32 %v5820_v57, %v5705_v21  ;;  %v5863_v55 = vsel %vm5861_vm15, %v5816_v49, %v5818_v12  ;;  %v11516_v23 = vadd.f32 %v5818_v12, %v11236_v46  ;;  %v5706_v46 = vadd.f32 %v11412_v38, %v5497_v15  ;;  %v12762_v15 = vld [vmem:[#allocation10_spill] sm:$0xff] }
 0x710   : > { %v11519_v63 = vadd.f32 %v5863_v55, %v11246_v52  ;;  %6064 = vrot.lane.b32.xlu1 %v5995_v50, %s7218_s17  ;;  %6066 = vrot.lane.b32.xlu0 %v5996_v31, %s7218_s17  ;;  %v4593_v49 = vadd.f32 %v12755_v40, %v4313_v7  ;;  %v4310_v21 = vmul.f32 %v11145_v2, %v12754_v18  ;;  %v12764_v7 = vld [vmem:[#allocation51_spill] sm:$0xff] }
 0x711   : > { %v4311_v31 = vmul.f32 %v11105_v35, %v12754_v18  ;;  %v4315_v12 = vmul.f32 %v11177_v56, %v11192_v51  ;;  %v4780_v26 = vsel %vm4770_vm12, %v12762_v15, %v12761_v37  ;;  %v4592_v18 = vadd.f32 %v4533_v45, %v4312_v30  ;;  %v12763_v56 = vld [vmem:[#allocation74_spill] sm:$0xff]  ;;  %v12771_v45 = vld [vmem:[#allocation93_spill] sm:$0xff] }
 0x712   : > { %v5824_v59 = vpop.permute.xlu0 %5823  ;;  %v5822_v52 = vpop.permute.xlu1 %5821  ;;  %v4842_v6 = vadd.f32 %v12758_v9, %v4593_v49  ;;  %v4317_v49 = vmul.f32 %v11315_v4, %v11192_v51  ;;  %v4781_v15 = vsel %vm4770_vm12, %v12761_v37, %v12771_v45 }
 0x713   : > { %v11530_v29 = vadd.f32 %v5824_v59, %v5708_v5  ;;  %v5864_v47 = vsel %vm5861_vm15, %v5820_v57, %v5822_v52  ;;  %v5865_v58 = vsel %vm5861_vm15, %v5822_v52, %v5824_v59  ;;  %v4590_v57 = vadd.f32 %v4531_v8, %v4310_v21  ;;  %v12769_v8 = vld [vmem:[#allocation85_spill] sm:$0xff] }
 0x714   : > { %v11535_v60 = vadd.f32 %v5864_v47, %v5706_v46  ;;  %v11537_v28 = vadd.f32 %v5865_v58, %v5707_v62  ;;  %6068 = vrot.lane.b32.xlu1 %v5997_v39, %s7218_s17  ;;  %6224 = vperm.xlu0 %7120, %v6221_v3   ;;  %v11560_v50 = vadd.f32 %v12760_v11, %v4842_v6  ;;  %v12765_v46 = vld [vmem:[#allocation101_spill] sm:$0xff]  ;;  %v12767_v47 = vld [vmem:[#allocation48_spill] sm:$0xff]  ;;  %v12768_v58 = vld [vmem:[#allocation31_spill] sm:$0xff] }
 0x715   : > { %v4532_v5 = vsel %vm2643_vm8, %v12756_v54, %v12759_v44  ;;  %v4783_v39 = vsel %vm4770_vm12, %v12764_v7, %v12763_v56  ;;  %v12766_v62 = vld [vmem:[#allocation41_spill] sm:$0xff]  ;;  %v4316_v52 = vmul.f32 %v11181_v17, %v11192_v51  ;;  %v4535_v40 = vsel %vm2643_vm8, %v12765_v46, %v12768_v58  ;;  %v12770_v6 = vld [vmem:[#allocation50_spill] sm:$0xff] }
 0x716   : > { %v5625_v38 = vpop.permute.xlu0 %5624  ;;  %v11540_v27 = vpop.permute.xlu1 %5622  ;;  %v4534_v59 = vsel %vm2643_vm8, %v12766_v62, %v12765_v46  ;;  %v4591_v54 = vadd.f32 %v4532_v5, %v4311_v31  ;;  %v4839_v1 = vadd.f32 %v4780_v26, %v4590_v57  ;;  %v5028_v21 = vsel %vm3371_vm10, %v12770_v6, %v12769_v8  ;;  %v12773_v26 = vld [vmem:[#allocation70_spill] sm:$0xff]  ;;  %v12775_v62 = vld [vmem:[#allocation73_spill] sm:$0xff] }
 0x717   : > { %v11547_v42 = vsel %vm5652_vm14, %v11540_v27, %v5625_v38  ;;  %v4595_v30 = vadd.f32 %v4535_v40, %v4315_v12  ;;  %v4782_v57 = vsel %vm4770_vm12, %v12771_v45, %v12758_v9  ;;  %v12772_v12 = vld [vmem:[#allocation106_spill] sm:$0xff]  ;;  %v12776_v40 = vld [vmem:[#allocation8_spill] sm:$0xff] }
 0x718   : > { %v12774_v5 = vld [vmem:[#allocation42_spill] sm:$0xff]  ;;  %v4840_v9 = vadd.f32 %v4781_v15, %v4591_v54 }
 0x71a   : > { %v5826_v34 = vpop.permute.xlu0 %5825  ;;  %v11566_v55 = vpop.permute.xlu1 %5626 }
 0x71b   : > { %v11575_v3 = vadd.f32 %v5826_v34, %v11440_v19  ;;  %v11579_v35 = vsel %vm5652_vm14, %v5625_v38, %v11566_v55  ;;  %v4536_v19 = vsel %vm2643_vm8, %v12768_v58, %v12767_v47  ;;  %v4594_v38 = vadd.f32 %v4534_v59, %v4314_v61 }
 0x71c   : > { %v4596_v4 = vadd.f32 %v4536_v19, %v4316_v52  ;;  %v5087_v59 = vadd.f32 %v5028_v21, %v4839_v1  ;;  %v12779_v21 = vld [vmem:[#allocation40_spill] sm:$0xff] }
 0x71d   : > { %v4843_v37 = vadd.f32 %v4783_v39, %v4594_v38  ;;  %v12777_v38 = vld [vmem:[#allocation103_spill] sm:$0xff] }
 0x71e   : > { %v5830_v17 = vpop.permute.xlu0 %5829  ;;  %v5828_v44 = vpop.permute.xlu1 %5827 }
 0x71f   : > { %v11604_v7 = vadd.f32 %v5830_v17, %v11462_v22  ;;  %v5866_v46 = vsel %vm5861_vm15, %v5826_v34, %v5828_v44  ;;  %v5867_v51 = vsel %vm5861_vm15, %v5828_v44, %v5830_v17  ;;  %v4784_v22 = vsel %vm4770_vm12, %v12763_v56, %v12772_v12 }
 0x720   : > { %v11609_v61 = vadd.f32 %v5866_v46, %v11469_v41  ;;  %v11612_v31 = vadd.f32 %v5867_v51, %v11471_v24  ;;  %v4597_v34 = vadd.f32 %v12767_v47, %v4317_v49  ;;  %v5030_v41 = vsel %vm3371_vm10, %v12773_v26, %v12760_v11  ;;  %v12778_v11 = vld [vmem:[#allocation46_spill] sm:$0xff] }
 0x721   : > { %v5033_v24 = vsel %vm3371_vm10, %v12775_v62, %v12774_v5  ;;  %v4844_v52 = vadd.f32 %v4784_v22, %v4595_v30  ;;  %v4785_v56 = vsel %vm4770_vm12, %v12772_v12, %v12776_v40  ;;  %v4841_v49 = vadd.f32 %v4782_v57, %v4592_v18  ;;  %v12780_v30 = vld [vmem:[#allocation21_spill] sm:$0xff]  ;;  %v12781_v18 = vld [vmem:[#allocation19_spill] sm:$0xff] }
 0x722   : > { %v6025_v58 = vpop.permute.xlu0 %6024  ;;  %v6023_v19 = vpop.permute.xlu1 %6022  ;;  %v5031_v6 = vsel %vm3371_vm10, %v12778_v11, %v12777_v38  ;;  %v4845_v17 = vadd.f32 %v4785_v56, %v4596_v4  ;;  %v5244_v54 = vsel %vm3735_vm11, %v12780_v30, %v12779_v21  ;;  %v5032_v44 = vsel %vm3371_vm10, %v12777_v38, %v12775_v62  ;;  %v12786_v11 = vld [vmem:[#allocation102_spill] sm:$0xff] }
 0x723   : > { %v6071_v47 = vsel %vm6070_vm0, %v6023_v19, %v6025_v58  ;;  %v6119_v39 = vadd.f32 %v6023_v19, %v11493_v53  ;;  %v5091_v45 = vadd.f32 %v5031_v6, %v4843_v37  ;;  %v4846_v15 = vadd.f32 %v12776_v40, %v4597_v34  ;;  %v12782_v34 = vld [vmem:[#allocation105_spill] sm:$0xff] }
 0x724   : > { %v6120_v1 = vadd.f32 %v6071_v47, %v11496_v20  ;;  %v5029_v53 = vsel %vm3371_vm10, %v12769_v8, %v12773_v26  ;;  %v5295_v46 = vadd.f32 %v12781_v18, %v5087_v59  ;;  %v5092_v4 = vadd.f32 %v5032_v44, %v4844_v52 }
 0x725   : > { %v5088_v57 = vadd.f32 %v5029_v53, %v4840_v9  ;;  %v5089_v37 = vadd.f32 %v5030_v41, %v4841_v49  ;;  %v5243_v19 = vsel %vm3735_vm11, %v12782_v34, %v12780_v30  ;;  %v5093_v26 = vadd.f32 %v5033_v24, %v4845_v17  ;;  %v12783_v9 = vld [vmem:[#allocation97_spill] sm:$0xff]  ;;  %v12784_v49 = vld [vmem:[#allocation27_spill] sm:$0xff] }
 0x726   : > { %v6029_v51 = vpop.permute.xlu0 %6028  ;;  %v6027_v20 = vpop.permute.xlu1 %6026  ;;  %v6152_v59 = vsel %vm6151_vm1, %v6119_v39, 0.0  ;;  %v5299_v52 = vadd.f32 %v12782_v34, %v5091_v45  ;;  %v5300_v47 = vadd.f32 %v5243_v19, %v5092_v4  ;;  %v12787_v34 = vld [vmem:[#allocation89_spill] sm:$0xff] }
 0x727   : > { %v6123_v12 = vadd.f32 %v6029_v51, %v11512_v48  ;;  %v6072_v22 = vsel %vm6070_vm0, %v6025_v58, %v6027_v20  ;;  %v6122_v62 = vadd.f32 %v6027_v20, %v11516_v23  ;;  %v5094_v48 = vadd.f32 %v12774_v5, %v4846_v15  ;;  %v12785_v5 = vld [vmem:[#allocation122_spill] sm:$0xff] }
 0x728   : > { %v6121_v8 = vadd.f32 %v6072_v22, %v11519_v63  ;;  %v5241_v23 = vsel %vm3735_vm11, %v12781_v18, %v12783_v9  ;;  %v5242_v63 = vsel %vm3735_vm11, %v12783_v9, %v12784_v49  ;;  %v5452_v6 = vsel %vm5443_vm13, %v12786_v11, %v12785_v5 }
 0x729   : > { %v6153_v40 = vsel %vm6151_vm1, %v6123_v12, 0.0  ;;  %v5301_v44 = vadd.f32 %v5244_v54, %v5093_v26  ;;  %v6200_v45 = vsel %vm6199_vm2, %v6122_v62, 0.0  ;;  %v5508_v53 = vadd.f32 %v12786_v11, %v5299_v52 }
 0x72a   : > { %v6154_v41 = vadd.f32 %v6153_v40, %v6152_v59  ;;  %v6033_v58 = vpop.permute.xlu0 %6032  ;;  %v6031_v56 = vpop.permute.xlu1 %6030  ;;  %v5509_v12 = vadd.f32 %v5452_v6, %v5300_v47  ;;  %v5504_v19 = vadd.f32 %v12787_v34, %v5295_v46  ;;  %v5298_v54 = vadd.f32 %v12784_v49, %v11560_v50  ;;  %v12789_v46 = vld [vmem:[#allocation12_spill] sm:$0xff] }
 0x72b   : > { %v6126_v24 = vadd.f32 %v6033_v58, %v11530_v29  ;;  %v6073_v39 = vsel %vm6070_vm0, %v6029_v51, %v6031_v56  ;;  %v6074_v38 = vsel %vm6070_vm0, %v6031_v56, %v6033_v58  ;;  %v5302_v29 = vadd.f32 %v12779_v21, %v5094_v48  ;;  %v12788_v21 = vld [vmem:[#allocation104_spill] sm:$0xff] }
 0x72c   : > { %v6124_v17 = vadd.f32 %v6073_v39, %v11535_v60  ;;  %v6125_v30 = vadd.f32 %v6074_v38, %v11537_v28  ;;  %v5296_v62 = vadd.f32 %v5241_v23, %v5088_v57  ;;  %v5297_v26 = vadd.f32 %v5242_v63, %v5089_v37  ;;  %v12790_v48 = vld [vmem:[#allocation60_spill] sm:$0xff] }
 0x72d   : > { %v6201_v15 = vsel %vm6199_vm2, %v6126_v24, 0.0  ;;  %v5511_v40 = vadd.f32 %v12788_v21, %v5302_v29  ;;  %v5507_v52 = vadd.f32 %v12789_v46, %v5298_v54  ;;  %v5451_v9 = vsel %vm5443_vm13, %v12790_v48, %v12789_v46  ;;  %v12792_v46 = vld [vmem:[#allocation11_spill] sm:$0xff] }
 0x72e   : > { %v6202_v18 = vadd.f32 %v6201_v15, %v6200_v45  ;;  %v6173_v51 = vadd.f32 %v6124_v17, %v6120_v1  ;;  %v6186_v20 = vadd.f32 %v6125_v30, %v6121_v8  ;;  %v5631_v4 = vpop.permute.xlu0 %5630  ;;  %v5629_v22 = vpop.permute.xlu1 %5628  ;;  %v5453_v1 = vsel %vm5443_vm13, %v12785_v5, %v12788_v21 }
 0x72f   : > { %v5661_v60 = vsel %vm5652_vm14, %v5629_v22, %v5631_v4  ;;  %v11678_v28 = vadd.f32 %v5629_v22, %v5508_v53  ;;  %v5713_v8 = vadd.f32 %v11540_v27, %v5504_v19  ;;  %v5510_v50 = vadd.f32 %v5453_v1, %v5301_v44 }
 0x730   : > { %v11682_v59 = vadd.f32 %v5661_v60, %v5509_v12  ;;  %v5450_v37 = vsel %vm5443_vm13, %v12787_v34, %v12790_v48  ;;  %v5506_v49 = vadd.f32 %v5451_v9, %v5297_v26  ;;  %v5716_v24 = vadd.f32 %v11566_v55, %v5507_v52  ;;  %v12793_v52 = vld [vmem:[#allocation54_spill] sm:$0xff] }
 0x731   : > { %v5505_v27 = vadd.f32 %v5450_v37, %v5296_v62 }
 0x732   : > { %v5832_v58 = vpop.permute.xlu0 %5831  ;;  %v5633_v57 = vpop.permute.xlu1 %5632  ;;  %v5715_v38 = vadd.f32 %v11579_v35, %v5506_v49  ;;  %v12795_v49 = vld [vmem:[#allocation83_spill] sm:$0xff] }
 0x733   : > { %v5922_v23 = vadd.f32 %v5832_v58, %v5713_v8  ;;  %v5662_v56 = vsel %vm5652_vm14, %v5631_v4, %v5633_v57  ;;  %v11697_v47 = vadd.f32 %v5633_v57, %v5511_v40  ;;  %v5714_v39 = vadd.f32 %v11547_v42, %v5505_v27 }
 0x734   : > { %v11699_v63 = vadd.f32 %v5662_v56, %v5510_v50 }
 0x736   : > { %v5836_v5 = vpop.permute.xlu0 %5835  ;;  %v5834_v11 = vpop.permute.xlu1 %5833 }
 0x737   : > { %v5925_v6 = vadd.f32 %v5836_v5, %v5716_v24  ;;  %v5868_v17 = vsel %vm5861_vm15, %v5832_v58, %v5834_v11  ;;  %v5869_v30 = vsel %vm5861_vm15, %v5834_v11, %v5836_v5  ;;  %v12794_v58 = vld [vmem:[#allocation49_spill] sm:$0xff] }
 0x738   : > { %v5923_v44 = vadd.f32 %v5868_v17, %v5714_v39  ;;  %v5924_v45 = vadd.f32 %v5869_v30, %v5715_v38  ;;  %v12799_v30 = vld [vmem:[#allocation108_spill] sm:$0xff] }
 0x73a   : > { %v6037_v15 = vpop.permute.xlu0 %6036  ;;  %v6035_v53 = vpop.permute.xlu1 %6034 }
 0x73b   : > { %v6075_v29 = vsel %vm6070_vm0, %v6035_v53, %v6037_v15  ;;  %v6127_v4 = vadd.f32 %v6035_v53, %v11575_v3  ;;  %v12801_v53 = vld [vmem:[#allocation55_spill] sm:$0xff] }
 0x73c   : > { %v6128_v55 = vadd.f32 %v6075_v29, %v11609_v61 }
 0x73d   : > { %v6155_v42 = vsel %vm6151_vm1, %v6127_v4, 0.0  ;;  %v12802_v4 = vld [vmem:[#allocation22_spill] sm:$0xff] }
 0x73e   : > { %v6156_v35 = vadd.f32 %v6155_v42, %v6154_v41  ;;  %v6174_v12 = vadd.f32 %v6173_v51, %v6128_v55  ;;  %v11710_v22 = vpop.permute.xlu0 %5634  ;;  %v6039_v34 = vpop.permute.xlu1 %6038  ;;  %v12803_v42 = vld [vmem:[#allocation82_spill] sm:$0xff] }
 0x73f   : > { %v6076_v19 = vsel %vm6070_vm0, %v6037_v15, %v6039_v34  ;;  %v6130_v60 = vadd.f32 %v6039_v34, %v11604_v7  ;;  %v4321_v7 = vmul.f32 %v11301_v33, %v12792_v46  ;;  %v12800_v15 = vld [vmem:[#allocation25_spill] sm:$0xff] }
 0x740   : > { %v6129_v54 = vadd.f32 %v6076_v19, %v11612_v31 }
 0x741   : > { %v6203_v62 = vsel %vm6199_vm2, %v6130_v60, 0.0  ;;  %v4601_v50 = vadd.f32 %v12794_v58, %v4321_v7  ;;  %v4320_v60 = vmul.f32 %v11257_v13, %v12792_v46  ;;  %v12807_v7 = vld [vmem:[#allocation16_spill] sm:$0xff] }
 0x742   : > { %v6187_v26 = vadd.f32 %v6186_v20, %v6129_v54  ;;  %v6204_v21 = vadd.f32 %v6203_v62, %v6202_v18  ;;  %v11716_v3 = vpop.permute.xlu0 %5638  ;;  %v11718_v61 = vpop.permute.xlu1 %5636  ;;  %v4329_v20 = vmul.f32 %v11457_v25, %v12793_v52  ;;  %v12805_v54 = vld [vmem:[#allocation87_spill] sm:$0xff]  ;;  %v12808_v13 = vld [vmem:[#allocation24_spill] sm:$0xff] }
 0x743   : > { %12791 = vst [vmem:[#allocation67_spill] sm:$0xff] %v11718_v61 }
 0x744   : > { %v4609_v33 = vadd.f32 %v12795_v49, %v4329_v20 }
 0x746   : > { %v11720_v1 = vpop.permute.xlu0 %5839  ;;  %v5838_v41 = vpop.permute.xlu1 %5837  ;;  %v4858_v55 = vadd.f32 %v12802_v4, %v4609_v33  ;;  %v12816_v33 = vld [vmem:[#allocation36_spill] sm:$0xff] }
 0x748   : > { %v5106_v62 = vadd.f32 %v12805_v54, %v4858_v55 }
 0x74a   : > { %v6041_v51 = vpop.permute.xlu0 %6040  ;;  %v11722_v8 = vpop.permute.xlu1 %5841 }
 0x74b   : > { %v6131_v40 = vadd.f32 %v6041_v51, %v5922_v23 }
 0x74d   : > { %v6157_v31 = vsel %vm6151_vm1, %v6131_v40, 0.0  ;;  %v12806_v40 = vld [vmem:[#allocation65_spill] sm:$0xff] }
 0x74e   : > { %v11729_v18 = vadd.f32 %v6157_v31, %v6156_v35  ;;  %v6045_v48 = vpop.permute.xlu0 %6044  ;;  %v6043_v9 = vpop.permute.xlu1 %6042  ;;  %v4539_v35 = vsel %vm2643_vm8, %v12803_v42, %v12794_v58  ;;  %v4786_v31 = vsel %vm4770_vm12, %v12807_v7, %v12806_v40 }
 0x74f   : > { %v6134_v57 = vadd.f32 %v6045_v48, %v5925_v6  ;;  %v6077_v37 = vsel %vm6070_vm0, %v6041_v51, %v6043_v9  ;;  %v6078_v56 = vsel %vm6070_vm0, %v6043_v9, %v6045_v48  ;;  %v12798_v6 = vld [vmem:[#allocation26_spill] sm:$0xff]  ;;  %v4326_v51 = vmul.f32 %v11145_v2, %v12793_v52 }
 0x750   : > { %v6132_v23 = vadd.f32 %v6077_v37, %v5923_v44  ;;  %v6133_v27 = vadd.f32 %v6078_v56, %v5924_v45  ;;  %v4850_v17 = vadd.f32 %v12798_v6, %v4601_v50  ;;  %v4537_v44 = vsel %vm2643_vm8, %v12800_v15, %v12799_v30  ;;  %v12814_v56 = vld [vmem:[#allocation44_spill] sm:$0xff] }
 0x751   : > { %v6205_v24 = vsel %vm6199_vm2, %v6134_v57, 0.0  ;;  %v4318_v45 = vmul.f32 %v11145_v2, %v12792_v46  ;;  %v4600_v20 = vadd.f32 %v4539_v35, %v4320_v60  ;;  %v11773_v48 = vmul.f32 %v11319_v16, %v12793_v52  ;;  %v12824_v35 = vld [vmem:[#allocation90_spill] sm:$0xff]  ;;  %v12825_v60 = vld [vmem:[#allocation111_spill] sm:$0xff] }
 0x752   : > { %v11736_v39 = vadd.f32 %v6205_v24, %v6204_v21  ;;  %v6175_v25 = vadd.f32 %v6174_v12, %v6132_v23  ;;  %v11738_v38 = vadd.f32 %v6187_v26, %v6133_v27  ;;  %v11740_v5 = vpop.permute.xlu0 %5642  ;;  %v11742_v11 = vpop.permute.xlu1 %5640  ;;  %v5098_v29 = vadd.f32 %v12801_v53, %v4850_v17  ;;  %v12815_v27 = vld [vmem:[#allocation110_spill] sm:$0xff] }
 0x753   : > { %12796 = vst [vmem:[#allocation57_spill] sm:$0xff] %v11740_v5  ;;  %12797 = vst [vmem:[#allocation15_spill] sm:$0xff] %v11742_v11  ;;  %v4598_v12 = vadd.f32 %v4537_v44, %v4318_v45  ;;  %v4328_v26 = vmul.f32 %v11329_v32, %v12793_v52  ;;  %v4319_v21 = vmul.f32 %v11250_v36, %v12792_v46  ;;  %v12809_v32 = vld [vmem:[#allocation84_spill] sm:$0xff]  ;;  %v12810_v36 = vld [vmem:[#allocation98_spill] sm:$0xff] }
 0x754   : > { %v11776_v9 = vadd.f32 %v12808_v13, %v5098_v29  ;;  %v5036_v58 = vsel %vm3371_vm10, %v12809_v32, %v12801_v53  ;;  %v4545_v46 = vsel %vm2643_vm8, %v12810_v36, %v12795_v49  ;;  %v4538_v50 = vsel %vm2643_vm8, %v12799_v30, %v12803_v42  ;;  %v12813_v52 = vld [vmem:[#allocation86_spill] sm:$0xff]  ;;  %v12819_v30 = vld [vmem:[#allocation91_spill] sm:$0xff]  ;;  %v12820_v44 = vld [vmem:[#allocation88_spill] sm:$0xff] }
 0x755   : > { %v4847_v57 = vadd.f32 %v4786_v31, %v4598_v12  ;;  %v4789_v23 = vsel %vm4770_vm12, %v12814_v56, %v12813_v52  ;;  %v5034_v24 = vsel %vm3371_vm10, %v12816_v33, %v12815_v27  ;;  %v12817_v17 = vld [vmem:[#allocation38_spill] sm:$0xff]  ;;  %v5870_v49 = vsel %vm5861_vm15, %v5838_v41, %v11720_v1  ;;  %v12822_v29 = vld [vmem:[#allocation61_spill] sm:$0xff]  ;;  %v12823_v42 = vld [vmem:[#allocation95_spill] sm:$0xff] }
 0x756   : > { %v11755_v34 = vpop.permute.xlu0 %5843  ;;  %v11757_v19 = vpop.permute.xlu1 %5644  ;;  %v11798_v15 = vadd.f32 %v12817_v17, %v5106_v62  ;;  %v4542_v45 = vsel %vm2643_vm8, %v12820_v44, %v12819_v30  ;;  %v12821_v53 = vld [vmem:[#allocation94_spill] sm:$0xff]  ;;  %v11811_v12 = vsel %vm3371_vm10, %v12824_v35, %v12823_v42  ;;  %v4787_v62 = vsel %vm4770_vm12, %v12806_v40, %v12825_v60  ;;  %v12829_v11 = vld [vmem:[#allocation119_spill] sm:$0xff]  ;;  %v12830_v5 = vld [vmem:[#allocation33_spill] sm:$0xff] }
 0x757   : > { %12804 = vst [vmem:[#allocation63_spill] sm:$0xff] %v11757_v19  ;;  %v4792_v55 = vsel %vm4770_vm12, %v12822_v29, %v12821_v53  ;;  %v11816_v7 = vadd.f32 %v4545_v46, %v4328_v26  ;;  %v4599_v31 = vadd.f32 %v4538_v50, %v4319_v21  ;;  %v4788_v56 = vsel %vm4770_vm12, %v12825_v60, %v12798_v6  ;;  %v12826_v19 = vld [vmem:[#allocation99_spill] sm:$0xff]  ;;  %v12827_v29 = vld [vmem:[#allocation92_spill] sm:$0xff] }
 0x758   : > { %12818 = vst [vmem:[#allocation29_spill] sm:$0xff] %v11798_v15  ;;  %v5926_v33 = vadd.f32 %v5838_v41, %v11678_v28  ;;  %v12828_v15 = vld [vmem:[#allocation100_spill] sm:$0xff]  ;;  %v5095_v40 = vadd.f32 %v5034_v24, %v4847_v57  ;;  %v5927_v26 = vadd.f32 %v5870_v49, %v11682_v59  ;;  %v5871_v28 = vsel %vm5861_vm15, %v11720_v1, %v11722_v8 }
 0x759   : > { %v4848_v50 = vadd.f32 %v4787_v62, %v4599_v31  ;;  %v4849_v60 = vadd.f32 %v4788_v56, %v4600_v20  ;;  %v4543_v61 = vsel %vm2643_vm8, %v12830_v5, %v12829_v11  ;;  %v4323_v59 = vmul.f32 %v11283_v10, %v11210_v0  ;;  %v12831_v56 = vld [vmem:[#allocation115_spill] sm:$0xff] }
 0x75a   : > { %v11787_v37 = vpop.permute.xlu0 %5847  ;;  %v11789_v16 = vpop.permute.xlu1 %5845  ;;  %v4324_v24 = vmul.f32 %v11287_v14, %v11210_v0  ;;  %v5929_v1 = vadd.f32 %v11722_v8, %v11697_v47  ;;  %v4325_v20 = vmul.f32 %v11376_v43, %v11210_v0  ;;  %v5928_v5 = vadd.f32 %v5871_v28, %v11699_v63  ;;  %v12832_v14 = vld [vmem:[#allocation18_spill] sm:$0xff] }
 0x75b   : > { %12811 = vst [vmem:[#allocation59_spill] sm:$0xff] %v11787_v37  ;;  %12812 = vst [vmem:[#allocation56_spill] sm:$0xff] %v11789_v16  ;;  %v11825_v16 = vsel %vm3735_vm11, %v12827_v29, %v12826_v19  ;;  %v11830_v37 = vsel %vm3371_vm10, %v12828_v15, %v12805_v54  ;;  %v4322_v54 = vmul.f32 %v11145_v2, %v11210_v0 }
 0x75c   : > { %v4606_v47 = vadd.f32 %v4543_v61, %v4326_v51  ;;  %v5035_v0 = vsel %vm3371_vm10, %v12815_v27, %v12809_v32  ;;  %v4541_v43 = vsel %vm2643_vm8, %v12831_v56, %v12820_v44  ;;  %v4604_v51 = vadd.f32 %v4542_v45, %v4324_v24 }
 0x75d   : > { %v4603_v28 = vadd.f32 %v4541_v43, %v4323_v59  ;;  %v12837_v59 = vld [vmem:[#allocation121_spill] sm:$0xff] }
 0x75e   : > { %v6049_v21 = vpop.permute.xlu0 %6048  ;;  %v6047_v46 = vpop.permute.xlu1 %6046  ;;  %v4794_v24 = vsel %vm4770_vm12, %v12837_v59, %v12802_v4 }
 0x75f   : > { %v6079_v41 = vsel %vm6070_vm0, %v6047_v46, %v6049_v21  ;;  %v6135_v6 = vadd.f32 %v6047_v46, %v5926_v33  ;;  %v4540_v33 = vsel %vm2643_vm8, %v12832_v14, %v12831_v56  ;;  %v4544_v46 = vsel %vm2643_vm8, %v12829_v11, %v12810_v36  ;;  %v12841_v14 = vld [vmem:[#allocation64_spill] sm:$0xff] }
 0x760   : > { %v6136_v57 = vadd.f32 %v6079_v41, %v5927_v26  ;;  %v4602_v63 = vadd.f32 %v4540_v33, %v4322_v54  ;;  %v12834_v54 = vld [vmem:[#allocation80_spill] sm:$0xff]  ;;  %v4855_v36 = vadd.f32 %v4792_v55, %v4606_v47  ;;  %v12838_v55 = vld [vmem:[#allocation118_spill] sm:$0xff] }
 0x761   : > { %v6159_v49 = vsel %vm6151_vm1, %v6135_v6, 0.0  ;;  %v12833_v6 = vld [vmem:[#allocation113_spill] sm:$0xff]  ;;  %v5303_v45 = vadd.f32 %v12834_v54, %v5095_v40  ;;  %v4790_v40 = vsel %vm4770_vm12, %v12813_v52, %v12838_v55 }
 0x762   : > { %v11853_v62 = vadd.f32 %v6159_v49, %v11729_v18  ;;  %v11855_v2 = vadd.f32 %v6175_v25, %v6136_v57  ;;  %v11857_v31 = vpop.permute.xlu0 %5646  ;;  %v6051_v10 = vpop.permute.xlu1 %6050  ;;  %v5096_v25 = vadd.f32 %v5035_v0, %v4848_v50  ;;  %v5097_v50 = vadd.f32 %v5036_v58, %v4849_v60  ;;  %v12835_v57 = vld [vmem:[#allocation120_spill] sm:$0xff]  ;;  %v12842_v0 = vld [vmem:[#allocation117_spill] sm:$0xff] }
 0x763   : > { %v6080_v8 = vsel %vm6070_vm0, %v6049_v21, %v6051_v10  ;;  %v6138_v26 = vadd.f32 %v6051_v10, %v5929_v1  ;;  %v4605_v21 = vadd.f32 %v12819_v30, %v4325_v20  ;;  %v5245_v11 = vsel %vm3735_vm11, %v12834_v54, %v12833_v6  ;;  %v12836_v30 = vld [vmem:[#allocation52_spill] sm:$0xff] }
 0x764   : > { %v6137_v18 = vadd.f32 %v6080_v8, %v5928_v5  ;;  %v4851_v58 = vadd.f32 %v4789_v23, %v4602_v63  ;;  %v5246_v60 = vsel %vm3735_vm11, %v12833_v6, %v12808_v13  ;;  %v12839_v1 = vld [vmem:[#allocation72_spill] sm:$0xff]  ;;  %v4607_v20 = vadd.f32 %v4544_v46, %v11773_v48  ;;  %v12844_v46 = vld [vmem:[#allocation123_spill] sm:$0xff] }
 0x765   : > { %v6207_v61 = vsel %vm6199_vm2, %v6138_v26, 0.0  ;;  %v4791_v49 = vsel %vm4770_vm12, %v12838_v55, %v12839_v1  ;;  %v4852_v5 = vadd.f32 %v4790_v40, %v4603_v28  ;;  %v4854_v4 = vadd.f32 %v12839_v1, %v4605_v21  ;;  %v12840_v13 = vld [vmem:[#allocation116_spill] sm:$0xff]  ;;  %v12850_v40 = vld [vmem:[#allocation126_spill] sm:$0xff] }
 0x766   : > { %v11875_v41 = vadd.f32 %v11738_v38, %v6137_v18  ;;  %v11878_v32 = vadd.f32 %v6207_v61, %v11736_v39  ;;  %v11880_v27 = vpop.permute.xlu0 %5650  ;;  %v11882_v44 = vpop.permute.xlu1 %5648  ;;  %v5040_v38 = vsel %vm3371_vm10, %v12836_v30, %v12835_v57  ;;  %v4793_v39 = vsel %vm4770_vm12, %v12821_v53, %v12837_v59  ;;  %v12845_v61 = vld [vmem:[#allocation124_spill] sm:$0xff] }
 0x767   : > { %v5304_v53 = vadd.f32 %v5245_v11, %v5096_v25  ;;  %v4853_v10 = vadd.f32 %v4791_v49, %v4604_v51  ;;  %v5037_v33 = vsel %vm3371_vm10, %v12841_v14, %v12840_v13  ;;  %v5103_v52 = vadd.f32 %v5040_v38, %v4855_v36  ;;  %v12843_v25 = vld [vmem:[#allocation107_spill] sm:$0xff]  ;;  %v12846_v51 = vld [vmem:[#allocation125_spill] sm:$0xff]  ;;  %v12847_v21 = vld [vmem:[#allocation96_spill] sm:$0xff] }
 0x768   : > { %v4856_v47 = vadd.f32 %v4793_v39, %v4607_v20  ;;  %v4857_v8 = vadd.f32 %v4794_v24, %v11816_v7  ;;  %v5305_v26 = vadd.f32 %v5246_v60, %v5097_v50  ;;  %v5038_v48 = vsel %vm3371_vm10, %v12840_v13, %v12824_v35  ;;  %v12849_v60 = vld [vmem:[#allocation127_spill] sm:$0xff] }
 0x769   : > { %v5247_v43 = vsel %vm3735_vm11, %v12842_v0, %v12827_v29  ;;  %v5099_v63 = vadd.f32 %v5037_v33, %v4851_v58  ;;  %v5041_v18 = vsel %vm3371_vm10, %v12835_v57, %v12828_v15  ;;  %v5454_v28 = vsel %vm5443_vm13, %v12844_v46, %v12843_v25 }
 0x76a   : > { %v11908_v23 = vpop.permute.xlu0 %5851  ;;  %v11910_v56 = vpop.permute.xlu1 %5849  ;;  %v5455_v7 = vsel %vm5443_vm13, %v12843_v25, %v12845_v61  ;;  %v5249_v35 = vsel %vm3735_vm11, %v12847_v21, %v12846_v51  ;;  %v5250_v29 = vsel %vm3735_vm11, %v12846_v51, %v12817_v17  ;;  %v5100_v50 = vadd.f32 %v5038_v48, %v4852_v5 }
 0x76b   : > { %v5101_v6 = vadd.f32 %v11811_v12, %v4853_v10  ;;  %v5102_v15 = vadd.f32 %v12823_v42, %v4854_v4  ;;  %v5512_v36 = vadd.f32 %v12844_v46, %v5303_v45  ;;  %v5104_v57 = vadd.f32 %v5041_v18, %v4856_v47  ;;  %v12848_v42 = vld [vmem:[#allocation114_spill] sm:$0xff]  ;;  %v12852_v10 = vld [vmem:[#allocation112_spill] sm:$0xff]  ;;  %v12857_v18 = vld [vmem:[#allocation59_spill] sm:$0xff] }
 0x76c   : > { %v5105_v30 = vadd.f32 %v11830_v37, %v4857_v8  ;;  %v5311_v38 = vadd.f32 %v12847_v21, %v5103_v52  ;;  %v5513_v59 = vadd.f32 %v5454_v28, %v5304_v53  ;;  %v5514_v39 = vadd.f32 %v5455_v7, %v5305_v26  ;;  %v12851_v37 = vld [vmem:[#allocation109_spill] sm:$0xff]  ;;  %v12853_v47 = vld [vmem:[#allocation128_spill] sm:$0xff] }
 0x76d   : > { %v5515_v17 = vadd.f32 %v12845_v61, %v11776_v9  ;;  %v5307_v24 = vadd.f32 %v12842_v0, %v5099_v63  ;;  %v5312_v12 = vadd.f32 %v5249_v35, %v5104_v57  ;;  %v5458_v55 = vsel %vm5443_vm13, %v12849_v60, %v12848_v42  ;;  %v12855_v0 = vld [vmem:[#allocation57_spill] sm:$0xff] }
 0x76e   : > { %v6053_v54 = vpop.permute.xlu0 %6052  ;;  %v11939_v11 = vpop.permute.xlu1 %5853  ;;  %v11947_v58 = vadd.f32 %v5250_v29, %v5105_v30  ;;  %v5721_v45 = vadd.f32 %v11710_v22, %v5512_v36  ;;  %v5456_v1 = vsel %vm5443_vm13, %v12851_v37, %v12850_v40  ;;  %v5308_v49 = vadd.f32 %v5247_v43, %v5100_v50  ;;  %v12856_v43 = vld [vmem:[#allocation15_spill] sm:$0xff]  ;;  %v12858_v28 = vld [vmem:[#allocation29_spill] sm:$0xff]  ;;  %v12859_v50 = vld [vmem:[#allocation56_spill] sm:$0xff] }
 0x76f   : > { %v5309_v20 = vadd.f32 %v11825_v16, %v5101_v6  ;;  %v5310_v9 = vadd.f32 %v12826_v19, %v5102_v15  ;;  %v5457_v4 = vsel %vm5443_vm13, %v12850_v40, %v12852_v10  ;;  %v5520_v13 = vadd.f32 %v12849_v60, %v5311_v38  ;;  %v12854_v16 = vld [vmem:[#allocation67_spill] sm:$0xff] }
 0x770   : > { %v5724_v14 = vadd.f32 %v11716_v3, %v5515_v17  ;;  %v5930_v33 = vadd.f32 %v11755_v34, %v5721_v45  ;;  %v5521_v52 = vadd.f32 %v5458_v55, %v5312_v12  ;;  %v5459_v8 = vsel %vm5443_vm13, %v12848_v42, %v12853_v47  ;;  %v12860_v38 = vld [vmem:[#allocation63_spill] sm:$0xff] }
 0x771   : > { %v5663_v19 = vsel %vm5652_vm14, %v11710_v22, %v12854_v16  ;;  %v5516_v26 = vadd.f32 %v12851_v37, %v5307_v24  ;;  %v5664_v48 = vsel %vm5652_vm14, %v12854_v16, %v11716_v3  ;;  %v5665_v63 = vsel %vm5652_vm14, %v12856_v43, %v12855_v0 }
 0x772   : > { %v6057_v53 = vpop.permute.xlu0 %6056  ;;  %v6055_v5 = vpop.permute.xlu1 %6054  ;;  %v5933_v25 = vadd.f32 %v12857_v18, %v5724_v14  ;;  %v6139_v46 = vadd.f32 %v6053_v54, %v5930_v33  ;;  %v5523_v61 = vadd.f32 %v12853_v47, %v12858_v28  ;;  %v5517_v7 = vadd.f32 %v5456_v1, %v5308_v49 }
 0x773   : > { %v5518_v51 = vadd.f32 %v5457_v4, %v5309_v20  ;;  %v5519_v22 = vadd.f32 %v12852_v10, %v5310_v9  ;;  %v5725_v29 = vadd.f32 %v12856_v43, %v5516_v26  ;;  %v5872_v3 = vsel %vm5861_vm15, %v11755_v34, %v12859_v50 }
 0x774   : > { %v5873_v6 = vsel %vm5861_vm15, %v12859_v50, %v12857_v18  ;;  %v6142_v15 = vadd.f32 %v6057_v53, %v5933_v25  ;;  %v5722_v36 = vadd.f32 %v5663_v19, %v5513_v59  ;;  %v5723_v57 = vadd.f32 %v5664_v48, %v5514_v39 }
 0x775   : > { %v5726_v30 = vadd.f32 %v5665_v63, %v5517_v7  ;;  %v5666_v17 = vsel %vm5652_vm14, %v12855_v0, %v12860_v38  ;;  %v5934_v24 = vadd.f32 %v11910_v56, %v5725_v29  ;;  %v6161_v12 = vsel %vm6151_vm1, %v6139_v46, 0.0 }
 0x776   : > { %v5858_v21 = vpop.permute.xlu0 %5857  ;;  %v5856_v35 = vpop.permute.xlu1 %5855  ;;  %v6081_v42 = vsel %vm6070_vm0, %v6053_v54, %v6055_v5  ;;  %v6082_v34 = vsel %vm6070_vm0, %v6055_v5, %v6057_v53  ;;  %v5728_v60 = vadd.f32 %v12860_v38, %v5519_v22  ;;  %v5931_v55 = vadd.f32 %v5872_v3, %v5722_v36 }
 0x777   : > { %v5932_v45 = vadd.f32 %v5873_v6, %v5723_v57  ;;  %v5667_v59 = vsel %vm5652_vm14, %v11857_v31, %v11882_v44  ;;  %v5874_v37 = vsel %vm5861_vm15, %v11910_v56, %v11908_v23  ;;  %v5875_v54 = vsel %vm5861_vm15, %v11908_v23, %v11939_v11 }
 0x778   : > { %v6209_v1 = vsel %vm6199_vm2, %v6142_v15, 0.0  ;;  %v5727_v20 = vadd.f32 %v5666_v17, %v5518_v51  ;;  %v6162_v9 = vadd.f32 %v6161_v12, %v11853_v62  ;;  %v6140_v53 = vadd.f32 %v6081_v42, %v5931_v55 }
 0x779   : > { %v6141_v5 = vadd.f32 %v6082_v34, %v5932_v45  ;;  %v5729_v10 = vadd.f32 %v11857_v31, %v5520_v13  ;;  %v5730_v4 = vadd.f32 %v5667_v59, %v5521_v52  ;;  %v5937_v14 = vadd.f32 %v11939_v11, %v5728_v60 }
 0x77a   : > { %v6059_v39 = vpop.permute.xlu0 %6058  ;;  %v5860_v40 = vpop.permute.xlu1 %5859  ;;  %v5935_v56 = vadd.f32 %v5874_v37, %v5726_v30  ;;  %v5936_v47 = vadd.f32 %v5875_v54, %v5727_v20  ;;  %v6210_v16 = vadd.f32 %v6209_v1, %v11878_v32  ;;  %v5876_v48 = vsel %vm5861_vm15, %v5856_v35, %v5858_v21 }
 0x77b   : > { %v6143_v49 = vadd.f32 %v6059_v39, %v5934_v24  ;;  %v6177_v31 = vadd.f32 %v11855_v2, %v6140_v53  ;;  %v6190_v11 = vadd.f32 %v11875_v41, %v6141_v5  ;;  %v5522_v63 = vadd.f32 %v5459_v8, %v11947_v58 }
 0x77c   : > { %v5668_v32 = vsel %vm5652_vm14, %v11882_v44, %v11880_v27  ;;  %v5938_v18 = vadd.f32 %v5856_v35, %v5729_v10  ;;  %v5939_v46 = vadd.f32 %v5876_v48, %v5730_v4  ;;  %v5732_v2 = vadd.f32 %v11880_v27, %v5523_v61  ;;  %v12861_v4 = vld [vmem:[#allocation5_spill] sm:$0xff] }
 0x77d   : > { %v6163_v33 = vsel %vm6151_vm1, %v6143_v49, 0.0  ;;  %v5877_v41 = vsel %vm5861_vm15, %v5858_v21, %v5860_v40  ;;  %v5731_v8 = vadd.f32 %v5668_v32, %v5522_v63  ;;  %v7219_v49 = vmov 1966171168  }
 0x77e   : > { %v6164_v23 = vadd.f32 %v6163_v33, %v6162_v9  ;;  %v6063_v19 = vpop.permute.xlu0 %6062  ;;  %v6061_v26 = vpop.permute.xlu1 %6060  ;;  %v5941_v6 = vadd.f32 %v5860_v40, %v5732_v2  ;;  %v6242_v20 = vunpack.c.l.s4 %v7219_v49 }
 0x77f   : > { %v6146_v0 = vadd.f32 %v6063_v19, %v5937_v14  ;;  %v6083_v62 = vsel %vm6070_vm0, %v6059_v39, %v6061_v26  ;;  %v6084_v43 = vsel %vm6070_vm0, %v6061_v26, %v6063_v19  ;;  %v5940_v35 = vadd.f32 %v5877_v41, %v5731_v8 }
 0x780   : > { %v6144_v13 = vadd.f32 %v6083_v62, %v5935_v56  ;;  %v6145_v52 = vadd.f32 %v6084_v43, %v5936_v47  ;;  %v12862_v14 = vsub.s32 0, %v12861_v4  ;;  %v6243_v19 = vunpack.c.0.s8 %v6242_v20 }
 0x781   : > { %v6211_v25 = vsel %vm6199_vm2, %v6146_v0, 0.0 }
 0x782   : > { %v6212_v28 = vadd.f32 %v6211_v25, %v6210_v16  ;;  %v6178_v7 = vadd.f32 %v6177_v31, %v6144_v13  ;;  %v6191_v51 = vadd.f32 %v6190_v11, %v6145_v52  ;;  %v6067_v22 = vpop.permute.xlu0 %6066  ;;  %v6065_v29 = vpop.permute.xlu1 %6064  ;;  %v6246_v63 = vsub.s32 %v6243_v19, %v12861_v4 }
 0x783   : > { %v6085_v50 = vsel %vm6070_vm0, %v6065_v29, %v6067_v22  ;;  %v6147_v58 = vadd.f32 %v6065_v29, %v5938_v18 }
 0x784   : > { %v6148_v3 = vadd.f32 %v6085_v50, %v5939_v46 }
 0x785   : > { %v6165_v44 = vsel %vm6151_vm1, %v6147_v58, 0.0 }
 0x786   : > { %v6166_v15 = vadd.f32 %v6165_v44, %v6164_v23  ;;  %v6179_v36 = vadd.f32 %v6178_v7, %v6148_v3  ;;  %v6069_v57 = vpop.permute.xlu1 %6068 }
 0x787   : > { %v6086_v30 = vsel %vm6070_vm0, %v6067_v22, %v6069_v57  ;;  %v6150_v38 = vadd.f32 %v6069_v57, %v5941_v6 }
 0x788   : > { %v6167_v17 = vrot.slane %v6166_v15, 4  ;;  %v6180_v24 = vrot.slane %v6179_v36, 4  ;;  %v6149_v27 = vadd.f32 %v6086_v30, %v5940_v35 }
 0x789   : > { %v6213_v61 = vsel %vm6199_vm2, %v6150_v38, 0.0 }
 0x78a   : > { %v6168_v21 = vadd.f32 %v6167_v17, %v6166_v15  ;;  %v6181_v12 = vadd.f32 %v6180_v24, %v6179_v36  ;;  %v6192_v42 = vadd.f32 %v6191_v51, %v6149_v27  ;;  %v6214_v34 = vadd.f32 %v6213_v61, %v6212_v28 }
 0x78b   : > { %v12863_v51 = vlaneseq }
 0x78c   : > { %v6169_v60 = vrot.slane %v6168_v21, 2  ;;  %v6182_v55 = vrot.slane %v6181_v12, 2  ;;  %v6193_v45 = vrot.slane %v6192_v42, 4  ;;  %v6215_v59 = vrot.slane %v6214_v34, 4 }
 0x78d   : > { %vm6270_vm3 = vcmp.lt.s32.totalorder %v12863_v51, 324 }
 0x78e   : > { %v6170_v39 = vadd.f32 %v6169_v60, %v6168_v21  ;;  %v6183_v40 = vadd.f32 %v6182_v55, %v6181_v12  ;;  %v6194_v37 = vadd.f32 %v6193_v45, %v6192_v42  ;;  %v6216_v54 = vadd.f32 %v6215_v59, %v6214_v34 }
 0x78f   : > { %v6225_v1 = vpop.permute.xlu0 %6224 }
 0x790   : > { %v6171_v9 = vrot.slane %v6170_v39, 1  ;;  %v6184_v53 = vrot.slane %v6183_v40, 1  ;;  %v6195_v5 = vrot.slane %v6194_v37, 2  ;;  %v6217_v10 = vrot.slane %v6216_v54, 2 }
 0x791   : > { %v6230_v33 = vrot.slane %v6225_v1, %v12862_v14 }
 0x792   : > { %v6196_v56 = vadd.f32 %v6195_v5, %v6194_v37  ;;  %v6218_v47 = vadd.f32 %v6217_v10, %v6216_v54  ;;  %v6172_v16 = vadd.f32 %v6171_v9, %v6170_v39  ;;  %v6185_v23 = vadd.f32 %v6184_v53, %v6183_v40 }
 0x794   : > { %v6197_v26 = vrot.slane %v6196_v56, 1  ;;  %v6219_v48 = vrot.slane %v6218_v47, 1  ;;  %v6231_v0 = vadd.f32 %v6230_v33, %v6172_v16  ;;  %v6232_v62 = vadd.f32 %v6230_v33, %v6185_v23 }
 0x796   : > { %v6198_v43 = vadd.f32 %v6197_v26, %v6196_v56  ;;  %v6220_v31 = vadd.f32 %v6219_v48, %v6218_v47  ;;  %v6239_v11 = vcombine.low %v6231_v0, %v6232_v62 }
 0x798   : > { %v6233_v13 = vadd.f32 %v6230_v33, %v6198_v43  ;;  %v6234_v52 = vadd.f32 %v6230_v33, %v6220_v31  ;;  %v6247_v18 = vrot.slane %v6239_v11, %v6246_v63 }
 0x79a   : > { %v6240_v32 = vcombine.low %v6233_v13, %v6234_v52 }
 0x79c   : > { %v6254_v25 = vrot.slane %v6240_v32, %v6246_v63 }
 0x79e   : > { %v6255_v46 = vcombine.low %v6247_v18, %v6254_v25 }
 0x7a0   : > { %v6262_v28 = vrot.slane %v6255_v46, %v6246_v63 }
 0x7a2   : > { %6263 = vrot.lane.b32.xlu1 %v6262_v28, %s7199_s25 }
 0x814   : > { %v6264_v7 = vpop.permute.xlu1 %6263 }
 0x815   : > { %v6265_v22 = vrot.slane %v6264_v7, 1 }
 0x817   : > { %v6266_v29 = vsel %vm1244_vm5, %v6264_v7, %v6265_v22 }
 0x818   : > { %6272 = vst.msk [vmem:[%s305_s21] sm:$0x7] %vm6270_vm3, %v6266_v29 }
 0x819 PF: > { %s20_s29 = sadd.s32 1, %s7194_s29  }
 0x81a   : > { %p17_p4 = scmp.ge.s32.totalorder %s20_s29, 4  }
 0x81c   :  { %19 = sbr.rel (!%p17_p4) target bundleno = 3 (0x3), region = 90 }

</bundles_post_ra>
